<compile_context>
chip_gen: v7x
topology: tpu7x:2x2x1
jax: 0.10.0
libtpu: 0.0.40
codegen_flags: <defaults>
</compile_context>

<pallas_src>
import functools

import jax
import jax.numpy as jnp
from jax import lax
from jax.experimental import pallas as pl
from jax.experimental.pallas import tpu as pltpu

EPS = 1e-8
F32 = jnp.float32


# --------------------------------------------------------------------------
# Shared BiLSTM recurrence (PyTorch gate order i, f, g, o)
# --------------------------------------------------------------------------

def _lstm_gate_update(g, c, H):
    i = jax.nn.sigmoid(g[:, 0 * H:1 * H])
    f = jax.nn.sigmoid(g[:, 1 * H:2 * H])
    gg = jnp.tanh(g[:, 2 * H:3 * H])
    o = jax.nn.sigmoid(g[:, 3 * H:4 * H])
    c_new = f * c + i * gg
    return o * jnp.tanh(c_new), c_new


def _bilstm_steps(pre, whh, S, NB, H, collect_seq):
    """pre: (S*NB, 8H) fused input projections (time-major, gates [fwd i,f,g,o | bwd i,f,g,o]).
       whh: (2H, 8H) block-diagonal recurrent weights.  Returns final (hf, hb) and,
       optionally, the batch-major forward/backward sequences (NB, S, H)."""
    hf = jnp.zeros((NB, H), F32)
    cf = jnp.zeros((NB, H), F32)
    hb = jnp.zeros((NB, H), F32)
    cb = jnp.zeros((NB, H), F32)
    fwd = [None] * S
    bwd = [None] * S
    for t in range(S):                      # statically unrolled (S is small)
        tb = S - 1 - t
        h_both = jnp.concatenate([hf, hb], axis=1)                       # (NB, 2H)
        rec = jnp.dot(h_both, whh, preferred_element_type=F32)           # (NB, 8H)
        gf = pre[t * NB:(t + 1) * NB, :4 * H] + rec[:, :4 * H]
        gb = pre[tb * NB:(tb + 1) * NB, 4 * H:] + rec[:, 4 * H:]
        hf, cf = _lstm_gate_update(gf, cf, H)
        hb, cb = _lstm_gate_update(gb, cb, H)
        if collect_seq:
            fwd[t] = hf
            bwd[tb] = hb
    if collect_seq:
        # single stacked writeback (no per-step masked vst), batch-major already
        fwd_seq = jnp.stack(fwd, axis=1)    # (NB, S, H)
        bwd_seq = jnp.stack(bwd, axis=1)
        return hf, hb, fwd_seq, bwd_seq
    return hf, hb, None, None


def _fuse_bilstm_weights(p):
    H = p["w_hh"].shape[1]
    wih = jnp.concatenate([p["w_ih"].T, p["w_ih_r"].T], axis=1).astype(F32)      # (Din, 8H)
    bias = jnp.concatenate([p["b_ih"] + p["b_hh"], p["b_ih_r"] + p["b_hh_r"]])
    bias = bias.reshape(1, 8 * H).astype(F32)
    z = jnp.zeros((H, 4 * H), F32)
    whh = jnp.concatenate(
        [jnp.concatenate([p["w_hh"].T, z], axis=1),
         jnp.concatenate([z, p["w_hh_r"].T], axis=1)], axis=0).astype(F32)        # (2H, 8H)
    return wih, bias, whh


# --------------------------------------------------------------------------
# Kernel 1: context BiLSTM (one grid step per sentence -> parallel on v7x)
# --------------------------------------------------------------------------

def _context_bilstm_kernel(x_ref, wih_ref, b_ref, whh_ref, ctx_ref, *, S, NB, H):
    x = x_ref[0]                                                   # (S*NB, Din), time-major
    pre = jnp.dot(x, wih_ref[...], preferred_element_type=F32) + b_ref[...]
    _, _, fwd_seq, bwd_seq = _bilstm_steps(pre, whh_ref[...], S, NB, H, True)
    # (NB, S, 2H): same layout as PyTorch's bidirectional output, single store.
    ctx_ref[0] = jnp.concatenate([fwd_seq, bwd_seq], axis=-1)


def context_bilstm(x, lstm_params, S, B):
    """x: (2, S*B, D) -- sentence-a block then sentence-b block, time-major-flattened."""
    D = x.shape[-1]
    H = lstm_params["w_hh"].shape[1]
    wih, bias, whh = _fuse_bilstm_weights(lstm_params)
    return pl.pallas_call(
        functools.partial(_context_bilstm_kernel, S=S, NB=B, H=H),
        out_shape=jax.ShapeDtypeStruct((2, B, S, 2 * H), F32),
        grid=(2,),
        in_specs=[
            pl.BlockSpec((1, S * B, D), lambda i: (i, 0, 0)),
            pl.BlockSpec((D, 8 * H), lambda i: (0, 0)),
            pl.BlockSpec((1, 8 * H), lambda i: (0, 0)),
            pl.BlockSpec((2 * H, 8 * H), lambda i: (0, 0)),
        ],
        out_specs=pl.BlockSpec((1, B, S, 2 * H), lambda i: (i, 0, 0, 0)),
        compiler_params=pltpu.CompilerParams(dimension_semantics=("parallel",)),
    )(x, wih, bias, whh)


# --------------------------------------------------------------------------
# Kernel 2: matching mega-kernel (all strategies, one grid step per batch item)
# --------------------------------------------------------------------------

def _matching_kernel(s1_ref, s2_ref, w2t_f_ref, w2t_b_ref, w2mp_ref, out_ref, *, H, l):
    s1 = s1_ref[0, 0]                        # (S1, 2H)
    s2 = s2_ref[0, 0]                        # (S2, 2H)
    S1 = s1.shape[0]
    S2 = s2.shape[0]
    s1f, s1b = s1[:, :H], s1[:, H:]
    s2f, s2b = s2[:, :H], s2[:, H:]
    w2t_f = w2t_f_ref[...]                   # (H, 3l) : [W_full_f^2 | W_attn_f^2 | W_maxattn_f^2]^T
    w2t_b = w2t_b_ref[...]                   # (H, 3l) : [W_full_b^2 | W_attn_f^2 | W_maxattn_f^2]^T
    w2_mp = w2mp_ref[...]                    # (2l, H) : [W_maxpool_f^2 ; W_maxpool_b^2]

    def inv_norm(v):                         # 1/||v|| per row (rsqrt -> EUP slot)
        return lax.rsqrt(jnp.maximum(jnp.sum(v * v, axis=1, keepdims=True), EPS * EPS))

    def safe_div(x, d):
        # sign-preserving clamp (differs from the raw reference only when |d| < 1e-8)
        d = jnp.where(d >= 0, jnp.maximum(d, EPS), jnp.minimum(d, -EPS))
        return x / d

    inv_s1f = inv_norm(s1f)                  # (S1, 1)
    inv_s1b = inv_norm(s1b)
    inv_s2f = inv_norm(s2f)                  # (S2, 1)
    inv_s2b = inv_norm(s2b)

    # ---- attention cosine matrices: one MXU push for both directions -------------
    v1c = jnp.concatenate([s1f, s1b], axis=0)                     # (2*S1, H)
    v2c = jnp.concatenate([s2f, s2b], axis=0)                     # (2*S2, H)
    dots = lax.dot_general(v1c, v2c, (((1,), (1,)), ((), ())),
                           preferred_element_type=F32)            # (2S1, 2S2)
    cos_f = dots[:S1, :S2] * (inv_s1f * inv_s2f.T)
    cos_b = dots[S1:, S2:] * (inv_s1b * inv_s2b.T)

    # ---- attentive mean vectors (two stacked matmuls instead of four) ------------
    # quirk (reproduced): backward means are built from the *forward* states.
    cos_cat = jnp.concatenate([cos_f, cos_b], axis=0)             # (2S1, S2)
    cos_cat_t = jnp.concatenate([cos_f.T, cos_b.T], axis=0)       # (2S2, S1)
    means_s1 = jnp.dot(cos_cat, s2f, preferred_element_type=F32)  # (2S1, H)
    means_s2 = jnp.dot(cos_cat_t, s1f, preferred_element_type=F32)  # (2S2, H)
    rowsum_f = jnp.sum(cos_f, axis=1, keepdims=True)              # (S1, 1)
    rowsum_b = jnp.sum(cos_b, axis=1, keepdims=True)
    colsum_f = jnp.sum(cos_f, axis=0, keepdims=True).T            # (S2, 1)
    colsum_b = jnp.sum(cos_b, axis=0, keepdims=True).T
    mean_s1_f = safe_div(means_s1[:S1], rowsum_f)
    mean_s1_b = safe_div(means_s1[S1:], rowsum_b)
    mean_s2_f = safe_div(means_s2[:S2], colsum_f)
    mean_s2_b = safe_div(means_s2[S2:], colsum_b)

    # ---- max-attentive vectors (rank-3 broadcasts stay in vregs) -----------------
    # TODO(synk): at production S/H, tile the S2 axis here (and in pairwise below) to
    # respect v7x's 64 MiB VMEM; at these toy shapes the temporaries are a few KiB.
    max_s2_f = jnp.max(s1f[:, None, :] * cos_f[:, :, None], axis=0)   # (S2, H)
    max_s2_b = jnp.max(s1f[:, None, :] * cos_b[:, :, None], axis=0)
    max_s1_f = jnp.max(s2f[None, :, :] * cos_f[:, :, None], axis=1)   # (S1, H)
    max_s1_b = jnp.max(s2f[None, :, :] * cos_b[:, :, None], axis=1)

    # ---- pairwise maxpool matching: one MXU push for both directions -------------
    # quirk (reproduced): the reference passes s2_backward to BOTH pairwise calls.
    prod_f = (s1f[:, None, :] * w2_mp[None, :l, :]).reshape(S1 * l, H)
    prod_b = (s1b[:, None, :] * w2_mp[None, l:, :]).reshape(S1 * l, H)
    prod = jnp.concatenate([prod_f, prod_b], axis=0)              # (2*S1*l, H)
    dmp = lax.dot_general(prod, s2b, (((1,), (1,)), ((), ())),
                          preferred_element_type=F32)             # (2*S1*l, S2)
    scale2 = inv_s2b.T[None]                                      # (1, 1, S2)
    cmp_f = dmp[:S1 * l].reshape(S1, l, S2) * (inv_s1f[:, :, None] * scale2)
    cmp_b = dmp[S1 * l:].reshape(S1, l, S2) * (inv_s1b[:, :, None] * scale2)
    mp_s1_f = jnp.max(cmp_f, axis=2)                              # (S1, l)
    mp_s1_b = jnp.max(cmp_b, axis=2)
    mp_s2_f = jnp.max(cmp_f, axis=0).T                            # (S2, l)
    mp_s2_b = jnp.max(cmp_b, axis=0).T

    # ---- "full"-style matches: one stacked MXU push per state group (4 total) ----
    def group_matches(v1, v2_full, v2_attn, v2_ma, w2t):
        S = v1.shape[0]
        rows = jnp.concatenate([
            v1 * v2_full,                  # (S, H)  anchor broadcast
            v1 * v2_attn,
            v1 * v2_ma,
            v1 * v1,                       # v1 norms under all three weights
            v2_attn * v2_attn,
            v2_ma * v2_ma,
            v2_full * v2_full,             # (1, H)
        ], axis=0)                                                # (6S+1, H)
        R = jnp.dot(rows, w2t, preferred_element_type=F32)        # (6S+1, 3l)
        d_full = R[0:S, 0:l]
        d_attn = R[S:2 * S, l:2 * l]
        d_ma = R[2 * S:3 * S, 2 * l:3 * l]
        n1sq = R[3 * S:4 * S, :]
        n2sq_attn = R[4 * S:5 * S, l:2 * l]
        n2sq_ma = R[5 * S:6 * S, 2 * l:3 * l]
        n2sq_full = R[6 * S:6 * S + 1, 0:l]

        def cos(d, a, b):   # torch.cosine_similarity: d * rsqrt(clamp(a*b, eps^2))
            return d * lax.rsqrt(jnp.maximum(a * b, EPS * EPS))

        return (cos(d_full, n1sq[:, 0:l], n2sq_full),
                cos(d_attn, n1sq[:, l:2 * l], n2sq_attn),
                cos(d_ma, n1sq[:, 2 * l:3 * l], n2sq_ma))

    full_s1_f, attn_s1_f, maxattn_s1_f = group_matches(
        s1f, s2f[S2 - 1:S2], mean_s1_f, max_s1_f, w2t_f)
    full_s1_b, attn_s1_b, maxattn_s1_b = group_matches(
        s1b, s2b[0:1], mean_s1_b, max_s1_b, w2t_b)
    full_s2_f, attn_s2_f, maxattn_s2_f = group_matches(
        s2f, s1f[S1 - 1:S1], mean_s2_f, max_s2_f, w2t_f)
    full_s2_b, attn_s2_b, maxattn_s2_b = group_matches(
        s2b, s1b[0:1], mean_s2_b, max_s2_b, w2t_b)

    # ---- combined match vectors (torch.cat order), single store per grid step ----
    s1_comb = jnp.concatenate([full_s1_f, mp_s1_f, attn_s1_f, maxattn_s1_f,
                               full_s1_b, mp_s1_b, attn_s1_b, maxattn_s1_b], axis=1)
    s2_comb = jnp.concatenate([full_s2_f, mp_s2_f, attn_s2_f, maxattn_s2_f,
                               full_s2_b, mp_s2_b, attn_s2_b, maxattn_s2_b], axis=1)
    # (S, 1, 2, 8l): time-major, sentence-interleaved -> feeds the aggregation LSTM
    # with a free row-major reshape (no XLA transpose / concat between launches).
    out_ref[...] = jnp.stack([s1_comb, s2_comb], axis=1)[:, None, :, :]


def matching_stage(ctx, params, B, S, H, l):
    sq = lambda w: jnp.square(w).astype(F32)
    w2t_f = jnp.concatenate([sq(params["m_full_forward_W"]).T,
                             sq(params["m_attn_forward_W"]).T,
                             sq(params["m_maxattn_forward_W"]).T], axis=1)      # (H, 3l)
    w2t_b = jnp.concatenate([sq(params["m_full_backward_W"]).T,
                             sq(params["m_attn_forward_W"]).T,
                             sq(params["m_maxattn_forward_W"]).T], axis=1)      # (H, 3l)
    w2_mp = jnp.concatenate([sq(params["m_maxpool_forward_W"]),
                             sq(params["m_maxpool_backward_W"])], axis=0)       # (2l, H)

    s1_spec = pl.BlockSpec((1, 1, S, 2 * H), lambda b: (0, b, 0, 0))
    s2_spec = pl.BlockSpec((1, 1, S, 2 * H), lambda b: (1, b, 0, 0))
    return pl.pallas_call(
        functools.partial(_matching_kernel, H=H, l=l),
        out_shape=jax.ShapeDtypeStruct((S, B, 2, 8 * l), F32),
        grid=(B,),
        in_specs=[s1_spec, s2_spec,
                  pl.BlockSpec((H, 3 * l), lambda b: (0, 0)),
                  pl.BlockSpec((H, 3 * l), lambda b: (0, 0)),
                  pl.BlockSpec((2 * l, H), lambda b: (0, 0))],
        out_specs=pl.BlockSpec((S, 1, 2, 8 * l), lambda b: (0, b, 0, 0)),
        compiler_params=pltpu.CompilerParams(dimension_semantics=("parallel",)),
    )(ctx, ctx, w2t_f, w2t_b, w2_mp)


# --------------------------------------------------------------------------
# Kernel 3: aggregation BiLSTM fused with the prediction head
# --------------------------------------------------------------------------

def _agg_predict_kernel(x_ref, wih_ref, b_ref, whh_ref,
                        w1_ref, b1_ref, w2_ref, b2_ref, o_ref, *, S, NB, H, B):
    pre = jnp.dot(x_ref[...], wih_ref[...], preferred_element_type=F32) + b_ref[...]
    hf, hb, _, _ = _bilstm_steps(pre, whh_ref[...], S, NB, H, False)
    h_last = jnp.concatenate([hf, hb], axis=1)        # (2B, 2H), interleaved [s1_0, s2_0, ...]
    # matching_vector rows: [s1_i hidden | s2_i hidden]  (== torch .view(-1, 4H))
    rows = [jnp.concatenate([h_last[2 * i:2 * i + 1, :], h_last[2 * i + 1:2 * i + 2, :]],
                            axis=1) for i in range(B)]
    mv = jnp.concatenate(rows, axis=0)                 # (B, 4H)
    h1 = jnp.tanh(jnp.dot(mv, w1_ref[...], preferred_element_type=F32) + b1_ref[...])
    logits = jnp.dot(h1, w2_ref[...], preferred_element_type=F32) + b2_ref[...]
    m = jnp.max(logits, axis=1, keepdims=True)
    lse = m + jnp.log(jnp.sum(jnp.exp(logits - m), axis=1, keepdims=True))
    o_ref[...] = logits - lse


def aggregate_and_predict(x_flat, lstm_params, w1t, b1, w2t, b2, *, S, B):
    NB = 2 * B
    Din = x_flat.shape[1]
    H = lstm_params["w_hh"].shape[1]
    C = w2t.shape[1]
    wih, bias, whh = _fuse_bilstm_weights(lstm_params)
    return pl.pallas_call(
        functools.partial(_agg_predict_kernel, S=S, NB=NB, H=H, B=B),
        out_shape=jax.ShapeDtypeStruct((B, C), F32),
        grid=(1,),
        in_specs=[
            pl.BlockSpec((S * NB, Din), lambda i: (0, 0)),
            pl.BlockSpec((Din, 8 * H), lambda i: (0, 0)),
            pl.BlockSpec((1, 8 * H), lambda i: (0, 0)),
            pl.BlockSpec((2 * H, 8 * H), lambda i: (0, 0)),
            pl.BlockSpec((4 * H, 2 * H), lambda i: (0, 0)),
            pl.BlockSpec((1, 2 * H), lambda i: (0, 0)),
            pl.BlockSpec((2 * H, C), lambda i: (0, 0)),
            pl.BlockSpec((1, C), lambda i: (0, 0)),
        ],
        out_specs=pl.BlockSpec((B, C), lambda i: (0, 0)),
    )(x_flat.astype(F32), wih, bias, whh,
      w1t.astype(F32), b1.reshape(1, -1).astype(F32),
      w2t.astype(F32), b2.reshape(1, -1).astype(F32))


# --------------------------------------------------------------------------
# BiMPM forward
# --------------------------------------------------------------------------

def bimpm_forward(params, sent_a_ids, sent_b_ids):
    B, S = sent_a_ids.shape
    assert sent_b_ids.shape == (B, S)  # TODO(synk): unequal sentence lengths would need separate match outputs
    emb = params["embedding"]
    D = emb.shape[1]
    H = params["ctx_lstm"]["w_hh"].shape[1]
    l = params["m_full_forward_W"].shape[0]

    # TODO(synk): embedding gather left to XLA; gathered directly in time-major layout
    # so no transpose / concat is needed between the gather and the first kernel.
    ids_tm = jnp.stack([sent_a_ids.T, sent_b_ids.T], axis=0)          # (2, S, B)
    x = emb[ids_tm].astype(F32).reshape(2, S * B, D)                  # free row-major reshape

    # ---- context representation layer (both sentences, one launch, 2 parallel grid steps)
    ctx = context_bilstm(x, params["ctx_lstm"], S, B)                  # (2, B, S, 2H)

    # ---- all four matching strategies fused into one kernel
    match_out = matching_stage(ctx, params, B, S, H, l)                # (S, B, 2, 8l)
    match_flat = match_out.reshape(S * 2 * B, 8 * l)                   # free reshape, time-major

    # ---- aggregation BiLSTM + prediction head fused into one kernel
    return aggregate_and_predict(
        match_flat, params["agg_lstm"],
        params["pred_w1t"], params["pred_b1"],
        params["pred_w2t"], params["pred_b2"],
        S=S, B=B)


# --------------------------------------------------------------------------
# Deterministic parameter init (PyTorch-style shapes / gate layout)
# --------------------------------------------------------------------------

def _uniform(key, shape, lo, hi):
    return jax.random.uniform(key, shape, F32, lo, hi)


def init_lstm(key, input_size, hidden):
    k = 1.0 / jnp.sqrt(hidden)
    keys = jax.random.split(key, 8)
    return {
        "w_ih": _uniform(keys[0], (4 * hidden, input_size), -k, k),
        "w_hh": _uniform(keys[1], (4 * hidden, hidden), -k, k),
        "b_ih": _uniform(keys[2], (4 * hidden,), -k, k),
        "b_hh": _uniform(keys[3], (4 * hidden,), -k, k),
        "w_ih_r": _uniform(keys[4], (4 * hidden, input_size), -k, k),
        "w_hh_r": _uniform(keys[5], (4 * hidden, hidden), -k, k),
        "b_ih_r": _uniform(keys[6], (4 * hidden,), -k, k),
        "b_hh_r": _uniform(keys[7], (4 * hidden,), -k, k),
    }


def init_params(key, vocab, d, hidden, l, n_classes):
    keys = jax.random.split(key, 16)
    k1 = 1.0 / jnp.sqrt(4.0 * hidden)
    k2 = 1.0 / jnp.sqrt(2.0 * hidden)
    return {
        "embedding": jax.random.normal(keys[0], (vocab, d), F32),
        "ctx_lstm": init_lstm(keys[1], d, hidden),
        "agg_lstm": init_lstm(keys[2], 8 * l, hidden),
        "m_full_forward_W": _uniform(keys[3], (l, hidden), 0.0, 1.0),
        "m_full_backward_W": _uniform(keys[4], (l, hidden), 0.0, 1.0),
        "m_maxpool_forward_W": _uniform(keys[5], (l, hidden), 0.0, 1.0),
        "m_maxpool_backward_W": _uniform(keys[6], (l, hidden), 0.0, 1.0),
        "m_attn_forward_W": _uniform(keys[7], (l, hidden), 0.0, 1.0),
        "m_attn_backward_W": _uniform(keys[8], (l, hidden), 0.0, 1.0),      # unused (matches reference)
        "m_maxattn_forward_W": _uniform(keys[9], (l, hidden), 0.0, 1.0),
        "m_maxattn_backward_W": _uniform(keys[10], (l, hidden), 0.0, 1.0),  # unused (matches reference)
        "pred_w1t": _uniform(keys[11], (4 * hidden, 2 * hidden), -k1, k1),
        "pred_b1": _uniform(keys[12], (2 * hidden,), -k1, k1),
        "pred_w2t": _uniform(keys[13], (2 * hidden, n_classes), -k2, k2),
        "pred_b2": _uniform(keys[14], (n_classes,), -k2, k2),
    }


# --------------------------------------------------------------------------
# main
# --------------------------------------------------------------------------

if __name__ == "__main__":
    B, S, V = 2, 8, 50
    D, H, L, C = 32, 32, 8, 2

    key = jax.random.PRNGKey(0)
    kp, ka, kb = jax.random.split(key, 3)
    params = init_params(kp, V, D, H, L, C)
    sent_a = jax.random.randint(ka, (B, S), 0, V, dtype=jnp.int32)
    sent_b = jax.random.randint(kb, (B, S), 0, V, dtype=jnp.int32)

    fwd = jax.jit(bimpm_forward)
    out = fwd(params, sent_a, sent_b)
    out = jax.block_until_ready(out)

    assert out.shape == (B, C), out.shape
    assert bool(jnp.all(jnp.isfinite(out)))
    # log-softmax rows should sum to ~1 in prob space
    assert bool(jnp.allclose(jnp.sum(jnp.exp(out), axis=1), 1.0, atol=1e-4))
    print("KERNEL_OK")
</pallas_src>

<mosaic_0001>
module attributes {stable_mosaic.version = 11 : i64} {
  func.func @_context_bilstm_kernel(%arg0: i32, %arg1: memref<1x16x32xf32, #tpu.memory_space<vmem>>, %arg2: memref<32x256xf32, #tpu.memory_space<vmem>>, %arg3: memref<1x256xf32, #tpu.memory_space<vmem>>, %arg4: memref<64x256xf32, #tpu.memory_space<vmem>>, %arg5: memref<1x2x8x64xf32, #tpu.memory_space<vmem>>) attributes {dimension_semantics = [#tpu.dimension_semantics<parallel>], iteration_bounds = array<i64: 2>, scalar_prefetch = 0 : i64, scratch_operands = 0 : i64, tpu.core_type = #tpu.core_type<tc>, window_params = [{transform_indices = @transform_0, window_bounds = array<i64: 1, 16, 32>}, {pipeline_mode = #tpu.pipeline_mode<synchronous>, transform_indices = @transform_1, window_bounds = array<i64: 32, 256>}, {pipeline_mode = #tpu.pipeline_mode<synchronous>, transform_indices = @transform_2, window_bounds = array<i64: 1, 256>}, {pipeline_mode = #tpu.pipeline_mode<synchronous>, transform_indices = @transform_3, window_bounds = array<i64: 64, 256>}, {transform_indices = @transform_4, window_bounds = array<i64: 1, 2, 8, 64>}]} {
    %c0 = arith.constant 0 : index
    %c0_0 = arith.constant 0 : index
    %c0_1 = arith.constant 0 : index
    %0 = vector.load %arg1[%c0, %c0_0, %c0_1] : memref<1x16x32xf32, #tpu.memory_space<vmem>>, vector<1x16x32xf32>
    %1 = vector.shape_cast %0 : vector<1x16x32xf32> to vector<16x32xf32>
    %c0_2 = arith.constant 0 : index
    %c0_3 = arith.constant 0 : index
    %2 = vector.load %arg2[%c0_2, %c0_3] : memref<32x256xf32, #tpu.memory_space<vmem>>, vector<32x256xf32>
    %cst = arith.constant dense<0.000000e+00> : vector<16x256xf32>
    %3 = tpu.matmul %1, %2, %cst {dimension_numbers = #tpu.dot_dimension_numbers<[1], [0], [0], [1], [0, 0, 1, 1], [], []>} : vector<16x32xf32>, vector<32x256xf32>, vector<16x256xf32> -> vector<16x256xf32>
    %c0_4 = arith.constant 0 : index
    %c0_5 = arith.constant 0 : index
    %4 = vector.load %arg3[%c0_4, %c0_5] : memref<1x256xf32, #tpu.memory_space<vmem>>, vector<1x256xf32>
    %5 = vector.broadcast %4 : vector<1x256xf32> to vector<16x256xf32>
    %6 = arith.addf %3, %5 : vector<16x256xf32>
    %c0_6 = arith.constant 0 : index
    %c0_7 = arith.constant 0 : index
    %7 = vector.load %arg4[%c0_6, %c0_7] : memref<64x256xf32, #tpu.memory_space<vmem>>, vector<64x256xf32>
    %cst_8 = arith.constant 0.000000e+00 : f32
    %8 = vector.broadcast %cst_8 : f32 to vector<2x32xf32>
    %cst_9 = arith.constant 0.000000e+00 : f32
    %9 = vector.broadcast %cst_9 : f32 to vector<2x32xf32>
    %cst_10 = arith.constant 0.000000e+00 : f32
    %10 = vector.broadcast %cst_10 : f32 to vector<2x32xf32>
    %cst_11 = arith.constant 0.000000e+00 : f32
    %11 = vector.broadcast %cst_11 : f32 to vector<2x32xf32>
    %12 = tpu.concatenate %8, %10 in 1 : vector<2x32xf32>, vector<2x32xf32> -> vector<2x64xf32>
    %cst_12 = arith.constant dense<0.000000e+00> : vector<2x256xf32>
    %13 = tpu.matmul %12, %7, %cst_12 {dimension_numbers = #tpu.dot_dimension_numbers<[1], [0], [0], [1], [0, 0, 1, 1], [], []>} : vector<2x64xf32>, vector<64x256xf32>, vector<2x256xf32> -> vector<2x256xf32>
    %14 = vector.extract_strided_slice %6 {offsets = [0, 0], sizes = [2, 128], strides = [1, 1]} : vector<16x256xf32> to vector<2x128xf32>
    %15 = vector.extract_strided_slice %13 {offsets = [0, 0], sizes = [2, 128], strides = [1, 1]} : vector<2x256xf32> to vector<2x128xf32>
    %16 = arith.addf %14, %15 : vector<2x128xf32>
    %17 = vector.extract_strided_slice %6 {offsets = [14, 128], sizes = [2, 128], strides = [1, 1]} : vector<16x256xf32> to vector<2x128xf32>
    %18 = vector.extract_strided_slice %13 {offsets = [0, 128], sizes = [2, 128], strides = [1, 1]} : vector<2x256xf32> to vector<2x128xf32>
    %19 = arith.addf %17, %18 : vector<2x128xf32>
    %20 = vector.extract_strided_slice %16 {offsets = [0, 0], sizes = [2, 32], strides = [1, 1]} : vector<2x128xf32> to vector<2x32xf32>
    %21 = arith.negf %20 : vector<2x32xf32>
    %22 = math.exp %21 : vector<2x32xf32>
    %cst_13 = arith.constant 1.000000e+00 : f32
    %23 = vector.broadcast %cst_13 : f32 to vector<2x32xf32>
    %24 = arith.addf %23, %22 : vector<2x32xf32>
    %25 = arith.divf %23, %24 : vector<2x32xf32>
    %26 = vector.extract_strided_slice %16 {offsets = [0, 32], sizes = [2, 32], strides = [1, 1]} : vector<2x128xf32> to vector<2x32xf32>
    %27 = arith.negf %26 : vector<2x32xf32>
    %28 = math.exp %27 : vector<2x32xf32>
    %cst_14 = arith.constant 1.000000e+00 : f32
    %29 = vector.broadcast %cst_14 : f32 to vector<2x32xf32>
    %30 = arith.addf %29, %28 : vector<2x32xf32>
    %31 = arith.divf %29, %30 : vector<2x32xf32>
    %32 = vector.extract_strided_slice %16 {offsets = [0, 64], sizes = [2, 32], strides = [1, 1]} : vector<2x128xf32> to vector<2x32xf32>
    %33 = math.tanh %32 : vector<2x32xf32>
    %34 = vector.extract_strided_slice %16 {offsets = [0, 96], sizes = [2, 32], strides = [1, 1]} : vector<2x128xf32> to vector<2x32xf32>
    %35 = arith.negf %34 : vector<2x32xf32>
    %36 = math.exp %35 : vector<2x32xf32>
    %cst_15 = arith.constant 1.000000e+00 : f32
    %37 = vector.broadcast %cst_15 : f32 to vector<2x32xf32>
    %38 = arith.addf %37, %36 : vector<2x32xf32>
    %39 = arith.divf %37, %38 : vector<2x32xf32>
    %40 = arith.mulf %31, %9 : vector<2x32xf32>
    %41 = arith.mulf %25, %33 : vector<2x32xf32>
    %42 = arith.addf %40, %41 : vector<2x32xf32>
    %43 = math.tanh %42 : vector<2x32xf32>
    %44 = arith.mulf %39, %43 : vector<2x32xf32>
    %45 = vector.extract_strided_slice %19 {offsets = [0, 0], sizes = [2, 32], strides = [1, 1]} : vector<2x128xf32> to vector<2x32xf32>
    %46 = arith.negf %45 : vector<2x32xf32>
    %47 = math.exp %46 : vector<2x32xf32>
    %cst_16 = arith.constant 1.000000e+00 : f32
    %48 = vector.broadcast %cst_16 : f32 to vector<2x32xf32>
    %49 = arith.addf %48, %47 : vector<2x32xf32>
    %50 = arith.divf %48, %49 : vector<2x32xf32>
    %51 = vector.extract_strided_slice %19 {offsets = [0, 32], sizes = [2, 32], strides = [1, 1]} : vector<2x128xf32> to vector<2x32xf32>
    %52 = arith.negf %51 : vector<2x32xf32>
    %53 = math.exp %52 : vector<2x32xf32>
    %cst_17 = arith.constant 1.000000e+00 : f32
    %54 = vector.broadcast %cst_17 : f32 to vector<2x32xf32>
    %55 = arith.addf %54, %53 : vector<2x32xf32>
    %56 = arith.divf %54, %55 : vector<2x32xf32>
    %57 = vector.extract_strided_slice %19 {offsets = [0, 64], sizes = [2, 32], strides = [1, 1]} : vector<2x128xf32> to vector<2x32xf32>
    %58 = math.tanh %57 : vector<2x32xf32>
    %59 = vector.extract_strided_slice %19 {offsets = [0, 96], sizes = [2, 32], strides = [1, 1]} : vector<2x128xf32> to vector<2x32xf32>
    %60 = arith.negf %59 : vector<2x32xf32>
    %61 = math.exp %60 : vector<2x32xf32>
    %cst_18 = arith.constant 1.000000e+00 : f32
    %62 = vector.broadcast %cst_18 : f32 to vector<2x32xf32>
    %63 = arith.addf %62, %61 : vector<2x32xf32>
    %64 = arith.divf %62, %63 : vector<2x32xf32>
    %65 = arith.mulf %56, %11 : vector<2x32xf32>
    %66 = arith.mulf %50, %58 : vector<2x32xf32>
    %67 = arith.addf %65, %66 : vector<2x32xf32>
    %68 = math.tanh %67 : vector<2x32xf32>
    %69 = arith.mulf %64, %68 : vector<2x32xf32>
    %70 = tpu.concatenate %44, %69 in 1 : vector<2x32xf32>, vector<2x32xf32> -> vector<2x64xf32>
    %cst_19 = arith.constant dense<0.000000e+00> : vector<2x256xf32>
    %71 = tpu.matmul %70, %7, %cst_19 {dimension_numbers = #tpu.dot_dimension_numbers<[1], [0], [0], [1], [0, 0, 1, 1], [], []>} : vector<2x64xf32>, vector<64x256xf32>, vector<2x256xf32> -> vector<2x256xf32>
    %72 = vector.extract_strided_slice %6 {offsets = [2, 0], sizes = [2, 128], strides = [1, 1]} : vector<16x256xf32> to vector<2x128xf32>
    %73 = vector.extract_strided_slice %71 {offsets = [0, 0], sizes = [2, 128], strides = [1, 1]} : vector<2x256xf32> to vector<2x128xf32>
    %74 = arith.addf %72, %73 : vector<2x128xf32>
    %75 = vector.extract_strided_slice %6 {offsets = [12, 128], sizes = [2, 128], strides = [1, 1]} : vector<16x256xf32> to vector<2x128xf32>
    %76 = vector.extract_strided_slice %71 {offsets = [0, 128], sizes = [2, 128], strides = [1, 1]} : vector<2x256xf32> to vector<2x128xf32>
    %77 = arith.addf %75, %76 : vector<2x128xf32>
    %78 = vector.extract_strided_slice %74 {offsets = [0, 0], sizes = [2, 32], strides = [1, 1]} : vector<2x128xf32> to vector<2x32xf32>
    %79 = arith.negf %78 : vector<2x32xf32>
    %80 = math.exp %79 : vector<2x32xf32>
    %cst_20 = arith.constant 1.000000e+00 : f32
    %81 = vector.broadcast %cst_20 : f32 to vector<2x32xf32>
    %82 = arith.addf %81, %80 : vector<2x32xf32>
    %83 = arith.divf %81, %82 : vector<2x32xf32>
    %84 = vector.extract_strided_slice %74 {offsets = [0, 32], sizes = [2, 32], strides = [1, 1]} : vector<2x128xf32> to vector<2x32xf32>
    %85 = arith.negf %84 : vector<2x32xf32>
    %86 = math.exp %85 : vector<2x32xf32>
    %cst_21 = arith.constant 1.000000e+00 : f32
    %87 = vector.broadcast %cst_21 : f32 to vector<2x32xf32>
    %88 = arith.addf %87, %86 : vector<2x32xf32>
    %89 = arith.divf %87, %88 : vector<2x32xf32>
    %90 = vector.extract_strided_slice %74 {offsets = [0, 64], sizes = [2, 32], strides = [1, 1]} : vector<2x128xf32> to vector<2x32xf32>
    %91 = math.tanh %90 : vector<2x32xf32>
    %92 = vector.extract_strided_slice %74 {offsets = [0, 96], sizes = [2, 32], strides = [1, 1]} : vector<2x128xf32> to vector<2x32xf32>
    %93 = arith.negf %92 : vector<2x32xf32>
    %94 = math.exp %93 : vector<2x32xf32>
    %cst_22 = arith.constant 1.000000e+00 : f32
    %95 = vector.broadcast %cst_22 : f32 to vector<2x32xf32>
    %96 = arith.addf %95, %94 : vector<2x32xf32>
    %97 = arith.divf %95, %96 : vector<2x32xf32>
    %98 = arith.mulf %89, %42 : vector<2x32xf32>
    %99 = arith.mulf %83, %91 : vector<2x32xf32>
    %100 = arith.addf %98, %99 : vector<2x32xf32>
    %101 = math.tanh %100 : vector<2x32xf32>
    %102 = arith.mulf %97, %101 : vector<2x32xf32>
    %103 = vector.extract_strided_slice %77 {offsets = [0, 0], sizes = [2, 32], strides = [1, 1]} : vector<2x128xf32> to vector<2x32xf32>
    %104 = arith.negf %103 : vector<2x32xf32>
    %105 = math.exp %104 : vector<2x32xf32>
    %cst_23 = arith.constant 1.000000e+00 : f32
    %106 = vector.broadcast %cst_23 : f32 to vector<2x32xf32>
    %107 = arith.addf %106, %105 : vector<2x32xf32>
    %108 = arith.divf %106, %107 : vector<2x32xf32>
    %109 = vector.extract_strided_slice %77 {offsets = [0, 32], sizes = [2, 32], strides = [1, 1]} : vector<2x128xf32> to vector<2x32xf32>
    %110 = arith.negf %109 : vector<2x32xf32>
    %111 = math.exp %110 : vector<2x32xf32>
    %cst_24 = arith.constant 1.000000e+00 : f32
    %112 = vector.broadcast %cst_24 : f32 to vector<2x32xf32>
    %113 = arith.addf %112, %111 : vector<2x32xf32>
    %114 = arith.divf %112, %113 : vector<2x32xf32>
    %115 = vector.extract_strided_slice %77 {offsets = [0, 64], sizes = [2, 32], strides = [1, 1]} : vector<2x128xf32> to vector<2x32xf32>
    %116 = math.tanh %115 : vector<2x32xf32>
    %117 = vector.extract_strided_slice %77 {offsets = [0, 96], sizes = [2, 32], strides = [1, 1]} : vector<2x128xf32> to vector<2x32xf32>
    %118 = arith.negf %117 : vector<2x32xf32>
    %119 = math.exp %118 : vector<2x32xf32>
    %cst_25 = arith.constant 1.000000e+00 : f32
    %120 = vector.broadcast %cst_25 : f32 to vector<2x32xf32>
    %121 = arith.addf %120, %119 : vector<2x32xf32>
    %122 = arith.divf %120, %121 : vector<2x32xf32>
    %123 = arith.mulf %114, %67 : vector<2x32xf32>
    %124 = arith.mulf %108, %116 : vector<2x32xf32>
    %125 = arith.addf %123, %124 : vector<2x32xf32>
    %126 = math.tanh %125 : vector<2x32xf32>
    %127 = arith.mulf %122, %126 : vector<2x32xf32>
    %128 = tpu.concatenate %102, %127 in 1 : vector<2x32xf32>, vector<2x32xf32> -> vector<2x64xf32>
    %cst_26 = arith.constant dense<0.000000e+00> : vector<2x256xf32>
    %129 = tpu.matmul %128, %7, %cst_26 {dimension_numbers = #tpu.dot_dimension_numbers<[1], [0], [0], [1], [0, 0, 1, 1], [], []>} : vector<2x64xf32>, vector<64x256xf32>, vector<2x256xf32> -> vector<2x256xf32>
    %130 = vector.extract_strided_slice %6 {offsets = [4, 0], sizes = [2, 128], strides = [1, 1]} : vector<16x256xf32> to vector<2x128xf32>
    %131 = vector.extract_strided_slice %129 {offsets = [0, 0], sizes = [2, 128], strides = [1, 1]} : vector<2x256xf32> to vector<2x128xf32>
    %132 = arith.addf %130, %131 : vector<2x128xf32>
    %133 = vector.extract_strided_slice %6 {offsets = [10, 128], sizes = [2, 128], strides = [1, 1]} : vector<16x256xf32> to vector<2x128xf32>
    %134 = vector.extract_strided_slice %129 {offsets = [0, 128], sizes = [2, 128], strides = [1, 1]} : vector<2x256xf32> to vector<2x128xf32>
    %135 = arith.addf %133, %134 : vector<2x128xf32>
    %136 = vector.extract_strided_slice %132 {offsets = [0, 0], sizes = [2, 32], strides = [1, 1]} : vector<2x128xf32> to vector<2x32xf32>
    %137 = arith.negf %136 : vector<2x32xf32>
    %138 = math.exp %137 : vector<2x32xf32>
    %cst_27 = arith.constant 1.000000e+00 : f32
    %139 = vector.broadcast %cst_27 : f32 to vector<2x32xf32>
    %140 = arith.addf %139, %138 : vector<2x32xf32>
    %141 = arith.divf %139, %140 : vector<2x32xf32>
    %142 = vector.extract_strided_slice %132 {offsets = [0, 32], sizes = [2, 32], strides = [1, 1]} : vector<2x128xf32> to vector<2x32xf32>
    %143 = arith.negf %142 : vector<2x32xf32>
    %144 = math.exp %143 : vector<2x32xf32>
    %cst_28 = arith.constant 1.000000e+00 : f32
    %145 = vector.broadcast %cst_28 : f32 to vector<2x32xf32>
    %146 = arith.addf %145, %144 : vector<2x32xf32>
    %147 = arith.divf %145, %146 : vector<2x32xf32>
    %148 = vector.extract_strided_slice %132 {offsets = [0, 64], sizes = [2, 32], strides = [1, 1]} : vector<2x128xf32> to vector<2x32xf32>
    %149 = math.tanh %148 : vector<2x32xf32>
    %150 = vector.extract_strided_slice %132 {offsets = [0, 96], sizes = [2, 32], strides = [1, 1]} : vector<2x128xf32> to vector<2x32xf32>
    %151 = arith.negf %150 : vector<2x32xf32>
    %152 = math.exp %151 : vector<2x32xf32>
    %cst_29 = arith.constant 1.000000e+00 : f32
    %153 = vector.broadcast %cst_29 : f32 to vector<2x32xf32>
    %154 = arith.addf %153, %152 : vector<2x32xf32>
    %155 = arith.divf %153, %154 : vector<2x32xf32>
    %156 = arith.mulf %147, %100 : vector<2x32xf32>
    %157 = arith.mulf %141, %149 : vector<2x32xf32>
    %158 = arith.addf %156, %157 : vector<2x32xf32>
    %159 = math.tanh %158 : vector<2x32xf32>
    %160 = arith.mulf %155, %159 : vector<2x32xf32>
    %161 = vector.extract_strided_slice %135 {offsets = [0, 0], sizes = [2, 32], strides = [1, 1]} : vector<2x128xf32> to vector<2x32xf32>
    %162 = arith.negf %161 : vector<2x32xf32>
    %163 = math.exp %162 : vector<2x32xf32>
    %cst_30 = arith.constant 1.000000e+00 : f32
    %164 = vector.broadcast %cst_30 : f32 to vector<2x32xf32>
    %165 = arith.addf %164, %163 : vector<2x32xf32>
    %166 = arith.divf %164, %165 : vector<2x32xf32>
    %167 = vector.extract_strided_slice %135 {offsets = [0, 32], sizes = [2, 32], strides = [1, 1]} : vector<2x128xf32> to vector<2x32xf32>
    %168 = arith.negf %167 : vector<2x32xf32>
    %169 = math.exp %168 : vector<2x32xf32>
    %cst_31 = arith.constant 1.000000e+00 : f32
    %170 = vector.broadcast %cst_31 : f32 to vector<2x32xf32>
    %171 = arith.addf %170, %169 : vector<2x32xf32>
    %172 = arith.divf %170, %171 : vector<2x32xf32>
    %173 = vector.extract_strided_slice %135 {offsets = [0, 64], sizes = [2, 32], strides = [1, 1]} : vector<2x128xf32> to vector<2x32xf32>
    %174 = math.tanh %173 : vector<2x32xf32>
    %175 = vector.extract_strided_slice %135 {offsets = [0, 96], sizes = [2, 32], strides = [1, 1]} : vector<2x128xf32> to vector<2x32xf32>
    %176 = arith.negf %175 : vector<2x32xf32>
    %177 = math.exp %176 : vector<2x32xf32>
    %cst_32 = arith.constant 1.000000e+00 : f32
    %178 = vector.broadcast %cst_32 : f32 to vector<2x32xf32>
    %179 = arith.addf %178, %177 : vector<2x32xf32>
    %180 = arith.divf %178, %179 : vector<2x32xf32>
    %181 = arith.mulf %172, %125 : vector<2x32xf32>
    %182 = arith.mulf %166, %174 : vector<2x32xf32>
    %183 = arith.addf %181, %182 : vector<2x32xf32>
    %184 = math.tanh %183 : vector<2x32xf32>
    %185 = arith.mulf %180, %184 : vector<2x32xf32>
    %186 = tpu.concatenate %160, %185 in 1 : vector<2x32xf32>, vector<2x32xf32> -> vector<2x64xf32>
    %cst_33 = arith.constant dense<0.000000e+00> : vector<2x256xf32>
    %187 = tpu.matmul %186, %7, %cst_33 {dimension_numbers = #tpu.dot_dimension_numbers<[1], [0], [0], [1], [0, 0, 1, 1], [], []>} : vector<2x64xf32>, vector<64x256xf32>, vector<2x256xf32> -> vector<2x256xf32>
    %188 = vector.extract_strided_slice %6 {offsets = [6, 0], sizes = [2, 128], strides = [1, 1]} : vector<16x256xf32> to vector<2x128xf32>
    %189 = vector.extract_strided_slice %187 {offsets = [0, 0], sizes = [2, 128], strides = [1, 1]} : vector<2x256xf32> to vector<2x128xf32>
    %190 = arith.addf %188, %189 : vector<2x128xf32>
    %191 = vector.extract_strided_slice %6 {offsets = [8, 128], sizes = [2, 128], strides = [1, 1]} : vector<16x256xf32> to vector<2x128xf32>
    %192 = vector.extract_strided_slice %187 {offsets = [0, 128], sizes = [2, 128], strides = [1, 1]} : vector<2x256xf32> to vector<2x128xf32>
    %193 = arith.addf %191, %192 : vector<2x128xf32>
    %194 = vector.extract_strided_slice %190 {offsets = [0, 0], sizes = [2, 32], strides = [1, 1]} : vector<2x128xf32> to vector<2x32xf32>
    %195 = arith.negf %194 : vector<2x32xf32>
    %196 = math.exp %195 : vector<2x32xf32>
    %cst_34 = arith.constant 1.000000e+00 : f32
    %197 = vector.broadcast %cst_34 : f32 to vector<2x32xf32>
    %198 = arith.addf %197, %196 : vector<2x32xf32>
    %199 = arith.divf %197, %198 : vector<2x32xf32>
    %200 = vector.extract_strided_slice %190 {offsets = [0, 32], sizes = [2, 32], strides = [1, 1]} : vector<2x128xf32> to vector<2x32xf32>
    %201 = arith.negf %200 : vector<2x32xf32>
    %202 = math.exp %201 : vector<2x32xf32>
    %cst_35 = arith.constant 1.000000e+00 : f32
    %203 = vector.broadcast %cst_35 : f32 to vector<2x32xf32>
    %204 = arith.addf %203, %202 : vector<2x32xf32>
    %205 = arith.divf %203, %204 : vector<2x32xf32>
    %206 = vector.extract_strided_slice %190 {offsets = [0, 64], sizes = [2, 32], strides = [1, 1]} : vector<2x128xf32> to vector<2x32xf32>
    %207 = math.tanh %206 : vector<2x32xf32>
    %208 = vector.extract_strided_slice %190 {offsets = [0, 96], sizes = [2, 32], strides = [1, 1]} : vector<2x128xf32> to vector<2x32xf32>
    %209 = arith.negf %208 : vector<2x32xf32>
    %210 = math.exp %209 : vector<2x32xf32>
    %cst_36 = arith.constant 1.000000e+00 : f32
    %211 = vector.broadcast %cst_36 : f32 to vector<2x32xf32>
    %212 = arith.addf %211, %210 : vector<2x32xf32>
    %213 = arith.divf %211, %212 : vector<2x32xf32>
    %214 = arith.mulf %205, %158 : vector<2x32xf32>
    %215 = arith.mulf %199, %207 : vector<2x32xf32>
    %216 = arith.addf %214, %215 : vector<2x32xf32>
    %217 = math.tanh %216 : vector<2x32xf32>
    %218 = arith.mulf %213, %217 : vector<2x32xf32>
    %219 = vector.extract_strided_slice %193 {offsets = [0, 0], sizes = [2, 32], strides = [1, 1]} : vector<2x128xf32> to vector<2x32xf32>
    %220 = arith.negf %219 : vector<2x32xf32>
    %221 = math.exp %220 : vector<2x32xf32>
    %cst_37 = arith.constant 1.000000e+00 : f32
    %222 = vector.broadcast %cst_37 : f32 to vector<2x32xf32>
    %223 = arith.addf %222, %221 : vector<2x32xf32>
    %224 = arith.divf %222, %223 : vector<2x32xf32>
    %225 = vector.extract_strided_slice %193 {offsets = [0, 32], sizes = [2, 32], strides = [1, 1]} : vector<2x128xf32> to vector<2x32xf32>
    %226 = arith.negf %225 : vector<2x32xf32>
    %227 = math.exp %226 : vector<2x32xf32>
    %cst_38 = arith.constant 1.000000e+00 : f32
    %228 = vector.broadcast %cst_38 : f32 to vector<2x32xf32>
    %229 = arith.addf %228, %227 : vector<2x32xf32>
    %230 = arith.divf %228, %229 : vector<2x32xf32>
    %231 = vector.extract_strided_slice %193 {offsets = [0, 64], sizes = [2, 32], strides = [1, 1]} : vector<2x128xf32> to vector<2x32xf32>
    %232 = math.tanh %231 : vector<2x32xf32>
    %233 = vector.extract_strided_slice %193 {offsets = [0, 96], sizes = [2, 32], strides = [1, 1]} : vector<2x128xf32> to vector<2x32xf32>
    %234 = arith.negf %233 : vector<2x32xf32>
    %235 = math.exp %234 : vector<2x32xf32>
    %cst_39 = arith.constant 1.000000e+00 : f32
    %236 = vector.broadcast %cst_39 : f32 to vector<2x32xf32>
    %237 = arith.addf %236, %235 : vector<2x32xf32>
    %238 = arith.divf %236, %237 : vector<2x32xf32>
    %239 = arith.mulf %230, %183 : vector<2x32xf32>
    %240 = arith.mulf %224, %232 : vector<2x32xf32>
    %241 = arith.addf %239, %240 : vector<2x32xf32>
    %242 = math.tanh %241 : vector<2x32xf32>
    %243 = arith.mulf %238, %242 : vector<2x32xf32>
    %244 = tpu.concatenate %218, %243 in 1 : vector<2x32xf32>, vector<2x32xf32> -> vector<2x64xf32>
    %cst_40 = arith.constant dense<0.000000e+00> : vector<2x256xf32>
    %245 = tpu.matmul %244, %7, %cst_40 {dimension_numbers = #tpu.dot_dimension_numbers<[1], [0], [0], [1], [0, 0, 1, 1], [], []>} : vector<2x64xf32>, vector<64x256xf32>, vector<2x256xf32> -> vector<2x256xf32>
    %246 = vector.extract_strided_slice %6 {offsets = [8, 0], sizes = [2, 128], strides = [1, 1]} : vector<16x256xf32> to vector<2x128xf32>
    %247 = vector.extract_strided_slice %245 {offsets = [0, 0], sizes = [2, 128], strides = [1, 1]} : vector<2x256xf32> to vector<2x128xf32>
    %248 = arith.addf %246, %247 : vector<2x128xf32>
    %249 = vector.extract_strided_slice %6 {offsets = [6, 128], sizes = [2, 128], strides = [1, 1]} : vector<16x256xf32> to vector<2x128xf32>
    %250 = vector.extract_strided_slice %245 {offsets = [0, 128], sizes = [2, 128], strides = [1, 1]} : vector<2x256xf32> to vector<2x128xf32>
    %251 = arith.addf %249, %250 : vector<2x128xf32>
    %252 = vector.extract_strided_slice %248 {offsets = [0, 0], sizes = [2, 32], strides = [1, 1]} : vector<2x128xf32> to vector<2x32xf32>
    %253 = arith.negf %252 : vector<2x32xf32>
    %254 = math.exp %253 : vector<2x32xf32>
    %cst_41 = arith.constant 1.000000e+00 : f32
    %255 = vector.broadcast %cst_41 : f32 to vector<2x32xf32>
    %256 = arith.addf %255, %254 : vector<2x32xf32>
    %257 = arith.divf %255, %256 : vector<2x32xf32>
    %258 = vector.extract_strided_slice %248 {offsets = [0, 32], sizes = [2, 32], strides = [1, 1]} : vector<2x128xf32> to vector<2x32xf32>
    %259 = arith.negf %258 : vector<2x32xf32>
    %260 = math.exp %259 : vector<2x32xf32>
    %cst_42 = arith.constant 1.000000e+00 : f32
    %261 = vector.broadcast %cst_42 : f32 to vector<2x32xf32>
    %262 = arith.addf %261, %260 : vector<2x32xf32>
    %263 = arith.divf %261, %262 : vector<2x32xf32>
    %264 = vector.extract_strided_slice %248 {offsets = [0, 64], sizes = [2, 32], strides = [1, 1]} : vector<2x128xf32> to vector<2x32xf32>
    %265 = math.tanh %264 : vector<2x32xf32>
    %266 = vector.extract_strided_slice %248 {offsets = [0, 96], sizes = [2, 32], strides = [1, 1]} : vector<2x128xf32> to vector<2x32xf32>
    %267 = arith.negf %266 : vector<2x32xf32>
    %268 = math.exp %267 : vector<2x32xf32>
    %cst_43 = arith.constant 1.000000e+00 : f32
    %269 = vector.broadcast %cst_43 : f32 to vector<2x32xf32>
    %270 = arith.addf %269, %268 : vector<2x32xf32>
    %271 = arith.divf %269, %270 : vector<2x32xf32>
    %272 = arith.mulf %263, %216 : vector<2x32xf32>
    %273 = arith.mulf %257, %265 : vector<2x32xf32>
    %274 = arith.addf %272, %273 : vector<2x32xf32>
    %275 = math.tanh %274 : vector<2x32xf32>
    %276 = arith.mulf %271, %275 : vector<2x32xf32>
    %277 = vector.extract_strided_slice %251 {offsets = [0, 0], sizes = [2, 32], strides = [1, 1]} : vector<2x128xf32> to vector<2x32xf32>
    %278 = arith.negf %277 : vector<2x32xf32>
    %279 = math.exp %278 : vector<2x32xf32>
    %cst_44 = arith.constant 1.000000e+00 : f32
    %280 = vector.broadcast %cst_44 : f32 to vector<2x32xf32>
    %281 = arith.addf %280, %279 : vector<2x32xf32>
    %282 = arith.divf %280, %281 : vector<2x32xf32>
    %283 = vector.extract_strided_slice %251 {offsets = [0, 32], sizes = [2, 32], strides = [1, 1]} : vector<2x128xf32> to vector<2x32xf32>
    %284 = arith.negf %283 : vector<2x32xf32>
    %285 = math.exp %284 : vector<2x32xf32>
    %cst_45 = arith.constant 1.000000e+00 : f32
    %286 = vector.broadcast %cst_45 : f32 to vector<2x32xf32>
    %287 = arith.addf %286, %285 : vector<2x32xf32>
    %288 = arith.divf %286, %287 : vector<2x32xf32>
    %289 = vector.extract_strided_slice %251 {offsets = [0, 64], sizes = [2, 32], strides = [1, 1]} : vector<2x128xf32> to vector<2x32xf32>
    %290 = math.tanh %289 : vector<2x32xf32>
    %291 = vector.extract_strided_slice %251 {offsets = [0, 96], sizes = [2, 32], strides = [1, 1]} : vector<2x128xf32> to vector<2x32xf32>
    %292 = arith.negf %291 : vector<2x32xf32>
    %293 = math.exp %292 : vector<2x32xf32>
    %cst_46 = arith.constant 1.000000e+00 : f32
    %294 = vector.broadcast %cst_46 : f32 to vector<2x32xf32>
    %295 = arith.addf %294, %293 : vector<2x32xf32>
    %296 = arith.divf %294, %295 : vector<2x32xf32>
    %297 = arith.mulf %288, %241 : vector<2x32xf32>
    %298 = arith.mulf %282, %290 : vector<2x32xf32>
    %299 = arith.addf %297, %298 : vector<2x32xf32>
    %300 = math.tanh %299 : vector<2x32xf32>
    %301 = arith.mulf %296, %300 : vector<2x32xf32>
    %302 = tpu.concatenate %276, %301 in 1 : vector<2x32xf32>, vector<2x32xf32> -> vector<2x64xf32>
    %cst_47 = arith.constant dense<0.000000e+00> : vector<2x256xf32>
    %303 = tpu.matmul %302, %7, %cst_47 {dimension_numbers = #tpu.dot_dimension_numbers<[1], [0], [0], [1], [0, 0, 1, 1], [], []>} : vector<2x64xf32>, vector<64x256xf32>, vector<2x256xf32> -> vector<2x256xf32>
    %304 = vector.extract_strided_slice %6 {offsets = [10, 0], sizes = [2, 128], strides = [1, 1]} : vector<16x256xf32> to vector<2x128xf32>
    %305 = vector.extract_strided_slice %303 {offsets = [0, 0], sizes = [2, 128], strides = [1, 1]} : vector<2x256xf32> to vector<2x128xf32>
    %306 = arith.addf %304, %305 : vector<2x128xf32>
    %307 = vector.extract_strided_slice %6 {offsets = [4, 128], sizes = [2, 128], strides = [1, 1]} : vector<16x256xf32> to vector<2x128xf32>
    %308 = vector.extract_strided_slice %303 {offsets = [0, 128], sizes = [2, 128], strides = [1, 1]} : vector<2x256xf32> to vector<2x128xf32>
    %309 = arith.addf %307, %308 : vector<2x128xf32>
    %310 = vector.extract_strided_slice %306 {offsets = [0, 0], sizes = [2, 32], strides = [1, 1]} : vector<2x128xf32> to vector<2x32xf32>
    %311 = arith.negf %310 : vector<2x32xf32>
    %312 = math.exp %311 : vector<2x32xf32>
    %cst_48 = arith.constant 1.000000e+00 : f32
    %313 = vector.broadcast %cst_48 : f32 to vector<2x32xf32>
    %314 = arith.addf %313, %312 : vector<2x32xf32>
    %315 = arith.divf %313, %314 : vector<2x32xf32>
    %316 = vector.extract_strided_slice %306 {offsets = [0, 32], sizes = [2, 32], strides = [1, 1]} : vector<2x128xf32> to vector<2x32xf32>
    %317 = arith.negf %316 : vector<2x32xf32>
    %318 = math.exp %317 : vector<2x32xf32>
    %cst_49 = arith.constant 1.000000e+00 : f32
    %319 = vector.broadcast %cst_49 : f32 to vector<2x32xf32>
    %320 = arith.addf %319, %318 : vector<2x32xf32>
    %321 = arith.divf %319, %320 : vector<2x32xf32>
    %322 = vector.extract_strided_slice %306 {offsets = [0, 64], sizes = [2, 32], strides = [1, 1]} : vector<2x128xf32> to vector<2x32xf32>
    %323 = math.tanh %322 : vector<2x32xf32>
    %324 = vector.extract_strided_slice %306 {offsets = [0, 96], sizes = [2, 32], strides = [1, 1]} : vector<2x128xf32> to vector<2x32xf32>
    %325 = arith.negf %324 : vector<2x32xf32>
    %326 = math.exp %325 : vector<2x32xf32>
    %cst_50 = arith.constant 1.000000e+00 : f32
    %327 = vector.broadcast %cst_50 : f32 to vector<2x32xf32>
    %328 = arith.addf %327, %326 : vector<2x32xf32>
    %329 = arith.divf %327, %328 : vector<2x32xf32>
    %330 = arith.mulf %321, %274 : vector<2x32xf32>
    %331 = arith.mulf %315, %323 : vector<2x32xf32>
    %332 = arith.addf %330, %331 : vector<2x32xf32>
    %333 = math.tanh %332 : vector<2x32xf32>
    %334 = arith.mulf %329, %333 : vector<2x32xf32>
    %335 = vector.extract_strided_slice %309 {offsets = [0, 0], sizes = [2, 32], strides = [1, 1]} : vector<2x128xf32> to vector<2x32xf32>
    %336 = arith.negf %335 : vector<2x32xf32>
    %337 = math.exp %336 : vector<2x32xf32>
    %cst_51 = arith.constant 1.000000e+00 : f32
    %338 = vector.broadcast %cst_51 : f32 to vector<2x32xf32>
    %339 = arith.addf %338, %337 : vector<2x32xf32>
    %340 = arith.divf %338, %339 : vector<2x32xf32>
    %341 = vector.extract_strided_slice %309 {offsets = [0, 32], sizes = [2, 32], strides = [1, 1]} : vector<2x128xf32> to vector<2x32xf32>
    %342 = arith.negf %341 : vector<2x32xf32>
    %343 = math.exp %342 : vector<2x32xf32>
    %cst_52 = arith.constant 1.000000e+00 : f32
    %344 = vector.broadcast %cst_52 : f32 to vector<2x32xf32>
    %345 = arith.addf %344, %343 : vector<2x32xf32>
    %346 = arith.divf %344, %345 : vector<2x32xf32>
    %347 = vector.extract_strided_slice %309 {offsets = [0, 64], sizes = [2, 32], strides = [1, 1]} : vector<2x128xf32> to vector<2x32xf32>
    %348 = math.tanh %347 : vector<2x32xf32>
    %349 = vector.extract_strided_slice %309 {offsets = [0, 96], sizes = [2, 32], strides = [1, 1]} : vector<2x128xf32> to vector<2x32xf32>
    %350 = arith.negf %349 : vector<2x32xf32>
    %351 = math.exp %350 : vector<2x32xf32>
    %cst_53 = arith.constant 1.000000e+00 : f32
    %352 = vector.broadcast %cst_53 : f32 to vector<2x32xf32>
    %353 = arith.addf %352, %351 : vector<2x32xf32>
    %354 = arith.divf %352, %353 : vector<2x32xf32>
    %355 = arith.mulf %346, %299 : vector<2x32xf32>
    %356 = arith.mulf %340, %348 : vector<2x32xf32>
    %357 = arith.addf %355, %356 : vector<2x32xf32>
    %358 = math.tanh %357 : vector<2x32xf32>
    %359 = arith.mulf %354, %358 : vector<2x32xf32>
    %360 = tpu.concatenate %334, %359 in 1 : vector<2x32xf32>, vector<2x32xf32> -> vector<2x64xf32>
    %cst_54 = arith.constant dense<0.000000e+00> : vector<2x256xf32>
    %361 = tpu.matmul %360, %7, %cst_54 {dimension_numbers = #tpu.dot_dimension_numbers<[1], [0], [0], [1], [0, 0, 1, 1], [], []>} : vector<2x64xf32>, vector<64x256xf32>, vector<2x256xf32> -> vector<2x256xf32>
    %362 = vector.extract_strided_slice %6 {offsets = [12, 0], sizes = [2, 128], strides = [1, 1]} : vector<16x256xf32> to vector<2x128xf32>
    %363 = vector.extract_strided_slice %361 {offsets = [0, 0], sizes = [2, 128], strides = [1, 1]} : vector<2x256xf32> to vector<2x128xf32>
    %364 = arith.addf %362, %363 : vector<2x128xf32>
    %365 = vector.extract_strided_slice %6 {offsets = [2, 128], sizes = [2, 128], strides = [1, 1]} : vector<16x256xf32> to vector<2x128xf32>
    %366 = vector.extract_strided_slice %361 {offsets = [0, 128], sizes = [2, 128], strides = [1, 1]} : vector<2x256xf32> to vector<2x128xf32>
    %367 = arith.addf %365, %366 : vector<2x128xf32>
    %368 = vector.extract_strided_slice %364 {offsets = [0, 0], sizes = [2, 32], strides = [1, 1]} : vector<2x128xf32> to vector<2x32xf32>
    %369 = arith.negf %368 : vector<2x32xf32>
    %370 = math.exp %369 : vector<2x32xf32>
    %cst_55 = arith.constant 1.000000e+00 : f32
    %371 = vector.broadcast %cst_55 : f32 to vector<2x32xf32>
    %372 = arith.addf %371, %370 : vector<2x32xf32>
    %373 = arith.divf %371, %372 : vector<2x32xf32>
    %374 = vector.extract_strided_slice %364 {offsets = [0, 32], sizes = [2, 32], strides = [1, 1]} : vector<2x128xf32> to vector<2x32xf32>
    %375 = arith.negf %374 : vector<2x32xf32>
    %376 = math.exp %375 : vector<2x32xf32>
    %cst_56 = arith.constant 1.000000e+00 : f32
    %377 = vector.broadcast %cst_56 : f32 to vector<2x32xf32>
    %378 = arith.addf %377, %376 : vector<2x32xf32>
    %379 = arith.divf %377, %378 : vector<2x32xf32>
    %380 = vector.extract_strided_slice %364 {offsets = [0, 64], sizes = [2, 32], strides = [1, 1]} : vector<2x128xf32> to vector<2x32xf32>
    %381 = math.tanh %380 : vector<2x32xf32>
    %382 = vector.extract_strided_slice %364 {offsets = [0, 96], sizes = [2, 32], strides = [1, 1]} : vector<2x128xf32> to vector<2x32xf32>
    %383 = arith.negf %382 : vector<2x32xf32>
    %384 = math.exp %383 : vector<2x32xf32>
    %cst_57 = arith.constant 1.000000e+00 : f32
    %385 = vector.broadcast %cst_57 : f32 to vector<2x32xf32>
    %386 = arith.addf %385, %384 : vector<2x32xf32>
    %387 = arith.divf %385, %386 : vector<2x32xf32>
    %388 = arith.mulf %379, %332 : vector<2x32xf32>
    %389 = arith.mulf %373, %381 : vector<2x32xf32>
    %390 = arith.addf %388, %389 : vector<2x32xf32>
    %391 = math.tanh %390 : vector<2x32xf32>
    %392 = arith.mulf %387, %391 : vector<2x32xf32>
    %393 = vector.extract_strided_slice %367 {offsets = [0, 0], sizes = [2, 32], strides = [1, 1]} : vector<2x128xf32> to vector<2x32xf32>
    %394 = arith.negf %393 : vector<2x32xf32>
    %395 = math.exp %394 : vector<2x32xf32>
    %cst_58 = arith.constant 1.000000e+00 : f32
    %396 = vector.broadcast %cst_58 : f32 to vector<2x32xf32>
    %397 = arith.addf %396, %395 : vector<2x32xf32>
    %398 = arith.divf %396, %397 : vector<2x32xf32>
    %399 = vector.extract_strided_slice %367 {offsets = [0, 32], sizes = [2, 32], strides = [1, 1]} : vector<2x128xf32> to vector<2x32xf32>
    %400 = arith.negf %399 : vector<2x32xf32>
    %401 = math.exp %400 : vector<2x32xf32>
    %cst_59 = arith.constant 1.000000e+00 : f32
    %402 = vector.broadcast %cst_59 : f32 to vector<2x32xf32>
    %403 = arith.addf %402, %401 : vector<2x32xf32>
    %404 = arith.divf %402, %403 : vector<2x32xf32>
    %405 = vector.extract_strided_slice %367 {offsets = [0, 64], sizes = [2, 32], strides = [1, 1]} : vector<2x128xf32> to vector<2x32xf32>
    %406 = math.tanh %405 : vector<2x32xf32>
    %407 = vector.extract_strided_slice %367 {offsets = [0, 96], sizes = [2, 32], strides = [1, 1]} : vector<2x128xf32> to vector<2x32xf32>
    %408 = arith.negf %407 : vector<2x32xf32>
    %409 = math.exp %408 : vector<2x32xf32>
    %cst_60 = arith.constant 1.000000e+00 : f32
    %410 = vector.broadcast %cst_60 : f32 to vector<2x32xf32>
    %411 = arith.addf %410, %409 : vector<2x32xf32>
    %412 = arith.divf %410, %411 : vector<2x32xf32>
    %413 = arith.mulf %404, %357 : vector<2x32xf32>
    %414 = arith.mulf %398, %406 : vector<2x32xf32>
    %415 = arith.addf %413, %414 : vector<2x32xf32>
    %416 = math.tanh %415 : vector<2x32xf32>
    %417 = arith.mulf %412, %416 : vector<2x32xf32>
    %418 = tpu.concatenate %392, %417 in 1 : vector<2x32xf32>, vector<2x32xf32> -> vector<2x64xf32>
    %cst_61 = arith.constant dense<0.000000e+00> : vector<2x256xf32>
    %419 = tpu.matmul %418, %7, %cst_61 {dimension_numbers = #tpu.dot_dimension_numbers<[1], [0], [0], [1], [0, 0, 1, 1], [], []>} : vector<2x64xf32>, vector<64x256xf32>, vector<2x256xf32> -> vector<2x256xf32>
    %420 = vector.extract_strided_slice %6 {offsets = [14, 0], sizes = [2, 128], strides = [1, 1]} : vector<16x256xf32> to vector<2x128xf32>
    %421 = vector.extract_strided_slice %419 {offsets = [0, 0], sizes = [2, 128], strides = [1, 1]} : vector<2x256xf32> to vector<2x128xf32>
    %422 = arith.addf %420, %421 : vector<2x128xf32>
    %423 = vector.extract_strided_slice %6 {offsets = [0, 128], sizes = [2, 128], strides = [1, 1]} : vector<16x256xf32> to vector<2x128xf32>
    %424 = vector.extract_strided_slice %419 {offsets = [0, 128], sizes = [2, 128], strides = [1, 1]} : vector<2x256xf32> to vector<2x128xf32>
    %425 = arith.addf %423, %424 : vector<2x128xf32>
    %426 = vector.extract_strided_slice %422 {offsets = [0, 0], sizes = [2, 32], strides = [1, 1]} : vector<2x128xf32> to vector<2x32xf32>
    %427 = arith.negf %426 : vector<2x32xf32>
    %428 = math.exp %427 : vector<2x32xf32>
    %cst_62 = arith.constant 1.000000e+00 : f32
    %429 = vector.broadcast %cst_62 : f32 to vector<2x32xf32>
    %430 = arith.addf %429, %428 : vector<2x32xf32>
    %431 = arith.divf %429, %430 : vector<2x32xf32>
    %432 = vector.extract_strided_slice %422 {offsets = [0, 32], sizes = [2, 32], strides = [1, 1]} : vector<2x128xf32> to vector<2x32xf32>
    %433 = arith.negf %432 : vector<2x32xf32>
    %434 = math.exp %433 : vector<2x32xf32>
    %cst_63 = arith.constant 1.000000e+00 : f32
    %435 = vector.broadcast %cst_63 : f32 to vector<2x32xf32>
    %436 = arith.addf %435, %434 : vector<2x32xf32>
    %437 = arith.divf %435, %436 : vector<2x32xf32>
    %438 = vector.extract_strided_slice %422 {offsets = [0, 64], sizes = [2, 32], strides = [1, 1]} : vector<2x128xf32> to vector<2x32xf32>
    %439 = math.tanh %438 : vector<2x32xf32>
    %440 = vector.extract_strided_slice %422 {offsets = [0, 96], sizes = [2, 32], strides = [1, 1]} : vector<2x128xf32> to vector<2x32xf32>
    %441 = arith.negf %440 : vector<2x32xf32>
    %442 = math.exp %441 : vector<2x32xf32>
    %cst_64 = arith.constant 1.000000e+00 : f32
    %443 = vector.broadcast %cst_64 : f32 to vector<2x32xf32>
    %444 = arith.addf %443, %442 : vector<2x32xf32>
    %445 = arith.divf %443, %444 : vector<2x32xf32>
    %446 = arith.mulf %437, %390 : vector<2x32xf32>
    %447 = arith.mulf %431, %439 : vector<2x32xf32>
    %448 = arith.addf %446, %447 : vector<2x32xf32>
    %449 = math.tanh %448 : vector<2x32xf32>
    %450 = arith.mulf %445, %449 : vector<2x32xf32>
    %451 = vector.extract_strided_slice %425 {offsets = [0, 0], sizes = [2, 32], strides = [1, 1]} : vector<2x128xf32> to vector<2x32xf32>
    %452 = arith.negf %451 : vector<2x32xf32>
    %453 = math.exp %452 : vector<2x32xf32>
    %cst_65 = arith.constant 1.000000e+00 : f32
    %454 = vector.broadcast %cst_65 : f32 to vector<2x32xf32>
    %455 = arith.addf %454, %453 : vector<2x32xf32>
    %456 = arith.divf %454, %455 : vector<2x32xf32>
    %457 = vector.extract_strided_slice %425 {offsets = [0, 32], sizes = [2, 32], strides = [1, 1]} : vector<2x128xf32> to vector<2x32xf32>
    %458 = arith.negf %457 : vector<2x32xf32>
    %459 = math.exp %458 : vector<2x32xf32>
    %cst_66 = arith.constant 1.000000e+00 : f32
    %460 = vector.broadcast %cst_66 : f32 to vector<2x32xf32>
    %461 = arith.addf %460, %459 : vector<2x32xf32>
    %462 = arith.divf %460, %461 : vector<2x32xf32>
    %463 = vector.extract_strided_slice %425 {offsets = [0, 64], sizes = [2, 32], strides = [1, 1]} : vector<2x128xf32> to vector<2x32xf32>
    %464 = math.tanh %463 : vector<2x32xf32>
    %465 = vector.extract_strided_slice %425 {offsets = [0, 96], sizes = [2, 32], strides = [1, 1]} : vector<2x128xf32> to vector<2x32xf32>
    %466 = arith.negf %465 : vector<2x32xf32>
    %467 = math.exp %466 : vector<2x32xf32>
    %cst_67 = arith.constant 1.000000e+00 : f32
    %468 = vector.broadcast %cst_67 : f32 to vector<2x32xf32>
    %469 = arith.addf %468, %467 : vector<2x32xf32>
    %470 = arith.divf %468, %469 : vector<2x32xf32>
    %471 = arith.mulf %462, %415 : vector<2x32xf32>
    %472 = arith.mulf %456, %464 : vector<2x32xf32>
    %473 = arith.addf %471, %472 : vector<2x32xf32>
    %474 = math.tanh %473 : vector<2x32xf32>
    %475 = arith.mulf %470, %474 : vector<2x32xf32>
    %476 = vector.shape_cast %44 : vector<2x32xf32> to vector<2x1x32xf32>
    %477 = vector.shape_cast %102 : vector<2x32xf32> to vector<2x1x32xf32>
    %478 = vector.shape_cast %160 : vector<2x32xf32> to vector<2x1x32xf32>
    %479 = vector.shape_cast %218 : vector<2x32xf32> to vector<2x1x32xf32>
    %480 = vector.shape_cast %276 : vector<2x32xf32> to vector<2x1x32xf32>
    %481 = vector.shape_cast %334 : vector<2x32xf32> to vector<2x1x32xf32>
    %482 = vector.shape_cast %392 : vector<2x32xf32> to vector<2x1x32xf32>
    %483 = vector.shape_cast %450 : vector<2x32xf32> to vector<2x1x32xf32>
    %484 = tpu.concatenate %476, %477, %478, %479, %480, %481, %482, %483 in 1 : vector<2x1x32xf32>, vector<2x1x32xf32>, vector<2x1x32xf32>, vector<2x1x32xf32>, vector<2x1x32xf32>, vector<2x1x32xf32>, vector<2x1x32xf32>, vector<2x1x32xf32> -> vector<2x8x32xf32>
    %485 = vector.shape_cast %475 : vector<2x32xf32> to vector<2x1x32xf32>
    %486 = vector.shape_cast %417 : vector<2x32xf32> to vector<2x1x32xf32>
    %487 = vector.shape_cast %359 : vector<2x32xf32> to vector<2x1x32xf32>
    %488 = vector.shape_cast %301 : vector<2x32xf32> to vector<2x1x32xf32>
    %489 = vector.shape_cast %243 : vector<2x32xf32> to vector<2x1x32xf32>
    %490 = vector.shape_cast %185 : vector<2x32xf32> to vector<2x1x32xf32>
    %491 = vector.shape_cast %127 : vector<2x32xf32> to vector<2x1x32xf32>
    %492 = vector.shape_cast %69 : vector<2x32xf32> to vector<2x1x32xf32>
    %493 = tpu.concatenate %485, %486, %487, %488, %489, %490, %491, %492 in 1 : vector<2x1x32xf32>, vector<2x1x32xf32>, vector<2x1x32xf32>, vector<2x1x32xf32>, vector<2x1x32xf32>, vector<2x1x32xf32>, vector<2x1x32xf32>, vector<2x1x32xf32> -> vector<2x8x32xf32>
    %494 = tpu.concatenate %484, %493 in 2 : vector<2x8x32xf32>, vector<2x8x32xf32> -> vector<2x8x64xf32>
    %c0_68 = arith.constant 0 : index
    %c0_69 = arith.constant 0 : index
    %c0_70 = arith.constant 0 : index
    %c0_71 = arith.constant 0 : index
    %495 = vector.load %arg5[%c0_68, %c0_69, %c0_70, %c0_71] : memref<1x2x8x64xf32, #tpu.memory_space<vmem>>, vector<1x2x8x64xf32>
    %496 = vector.shape_cast %495 : vector<1x2x8x64xf32> to vector<2x8x64xf32>
    %497 = vector.shape_cast %494 : vector<2x8x64xf32> to vector<1x2x8x64xf32>
    tpu.vector_store %arg5[%c0_68, %c0_69, %c0_70, %c0_71], %497 {strides = array<i32>} : memref<1x2x8x64xf32, #tpu.memory_space<vmem>>, vector<1x2x8x64xf32>,
    return
  }
  func.func @transform_0(%arg0: i32) -> (i32, i32, i32) {
    %c0_i32 = arith.constant 0 : i32
    %c0_i32_0 = arith.constant 0 : i32
    %c0_i32_1 = arith.constant 0 : i32
    return %arg0, %c0_i32, %c0_i32_0 : i32, i32, i32
  }
  func.func @transform_1(%arg0: i32) -> (i32, i32) {
    %c0_i32 = arith.constant 0 : i32
    %c0_i32_0 = arith.constant 0 : i32
    %c0_i32_1 = arith.constant 0 : i32
    return %c0_i32, %c0_i32_0 : i32, i32
  }
  func.func @transform_2(%arg0: i32) -> (i32, i32) {
    %c0_i32 = arith.constant 0 : i32
    %c0_i32_0 = arith.constant 0 : i32
    %c0_i32_1 = arith.constant 0 : i32
    return %c0_i32, %c0_i32_0 : i32, i32
  }
  func.func @transform_3(%arg0: i32) -> (i32, i32) {
    %c0_i32 = arith.constant 0 : i32
    %c0_i32_0 = arith.constant 0 : i32
    %c0_i32_1 = arith.constant 0 : i32
    return %c0_i32, %c0_i32_0 : i32, i32
  }
  func.func @transform_4(%arg0: i32) -> (i32, i32, i32, i32) {
    %c0_i32 = arith.constant 0 : i32
    %c0_i32_0 = arith.constant 0 : i32
    %c0_i32_1 = arith.constant 0 : i32
    %c0_i32_2 = arith.constant 0 : i32
    return %arg0, %c0_i32, %c0_i32_0, %c0_i32_1 : i32, i32, i32, i32
  }
}

module attributes {stable_mosaic.version = 11 : i64} {
  func.func @_agg_predict_kernel(%arg0: i32, %arg1: memref<32x64xf32, #tpu.memory_space<vmem>>, %arg2: memref<64x256xf32, #tpu.memory_space<vmem>>, %arg3: memref<1x256xf32, #tpu.memory_space<vmem>>, %arg4: memref<64x256xf32, #tpu.memory_space<vmem>>, %arg5: memref<128x64xf32, #tpu.memory_space<vmem>>, %arg6: memref<1x64xf32, #tpu.memory_space<vmem>>, %arg7: memref<64x2xf32, #tpu.memory_space<vmem>>, %arg8: memref<1x2xf32, #tpu.memory_space<vmem>>, %arg9: memref<2x2xf32, #tpu.memory_space<vmem>>) attributes {dimension_semantics = [#tpu.dimension_semantics<arbitrary>], iteration_bounds = array<i64: 1>, scalar_prefetch = 0 : i64, scratch_operands = 0 : i64, tpu.core_type = #tpu.core_type<tc>, window_params = [{pipeline_mode = #tpu.pipeline_mode<synchronous>, transform_indices = @transform_0, window_bounds = array<i64: 32, 64>}, {pipeline_mode = #tpu.pipeline_mode<synchronous>, transform_indices = @transform_1, window_bounds = array<i64: 64, 256>}, {pipeline_mode = #tpu.pipeline_mode<synchronous>, transform_indices = @transform_2, window_bounds = array<i64: 1, 256>}, {pipeline_mode = #tpu.pipeline_mode<synchronous>, transform_indices = @transform_3, window_bounds = array<i64: 64, 256>}, {pipeline_mode = #tpu.pipeline_mode<synchronous>, transform_indices = @transform_4, window_bounds = array<i64: 128, 64>}, {pipeline_mode = #tpu.pipeline_mode<synchronous>, transform_indices = @transform_5, window_bounds = array<i64: 1, 64>}, {pipeline_mode = #tpu.pipeline_mode<synchronous>, transform_indices = @transform_6, window_bounds = array<i64: 64, 2>}, {pipeline_mode = #tpu.pipeline_mode<synchronous>, transform_indices = @transform_7, window_bounds = array<i64: 1, 2>}, {pipeline_mode = #tpu.pipeline_mode<synchronous>, transform_indices = @transform_8, window_bounds = array<i64: 2, 2>}]} {
    %c0 = arith.constant 0 : index
    %c0_0 = arith.constant 0 : index
    %0 = vector.load %arg1[%c0, %c0_0] : memref<32x64xf32, #tpu.memory_space<vmem>>, vector<32x64xf32>
    %c0_1 = arith.constant 0 : index
    %c0_2 = arith.constant 0 : index
    %1 = vector.load %arg2[%c0_1, %c0_2] : memref<64x256xf32, #tpu.memory_space<vmem>>, vector<64x256xf32>
    %cst = arith.constant dense<0.000000e+00> : vector<32x256xf32>
    %2 = tpu.matmul %0, %1, %cst {dimension_numbers = #tpu.dot_dimension_numbers<[1], [0], [0], [1], [0, 0, 1, 1], [], []>} : vector<32x64xf32>, vector<64x256xf32>, vector<32x256xf32> -> vector<32x256xf32>
    %c0_3 = arith.constant 0 : index
    %c0_4 = arith.constant 0 : index
    %3 = vector.load %arg3[%c0_3, %c0_4] : memref<1x256xf32, #tpu.memory_space<vmem>>, vector<1x256xf32>
    %4 = vector.broadcast %3 : vector<1x256xf32> to vector<32x256xf32>
    %5 = arith.addf %2, %4 : vector<32x256xf32>
    %c0_5 = arith.constant 0 : index
    %c0_6 = arith.constant 0 : index
    %6 = vector.load %arg4[%c0_5, %c0_6] : memref<64x256xf32, #tpu.memory_space<vmem>>, vector<64x256xf32>
    %cst_7 = arith.constant 0.000000e+00 : f32
    %7 = vector.broadcast %cst_7 : f32 to vector<4x32xf32>
    %cst_8 = arith.constant 0.000000e+00 : f32
    %8 = vector.broadcast %cst_8 : f32 to vector<4x32xf32>
    %cst_9 = arith.constant 0.000000e+00 : f32
    %9 = vector.broadcast %cst_9 : f32 to vector<4x32xf32>
    %cst_10 = arith.constant 0.000000e+00 : f32
    %10 = vector.broadcast %cst_10 : f32 to vector<4x32xf32>
    %11 = tpu.concatenate %7, %9 in 1 : vector<4x32xf32>, vector<4x32xf32> -> vector<4x64xf32>
    %cst_11 = arith.constant dense<0.000000e+00> : vector<4x256xf32>
    %12 = tpu.matmul %11, %6, %cst_11 {dimension_numbers = #tpu.dot_dimension_numbers<[1], [0], [0], [1], [0, 0, 1, 1], [], []>} : vector<4x64xf32>, vector<64x256xf32>, vector<4x256xf32> -> vector<4x256xf32>
    %13 = vector.extract_strided_slice %5 {offsets = [0, 0], sizes = [4, 128], strides = [1, 1]} : vector<32x256xf32> to vector<4x128xf32>
    %14 = vector.extract_strided_slice %12 {offsets = [0, 0], sizes = [4, 128], strides = [1, 1]} : vector<4x256xf32> to vector<4x128xf32>
    %15 = arith.addf %13, %14 : vector<4x128xf32>
    %16 = vector.extract_strided_slice %5 {offsets = [28, 128], sizes = [4, 128], strides = [1, 1]} : vector<32x256xf32> to vector<4x128xf32>
    %17 = vector.extract_strided_slice %12 {offsets = [0, 128], sizes = [4, 128], strides = [1, 1]} : vector<4x256xf32> to vector<4x128xf32>
    %18 = arith.addf %16, %17 : vector<4x128xf32>
    %19 = vector.extract_strided_slice %15 {offsets = [0, 0], sizes = [4, 32], strides = [1, 1]} : vector<4x128xf32> to vector<4x32xf32>
    %20 = arith.negf %19 : vector<4x32xf32>
    %21 = math.exp %20 : vector<4x32xf32>
    %cst_12 = arith.constant 1.000000e+00 : f32
    %22 = vector.broadcast %cst_12 : f32 to vector<4x32xf32>
    %23 = arith.addf %22, %21 : vector<4x32xf32>
    %24 = arith.divf %22, %23 : vector<4x32xf32>
    %25 = vector.extract_strided_slice %15 {offsets = [0, 32], sizes = [4, 32], strides = [1, 1]} : vector<4x128xf32> to vector<4x32xf32>
    %26 = arith.negf %25 : vector<4x32xf32>
    %27 = math.exp %26 : vector<4x32xf32>
    %cst_13 = arith.constant 1.000000e+00 : f32
    %28 = vector.broadcast %cst_13 : f32 to vector<4x32xf32>
    %29 = arith.addf %28, %27 : vector<4x32xf32>
    %30 = arith.divf %28, %29 : vector<4x32xf32>
    %31 = vector.extract_strided_slice %15 {offsets = [0, 64], sizes = [4, 32], strides = [1, 1]} : vector<4x128xf32> to vector<4x32xf32>
    %32 = math.tanh %31 : vector<4x32xf32>
    %33 = vector.extract_strided_slice %15 {offsets = [0, 96], sizes = [4, 32], strides = [1, 1]} : vector<4x128xf32> to vector<4x32xf32>
    %34 = arith.negf %33 : vector<4x32xf32>
    %35 = math.exp %34 : vector<4x32xf32>
    %cst_14 = arith.constant 1.000000e+00 : f32
    %36 = vector.broadcast %cst_14 : f32 to vector<4x32xf32>
    %37 = arith.addf %36, %35 : vector<4x32xf32>
    %38 = arith.divf %36, %37 : vector<4x32xf32>
    %39 = arith.mulf %30, %8 : vector<4x32xf32>
    %40 = arith.mulf %24, %32 : vector<4x32xf32>
    %41 = arith.addf %39, %40 : vector<4x32xf32>
    %42 = math.tanh %41 : vector<4x32xf32>
    %43 = arith.mulf %38, %42 : vector<4x32xf32>
    %44 = vector.extract_strided_slice %18 {offsets = [0, 0], sizes = [4, 32], strides = [1, 1]} : vector<4x128xf32> to vector<4x32xf32>
    %45 = arith.negf %44 : vector<4x32xf32>
    %46 = math.exp %45 : vector<4x32xf32>
    %cst_15 = arith.constant 1.000000e+00 : f32
    %47 = vector.broadcast %cst_15 : f32 to vector<4x32xf32>
    %48 = arith.addf %47, %46 : vector<4x32xf32>
    %49 = arith.divf %47, %48 : vector<4x32xf32>
    %50 = vector.extract_strided_slice %18 {offsets = [0, 32], sizes = [4, 32], strides = [1, 1]} : vector<4x128xf32> to vector<4x32xf32>
    %51 = arith.negf %50 : vector<4x32xf32>
    %52 = math.exp %51 : vector<4x32xf32>
    %cst_16 = arith.constant 1.000000e+00 : f32
    %53 = vector.broadcast %cst_16 : f32 to vector<4x32xf32>
    %54 = arith.addf %53, %52 : vector<4x32xf32>
    %55 = arith.divf %53, %54 : vector<4x32xf32>
    %56 = vector.extract_strided_slice %18 {offsets = [0, 64], sizes = [4, 32], strides = [1, 1]} : vector<4x128xf32> to vector<4x32xf32>
    %57 = math.tanh %56 : vector<4x32xf32>
    %58 = vector.extract_strided_slice %18 {offsets = [0, 96], sizes = [4, 32], strides = [1, 1]} : vector<4x128xf32> to vector<4x32xf32>
    %59 = arith.negf %58 : vector<4x32xf32>
    %60 = math.exp %59 : vector<4x32xf32>
    %cst_17 = arith.constant 1.000000e+00 : f32
    %61 = vector.broadcast %cst_17 : f32 to vector<4x32xf32>
    %62 = arith.addf %61, %60 : vector<4x32xf32>
    %63 = arith.divf %61, %62 : vector<4x32xf32>
    %64 = arith.mulf %55, %10 : vector<4x32xf32>
    %65 = arith.mulf %49, %57 : vector<4x32xf32>
    %66 = arith.addf %64, %65 : vector<4x32xf32>
    %67 = math.tanh %66 : vector<4x32xf32>
    %68 = arith.mulf %63, %67 : vector<4x32xf32>
    %69 = tpu.concatenate %43, %68 in 1 : vector<4x32xf32>, vector<4x32xf32> -> vector<4x64xf32>
    %cst_18 = arith.constant dense<0.000000e+00> : vector<4x256xf32>
    %70 = tpu.matmul %69, %6, %cst_18 {dimension_numbers = #tpu.dot_dimension_numbers<[1], [0], [0], [1], [0, 0, 1, 1], [], []>} : vector<4x64xf32>, vector<64x256xf32>, vector<4x256xf32> -> vector<4x256xf32>
    %71 = vector.extract_strided_slice %5 {offsets = [4, 0], sizes = [4, 128], strides = [1, 1]} : vector<32x256xf32> to vector<4x128xf32>
    %72 = vector.extract_strided_slice %70 {offsets = [0, 0], sizes = [4, 128], strides = [1, 1]} : vector<4x256xf32> to vector<4x128xf32>
    %73 = arith.addf %71, %72 : vector<4x128xf32>
    %74 = vector.extract_strided_slice %5 {offsets = [24, 128], sizes = [4, 128], strides = [1, 1]} : vector<32x256xf32> to vector<4x128xf32>
    %75 = vector.extract_strided_slice %70 {offsets = [0, 128], sizes = [4, 128], strides = [1, 1]} : vector<4x256xf32> to vector<4x128xf32>
    %76 = arith.addf %74, %75 : vector<4x128xf32>
    %77 = vector.extract_strided_slice %73 {offsets = [0, 0], sizes = [4, 32], strides = [1, 1]} : vector<4x128xf32> to vector<4x32xf32>
    %78 = arith.negf %77 : vector<4x32xf32>
    %79 = math.exp %78 : vector<4x32xf32>
    %cst_19 = arith.constant 1.000000e+00 : f32
    %80 = vector.broadcast %cst_19 : f32 to vector<4x32xf32>
    %81 = arith.addf %80, %79 : vector<4x32xf32>
    %82 = arith.divf %80, %81 : vector<4x32xf32>
    %83 = vector.extract_strided_slice %73 {offsets = [0, 32], sizes = [4, 32], strides = [1, 1]} : vector<4x128xf32> to vector<4x32xf32>
    %84 = arith.negf %83 : vector<4x32xf32>
    %85 = math.exp %84 : vector<4x32xf32>
    %cst_20 = arith.constant 1.000000e+00 : f32
    %86 = vector.broadcast %cst_20 : f32 to vector<4x32xf32>
    %87 = arith.addf %86, %85 : vector<4x32xf32>
    %88 = arith.divf %86, %87 : vector<4x32xf32>
    %89 = vector.extract_strided_slice %73 {offsets = [0, 64], sizes = [4, 32], strides = [1, 1]} : vector<4x128xf32> to vector<4x32xf32>
    %90 = math.tanh %89 : vector<4x32xf32>
    %91 = vector.extract_strided_slice %73 {offsets = [0, 96], sizes = [4, 32], strides = [1, 1]} : vector<4x128xf32> to vector<4x32xf32>
    %92 = arith.negf %91 : vector<4x32xf32>
    %93 = math.exp %92 : vector<4x32xf32>
    %cst_21 = arith.constant 1.000000e+00 : f32
    %94 = vector.broadcast %cst_21 : f32 to vector<4x32xf32>
    %95 = arith.addf %94, %93 : vector<4x32xf32>
    %96 = arith.divf %94, %95 : vector<4x32xf32>
    %97 = arith.mulf %88, %41 : vector<4x32xf32>
    %98 = arith.mulf %82, %90 : vector<4x32xf32>
    %99 = arith.addf %97, %98 : vector<4x32xf32>
    %100 = math.tanh %99 : vector<4x32xf32>
    %101 = arith.mulf %96, %100 : vector<4x32xf32>
    %102 = vector.extract_strided_slice %76 {offsets = [0, 0], sizes = [4, 32], strides = [1, 1]} : vector<4x128xf32> to vector<4x32xf32>
    %103 = arith.negf %102 : vector<4x32xf32>
    %104 = math.exp %103 : vector<4x32xf32>
    %cst_22 = arith.constant 1.000000e+00 : f32
    %105 = vector.broadcast %cst_22 : f32 to vector<4x32xf32>
    %106 = arith.addf %105, %104 : vector<4x32xf32>
    %107 = arith.divf %105, %106 : vector<4x32xf32>
    %108 = vector.extract_strided_slice %76 {offsets = [0, 32], sizes = [4, 32], strides = [1, 1]} : vector<4x128xf32> to vector<4x32xf32>
    %109 = arith.negf %108 : vector<4x32xf32>
    %110 = math.exp %109 : vector<4x32xf32>
    %cst_23 = arith.constant 1.000000e+00 : f32
    %111 = vector.broadcast %cst_23 : f32 to vector<4x32xf32>
    %112 = arith.addf %111, %110 : vector<4x32xf32>
    %113 = arith.divf %111, %112 : vector<4x32xf32>
    %114 = vector.extract_strided_slice %76 {offsets = [0, 64], sizes = [4, 32], strides = [1, 1]} : vector<4x128xf32> to vector<4x32xf32>
    %115 = math.tanh %114 : vector<4x32xf32>
    %116 = vector.extract_strided_slice %76 {offsets = [0, 96], sizes = [4, 32], strides = [1, 1]} : vector<4x128xf32> to vector<4x32xf32>
    %117 = arith.negf %116 : vector<4x32xf32>
    %118 = math.exp %117 : vector<4x32xf32>
    %cst_24 = arith.constant 1.000000e+00 : f32
    %119 = vector.broadcast %cst_24 : f32 to vector<4x32xf32>
    %120 = arith.addf %119, %118 : vector<4x32xf32>
    %121 = arith.divf %119, %120 : vector<4x32xf32>
    %122 = arith.mulf %113, %66 : vector<4x32xf32>
    %123 = arith.mulf %107, %115 : vector<4x32xf32>
    %124 = arith.addf %122, %123 : vector<4x32xf32>
    %125 = math.tanh %124 : vector<4x32xf32>
    %126 = arith.mulf %121, %125 : vector<4x32xf32>
    %127 = tpu.concatenate %101, %126 in 1 : vector<4x32xf32>, vector<4x32xf32> -> vector<4x64xf32>
    %cst_25 = arith.constant dense<0.000000e+00> : vector<4x256xf32>
    %128 = tpu.matmul %127, %6, %cst_25 {dimension_numbers = #tpu.dot_dimension_numbers<[1], [0], [0], [1], [0, 0, 1, 1], [], []>} : vector<4x64xf32>, vector<64x256xf32>, vector<4x256xf32> -> vector<4x256xf32>
    %129 = vector.extract_strided_slice %5 {offsets = [8, 0], sizes = [4, 128], strides = [1, 1]} : vector<32x256xf32> to vector<4x128xf32>
    %130 = vector.extract_strided_slice %128 {offsets = [0, 0], sizes = [4, 128], strides = [1, 1]} : vector<4x256xf32> to vector<4x128xf32>
    %131 = arith.addf %129, %130 : vector<4x128xf32>
    %132 = vector.extract_strided_slice %5 {offsets = [20, 128], sizes = [4, 128], strides = [1, 1]} : vector<32x256xf32> to vector<4x128xf32>
    %133 = vector.extract_strided_slice %128 {offsets = [0, 128], sizes = [4, 128], strides = [1, 1]} : vector<4x256xf32> to vector<4x128xf32>
    %134 = arith.addf %132, %133 : vector<4x128xf32>
    %135 = vector.extract_strided_slice %131 {offsets = [0, 0], sizes = [4, 32], strides = [1, 1]} : vector<4x128xf32> to vector<4x32xf32>
    %136 = arith.negf %135 : vector<4x32xf32>
    %137 = math.exp %136 : vector<4x32xf32>
    %cst_26 = arith.constant 1.000000e+00 : f32
    %138 = vector.broadcast %cst_26 : f32 to vector<4x32xf32>
    %139 = arith.addf %138, %137 : vector<4x32xf32>
    %140 = arith.divf %138, %139 : vector<4x32xf32>
    %141 = vector.extract_strided_slice %131 {offsets = [0, 32], sizes = [4, 32], strides = [1, 1]} : vector<4x128xf32> to vector<4x32xf32>
    %142 = arith.negf %141 : vector<4x32xf32>
    %143 = math.exp %142 : vector<4x32xf32>
    %cst_27 = arith.constant 1.000000e+00 : f32
    %144 = vector.broadcast %cst_27 : f32 to vector<4x32xf32>
    %145 = arith.addf %144, %143 : vector<4x32xf32>
    %146 = arith.divf %144, %145 : vector<4x32xf32>
    %147 = vector.extract_strided_slice %131 {offsets = [0, 64], sizes = [4, 32], strides = [1, 1]} : vector<4x128xf32> to vector<4x32xf32>
    %148 = math.tanh %147 : vector<4x32xf32>
    %149 = vector.extract_strided_slice %131 {offsets = [0, 96], sizes = [4, 32], strides = [1, 1]} : vector<4x128xf32> to vector<4x32xf32>
    %150 = arith.negf %149 : vector<4x32xf32>
    %151 = math.exp %150 : vector<4x32xf32>
    %cst_28 = arith.constant 1.000000e+00 : f32
    %152 = vector.broadcast %cst_28 : f32 to vector<4x32xf32>
    %153 = arith.addf %152, %151 : vector<4x32xf32>
    %154 = arith.divf %152, %153 : vector<4x32xf32>
    %155 = arith.mulf %146, %99 : vector<4x32xf32>
    %156 = arith.mulf %140, %148 : vector<4x32xf32>
    %157 = arith.addf %155, %156 : vector<4x32xf32>
    %158 = math.tanh %157 : vector<4x32xf32>
    %159 = arith.mulf %154, %158 : vector<4x32xf32>
    %160 = vector.extract_strided_slice %134 {offsets = [0, 0], sizes = [4, 32], strides = [1, 1]} : vector<4x128xf32> to vector<4x32xf32>
    %161 = arith.negf %160 : vector<4x32xf32>
    %162 = math.exp %161 : vector<4x32xf32>
    %cst_29 = arith.constant 1.000000e+00 : f32
    %163 = vector.broadcast %cst_29 : f32 to vector<4x32xf32>
    %164 = arith.addf %163, %162 : vector<4x32xf32>
    %165 = arith.divf %163, %164 : vector<4x32xf32>
    %166 = vector.extract_strided_slice %134 {offsets = [0, 32], sizes = [4, 32], strides = [1, 1]} : vector<4x128xf32> to vector<4x32xf32>
    %167 = arith.negf %166 : vector<4x32xf32>
    %168 = math.exp %167 : vector<4x32xf32>
    %cst_30 = arith.constant 1.000000e+00 : f32
    %169 = vector.broadcast %cst_30 : f32 to vector<4x32xf32>
    %170 = arith.addf %169, %168 : vector<4x32xf32>
    %171 = arith.divf %169, %170 : vector<4x32xf32>
    %172 = vector.extract_strided_slice %134 {offsets = [0, 64], sizes = [4, 32], strides = [1, 1]} : vector<4x128xf32> to vector<4x32xf32>
    %173 = math.tanh %172 : vector<4x32xf32>
    %174 = vector.extract_strided_slice %134 {offsets = [0, 96], sizes = [4, 32], strides = [1, 1]} : vector<4x128xf32> to vector<4x32xf32>
    %175 = arith.negf %174 : vector<4x32xf32>
    %176 = math.exp %175 : vector<4x32xf32>
    %cst_31 = arith.constant 1.000000e+00 : f32
    %177 = vector.broadcast %cst_31 : f32 to vector<4x32xf32>
    %178 = arith.addf %177, %176 : vector<4x32xf32>
    %179 = arith.divf %177, %178 : vector<4x32xf32>
    %180 = arith.mulf %171, %124 : vector<4x32xf32>
    %181 = arith.mulf %165, %173 : vector<4x32xf32>
    %182 = arith.addf %180, %181 : vector<4x32xf32>
    %183 = math.tanh %182 : vector<4x32xf32>
    %184 = arith.mulf %179, %183 : vector<4x32xf32>
    %185 = tpu.concatenate %159, %184 in 1 : vector<4x32xf32>, vector<4x32xf32> -> vector<4x64xf32>
    %cst_32 = arith.constant dense<0.000000e+00> : vector<4x256xf32>
    %186 = tpu.matmul %185, %6, %cst_32 {dimension_numbers = #tpu.dot_dimension_numbers<[1], [0], [0], [1], [0, 0, 1, 1], [], []>} : vector<4x64xf32>, vector<64x256xf32>, vector<4x256xf32> -> vector<4x256xf32>
    %187 = vector.extract_strided_slice %5 {offsets = [12, 0], sizes = [4, 128], strides = [1, 1]} : vector<32x256xf32> to vector<4x128xf32>
    %188 = vector.extract_strided_slice %186 {offsets = [0, 0], sizes = [4, 128], strides = [1, 1]} : vector<4x256xf32> to vector<4x128xf32>
    %189 = arith.addf %187, %188 : vector<4x128xf32>
    %190 = vector.extract_strided_slice %5 {offsets = [16, 128], sizes = [4, 128], strides = [1, 1]} : vector<32x256xf32> to vector<4x128xf32>
    %191 = vector.extract_strided_slice %186 {offsets = [0, 128], sizes = [4, 128], strides = [1, 1]} : vector<4x256xf32> to vector<4x128xf32>
    %192 = arith.addf %190, %191 : vector<4x128xf32>
    %193 = vector.extract_strided_slice %189 {offsets = [0, 0], sizes = [4, 32], strides = [1, 1]} : vector<4x128xf32> to vector<4x32xf32>
    %194 = arith.negf %193 : vector<4x32xf32>
    %195 = math.exp %194 : vector<4x32xf32>
    %cst_33 = arith.constant 1.000000e+00 : f32
    %196 = vector.broadcast %cst_33 : f32 to vector<4x32xf32>
    %197 = arith.addf %196, %195 : vector<4x32xf32>
    %198 = arith.divf %196, %197 : vector<4x32xf32>
    %199 = vector.extract_strided_slice %189 {offsets = [0, 32], sizes = [4, 32], strides = [1, 1]} : vector<4x128xf32> to vector<4x32xf32>
    %200 = arith.negf %199 : vector<4x32xf32>
    %201 = math.exp %200 : vector<4x32xf32>
    %cst_34 = arith.constant 1.000000e+00 : f32
    %202 = vector.broadcast %cst_34 : f32 to vector<4x32xf32>
    %203 = arith.addf %202, %201 : vector<4x32xf32>
    %204 = arith.divf %202, %203 : vector<4x32xf32>
    %205 = vector.extract_strided_slice %189 {offsets = [0, 64], sizes = [4, 32], strides = [1, 1]} : vector<4x128xf32> to vector<4x32xf32>
    %206 = math.tanh %205 : vector<4x32xf32>
    %207 = vector.extract_strided_slice %189 {offsets = [0, 96], sizes = [4, 32], strides = [1, 1]} : vector<4x128xf32> to vector<4x32xf32>
    %208 = arith.negf %207 : vector<4x32xf32>
    %209 = math.exp %208 : vector<4x32xf32>
    %cst_35 = arith.constant 1.000000e+00 : f32
    %210 = vector.broadcast %cst_35 : f32 to vector<4x32xf32>
    %211 = arith.addf %210, %209 : vector<4x32xf32>
    %212 = arith.divf %210, %211 : vector<4x32xf32>
    %213 = arith.mulf %204, %157 : vector<4x32xf32>
    %214 = arith.mulf %198, %206 : vector<4x32xf32>
    %215 = arith.addf %213, %214 : vector<4x32xf32>
    %216 = math.tanh %215 : vector<4x32xf32>
    %217 = arith.mulf %212, %216 : vector<4x32xf32>
    %218 = vector.extract_strided_slice %192 {offsets = [0, 0], sizes = [4, 32], strides = [1, 1]} : vector<4x128xf32> to vector<4x32xf32>
    %219 = arith.negf %218 : vector<4x32xf32>
    %220 = math.exp %219 : vector<4x32xf32>
    %cst_36 = arith.constant 1.000000e+00 : f32
    %221 = vector.broadcast %cst_36 : f32 to vector<4x32xf32>
    %222 = arith.addf %221, %220 : vector<4x32xf32>
    %223 = arith.divf %221, %222 : vector<4x32xf32>
    %224 = vector.extract_strided_slice %192 {offsets = [0, 32], sizes = [4, 32], strides = [1, 1]} : vector<4x128xf32> to vector<4x32xf32>
    %225 = arith.negf %224 : vector<4x32xf32>
    %226 = math.exp %225 : vector<4x32xf32>
    %cst_37 = arith.constant 1.000000e+00 : f32
    %227 = vector.broadcast %cst_37 : f32 to vector<4x32xf32>
    %228 = arith.addf %227, %226 : vector<4x32xf32>
    %229 = arith.divf %227, %228 : vector<4x32xf32>
    %230 = vector.extract_strided_slice %192 {offsets = [0, 64], sizes = [4, 32], strides = [1, 1]} : vector<4x128xf32> to vector<4x32xf32>
    %231 = math.tanh %230 : vector<4x32xf32>
    %232 = vector.extract_strided_slice %192 {offsets = [0, 96], sizes = [4, 32], strides = [1, 1]} : vector<4x128xf32> to vector<4x32xf32>
    %233 = arith.negf %232 : vector<4x32xf32>
    %234 = math.exp %233 : vector<4x32xf32>
    %cst_38 = arith.constant 1.000000e+00 : f32
    %235 = vector.broadcast %cst_38 : f32 to vector<4x32xf32>
    %236 = arith.addf %235, %234 : vector<4x32xf32>
    %237 = arith.divf %235, %236 : vector<4x32xf32>
    %238 = arith.mulf %229, %182 : vector<4x32xf32>
    %239 = arith.mulf %223, %231 : vector<4x32xf32>
    %240 = arith.addf %238, %239 : vector<4x32xf32>
    %241 = math.tanh %240 : vector<4x32xf32>
    %242 = arith.mulf %237, %241 : vector<4x32xf32>
    %243 = tpu.concatenate %217, %242 in 1 : vector<4x32xf32>, vector<4x32xf32> -> vector<4x64xf32>
    %cst_39 = arith.constant dense<0.000000e+00> : vector<4x256xf32>
    %244 = tpu.matmul %243, %6, %cst_39 {dimension_numbers = #tpu.dot_dimension_numbers<[1], [0], [0], [1], [0, 0, 1, 1], [], []>} : vector<4x64xf32>, vector<64x256xf32>, vector<4x256xf32> -> vector<4x256xf32>
    %245 = vector.extract_strided_slice %5 {offsets = [16, 0], sizes = [4, 128], strides = [1, 1]} : vector<32x256xf32> to vector<4x128xf32>
    %246 = vector.extract_strided_slice %244 {offsets = [0, 0], sizes = [4, 128], strides = [1, 1]} : vector<4x256xf32> to vector<4x128xf32>
    %247 = arith.addf %245, %246 : vector<4x128xf32>
    %248 = vector.extract_strided_slice %5 {offsets = [12, 128], sizes = [4, 128], strides = [1, 1]} : vector<32x256xf32> to vector<4x128xf32>
    %249 = vector.extract_strided_slice %244 {offsets = [0, 128], sizes = [4, 128], strides = [1, 1]} : vector<4x256xf32> to vector<4x128xf32>
    %250 = arith.addf %248, %249 : vector<4x128xf32>
    %251 = vector.extract_strided_slice %247 {offsets = [0, 0], sizes = [4, 32], strides = [1, 1]} : vector<4x128xf32> to vector<4x32xf32>
    %252 = arith.negf %251 : vector<4x32xf32>
    %253 = math.exp %252 : vector<4x32xf32>
    %cst_40 = arith.constant 1.000000e+00 : f32
    %254 = vector.broadcast %cst_40 : f32 to vector<4x32xf32>
    %255 = arith.addf %254, %253 : vector<4x32xf32>
    %256 = arith.divf %254, %255 : vector<4x32xf32>
    %257 = vector.extract_strided_slice %247 {offsets = [0, 32], sizes = [4, 32], strides = [1, 1]} : vector<4x128xf32> to vector<4x32xf32>
    %258 = arith.negf %257 : vector<4x32xf32>
    %259 = math.exp %258 : vector<4x32xf32>
    %cst_41 = arith.constant 1.000000e+00 : f32
    %260 = vector.broadcast %cst_41 : f32 to vector<4x32xf32>
    %261 = arith.addf %260, %259 : vector<4x32xf32>
    %262 = arith.divf %260, %261 : vector<4x32xf32>
    %263 = vector.extract_strided_slice %247 {offsets = [0, 64], sizes = [4, 32], strides = [1, 1]} : vector<4x128xf32> to vector<4x32xf32>
    %264 = math.tanh %263 : vector<4x32xf32>
    %265 = vector.extract_strided_slice %247 {offsets = [0, 96], sizes = [4, 32], strides = [1, 1]} : vector<4x128xf32> to vector<4x32xf32>
    %266 = arith.negf %265 : vector<4x32xf32>
    %267 = math.exp %266 : vector<4x32xf32>
    %cst_42 = arith.constant 1.000000e+00 : f32
    %268 = vector.broadcast %cst_42 : f32 to vector<4x32xf32>
    %269 = arith.addf %268, %267 : vector<4x32xf32>
    %270 = arith.divf %268, %269 : vector<4x32xf32>
    %271 = arith.mulf %262, %215 : vector<4x32xf32>
    %272 = arith.mulf %256, %264 : vector<4x32xf32>
    %273 = arith.addf %271, %272 : vector<4x32xf32>
    %274 = math.tanh %273 : vector<4x32xf32>
    %275 = arith.mulf %270, %274 : vector<4x32xf32>
    %276 = vector.extract_strided_slice %250 {offsets = [0, 0], sizes = [4, 32], strides = [1, 1]} : vector<4x128xf32> to vector<4x32xf32>
    %277 = arith.negf %276 : vector<4x32xf32>
    %278 = math.exp %277 : vector<4x32xf32>
    %cst_43 = arith.constant 1.000000e+00 : f32
    %279 = vector.broadcast %cst_43 : f32 to vector<4x32xf32>
    %280 = arith.addf %279, %278 : vector<4x32xf32>
    %281 = arith.divf %279, %280 : vector<4x32xf32>
    %282 = vector.extract_strided_slice %250 {offsets = [0, 32], sizes = [4, 32], strides = [1, 1]} : vector<4x128xf32> to vector<4x32xf32>
    %283 = arith.negf %282 : vector<4x32xf32>
    %284 = math.exp %283 : vector<4x32xf32>
    %cst_44 = arith.constant 1.000000e+00 : f32
    %285 = vector.broadcast %cst_44 : f32 to vector<4x32xf32>
    %286 = arith.addf %285, %284 : vector<4x32xf32>
    %287 = arith.divf %285, %286 : vector<4x32xf32>
    %288 = vector.extract_strided_slice %250 {offsets = [0, 64], sizes = [4, 32], strides = [1, 1]} : vector<4x128xf32> to vector<4x32xf32>
    %289 = math.tanh %288 : vector<4x32xf32>
    %290 = vector.extract_strided_slice %250 {offsets = [0, 96], sizes = [4, 32], strides = [1, 1]} : vector<4x128xf32> to vector<4x32xf32>
    %291 = arith.negf %290 : vector<4x32xf32>
    %292 = math.exp %291 : vector<4x32xf32>
    %cst_45 = arith.constant 1.000000e+00 : f32
    %293 = vector.broadcast %cst_45 : f32 to vector<4x32xf32>
    %294 = arith.addf %293, %292 : vector<4x32xf32>
    %295 = arith.divf %293, %294 : vector<4x32xf32>
    %296 = arith.mulf %287, %240 : vector<4x32xf32>
    %297 = arith.mulf %281, %289 : vector<4x32xf32>
    %298 = arith.addf %296, %297 : vector<4x32xf32>
    %299 = math.tanh %298 : vector<4x32xf32>
    %300 = arith.mulf %295, %299 : vector<4x32xf32>
    %301 = tpu.concatenate %275, %300 in 1 : vector<4x32xf32>, vector<4x32xf32> -> vector<4x64xf32>
    %cst_46 = arith.constant dense<0.000000e+00> : vector<4x256xf32>
    %302 = tpu.matmul %301, %6, %cst_46 {dimension_numbers = #tpu.dot_dimension_numbers<[1], [0], [0], [1], [0, 0, 1, 1], [], []>} : vector<4x64xf32>, vector<64x256xf32>, vector<4x256xf32> -> vector<4x256xf32>
    %303 = vector.extract_strided_slice %5 {offsets = [20, 0], sizes = [4, 128], strides = [1, 1]} : vector<32x256xf32> to vector<4x128xf32>
    %304 = vector.extract_strided_slice %302 {offsets = [0, 0], sizes = [4, 128], strides = [1, 1]} : vector<4x256xf32> to vector<4x128xf32>
    %305 = arith.addf %303, %304 : vector<4x128xf32>
    %306 = vector.extract_strided_slice %5 {offsets = [8, 128], sizes = [4, 128], strides = [1, 1]} : vector<32x256xf32> to vector<4x128xf32>
    %307 = vector.extract_strided_slice %302 {offsets = [0, 128], sizes = [4, 128], strides = [1, 1]} : vector<4x256xf32> to vector<4x128xf32>
    %308 = arith.addf %306, %307 : vector<4x128xf32>
    %309 = vector.extract_strided_slice %305 {offsets = [0, 0], sizes = [4, 32], strides = [1, 1]} : vector<4x128xf32> to vector<4x32xf32>
    %310 = arith.negf %309 : vector<4x32xf32>
    %311 = math.exp %310 : vector<4x32xf32>
    %cst_47 = arith.constant 1.000000e+00 : f32
    %312 = vector.broadcast %cst_47 : f32 to vector<4x32xf32>
    %313 = arith.addf %312, %311 : vector<4x32xf32>
    %314 = arith.divf %312, %313 : vector<4x32xf32>
    %315 = vector.extract_strided_slice %305 {offsets = [0, 32], sizes = [4, 32], strides = [1, 1]} : vector<4x128xf32> to vector<4x32xf32>
    %316 = arith.negf %315 : vector<4x32xf32>
    %317 = math.exp %316 : vector<4x32xf32>
    %cst_48 = arith.constant 1.000000e+00 : f32
    %318 = vector.broadcast %cst_48 : f32 to vector<4x32xf32>
    %319 = arith.addf %318, %317 : vector<4x32xf32>
    %320 = arith.divf %318, %319 : vector<4x32xf32>
    %321 = vector.extract_strided_slice %305 {offsets = [0, 64], sizes = [4, 32], strides = [1, 1]} : vector<4x128xf32> to vector<4x32xf32>
    %322 = math.tanh %321 : vector<4x32xf32>
    %323 = vector.extract_strided_slice %305 {offsets = [0, 96], sizes = [4, 32], strides = [1, 1]} : vector<4x128xf32> to vector<4x32xf32>
    %324 = arith.negf %323 : vector<4x32xf32>
    %325 = math.exp %324 : vector<4x32xf32>
    %cst_49 = arith.constant 1.000000e+00 : f32
    %326 = vector.broadcast %cst_49 : f32 to vector<4x32xf32>
    %327 = arith.addf %326, %325 : vector<4x32xf32>
    %328 = arith.divf %326, %327 : vector<4x32xf32>
    %329 = arith.mulf %320, %273 : vector<4x32xf32>
    %330 = arith.mulf %314, %322 : vector<4x32xf32>
    %331 = arith.addf %329, %330 : vector<4x32xf32>
    %332 = math.tanh %331 : vector<4x32xf32>
    %333 = arith.mulf %328, %332 : vector<4x32xf32>
    %334 = vector.extract_strided_slice %308 {offsets = [0, 0], sizes = [4, 32], strides = [1, 1]} : vector<4x128xf32> to vector<4x32xf32>
    %335 = arith.negf %334 : vector<4x32xf32>
    %336 = math.exp %335 : vector<4x32xf32>
    %cst_50 = arith.constant 1.000000e+00 : f32
    %337 = vector.broadcast %cst_50 : f32 to vector<4x32xf32>
    %338 = arith.addf %337, %336 : vector<4x32xf32>
    %339 = arith.divf %337, %338 : vector<4x32xf32>
    %340 = vector.extract_strided_slice %308 {offsets = [0, 32], sizes = [4, 32], strides = [1, 1]} : vector<4x128xf32> to vector<4x32xf32>
    %341 = arith.negf %340 : vector<4x32xf32>
    %342 = math.exp %341 : vector<4x32xf32>
    %cst_51 = arith.constant 1.000000e+00 : f32
    %343 = vector.broadcast %cst_51 : f32 to vector<4x32xf32>
    %344 = arith.addf %343, %342 : vector<4x32xf32>
    %345 = arith.divf %343, %344 : vector<4x32xf32>
    %346 = vector.extract_strided_slice %308 {offsets = [0, 64], sizes = [4, 32], strides = [1, 1]} : vector<4x128xf32> to vector<4x32xf32>
    %347 = math.tanh %346 : vector<4x32xf32>
    %348 = vector.extract_strided_slice %308 {offsets = [0, 96], sizes = [4, 32], strides = [1, 1]} : vector<4x128xf32> to vector<4x32xf32>
    %349 = arith.negf %348 : vector<4x32xf32>
    %350 = math.exp %349 : vector<4x32xf32>
    %cst_52 = arith.constant 1.000000e+00 : f32
    %351 = vector.broadcast %cst_52 : f32 to vector<4x32xf32>
    %352 = arith.addf %351, %350 : vector<4x32xf32>
    %353 = arith.divf %351, %352 : vector<4x32xf32>
    %354 = arith.mulf %345, %298 : vector<4x32xf32>
    %355 = arith.mulf %339, %347 : vector<4x32xf32>
    %356 = arith.addf %354, %355 : vector<4x32xf32>
    %357 = math.tanh %356 : vector<4x32xf32>
    %358 = arith.mulf %353, %357 : vector<4x32xf32>
    %359 = tpu.concatenate %333, %358 in 1 : vector<4x32xf32>, vector<4x32xf32> -> vector<4x64xf32>
    %cst_53 = arith.constant dense<0.000000e+00> : vector<4x256xf32>
    %360 = tpu.matmul %359, %6, %cst_53 {dimension_numbers = #tpu.dot_dimension_numbers<[1], [0], [0], [1], [0, 0, 1, 1], [], []>} : vector<4x64xf32>, vector<64x256xf32>, vector<4x256xf32> -> vector<4x256xf32>
    %361 = vector.extract_strided_slice %5 {offsets = [24, 0], sizes = [4, 128], strides = [1, 1]} : vector<32x256xf32> to vector<4x128xf32>
    %362 = vector.extract_strided_slice %360 {offsets = [0, 0], sizes = [4, 128], strides = [1, 1]} : vector<4x256xf32> to vector<4x128xf32>
    %363 = arith.addf %361, %362 : vector<4x128xf32>
    %364 = vector.extract_strided_slice %5 {offsets = [4, 128], sizes = [4, 128], strides = [1, 1]} : vector<32x256xf32> to vector<4x128xf32>
    %365 = vector.extract_strided_slice %360 {offsets = [0, 128], sizes = [4, 128], strides = [1, 1]} : vector<4x256xf32> to vector<4x128xf32>
    %366 = arith.addf %364, %365 : vector<4x128xf32>
    %367 = vector.extract_strided_slice %363 {offsets = [0, 0], sizes = [4, 32], strides = [1, 1]} : vector<4x128xf32> to vector<4x32xf32>
    %368 = arith.negf %367 : vector<4x32xf32>
    %369 = math.exp %368 : vector<4x32xf32>
    %cst_54 = arith.constant 1.000000e+00 : f32
    %370 = vector.broadcast %cst_54 : f32 to vector<4x32xf32>
    %371 = arith.addf %370, %369 : vector<4x32xf32>
    %372 = arith.divf %370, %371 : vector<4x32xf32>
    %373 = vector.extract_strided_slice %363 {offsets = [0, 32], sizes = [4, 32], strides = [1, 1]} : vector<4x128xf32> to vector<4x32xf32>
    %374 = arith.negf %373 : vector<4x32xf32>
    %375 = math.exp %374 : vector<4x32xf32>
    %cst_55 = arith.constant 1.000000e+00 : f32
    %376 = vector.broadcast %cst_55 : f32 to vector<4x32xf32>
    %377 = arith.addf %376, %375 : vector<4x32xf32>
    %378 = arith.divf %376, %377 : vector<4x32xf32>
    %379 = vector.extract_strided_slice %363 {offsets = [0, 64], sizes = [4, 32], strides = [1, 1]} : vector<4x128xf32> to vector<4x32xf32>
    %380 = math.tanh %379 : vector<4x32xf32>
    %381 = vector.extract_strided_slice %363 {offsets = [0, 96], sizes = [4, 32], strides = [1, 1]} : vector<4x128xf32> to vector<4x32xf32>
    %382 = arith.negf %381 : vector<4x32xf32>
    %383 = math.exp %382 : vector<4x32xf32>
    %cst_56 = arith.constant 1.000000e+00 : f32
    %384 = vector.broadcast %cst_56 : f32 to vector<4x32xf32>
    %385 = arith.addf %384, %383 : vector<4x32xf32>
    %386 = arith.divf %384, %385 : vector<4x32xf32>
    %387 = arith.mulf %378, %331 : vector<4x32xf32>
    %388 = arith.mulf %372, %380 : vector<4x32xf32>
    %389 = arith.addf %387, %388 : vector<4x32xf32>
    %390 = math.tanh %389 : vector<4x32xf32>
    %391 = arith.mulf %386, %390 : vector<4x32xf32>
    %392 = vector.extract_strided_slice %366 {offsets = [0, 0], sizes = [4, 32], strides = [1, 1]} : vector<4x128xf32> to vector<4x32xf32>
    %393 = arith.negf %392 : vector<4x32xf32>
    %394 = math.exp %393 : vector<4x32xf32>
    %cst_57 = arith.constant 1.000000e+00 : f32
    %395 = vector.broadcast %cst_57 : f32 to vector<4x32xf32>
    %396 = arith.addf %395, %394 : vector<4x32xf32>
    %397 = arith.divf %395, %396 : vector<4x32xf32>
    %398 = vector.extract_strided_slice %366 {offsets = [0, 32], sizes = [4, 32], strides = [1, 1]} : vector<4x128xf32> to vector<4x32xf32>
    %399 = arith.negf %398 : vector<4x32xf32>
    %400 = math.exp %399 : vector<4x32xf32>
    %cst_58 = arith.constant 1.000000e+00 : f32
    %401 = vector.broadcast %cst_58 : f32 to vector<4x32xf32>
    %402 = arith.addf %401, %400 : vector<4x32xf32>
    %403 = arith.divf %401, %402 : vector<4x32xf32>
    %404 = vector.extract_strided_slice %366 {offsets = [0, 64], sizes = [4, 32], strides = [1, 1]} : vector<4x128xf32> to vector<4x32xf32>
    %405 = math.tanh %404 : vector<4x32xf32>
    %406 = vector.extract_strided_slice %366 {offsets = [0, 96], sizes = [4, 32], strides = [1, 1]} : vector<4x128xf32> to vector<4x32xf32>
    %407 = arith.negf %406 : vector<4x32xf32>
    %408 = math.exp %407 : vector<4x32xf32>
    %cst_59 = arith.constant 1.000000e+00 : f32
    %409 = vector.broadcast %cst_59 : f32 to vector<4x32xf32>
    %410 = arith.addf %409, %408 : vector<4x32xf32>
    %411 = arith.divf %409, %410 : vector<4x32xf32>
    %412 = arith.mulf %403, %356 : vector<4x32xf32>
    %413 = arith.mulf %397, %405 : vector<4x32xf32>
    %414 = arith.addf %412, %413 : vector<4x32xf32>
    %415 = math.tanh %414 : vector<4x32xf32>
    %416 = arith.mulf %411, %415 : vector<4x32xf32>
    %417 = tpu.concatenate %391, %416 in 1 : vector<4x32xf32>, vector<4x32xf32> -> vector<4x64xf32>
    %cst_60 = arith.constant dense<0.000000e+00> : vector<4x256xf32>
    %418 = tpu.matmul %417, %6, %cst_60 {dimension_numbers = #tpu.dot_dimension_numbers<[1], [0], [0], [1], [0, 0, 1, 1], [], []>} : vector<4x64xf32>, vector<64x256xf32>, vector<4x256xf32> -> vector<4x256xf32>
    %419 = vector.extract_strided_slice %5 {offsets = [28, 0], sizes = [4, 128], strides = [1, 1]} : vector<32x256xf32> to vector<4x128xf32>
    %420 = vector.extract_strided_slice %418 {offsets = [0, 0], sizes = [4, 128], strides = [1, 1]} : vector<4x256xf32> to vector<4x128xf32>
    %421 = arith.addf %419, %420 : vector<4x128xf32>
    %422 = vector.extract_strided_slice %5 {offsets = [0, 128], sizes = [4, 128], strides = [1, 1]} : vector<32x256xf32> to vector<4x128xf32>
    %423 = vector.extract_strided_slice %418 {offsets = [0, 128], sizes = [4, 128], strides = [1, 1]} : vector<4x256xf32> to vector<4x128xf32>
    %424 = arith.addf %422, %423 : vector<4x128xf32>
    %425 = vector.extract_strided_slice %421 {offsets = [0, 0], sizes = [4, 32], strides = [1, 1]} : vector<4x128xf32> to vector<4x32xf32>
    %426 = arith.negf %425 : vector<4x32xf32>
    %427 = math.exp %426 : vector<4x32xf32>
    %cst_61 = arith.constant 1.000000e+00 : f32
    %428 = vector.broadcast %cst_61 : f32 to vector<4x32xf32>
    %429 = arith.addf %428, %427 : vector<4x32xf32>
    %430 = arith.divf %428, %429 : vector<4x32xf32>
    %431 = vector.extract_strided_slice %421 {offsets = [0, 32], sizes = [4, 32], strides = [1, 1]} : vector<4x128xf32> to vector<4x32xf32>
    %432 = arith.negf %431 : vector<4x32xf32>
    %433 = math.exp %432 : vector<4x32xf32>
    %cst_62 = arith.constant 1.000000e+00 : f32
    %434 = vector.broadcast %cst_62 : f32 to vector<4x32xf32>
    %435 = arith.addf %434, %433 : vector<4x32xf32>
    %436 = arith.divf %434, %435 : vector<4x32xf32>
    %437 = vector.extract_strided_slice %421 {offsets = [0, 64], sizes = [4, 32], strides = [1, 1]} : vector<4x128xf32> to vector<4x32xf32>
    %438 = math.tanh %437 : vector<4x32xf32>
    %439 = vector.extract_strided_slice %421 {offsets = [0, 96], sizes = [4, 32], strides = [1, 1]} : vector<4x128xf32> to vector<4x32xf32>
    %440 = arith.negf %439 : vector<4x32xf32>
    %441 = math.exp %440 : vector<4x32xf32>
    %cst_63 = arith.constant 1.000000e+00 : f32
    %442 = vector.broadcast %cst_63 : f32 to vector<4x32xf32>
    %443 = arith.addf %442, %441 : vector<4x32xf32>
    %444 = arith.divf %442, %443 : vector<4x32xf32>
    %445 = arith.mulf %436, %389 : vector<4x32xf32>
    %446 = arith.mulf %430, %438 : vector<4x32xf32>
    %447 = arith.addf %445, %446 : vector<4x32xf32>
    %448 = math.tanh %447 : vector<4x32xf32>
    %449 = arith.mulf %444, %448 : vector<4x32xf32>
    %450 = vector.extract_strided_slice %424 {offsets = [0, 0], sizes = [4, 32], strides = [1, 1]} : vector<4x128xf32> to vector<4x32xf32>
    %451 = arith.negf %450 : vector<4x32xf32>
    %452 = math.exp %451 : vector<4x32xf32>
    %cst_64 = arith.constant 1.000000e+00 : f32
    %453 = vector.broadcast %cst_64 : f32 to vector<4x32xf32>
    %454 = arith.addf %453, %452 : vector<4x32xf32>
    %455 = arith.divf %453, %454 : vector<4x32xf32>
    %456 = vector.extract_strided_slice %424 {offsets = [0, 32], sizes = [4, 32], strides = [1, 1]} : vector<4x128xf32> to vector<4x32xf32>
    %457 = arith.negf %456 : vector<4x32xf32>
    %458 = math.exp %457 : vector<4x32xf32>
    %cst_65 = arith.constant 1.000000e+00 : f32
    %459 = vector.broadcast %cst_65 : f32 to vector<4x32xf32>
    %460 = arith.addf %459, %458 : vector<4x32xf32>
    %461 = arith.divf %459, %460 : vector<4x32xf32>
    %462 = vector.extract_strided_slice %424 {offsets = [0, 64], sizes = [4, 32], strides = [1, 1]} : vector<4x128xf32> to vector<4x32xf32>
    %463 = math.tanh %462 : vector<4x32xf32>
    %464 = vector.extract_strided_slice %424 {offsets = [0, 96], sizes = [4, 32], strides = [1, 1]} : vector<4x128xf32> to vector<4x32xf32>
    %465 = arith.negf %464 : vector<4x32xf32>
    %466 = math.exp %465 : vector<4x32xf32>
    %cst_66 = arith.constant 1.000000e+00 : f32
    %467 = vector.broadcast %cst_66 : f32 to vector<4x32xf32>
    %468 = arith.addf %467, %466 : vector<4x32xf32>
    %469 = arith.divf %467, %468 : vector<4x32xf32>
    %470 = arith.mulf %461, %414 : vector<4x32xf32>
    %471 = arith.mulf %455, %463 : vector<4x32xf32>
    %472 = arith.addf %470, %471 : vector<4x32xf32>
    %473 = math.tanh %472 : vector<4x32xf32>
    %474 = arith.mulf %469, %473 : vector<4x32xf32>
    %475 = tpu.concatenate %449, %474 in 1 : vector<4x32xf32>, vector<4x32xf32> -> vector<4x64xf32>
    %476 = vector.extract_strided_slice %475 {offsets = [0, 0], sizes = [1, 64], strides = [1, 1]} : vector<4x64xf32> to vector<1x64xf32>
    %477 = vector.extract_strided_slice %475 {offsets = [1, 0], sizes = [1, 64], strides = [1, 1]} : vector<4x64xf32> to vector<1x64xf32>
    %478 = tpu.concatenate %476, %477 in 1 : vector<1x64xf32>, vector<1x64xf32> -> vector<1x128xf32>
    %479 = vector.extract_strided_slice %475 {offsets = [2, 0], sizes = [1, 64], strides = [1, 1]} : vector<4x64xf32> to vector<1x64xf32>
    %480 = vector.extract_strided_slice %475 {offsets = [3, 0], sizes = [1, 64], strides = [1, 1]} : vector<4x64xf32> to vector<1x64xf32>
    %481 = tpu.concatenate %479, %480 in 1 : vector<1x64xf32>, vector<1x64xf32> -> vector<1x128xf32>
    %482 = tpu.concatenate %478, %481 in 0 : vector<1x128xf32>, vector<1x128xf32> -> vector<2x128xf32>
    %c0_67 = arith.constant 0 : index
    %c0_68 = arith.constant 0 : index
    %483 = vector.load %arg5[%c0_67, %c0_68] : memref<128x64xf32, #tpu.memory_space<vmem>>, vector<128x64xf32>
    %cst_69 = arith.constant dense<0.000000e+00> : vector<2x64xf32>
    %484 = tpu.matmul %482, %483, %cst_69 {dimension_numbers = #tpu.dot_dimension_numbers<[1], [0], [0], [1], [0, 0, 1, 1], [], []>} : vector<2x128xf32>, vector<128x64xf32>, vector<2x64xf32> -> vector<2x64xf32>
    %c0_70 = arith.constant 0 : index
    %c0_71 = arith.constant 0 : index
    %485 = vector.load %arg6[%c0_70, %c0_71] : memref<1x64xf32, #tpu.memory_space<vmem>>, vector<1x64xf32>
    %486 = vector.broadcast %485 : vector<1x64xf32> to vector<2x64xf32>
    %487 = arith.addf %484, %486 : vector<2x64xf32>
    %488 = math.tanh %487 : vector<2x64xf32>
    %c0_72 = arith.constant 0 : index
    %c0_73 = arith.constant 0 : index
    %489 = vector.load %arg7[%c0_72, %c0_73] : memref<64x2xf32, #tpu.memory_space<vmem>>, vector<64x2xf32>
    %cst_74 = arith.constant dense<0.000000e+00> : vector<2x2xf32>
    %490 = tpu.matmul %488, %489, %cst_74 {dimension_numbers = #tpu.dot_dimension_numbers<[1], [0], [0], [1], [0, 0, 1, 1], [], []>} : vector<2x64xf32>, vector<64x2xf32>, vector<2x2xf32> -> vector<2x2xf32>
    %c0_75 = arith.constant 0 : index
    %c0_76 = arith.constant 0 : index
    %491 = vector.load %arg8[%c0_75, %c0_76] : memref<1x2xf32, #tpu.memory_space<vmem>>, vector<1x2xf32>
    %492 = vector.broadcast %491 : vector<1x2xf32> to vector<2x2xf32>
    %493 = arith.addf %490, %492 : vector<2x2xf32>
    %cst_77 = arith.constant dense<0xFF800000> : vector<2xf32>
    %494 = vector.multi_reduction <maximumf>, %493, %cst_77 [1] : vector<2x2xf32> to vector<2xf32>
    %495 = vector.shape_cast %494 : vector<2xf32> to vector<2x1xf32>
    %496 = vector.broadcast %495 : vector<2x1xf32> to vector<2x2xf32>
    %497 = arith.subf %493, %496 : vector<2x2xf32>
    %498 = math.exp %497 : vector<2x2xf32>
    %cst_78 = arith.constant dense<0.000000e+00> : vector<2xf32>
    %499 = vector.multi_reduction <add>, %498, %cst_78 [1] : vector<2x2xf32> to vector<2xf32>
    %500 = vector.shape_cast %499 : vector<2xf32> to vector<2x1xf32>
    %501 = math.log %500 : vector<2x1xf32>
    %502 = arith.addf %495, %501 : vector<2x1xf32>
    %503 = vector.broadcast %502 : vector<2x1xf32> to vector<2x2xf32>
    %504 = arith.subf %493, %503 : vector<2x2xf32>
    %c0_79 = arith.constant 0 : index
    %c0_80 = arith.constant 0 : index
    %505 = vector.load %arg9[%c0_79, %c0_80] : memref<2x2xf32, #tpu.memory_space<vmem>>, vector<2x2xf32>
    tpu.vector_store %arg9[%c0_79, %c0_80], %504 {strides = array<i32>} : memref<2x2xf32, #tpu.memory_space<vmem>>, vector<2x2xf32>,
    return
  }
  func.func @transform_0(%arg0: i32) -> (i32, i32) {
    %c0_i32 = arith.constant 0 : i32
    %c0_i32_0 = arith.constant 0 : i32
    %c0_i32_1 = arith.constant 0 : i32
    return %c0_i32, %c0_i32_0 : i32, i32
  }
  func.func @transform_1(%arg0: i32) -> (i32, i32) {
    %c0_i32 = arith.constant 0 : i32
    %c0_i32_0 = arith.constant 0 : i32
    %c0_i32_1 = arith.constant 0 : i32
    return %c0_i32, %c0_i32_0 : i32, i32
  }
  func.func @transform_2(%arg0: i32) -> (i32, i32) {
    %c0_i32 = arith.constant 0 : i32
    %c0_i32_0 = arith.constant 0 : i32
    %c0_i32_1 = arith.constant 0 : i32
    return %c0_i32, %c0_i32_0 : i32, i32
  }
  func.func @transform_3(%arg0: i32) -> (i32, i32) {
    %c0_i32 = arith.constant 0 : i32
    %c0_i32_0 = arith.constant 0 : i32
    %c0_i32_1 = arith.constant 0 : i32
    return %c0_i32, %c0_i32_0 : i32, i32
  }
  func.func @transform_4(%arg0: i32) -> (i32, i32) {
    %c0_i32 = arith.constant 0 : i32
    %c0_i32_0 = arith.constant 0 : i32
    %c0_i32_1 = arith.constant 0 : i32
    return %c0_i32, %c0_i32_0 : i32, i32
  }
  func.func @transform_5(%arg0: i32) -> (i32, i32) {
    %c0_i32 = arith.constant 0 : i32
    %c0_i32_0 = arith.constant 0 : i32
    %c0_i32_1 = arith.constant 0 : i32
    return %c0_i32, %c0_i32_0 : i32, i32
  }
  func.func @transform_6(%arg0: i32) -> (i32, i32) {
    %c0_i32 = arith.constant 0 : i32
    %c0_i32_0 = arith.constant 0 : i32
    %c0_i32_1 = arith.constant 0 : i32
    return %c0_i32, %c0_i32_0 : i32, i32
  }
  func.func @transform_7(%arg0: i32) -> (i32, i32) {
    %c0_i32 = arith.constant 0 : i32
    %c0_i32_0 = arith.constant 0 : i32
    %c0_i32_1 = arith.constant 0 : i32
    return %c0_i32, %c0_i32_0 : i32, i32
  }
  func.func @transform_8(%arg0: i32) -> (i32, i32) {
    %c0_i32 = arith.constant 0 : i32
    %c0_i32_0 = arith.constant 0 : i32
    %c0_i32_1 = arith.constant 0 : i32
    return %c0_i32, %c0_i32_0 : i32, i32
  }
}

module attributes {stable_mosaic.version = 11 : i64} {
  func.func @_matching_kernel(%arg0: i32, %arg1: memref<1x1x8x64xf32, #tpu.memory_space<vmem>>, %arg2: memref<1x1x8x64xf32, #tpu.memory_space<vmem>>, %arg3: memref<32x24xf32, #tpu.memory_space<vmem>>, %arg4: memref<32x24xf32, #tpu.memory_space<vmem>>, %arg5: memref<16x32xf32, #tpu.memory_space<vmem>>, %arg6: memref<8x1x2x64xf32, #tpu.memory_space<vmem>>) attributes {dimension_semantics = [#tpu.dimension_semantics<parallel>], iteration_bounds = array<i64: 2>, scalar_prefetch = 0 : i64, scratch_operands = 0 : i64, tpu.core_type = #tpu.core_type<tc>, window_params = [{transform_indices = @transform_0, window_bounds = array<i64: 1, 1, 8, 64>}, {transform_indices = @transform_1, window_bounds = array<i64: 1, 1, 8, 64>}, {pipeline_mode = #tpu.pipeline_mode<synchronous>, transform_indices = @transform_2, window_bounds = array<i64: 32, 24>}, {pipeline_mode = #tpu.pipeline_mode<synchronous>, transform_indices = @transform_3, window_bounds = array<i64: 32, 24>}, {pipeline_mode = #tpu.pipeline_mode<synchronous>, transform_indices = @transform_4, window_bounds = array<i64: 16, 32>}, {transform_indices = @transform_5, window_bounds = array<i64: 8, 1, 2, 64>}]} {
    %c0 = arith.constant 0 : index
    %c0_0 = arith.constant 0 : index
    %c0_1 = arith.constant 0 : index
    %c0_2 = arith.constant 0 : index
    %0 = vector.load %arg1[%c0, %c0_0, %c0_1, %c0_2] : memref<1x1x8x64xf32, #tpu.memory_space<vmem>>, vector<1x1x8x64xf32>
    %1 = vector.shape_cast %0 : vector<1x1x8x64xf32> to vector<8x64xf32>
    %c0_3 = arith.constant 0 : index
    %c0_4 = arith.constant 0 : index
    %c0_5 = arith.constant 0 : index
    %c0_6 = arith.constant 0 : index
    %2 = vector.load %arg2[%c0_3, %c0_4, %c0_5, %c0_6] : memref<1x1x8x64xf32, #tpu.memory_space<vmem>>, vector<1x1x8x64xf32>
    %3 = vector.shape_cast %2 : vector<1x1x8x64xf32> to vector<8x64xf32>
    %4 = vector.extract_strided_slice %1 {offsets = [0, 0], sizes = [8, 32], strides = [1, 1]} : vector<8x64xf32> to vector<8x32xf32>
    %5 = vector.extract_strided_slice %1 {offsets = [0, 32], sizes = [8, 32], strides = [1, 1]} : vector<8x64xf32> to vector<8x32xf32>
    %6 = vector.extract_strided_slice %3 {offsets = [0, 0], sizes = [8, 32], strides = [1, 1]} : vector<8x64xf32> to vector<8x32xf32>
    %7 = vector.extract_strided_slice %3 {offsets = [0, 32], sizes = [8, 32], strides = [1, 1]} : vector<8x64xf32> to vector<8x32xf32>
    %c0_7 = arith.constant 0 : index
    %c0_8 = arith.constant 0 : index
    %8 = vector.load %arg3[%c0_7, %c0_8] : memref<32x24xf32, #tpu.memory_space<vmem>>, vector<32x24xf32>
    %c0_9 = arith.constant 0 : index
    %c0_10 = arith.constant 0 : index
    %9 = vector.load %arg4[%c0_9, %c0_10] : memref<32x24xf32, #tpu.memory_space<vmem>>, vector<32x24xf32>
    %c0_11 = arith.constant 0 : index
    %c0_12 = arith.constant 0 : index
    %10 = vector.load %arg5[%c0_11, %c0_12] : memref<16x32xf32, #tpu.memory_space<vmem>>, vector<16x32xf32>
    %11 = arith.mulf %4, %4 : vector<8x32xf32>
    %cst = arith.constant dense<0.000000e+00> : vector<8xf32>
    %12 = vector.multi_reduction <add>, %11, %cst [1] : vector<8x32xf32> to vector<8xf32>
    %13 = vector.shape_cast %12 : vector<8xf32> to vector<8x1xf32>
    %cst_13 = arith.constant 1.000000e-16 : f32
    %14 = vector.broadcast %cst_13 : f32 to vector<8x1xf32>
    %15 = arith.maximumf %13, %14 : vector<8x1xf32>
    %16 = math.rsqrt %15 : vector<8x1xf32>
    %17 = arith.mulf %5, %5 : vector<8x32xf32>
    %cst_14 = arith.constant dense<0.000000e+00> : vector<8xf32>
    %18 = vector.multi_reduction <add>, %17, %cst_14 [1] : vector<8x32xf32> to vector<8xf32>
    %19 = vector.shape_cast %18 : vector<8xf32> to vector<8x1xf32>
    %cst_15 = arith.constant 1.000000e-16 : f32
    %20 = vector.broadcast %cst_15 : f32 to vector<8x1xf32>
    %21 = arith.maximumf %19, %20 : vector<8x1xf32>
    %22 = math.rsqrt %21 : vector<8x1xf32>
    %23 = arith.mulf %6, %6 : vector<8x32xf32>
    %cst_16 = arith.constant dense<0.000000e+00> : vector<8xf32>
    %24 = vector.multi_reduction <add>, %23, %cst_16 [1] : vector<8x32xf32> to vector<8xf32>
    %25 = vector.shape_cast %24 : vector<8xf32> to vector<8x1xf32>
    %cst_17 = arith.constant 1.000000e-16 : f32
    %26 = vector.broadcast %cst_17 : f32 to vector<8x1xf32>
    %27 = arith.maximumf %25, %26 : vector<8x1xf32>
    %28 = math.rsqrt %27 : vector<8x1xf32>
    %29 = arith.mulf %7, %7 : vector<8x32xf32>
    %cst_18 = arith.constant dense<0.000000e+00> : vector<8xf32>
    %30 = vector.multi_reduction <add>, %29, %cst_18 [1] : vector<8x32xf32> to vector<8xf32>
    %31 = vector.shape_cast %30 : vector<8xf32> to vector<8x1xf32>
    %cst_19 = arith.constant 1.000000e-16 : f32
    %32 = vector.broadcast %cst_19 : f32 to vector<8x1xf32>
    %33 = arith.maximumf %31, %32 : vector<8x1xf32>
    %34 = math.rsqrt %33 : vector<8x1xf32>
    %35 = tpu.concatenate %4, %5 in 0 : vector<8x32xf32>, vector<8x32xf32> -> vector<16x32xf32>
    %36 = tpu.concatenate %6, %7 in 0 : vector<8x32xf32>, vector<8x32xf32> -> vector<16x32xf32>
    %cst_20 = arith.constant dense<0.000000e+00> : vector<16x16xf32>
    %37 = tpu.matmul %35, %36, %cst_20 {dimension_numbers = #tpu.dot_dimension_numbers<[1], [1], [0], [0], [0, 0, 1, 0], [], []>} : vector<16x32xf32>, vector<16x32xf32>, vector<16x16xf32> -> vector<16x16xf32>
    %38 = vector.extract_strided_slice %37 {offsets = [0, 0], sizes = [8, 8], strides = [1, 1]} : vector<16x16xf32> to vector<8x8xf32>
    %39 = tpu.transpose %28, [1, 0] : vector<8x1xf32> -> vector<1x8xf32>
    %40 = vector.broadcast %16 : vector<8x1xf32> to vector<8x8xf32>
    %41 = vector.broadcast %39 : vector<1x8xf32> to vector<8x8xf32>
    %42 = arith.mulf %40, %41 : vector<8x8xf32>
    %43 = arith.mulf %38, %42 : vector<8x8xf32>
    %44 = vector.extract_strided_slice %37 {offsets = [8, 8], sizes = [8, 8], strides = [1, 1]} : vector<16x16xf32> to vector<8x8xf32>
    %45 = tpu.transpose %34, [1, 0] : vector<8x1xf32> -> vector<1x8xf32>
    %46 = vector.broadcast %22 : vector<8x1xf32> to vector<8x8xf32>
    %47 = vector.broadcast %45 : vector<1x8xf32> to vector<8x8xf32>
    %48 = arith.mulf %46, %47 : vector<8x8xf32>
    %49 = arith.mulf %44, %48 : vector<8x8xf32>
    %50 = tpu.concatenate %43, %49 in 0 : vector<8x8xf32>, vector<8x8xf32> -> vector<16x8xf32>
    %51 = tpu.transpose %43, [1, 0] : vector<8x8xf32> -> vector<8x8xf32>
    %52 = tpu.transpose %49, [1, 0] : vector<8x8xf32> -> vector<8x8xf32>
    %53 = tpu.concatenate %51, %52 in 0 : vector<8x8xf32>, vector<8x8xf32> -> vector<16x8xf32>
    %cst_21 = arith.constant dense<0.000000e+00> : vector<16x32xf32>
    %54 = tpu.matmul %50, %6, %cst_21 {dimension_numbers = #tpu.dot_dimension_numbers<[1], [0], [0], [1], [0, 0, 1, 1], [], []>} : vector<16x8xf32>, vector<8x32xf32>, vector<16x32xf32> -> vector<16x32xf32>
    %cst_22 = arith.constant dense<0.000000e+00> : vector<16x32xf32>
    %55 = tpu.matmul %53, %4, %cst_22 {dimension_numbers = #tpu.dot_dimension_numbers<[1], [0], [0], [1], [0, 0, 1, 1], [], []>} : vector<16x8xf32>, vector<8x32xf32>, vector<16x32xf32> -> vector<16x32xf32>
    %cst_23 = arith.constant dense<0.000000e+00> : vector<8xf32>
    %56 = vector.multi_reduction <add>, %43, %cst_23 [1] : vector<8x8xf32> to vector<8xf32>
    %57 = vector.shape_cast %56 : vector<8xf32> to vector<8x1xf32>
    %cst_24 = arith.constant dense<0.000000e+00> : vector<8xf32>
    %58 = vector.multi_reduction <add>, %49, %cst_24 [1] : vector<8x8xf32> to vector<8xf32>
    %59 = vector.shape_cast %58 : vector<8xf32> to vector<8x1xf32>
    %cst_25 = arith.constant dense<0.000000e+00> : vector<8xf32>
    %60 = vector.multi_reduction <add>, %43, %cst_25 [0] : vector<8x8xf32> to vector<8xf32>
    %61 = vector.shape_cast %60 : vector<8xf32> to vector<1x8xf32>
    %62 = tpu.transpose %61, [1, 0] : vector<1x8xf32> -> vector<8x1xf32>
    %cst_26 = arith.constant dense<0.000000e+00> : vector<8xf32>
    %63 = vector.multi_reduction <add>, %49, %cst_26 [0] : vector<8x8xf32> to vector<8xf32>
    %64 = vector.shape_cast %63 : vector<8xf32> to vector<1x8xf32>
    %65 = tpu.transpose %64, [1, 0] : vector<1x8xf32> -> vector<8x1xf32>
    %66 = vector.extract_strided_slice %54 {offsets = [0, 0], sizes = [8, 32], strides = [1, 1]} : vector<16x32xf32> to vector<8x32xf32>
    %cst_27 = arith.constant 0.000000e+00 : f32
    %67 = vector.broadcast %cst_27 : f32 to vector<8x1xf32>
    %68 = arith.cmpf oge, %57, %67 : vector<8x1xf32>
    %cst_28 = arith.constant 9.99999993E-9 : f32
    %69 = vector.broadcast %cst_28 : f32 to vector<8x1xf32>
    %70 = arith.maximumf %57, %69 : vector<8x1xf32>
    %cst_29 = arith.constant -9.99999993E-9 : f32
    %71 = vector.broadcast %cst_29 : f32 to vector<8x1xf32>
    %72 = arith.minimumf %57, %71 : vector<8x1xf32>
    %73 = arith.select %68, %70, %72 : vector<8x1xi1>, vector<8x1xf32>
    %74 = vector.broadcast %73 : vector<8x1xf32> to vector<8x32xf32>
    %75 = arith.divf %66, %74 : vector<8x32xf32>
    %76 = vector.extract_strided_slice %54 {offsets = [8, 0], sizes = [8, 32], strides = [1, 1]} : vector<16x32xf32> to vector<8x32xf32>
    %cst_30 = arith.constant 0.000000e+00 : f32
    %77 = vector.broadcast %cst_30 : f32 to vector<8x1xf32>
    %78 = arith.cmpf oge, %59, %77 : vector<8x1xf32>
    %cst_31 = arith.constant 9.99999993E-9 : f32
    %79 = vector.broadcast %cst_31 : f32 to vector<8x1xf32>
    %80 = arith.maximumf %59, %79 : vector<8x1xf32>
    %cst_32 = arith.constant -9.99999993E-9 : f32
    %81 = vector.broadcast %cst_32 : f32 to vector<8x1xf32>
    %82 = arith.minimumf %59, %81 : vector<8x1xf32>
    %83 = arith.select %78, %80, %82 : vector<8x1xi1>, vector<8x1xf32>
    %84 = vector.broadcast %83 : vector<8x1xf32> to vector<8x32xf32>
    %85 = arith.divf %76, %84 : vector<8x32xf32>
    %86 = vector.extract_strided_slice %55 {offsets = [0, 0], sizes = [8, 32], strides = [1, 1]} : vector<16x32xf32> to vector<8x32xf32>
    %cst_33 = arith.constant 0.000000e+00 : f32
    %87 = vector.broadcast %cst_33 : f32 to vector<8x1xf32>
    %88 = arith.cmpf oge, %62, %87 : vector<8x1xf32>
    %cst_34 = arith.constant 9.99999993E-9 : f32
    %89 = vector.broadcast %cst_34 : f32 to vector<8x1xf32>
    %90 = arith.maximumf %62, %89 : vector<8x1xf32>
    %cst_35 = arith.constant -9.99999993E-9 : f32
    %91 = vector.broadcast %cst_35 : f32 to vector<8x1xf32>
    %92 = arith.minimumf %62, %91 : vector<8x1xf32>
    %93 = arith.select %88, %90, %92 : vector<8x1xi1>, vector<8x1xf32>
    %94 = vector.broadcast %93 : vector<8x1xf32> to vector<8x32xf32>
    %95 = arith.divf %86, %94 : vector<8x32xf32>
    %96 = vector.extract_strided_slice %55 {offsets = [8, 0], sizes = [8, 32], strides = [1, 1]} : vector<16x32xf32> to vector<8x32xf32>
    %cst_36 = arith.constant 0.000000e+00 : f32
    %97 = vector.broadcast %cst_36 : f32 to vector<8x1xf32>
    %98 = arith.cmpf oge, %65, %97 : vector<8x1xf32>
    %cst_37 = arith.constant 9.99999993E-9 : f32
    %99 = vector.broadcast %cst_37 : f32 to vector<8x1xf32>
    %100 = arith.maximumf %65, %99 : vector<8x1xf32>
    %cst_38 = arith.constant -9.99999993E-9 : f32
    %101 = vector.broadcast %cst_38 : f32 to vector<8x1xf32>
    %102 = arith.minimumf %65, %101 : vector<8x1xf32>
    %103 = arith.select %98, %100, %102 : vector<8x1xi1>, vector<8x1xf32>
    %104 = vector.broadcast %103 : vector<8x1xf32> to vector<8x32xf32>
    %105 = arith.divf %96, %104 : vector<8x32xf32>
    %106 = vector.shape_cast %4 : vector<8x32xf32> to vector<8x1x32xf32>
    %107 = vector.shape_cast %43 : vector<8x8xf32> to vector<8x8x1xf32>
    %108 = vector.broadcast %106 : vector<8x1x32xf32> to vector<8x8x32xf32>
    %109 = vector.broadcast %107 : vector<8x8x1xf32> to vector<8x8x32xf32>
    %110 = arith.mulf %108, %109 : vector<8x8x32xf32>
    %cst_39 = arith.constant dense<0xFF800000> : vector<8x32xf32>
    %111 = vector.multi_reduction <maximumf>, %110, %cst_39 [0] : vector<8x8x32xf32> to vector<8x32xf32>
    %112 = vector.shape_cast %4 : vector<8x32xf32> to vector<8x1x32xf32>
    %113 = vector.shape_cast %49 : vector<8x8xf32> to vector<8x8x1xf32>
    %114 = vector.broadcast %112 : vector<8x1x32xf32> to vector<8x8x32xf32>
    %115 = vector.broadcast %113 : vector<8x8x1xf32> to vector<8x8x32xf32>
    %116 = arith.mulf %114, %115 : vector<8x8x32xf32>
    %cst_40 = arith.constant dense<0xFF800000> : vector<8x32xf32>
    %117 = vector.multi_reduction <maximumf>, %116, %cst_40 [0] : vector<8x8x32xf32> to vector<8x32xf32>
    %118 = vector.shape_cast %6 : vector<8x32xf32> to vector<1x8x32xf32>
    %119 = vector.shape_cast %43 : vector<8x8xf32> to vector<8x8x1xf32>
    %120 = vector.broadcast %118 : vector<1x8x32xf32> to vector<8x8x32xf32>
    %121 = vector.broadcast %119 : vector<8x8x1xf32> to vector<8x8x32xf32>
    %122 = arith.mulf %120, %121 : vector<8x8x32xf32>
    %cst_41 = arith.constant dense<0xFF800000> : vector<8x32xf32>
    %123 = vector.multi_reduction <maximumf>, %122, %cst_41 [1] : vector<8x8x32xf32> to vector<8x32xf32>
    %124 = vector.shape_cast %6 : vector<8x32xf32> to vector<1x8x32xf32>
    %125 = vector.shape_cast %49 : vector<8x8xf32> to vector<8x8x1xf32>
    %126 = vector.broadcast %124 : vector<1x8x32xf32> to vector<8x8x32xf32>
    %127 = vector.broadcast %125 : vector<8x8x1xf32> to vector<8x8x32xf32>
    %128 = arith.mulf %126, %127 : vector<8x8x32xf32>
    %cst_42 = arith.constant dense<0xFF800000> : vector<8x32xf32>
    %129 = vector.multi_reduction <maximumf>, %128, %cst_42 [1] : vector<8x8x32xf32> to vector<8x32xf32>
    %130 = vector.shape_cast %4 : vector<8x32xf32> to vector<8x1x32xf32>
    %131 = vector.extract_strided_slice %10 {offsets = [0, 0], sizes = [8, 32], strides = [1, 1]} : vector<16x32xf32> to vector<8x32xf32>
    %132 = vector.shape_cast %131 : vector<8x32xf32> to vector<1x8x32xf32>
    %133 = vector.broadcast %130 : vector<8x1x32xf32> to vector<8x8x32xf32>
    %134 = vector.broadcast %132 : vector<1x8x32xf32> to vector<8x8x32xf32>
    %135 = arith.mulf %133, %134 : vector<8x8x32xf32>
    %136 = vector.shape_cast %135 : vector<8x8x32xf32> to vector<64x32xf32>
    %137 = vector.shape_cast %5 : vector<8x32xf32> to vector<8x1x32xf32>
    %138 = vector.extract_strided_slice %10 {offsets = [8, 0], sizes = [8, 32], strides = [1, 1]} : vector<16x32xf32> to vector<8x32xf32>
    %139 = vector.shape_cast %138 : vector<8x32xf32> to vector<1x8x32xf32>
    %140 = vector.broadcast %137 : vector<8x1x32xf32> to vector<8x8x32xf32>
    %141 = vector.broadcast %139 : vector<1x8x32xf32> to vector<8x8x32xf32>
    %142 = arith.mulf %140, %141 : vector<8x8x32xf32>
    %143 = vector.shape_cast %142 : vector<8x8x32xf32> to vector<64x32xf32>
    %144 = tpu.concatenate %136, %143 in 0 : vector<64x32xf32>, vector<64x32xf32> -> vector<128x32xf32>
    %cst_43 = arith.constant dense<0.000000e+00> : vector<128x8xf32>
    %145 = tpu.matmul %144, %7, %cst_43 {dimension_numbers = #tpu.dot_dimension_numbers<[1], [1], [0], [0], [0, 0, 1, 0], [], []>} : vector<128x32xf32>, vector<8x32xf32>, vector<128x8xf32> -> vector<128x8xf32>
    %146 = tpu.transpose %34, [1, 0] : vector<8x1xf32> -> vector<1x8xf32>
    %147 = vector.shape_cast %146 : vector<1x8xf32> to vector<1x1x8xf32>
    %148 = vector.extract_strided_slice %145 {offsets = [0, 0], sizes = [64, 8], strides = [1, 1]} : vector<128x8xf32> to vector<64x8xf32>
    %149 = vector.shape_cast %148 : vector<64x8xf32> to vector<8x8x8xf32>
    %150 = vector.shape_cast %16 : vector<8x1xf32> to vector<8x1x1xf32>
    %151 = vector.broadcast %150 : vector<8x1x1xf32> to vector<8x1x8xf32>
    %152 = vector.broadcast %147 : vector<1x1x8xf32> to vector<8x1x8xf32>
    %153 = arith.mulf %151, %152 : vector<8x1x8xf32>
    %154 = vector.broadcast %153 : vector<8x1x8xf32> to vector<8x8x8xf32>
    %155 = arith.mulf %149, %154 : vector<8x8x8xf32>
    %156 = vector.extract_strided_slice %145 {offsets = [64, 0], sizes = [64, 8], strides = [1, 1]} : vector<128x8xf32> to vector<64x8xf32>
    %157 = vector.shape_cast %156 : vector<64x8xf32> to vector<8x8x8xf32>
    %158 = vector.shape_cast %22 : vector<8x1xf32> to vector<8x1x1xf32>
    %159 = vector.broadcast %158 : vector<8x1x1xf32> to vector<8x1x8xf32>
    %160 = vector.broadcast %147 : vector<1x1x8xf32> to vector<8x1x8xf32>
    %161 = arith.mulf %159, %160 : vector<8x1x8xf32>
    %162 = vector.broadcast %161 : vector<8x1x8xf32> to vector<8x8x8xf32>
    %163 = arith.mulf %157, %162 : vector<8x8x8xf32>
    %cst_44 = arith.constant dense<0xFF800000> : vector<8x8xf32>
    %164 = vector.multi_reduction <maximumf>, %155, %cst_44 [2] : vector<8x8x8xf32> to vector<8x8xf32>
    %cst_45 = arith.constant dense<0xFF800000> : vector<8x8xf32>
    %165 = vector.multi_reduction <maximumf>, %163, %cst_45 [2] : vector<8x8x8xf32> to vector<8x8xf32>
    %cst_46 = arith.constant dense<0xFF800000> : vector<8x8xf32>
    %166 = vector.multi_reduction <maximumf>, %155, %cst_46 [0] : vector<8x8x8xf32> to vector<8x8xf32>
    %167 = tpu.transpose %166, [1, 0] : vector<8x8xf32> -> vector<8x8xf32>
    %cst_47 = arith.constant dense<0xFF800000> : vector<8x8xf32>
    %168 = vector.multi_reduction <maximumf>, %163, %cst_47 [0] : vector<8x8x8xf32> to vector<8x8xf32>
    %169 = tpu.transpose %168, [1, 0] : vector<8x8xf32> -> vector<8x8xf32>
    %170 = vector.extract_strided_slice %6 {offsets = [7, 0], sizes = [1, 32], strides = [1, 1]} : vector<8x32xf32> to vector<1x32xf32>
    %171 = vector.broadcast %170 : vector<1x32xf32> to vector<8x32xf32>
    %172 = arith.mulf %4, %171 : vector<8x32xf32>
    %173 = arith.mulf %4, %75 : vector<8x32xf32>
    %174 = arith.mulf %4, %123 : vector<8x32xf32>
    %175 = arith.mulf %4, %4 : vector<8x32xf32>
    %176 = arith.mulf %75, %75 : vector<8x32xf32>
    %177 = arith.mulf %123, %123 : vector<8x32xf32>
    %178 = arith.mulf %170, %170 : vector<1x32xf32>
    %179 = tpu.concatenate %172, %173, %174, %175, %176, %177, %178 in 0 : vector<8x32xf32>, vector<8x32xf32>, vector<8x32xf32>, vector<8x32xf32>, vector<8x32xf32>, vector<8x32xf32>, vector<1x32xf32> -> vector<49x32xf32>
    %cst_48 = arith.constant dense<0.000000e+00> : vector<49x24xf32>
    %180 = tpu.matmul %179, %8, %cst_48 {dimension_numbers = #tpu.dot_dimension_numbers<[1], [0], [0], [1], [0, 0, 1, 1], [], []>} : vector<49x32xf32>, vector<32x24xf32>, vector<49x24xf32> -> vector<49x24xf32>
    %181 = vector.extract_strided_slice %180 {offsets = [0, 0], sizes = [8, 8], strides = [1, 1]} : vector<49x24xf32> to vector<8x8xf32>
    %182 = vector.extract_strided_slice %180 {offsets = [8, 8], sizes = [8, 8], strides = [1, 1]} : vector<49x24xf32> to vector<8x8xf32>
    %183 = vector.extract_strided_slice %180 {offsets = [16, 16], sizes = [8, 8], strides = [1, 1]} : vector<49x24xf32> to vector<8x8xf32>
    %184 = vector.extract_strided_slice %180 {offsets = [24, 0], sizes = [8, 24], strides = [1, 1]} : vector<49x24xf32> to vector<8x24xf32>
    %185 = vector.extract_strided_slice %180 {offsets = [32, 8], sizes = [8, 8], strides = [1, 1]} : vector<49x24xf32> to vector<8x8xf32>
    %186 = vector.extract_strided_slice %180 {offsets = [40, 16], sizes = [8, 8], strides = [1, 1]} : vector<49x24xf32> to vector<8x8xf32>
    %187 = vector.extract_strided_slice %180 {offsets = [48, 0], sizes = [1, 8], strides = [1, 1]} : vector<49x24xf32> to vector<1x8xf32>
    %188 = vector.extract_strided_slice %184 {offsets = [0, 0], sizes = [8, 8], strides = [1, 1]} : vector<8x24xf32> to vector<8x8xf32>
    %189 = vector.broadcast %187 : vector<1x8xf32> to vector<8x8xf32>
    %190 = arith.mulf %188, %189 : vector<8x8xf32>
    %cst_49 = arith.constant 1.000000e-16 : f32
    %191 = vector.broadcast %cst_49 : f32 to vector<8x8xf32>
    %192 = arith.maximumf %190, %191 : vector<8x8xf32>
    %193 = math.rsqrt %192 : vector<8x8xf32>
    %194 = arith.mulf %181, %193 : vector<8x8xf32>
    %195 = vector.extract_strided_slice %184 {offsets = [0, 8], sizes = [8, 8], strides = [1, 1]} : vector<8x24xf32> to vector<8x8xf32>
    %196 = arith.mulf %195, %185 : vector<8x8xf32>
    %cst_50 = arith.constant 1.000000e-16 : f32
    %197 = vector.broadcast %cst_50 : f32 to vector<8x8xf32>
    %198 = arith.maximumf %196, %197 : vector<8x8xf32>
    %199 = math.rsqrt %198 : vector<8x8xf32>
    %200 = arith.mulf %182, %199 : vector<8x8xf32>
    %201 = vector.extract_strided_slice %184 {offsets = [0, 16], sizes = [8, 8], strides = [1, 1]} : vector<8x24xf32> to vector<8x8xf32>
    %202 = arith.mulf %201, %186 : vector<8x8xf32>
    %cst_51 = arith.constant 1.000000e-16 : f32
    %203 = vector.broadcast %cst_51 : f32 to vector<8x8xf32>
    %204 = arith.maximumf %202, %203 : vector<8x8xf32>
    %205 = math.rsqrt %204 : vector<8x8xf32>
    %206 = arith.mulf %183, %205 : vector<8x8xf32>
    %207 = vector.extract_strided_slice %7 {offsets = [0, 0], sizes = [1, 32], strides = [1, 1]} : vector<8x32xf32> to vector<1x32xf32>
    %208 = vector.broadcast %207 : vector<1x32xf32> to vector<8x32xf32>
    %209 = arith.mulf %5, %208 : vector<8x32xf32>
    %210 = arith.mulf %5, %85 : vector<8x32xf32>
    %211 = arith.mulf %5, %129 : vector<8x32xf32>
    %212 = arith.mulf %5, %5 : vector<8x32xf32>
    %213 = arith.mulf %85, %85 : vector<8x32xf32>
    %214 = arith.mulf %129, %129 : vector<8x32xf32>
    %215 = arith.mulf %207, %207 : vector<1x32xf32>
    %216 = tpu.concatenate %209, %210, %211, %212, %213, %214, %215 in 0 : vector<8x32xf32>, vector<8x32xf32>, vector<8x32xf32>, vector<8x32xf32>, vector<8x32xf32>, vector<8x32xf32>, vector<1x32xf32> -> vector<49x32xf32>
    %cst_52 = arith.constant dense<0.000000e+00> : vector<49x24xf32>
    %217 = tpu.matmul %216, %9, %cst_52 {dimension_numbers = #tpu.dot_dimension_numbers<[1], [0], [0], [1], [0, 0, 1, 1], [], []>} : vector<49x32xf32>, vector<32x24xf32>, vector<49x24xf32> -> vector<49x24xf32>
    %218 = vector.extract_strided_slice %217 {offsets = [0, 0], sizes = [8, 8], strides = [1, 1]} : vector<49x24xf32> to vector<8x8xf32>
    %219 = vector.extract_strided_slice %217 {offsets = [8, 8], sizes = [8, 8], strides = [1, 1]} : vector<49x24xf32> to vector<8x8xf32>
    %220 = vector.extract_strided_slice %217 {offsets = [16, 16], sizes = [8, 8], strides = [1, 1]} : vector<49x24xf32> to vector<8x8xf32>
    %221 = vector.extract_strided_slice %217 {offsets = [24, 0], sizes = [8, 24], strides = [1, 1]} : vector<49x24xf32> to vector<8x24xf32>
    %222 = vector.extract_strided_slice %217 {offsets = [32, 8], sizes = [8, 8], strides = [1, 1]} : vector<49x24xf32> to vector<8x8xf32>
    %223 = vector.extract_strided_slice %217 {offsets = [40, 16], sizes = [8, 8], strides = [1, 1]} : vector<49x24xf32> to vector<8x8xf32>
    %224 = vector.extract_strided_slice %217 {offsets = [48, 0], sizes = [1, 8], strides = [1, 1]} : vector<49x24xf32> to vector<1x8xf32>
    %225 = vector.extract_strided_slice %221 {offsets = [0, 0], sizes = [8, 8], strides = [1, 1]} : vector<8x24xf32> to vector<8x8xf32>
    %226 = vector.broadcast %224 : vector<1x8xf32> to vector<8x8xf32>
    %227 = arith.mulf %225, %226 : vector<8x8xf32>
    %cst_53 = arith.constant 1.000000e-16 : f32
    %228 = vector.broadcast %cst_53 : f32 to vector<8x8xf32>
    %229 = arith.maximumf %227, %228 : vector<8x8xf32>
    %230 = math.rsqrt %229 : vector<8x8xf32>
    %231 = arith.mulf %218, %230 : vector<8x8xf32>
    %232 = vector.extract_strided_slice %221 {offsets = [0, 8], sizes = [8, 8], strides = [1, 1]} : vector<8x24xf32> to vector<8x8xf32>
    %233 = arith.mulf %232, %222 : vector<8x8xf32>
    %cst_54 = arith.constant 1.000000e-16 : f32
    %234 = vector.broadcast %cst_54 : f32 to vector<8x8xf32>
    %235 = arith.maximumf %233, %234 : vector<8x8xf32>
    %236 = math.rsqrt %235 : vector<8x8xf32>
    %237 = arith.mulf %219, %236 : vector<8x8xf32>
    %238 = vector.extract_strided_slice %221 {offsets = [0, 16], sizes = [8, 8], strides = [1, 1]} : vector<8x24xf32> to vector<8x8xf32>
    %239 = arith.mulf %238, %223 : vector<8x8xf32>
    %cst_55 = arith.constant 1.000000e-16 : f32
    %240 = vector.broadcast %cst_55 : f32 to vector<8x8xf32>
    %241 = arith.maximumf %239, %240 : vector<8x8xf32>
    %242 = math.rsqrt %241 : vector<8x8xf32>
    %243 = arith.mulf %220, %242 : vector<8x8xf32>
    %244 = vector.extract_strided_slice %4 {offsets = [7, 0], sizes = [1, 32], strides = [1, 1]} : vector<8x32xf32> to vector<1x32xf32>
    %245 = vector.broadcast %244 : vector<1x32xf32> to vector<8x32xf32>
    %246 = arith.mulf %6, %245 : vector<8x32xf32>
    %247 = arith.mulf %6, %95 : vector<8x32xf32>
    %248 = arith.mulf %6, %111 : vector<8x32xf32>
    %249 = arith.mulf %6, %6 : vector<8x32xf32>
    %250 = arith.mulf %95, %95 : vector<8x32xf32>
    %251 = arith.mulf %111, %111 : vector<8x32xf32>
    %252 = arith.mulf %244, %244 : vector<1x32xf32>
    %253 = tpu.concatenate %246, %247, %248, %249, %250, %251, %252 in 0 : vector<8x32xf32>, vector<8x32xf32>, vector<8x32xf32>, vector<8x32xf32>, vector<8x32xf32>, vector<8x32xf32>, vector<1x32xf32> -> vector<49x32xf32>
    %cst_56 = arith.constant dense<0.000000e+00> : vector<49x24xf32>
    %254 = tpu.matmul %253, %8, %cst_56 {dimension_numbers = #tpu.dot_dimension_numbers<[1], [0], [0], [1], [0, 0, 1, 1], [], []>} : vector<49x32xf32>, vector<32x24xf32>, vector<49x24xf32> -> vector<49x24xf32>
    %255 = vector.extract_strided_slice %254 {offsets = [0, 0], sizes = [8, 8], strides = [1, 1]} : vector<49x24xf32> to vector<8x8xf32>
    %256 = vector.extract_strided_slice %254 {offsets = [8, 8], sizes = [8, 8], strides = [1, 1]} : vector<49x24xf32> to vector<8x8xf32>
    %257 = vector.extract_strided_slice %254 {offsets = [16, 16], sizes = [8, 8], strides = [1, 1]} : vector<49x24xf32> to vector<8x8xf32>
    %258 = vector.extract_strided_slice %254 {offsets = [24, 0], sizes = [8, 24], strides = [1, 1]} : vector<49x24xf32> to vector<8x24xf32>
    %259 = vector.extract_strided_slice %254 {offsets = [32, 8], sizes = [8, 8], strides = [1, 1]} : vector<49x24xf32> to vector<8x8xf32>
    %260 = vector.extract_strided_slice %254 {offsets = [40, 16], sizes = [8, 8], strides = [1, 1]} : vector<49x24xf32> to vector<8x8xf32>
    %261 = vector.extract_strided_slice %254 {offsets = [48, 0], sizes = [1, 8], strides = [1, 1]} : vector<49x24xf32> to vector<1x8xf32>
    %262 = vector.extract_strided_slice %258 {offsets = [0, 0], sizes = [8, 8], strides = [1, 1]} : vector<8x24xf32> to vector<8x8xf32>
    %263 = vector.broadcast %261 : vector<1x8xf32> to vector<8x8xf32>
    %264 = arith.mulf %262, %263 : vector<8x8xf32>
    %cst_57 = arith.constant 1.000000e-16 : f32
    %265 = vector.broadcast %cst_57 : f32 to vector<8x8xf32>
    %266 = arith.maximumf %264, %265 : vector<8x8xf32>
    %267 = math.rsqrt %266 : vector<8x8xf32>
    %268 = arith.mulf %255, %267 : vector<8x8xf32>
    %269 = vector.extract_strided_slice %258 {offsets = [0, 8], sizes = [8, 8], strides = [1, 1]} : vector<8x24xf32> to vector<8x8xf32>
    %270 = arith.mulf %269, %259 : vector<8x8xf32>
    %cst_58 = arith.constant 1.000000e-16 : f32
    %271 = vector.broadcast %cst_58 : f32 to vector<8x8xf32>
    %272 = arith.maximumf %270, %271 : vector<8x8xf32>
    %273 = math.rsqrt %272 : vector<8x8xf32>
    %274 = arith.mulf %256, %273 : vector<8x8xf32>
    %275 = vector.extract_strided_slice %258 {offsets = [0, 16], sizes = [8, 8], strides = [1, 1]} : vector<8x24xf32> to vector<8x8xf32>
    %276 = arith.mulf %275, %260 : vector<8x8xf32>
    %cst_59 = arith.constant 1.000000e-16 : f32
    %277 = vector.broadcast %cst_59 : f32 to vector<8x8xf32>
    %278 = arith.maximumf %276, %277 : vector<8x8xf32>
    %279 = math.rsqrt %278 : vector<8x8xf32>
    %280 = arith.mulf %257, %279 : vector<8x8xf32>
    %281 = vector.extract_strided_slice %5 {offsets = [0, 0], sizes = [1, 32], strides = [1, 1]} : vector<8x32xf32> to vector<1x32xf32>
    %282 = vector.broadcast %281 : vector<1x32xf32> to vector<8x32xf32>
    %283 = arith.mulf %7, %282 : vector<8x32xf32>
    %284 = arith.mulf %7, %105 : vector<8x32xf32>
    %285 = arith.mulf %7, %117 : vector<8x32xf32>
    %286 = arith.mulf %7, %7 : vector<8x32xf32>
    %287 = arith.mulf %105, %105 : vector<8x32xf32>
    %288 = arith.mulf %117, %117 : vector<8x32xf32>
    %289 = arith.mulf %281, %281 : vector<1x32xf32>
    %290 = tpu.concatenate %283, %284, %285, %286, %287, %288, %289 in 0 : vector<8x32xf32>, vector<8x32xf32>, vector<8x32xf32>, vector<8x32xf32>, vector<8x32xf32>, vector<8x32xf32>, vector<1x32xf32> -> vector<49x32xf32>
    %cst_60 = arith.constant dense<0.000000e+00> : vector<49x24xf32>
    %291 = tpu.matmul %290, %9, %cst_60 {dimension_numbers = #tpu.dot_dimension_numbers<[1], [0], [0], [1], [0, 0, 1, 1], [], []>} : vector<49x32xf32>, vector<32x24xf32>, vector<49x24xf32> -> vector<49x24xf32>
    %292 = vector.extract_strided_slice %291 {offsets = [0, 0], sizes = [8, 8], strides = [1, 1]} : vector<49x24xf32> to vector<8x8xf32>
    %293 = vector.extract_strided_slice %291 {offsets = [8, 8], sizes = [8, 8], strides = [1, 1]} : vector<49x24xf32> to vector<8x8xf32>
    %294 = vector.extract_strided_slice %291 {offsets = [16, 16], sizes = [8, 8], strides = [1, 1]} : vector<49x24xf32> to vector<8x8xf32>
    %295 = vector.extract_strided_slice %291 {offsets = [24, 0], sizes = [8, 24], strides = [1, 1]} : vector<49x24xf32> to vector<8x24xf32>
    %296 = vector.extract_strided_slice %291 {offsets = [32, 8], sizes = [8, 8], strides = [1, 1]} : vector<49x24xf32> to vector<8x8xf32>
    %297 = vector.extract_strided_slice %291 {offsets = [40, 16], sizes = [8, 8], strides = [1, 1]} : vector<49x24xf32> to vector<8x8xf32>
    %298 = vector.extract_strided_slice %291 {offsets = [48, 0], sizes = [1, 8], strides = [1, 1]} : vector<49x24xf32> to vector<1x8xf32>
    %299 = vector.extract_strided_slice %295 {offsets = [0, 0], sizes = [8, 8], strides = [1, 1]} : vector<8x24xf32> to vector<8x8xf32>
    %300 = vector.broadcast %298 : vector<1x8xf32> to vector<8x8xf32>
    %301 = arith.mulf %299, %300 : vector<8x8xf32>
    %cst_61 = arith.constant 1.000000e-16 : f32
    %302 = vector.broadcast %cst_61 : f32 to vector<8x8xf32>
    %303 = arith.maximumf %301, %302 : vector<8x8xf32>
    %304 = math.rsqrt %303 : vector<8x8xf32>
    %305 = arith.mulf %292, %304 : vector<8x8xf32>
    %306 = vector.extract_strided_slice %295 {offsets = [0, 8], sizes = [8, 8], strides = [1, 1]} : vector<8x24xf32> to vector<8x8xf32>
    %307 = arith.mulf %306, %296 : vector<8x8xf32>
    %cst_62 = arith.constant 1.000000e-16 : f32
    %308 = vector.broadcast %cst_62 : f32 to vector<8x8xf32>
    %309 = arith.maximumf %307, %308 : vector<8x8xf32>
    %310 = math.rsqrt %309 : vector<8x8xf32>
    %311 = arith.mulf %293, %310 : vector<8x8xf32>
    %312 = vector.extract_strided_slice %295 {offsets = [0, 16], sizes = [8, 8], strides = [1, 1]} : vector<8x24xf32> to vector<8x8xf32>
    %313 = arith.mulf %312, %297 : vector<8x8xf32>
    %cst_63 = arith.constant 1.000000e-16 : f32
    %314 = vector.broadcast %cst_63 : f32 to vector<8x8xf32>
    %315 = arith.maximumf %313, %314 : vector<8x8xf32>
    %316 = math.rsqrt %315 : vector<8x8xf32>
    %317 = arith.mulf %294, %316 : vector<8x8xf32>
    %318 = tpu.concatenate %194, %164, %200, %206, %231, %165, %237, %243 in 1 : vector<8x8xf32>, vector<8x8xf32>, vector<8x8xf32>, vector<8x8xf32>, vector<8x8xf32>, vector<8x8xf32>, vector<8x8xf32>, vector<8x8xf32> -> vector<8x64xf32>
    %319 = tpu.concatenate %268, %167, %274, %280, %305, %169, %311, %317 in 1 : vector<8x8xf32>, vector<8x8xf32>, vector<8x8xf32>, vector<8x8xf32>, vector<8x8xf32>, vector<8x8xf32>, vector<8x8xf32>, vector<8x8xf32> -> vector<8x64xf32>
    %320 = vector.shape_cast %318 : vector<8x64xf32> to vector<8x1x64xf32>
    %321 = vector.shape_cast %319 : vector<8x64xf32> to vector<8x1x64xf32>
    %322 = tpu.concatenate %320, %321 in 1 : vector<8x1x64xf32>, vector<8x1x64xf32> -> vector<8x2x64xf32>
    %323 = vector.shape_cast %322 : vector<8x2x64xf32> to vector<8x1x2x64xf32>
    %c0_64 = arith.constant 0 : index
    %c0_65 = arith.constant 0 : index
    %c0_66 = arith.constant 0 : index
    %c0_67 = arith.constant 0 : index
    %324 = vector.load %arg6[%c0_64, %c0_65, %c0_66, %c0_67] : memref<8x1x2x64xf32, #tpu.memory_space<vmem>>, vector<8x1x2x64xf32>
    tpu.vector_store %arg6[%c0_64, %c0_65, %c0_66, %c0_67], %323 {strides = array<i32>} : memref<8x1x2x64xf32, #tpu.memory_space<vmem>>, vector<8x1x2x64xf32>,
    return
  }
  func.func @transform_0(%arg0: i32) -> (i32, i32, i32, i32) {
    %c0_i32 = arith.constant 0 : i32
    %c0_i32_0 = arith.constant 0 : i32
    %c0_i32_1 = arith.constant 0 : i32
    %c0_i32_2 = arith.constant 0 : i32
    return %c0_i32, %arg0, %c0_i32_0, %c0_i32_1 : i32, i32, i32, i32
  }
  func.func @transform_1(%arg0: i32) -> (i32, i32, i32, i32) {
    %c1_i32 = arith.constant 1 : i32
    %c0_i32 = arith.constant 0 : i32
    %c0_i32_0 = arith.constant 0 : i32
    %c0_i32_1 = arith.constant 0 : i32
    return %c1_i32, %arg0, %c0_i32, %c0_i32_0 : i32, i32, i32, i32
  }
  func.func @transform_2(%arg0: i32) -> (i32, i32) {
    %c0_i32 = arith.constant 0 : i32
    %c0_i32_0 = arith.constant 0 : i32
    %c0_i32_1 = arith.constant 0 : i32
    return %c0_i32, %c0_i32_0 : i32, i32
  }
  func.func @transform_3(%arg0: i32) -> (i32, i32) {
    %c0_i32 = arith.constant 0 : i32
    %c0_i32_0 = arith.constant 0 : i32
    %c0_i32_1 = arith.constant 0 : i32
    return %c0_i32, %c0_i32_0 : i32, i32
  }
  func.func @transform_4(%arg0: i32) -> (i32, i32) {
    %c0_i32 = arith.constant 0 : i32
    %c0_i32_0 = arith.constant 0 : i32
    %c0_i32_1 = arith.constant 0 : i32
    return %c0_i32, %c0_i32_0 : i32, i32
  }
  func.func @transform_5(%arg0: i32) -> (i32, i32, i32, i32) {
    %c0_i32 = arith.constant 0 : i32
    %c0_i32_0 = arith.constant 0 : i32
    %c0_i32_1 = arith.constant 0 : i32
    %c0_i32_2 = arith.constant 0 : i32
    return %c0_i32, %arg0, %c0_i32_0, %c0_i32_1 : i32, i32, i32, i32
  }
}

</mosaic_0001>

<bundles_post_ra>
// kernel: square.9
= control target key start
LH: loop header
LB: loop body
LE: loop exit
PB: predicated region body
PF: predicated region fallthrough
CT: control target
= control target key end

     0   :  { %s34_s0 = inlined_call_operand.vmem [shape: f32[8,32], index: 0, kind: input, shape index: {}, may-alias: {0,1}]   ;;  %s35_s1 = inlined_call_operand.vmem [shape: f32[8,32], index: 1, kind: input, shape index: {}, may-alias: {0,1}]   ;;  %s36_s2 = inlined_call_operand.vmem [shape: f32[8,32], index: 2, kind: output, shape index: {}]  }
   0x1   :  { %v3_v0 = vld [vmem:[%s34_s0] sm:$0xff] }
   0x2   :  { %v4_v1 = vld [vmem:[%s35_s1] sm:$0xff] }
   0x3   :  { %v7_v2 = vmul.f32 %v4_v1, %v3_v0 }
   0x5   :  { %9 = vst [vmem:[%s36_s2] sm:$0xff] %v7_v2 }

// kernel: bimpm_forward.5
= control target key start
LH: loop header
LB: loop body
LE: loop exit
PB: predicated region body
PF: predicated region fallthrough
CT: control target
= control target key end

     0   :  { %v2000_v7 = vmov 0.0   ;;  %s2500_s0 = inlined_call_operand.vmem [shape: f32[32,64], index: 0, kind: input, shape index: {}]   ;;  %s2501_s1 = inlined_call_operand.vmem [shape: f32[64,256], index: 1, kind: input, shape index: {}]   ;;  %s2502_s2 = inlined_call_operand.vmem [shape: f32[1,256], index: 2, kind: input, shape index: {}]   ;;  %s2503_s3 = inlined_call_operand.vmem [shape: f32[64,256], index: 3, kind: input, shape index: {}]   ;;  %s2504_s4 = inlined_call_operand.vmem [shape: f32[128,64], index: 4, kind: input, shape index: {}]   ;;  %s2505_s5 = inlined_call_operand.vmem [shape: f32[1,64], index: 5, kind: input, shape index: {}]   ;;  %s2506_s6 = inlined_call_operand.vmem [shape: f32[64,2], index: 6, kind: input, shape index: {}]   ;;  %s2507_s7 = inlined_call_operand.vmem [shape: f32[1,2], index: 7, kind: input, shape index: {}]   ;;  %s2508_s8 = inlined_call_operand.hbm [shape: f32[2,2], index: 8, kind: output, shape index: {}]  }
   0x1   :  { %v35_v0 = vld [vmem:[%s2501_s1 + $0x8] sm:$0xff]  ;;  %v37_v1 = vld [vmem:[%s2501_s1 + $0x18] sm:$0xff]  ;;  %v34_v2 = vld [vmem:[%s2501_s1] sm:$0xff]  ;;  %139 = vmatprep.mubr.f32.mxu0 %v2000_v7  ;;  %247 = vmatprep.mubr.f32.mxu1 %v2000_v7 }
   0x2   :  { %v1656_v3 = vpack.c.bf16 %v37_v1, %v35_v0  ;;  %v36_v4 = vld [vmem:[%s2501_s1 + $0x10] sm:$0xff]  ;;  %v165_v5 = vld [vmem:[%s2503_s3 + $0x8] sm:$0xff]  ;;  %v167_v6 = vld [vmem:[%s2503_s3 + $0x18] sm:$0xff] }
   0x3   :  { %v1658_v8 = vpack.c.bf16 %v36_v4, %v34_v2  ;;  %v2071_v9 = vpack.c.bf16 %v167_v6, %v165_v5  ;;  %v164_v10 = vld [vmem:[%s2503_s3] sm:$0xff]  ;;  %v166_v11 = vld [vmem:[%s2503_s3 + $0x10] sm:$0xff]  ;;  %v39_v12 = vld [vmem:[%s2501_s1 + $0x28] sm:$0xff] }
   0x4   :  { %1657 = vmatprep.subr.bf16.mxu0 %v1656_v3  ;;  %v2082_v13 = vpack.c.bf16 %v166_v11, %v164_v10  ;;  %v41_v14 = vld [vmem:[%s2501_s1 + $0x38] sm:$0xff]  ;;  %v38_v15 = vld [vmem:[%s2501_s1 + $0x20] sm:$0xff]  ;;  %v40_v16 = vld [vmem:[%s2501_s1 + $0x30] sm:$0xff] }
   0x5   :  { %1659 = vmatpush1.bf16.msra.mxu0 %v1658_v8  ;;  %1673 = vmatprep.subr.bf16.mxu1 %v2071_v9  ;;  %v1660_v17 = vpack.c.bf16 %v41_v14, %v39_v12  ;;  %v1662_v18 = vpack.c.bf16 %v40_v16, %v38_v15  ;;  %v169_v19 = vld [vmem:[%s2503_s3 + $0x28] sm:$0xff]  ;;  %v171_v20 = vld [vmem:[%s2503_s3 + $0x38] sm:$0xff]  ;;  %v168_v21 = vld [vmem:[%s2503_s3 + $0x20] sm:$0xff] }
   0x6   :  { %1675 = vmatpush1.bf16.msra.mxu1 %v2082_v13  ;;  %v2104_v22 = vpack.c.bf16 %v171_v20, %v169_v19  ;;  %v170_v23 = vld [vmem:[%s2503_s3 + $0x30] sm:$0xff]  ;;  %v43_v24 = vld [vmem:[%s2501_s1 + $0x48] sm:$0xff]  ;;  %v45_v25 = vld [vmem:[%s2501_s1 + $0x58] sm:$0xff] }
   0x7   :  { %1661 = vmatprep.subr.bf16.mxu0 %v1660_v17  ;;  %v2115_v26 = vpack.c.bf16 %v170_v23, %v168_v21  ;;  %v1664_v27 = vpack.c.bf16 %v45_v25, %v43_v24  ;;  %v42_v28 = vld [vmem:[%s2501_s1 + $0x40] sm:$0xff]  ;;  %v44_v29 = vld [vmem:[%s2501_s1 + $0x50] sm:$0xff]  ;;  %v173_v30 = vld [vmem:[%s2503_s3 + $0x48] sm:$0xff] }
   0x8   :  { %1677 = vmatprep.subr.bf16.mxu1 %v2104_v22  ;;  %v175_v31 = vld [vmem:[%s2503_s3 + $0x58] sm:$0xff]  ;;  %v172_v32 = vld [vmem:[%s2503_s3 + $0x40] sm:$0xff]  ;;  %v174_v33 = vld [vmem:[%s2503_s3 + $0x50] sm:$0xff]  ;;  %v1666_v34 = vpack.c.bf16 %v44_v29, %v42_v28 }
   0x9   :  { %1663 = vmatpush1.bf16.msra.mxu0 %v1662_v18  ;;  %v2136_v35 = vpack.c.bf16 %v175_v31, %v173_v30  ;;  %v47_v36 = vld [vmem:[%s2501_s1 + $0x68] sm:$0xff]  ;;  %v49_v37 = vld [vmem:[%s2501_s1 + $0x78] sm:$0xff]  ;;  %v46_v38 = vld [vmem:[%s2501_s1 + $0x60] sm:$0xff]  ;;  %v2148_v39 = vpack.c.bf16 %v174_v33, %v172_v32 }
   0xa   :  { %1679 = vmatpush1.bf16.msra.mxu1 %v2115_v26  ;;  %1665 = vmatprep.subr.bf16.mxu0 %v1664_v27  ;;  %v1668_v40 = vpack.c.bf16 %v49_v37, %v47_v36  ;;  %v48_v41 = vld [vmem:[%s2501_s1 + $0x70] sm:$0xff]  ;;  %v177_v42 = vld [vmem:[%s2503_s3 + $0x68] sm:$0xff]  ;;  %v179_v43 = vld [vmem:[%s2503_s3 + $0x78] sm:$0xff] }
   0xb   :  { %1681 = vmatprep.subr.bf16.mxu1 %v2136_v35  ;;  %v2160_v44 = vpack.c.bf16 %v179_v43, %v177_v42  ;;  %v176_v45 = vld [vmem:[%s2503_s3 + $0x60] sm:$0xff]  ;;  %v178_v46 = vld [vmem:[%s2503_s3 + $0x70] sm:$0xff]  ;;  %v1670_v47 = vpack.c.bf16 %v48_v41, %v46_v38 }
   0xd   :  { %1667 = vmatpush1.bf16.msra.mxu0 %v1666_v34 }
   0xe   :  { %13 = vsyncpa [#allocation3], 0  ;;  %1683 = vmatpush1.bf16.msra.mxu1 %v2148_v39  ;;  %1669 = vmatprep.subr.bf16.mxu0 %v1668_v40  ;;  %v2169_v48 = vpack.c.bf16 %v178_v46, %v176_v45  ;;  %v30_v49 = vld [vmem:[%s2500_s0] sm:$0xff]  ;;  %vm62_vm0 = vcmask 523264   ;;  %v31_v50 = vld [vmem:[%s2500_s0 + $0x8] sm:$0xff]  ;;  %v52_v53 = vlaneseq  ;;  %s2002_s10 = smov 32  }
   0xf   :  { %1685 = vmatprep.subr.bf16.mxu1 %v2160_v44  ;;  %v32_v51 = vld [vmem:[%s2500_s0 + $0x10] sm:$0xff]  ;;  %v33_v52 = vld [vmem:[%s2500_s0 + $0x18] sm:$0xff]  ;;  %v50_v56 = vld [vmem:[%s2502_s2] sm:$0x3]  ;;  %s2001_s2 = smov 64   ;;  %vm316_vm1 = vcmask 261120  }
  0x10   :  { %v53_v54 = vshrl.u32 %v52_v53, 7  ;;  %vm2004_vm2 = vmmov 0   ;;  %vm1333_vm3 = vcmask 1040384   ;;  %vm1517_vm4 = vcmask 9216  }
  0x11   :  { %1671 = vmatpush1.bf16.msra.mxu0 %v1670_v47 }
  0x12   :  { %1687 = vmatpush1.bf16.msra.mxu1 %v2169_v48  ;;  %1689 = vmatprep.subr.bf16.mxu0 %v2071_v9  ;;  %v58_v55 = vsub.s32 1, %v53_v54  ;;  %v54_v58 = vsub.s32 0, %v53_v54 }
  0x13   :  { %1705 = vmatprep.subr.bf16.mxu1 %v2071_v9 }
  0x14   :  { %1546 = vmatmul.mubr.msk.f32.vlgmr.msra.gmra.mrb[0].mxu0 %vm62_vm0, %v30_v49  ;;  %v59_v57 = vrot.slane %v50_v56, %v58_v55  ;;  %v55_v0 = vrot.slane %v50_v56, %v54_v58 }
  0x15   :  { %248 = vmatmul.mubr.f32.vlgmr.msra.gmra.mrb[0].mxu1 %v2000_v7  ;;  %145 = vmatprep.mubr.f32.mxu0 %v2000_v7 }
  0x16   :  { %1691 = vmatpush1.bf16.msra.mxu0 %v2082_v13  ;;  %1707 = vmatpush1.bf16.msra.mxu1 %v2082_v13 }
  0x17   :  { %1693 = vmatprep.subr.bf16.mxu0 %v2104_v22  ;;  %1709 = vmatprep.subr.bf16.mxu1 %v2104_v22 }
  0x18   :  { %1547 = vmatmul.mubr.msk.f32.gmra.mrb[2].mxu0 %vm62_vm0, %v31_v50  ;;  %529 = vmatprep.mubr.f32.mxu1 %v2000_v7 }
  0x19   :  { %151 = vmatprep.mubr.f32.mxu0 %v2000_v7 }
  0x1a   :  { %1695 = vmatpush1.bf16.msra.mxu0 %v2115_v26  ;;  %1711 = vmatpush1.bf16.msra.mxu1 %v2115_v26 }
  0x1b   :  { %1697 = vmatprep.subr.bf16.mxu0 %v2136_v35  ;;  %1713 = vmatprep.subr.bf16.mxu1 %v2136_v35 }
  0x1c   :  { %1548 = vmatmul.mubr.msk.f32.gmra.mrb[4].mxu0 %vm62_vm0, %v32_v51 }
  0x1d   :  { %157 = vmatprep.mubr.f32.mxu0 %v2000_v7 }
  0x1e   :  { %1699 = vmatpush1.bf16.msra.mxu0 %v2148_v39  ;;  %1715 = vmatpush1.bf16.msra.mxu1 %v2148_v39 }
  0x1f   :  { %1701 = vmatprep.subr.bf16.mxu0 %v2160_v44  ;;  %1717 = vmatprep.subr.bf16.mxu1 %v2160_v44 }
  0x20   :  { %1549 = vmatmul.mubr.msk.f32.gmra.mrb[6].mxu0 %vm62_vm0, %v33_v52 }
  0x21   :  { %385 = vmatprep.mubr.f32.mxu0 %v2000_v7 }
  0x22   :  { %1703 = vmatpush1.bf16.msra.mxu0 %v2169_v48  ;;  %1719 = vmatpush1.bf16.msra.mxu1 %v2169_v48 }
  0x23   :  { %1721 = vmatprep.subr.bf16.mxu0 %v2071_v9  ;;  %1737 = vmatprep.subr.bf16.mxu1 %v2071_v9 }
  0xe7   :  { %v141_v59 = vpop.f32.mrb[0].mxu0 }
  0xe8   :  { %v143_v60 = vpop.f32.mrb[1].mxu0  ;;  %v249_v61 = vpop.f32.mrb[0].mxu1  ;;  %v2228_v16 = vadd.f32 %v141_v59, %v55_v0 }
  0xe9   :  { %v2216_v62 = vadd.f32 %v143_v60, %v59_v57  ;;  %v251_v63 = vpop.f32.mrb[1].mxu1 }
  0xea   :  { %v256_v12 = vrot.slane %v251_v63, 4  ;;  %v254_v19 = vadd.f32 %v249_v61, %v2228_v16 }
  0xeb   :  { %v147_v1 = vpop.f32.mrb[2].mxu0 }
  0xec   :  { %v2218_v2 = vadd.f32 %v147_v1, %v55_v0  ;;  %v149_v3 = vpop.f32.mrb[3].mxu0  ;;  %v1550_v24 = vmul.f32 -1.442695, %v254_v19 }
  0xed   :  { %v2220_v4 = vadd.f32 %v149_v3, %v59_v57 }
  0xef   :  { %v153_v5 = vpop.f32.mrb[4].mxu0 }
  0xf0   :  { %v2222_v6 = vadd.f32 %v153_v5, %v55_v0  ;;  %v155_v8 = vpop.f32.mrb[5].mxu0 }
  0xf1   :  { %v2224_v10 = vadd.f32 %v155_v8, %v59_v57 }
  0xf3   :  { %v159_v11 = vpop.f32.mrb[6].mxu0 }
  0xf4   :  { %v2226_v14 = vadd.f32 %v159_v11, %v55_v0  ;;  %v161_v15 = vpop.f32.mrb[7].mxu0 }
  0xf5   :  { %v2230_v17 = vadd.f32 %v161_v15, %v59_v57 }
  0xf7   :  { %v258_v18 = vadd.f32 %v256_v12, %v2230_v17 }
  0xf9   :  { %1842 = vtanh.f32 %v258_v18  ;;  %v1551_v23 = vmul.f32 -1.442695, %v258_v18 }
  0xfa   :  { %1844 = vtanh.f32 %v254_v19 }
  0xfb   :  { %1846 = vpow2.f32 %v1551_v23 }
  0xfc   :  { %1848 = vpow2.f32 %v1550_v24 }
 0x103   :  { %v1843_v20 = vpop.eup %1842 }
 0x104   :  { %292 = vrot.lane.b32.xlu0 %v1843_v20, %s2001_s2  ;;  %v1845_v21 = vpop.eup %1844 }
 0x105   :  { %v1847_v25 = vpop.eup %1846 }
 0x106   :  { %v286_v27 = vadd.f32 1.0, %v1847_v25  ;;  %v1849_v28 = vpop.eup %1848 }
 0x107   :  { %v262_v29 = vadd.f32 1.0, %v1849_v28 }
 0x108   :  { %268 = vrot.lane.b32.xlu0 %v1845_v21, %s2001_s2  ;;  %1850 = vrcp.f32 %v286_v27 }
 0x109   :  { %1852 = vrcp.f32 %v262_v29 }
 0x112   :  { %v1851_v30 = vpop.eup %1850 }
 0x113   :  { %v1853_v33 = vpop.eup %1852  ;;  %v290_v37 = vmul.f32 0.0, %v1851_v30 }
 0x114   :  { %v266_v41 = vmul.f32 0.0, %v1853_v33 }
 0x176   :  { %v293_v31 = vpop.permute.xlu0 %292 }
 0x177   :  { %v295_v32 = vmul.f32 %v1851_v30, %v293_v31 }
 0x179   :  { %297 = vrot.lane.b32.xlu1 %v295_v32, %s2002_s10 }
 0x17a   :  { %v269_v34 = vpop.permute.xlu0 %268 }
 0x17b   :  { %v271_v36 = vmul.f32 %v1853_v33, %v269_v34 }
 0x17d   :  { %273 = vrot.lane.b32.xlu1 %v271_v36, %s2002_s10 }
 0x1eb   :  { %v298_v38 = vpop.permute.xlu1 %297 }
 0x1ec   :  { %v2238_v40 = vadd.f32 %v298_v38, %v290_v37 }
 0x1ee   :  { %1854 = vtanh.f32 %v2238_v40  ;;  %v432_v20 = vrot.slane %v2238_v40, 4 }
 0x1ef   :  { %v274_v42 = vpop.permute.xlu1 %273 }
 0x1f0   :  { %v276_v43 = vadd.f32 %v274_v42, %v266_v41 }
 0x1f2   :  { %1856 = vtanh.f32 %v276_v43  ;;  %v405_v21 = vrot.slane %v276_v43, 4 }
 0x1f8   :  { %v1855_v45 = vpop.eup %1854 }
 0x1f9   :  { %303 = vrot.lane.b32.xlu0 %v1855_v45, %s2001_s2 }
 0x1fc   :  { %v1857_v46 = vpop.eup %1856 }
 0x1fd   :  { %279 = vrot.lane.b32.xlu1 %v1857_v46, %s2001_s2 }
 0x26b   :  { %v304_v47 = vpop.permute.xlu0 %303 }
 0x26c   :  { %v306_v49 = vmul.f32 %v1851_v30, %v304_v47 }
 0x26e   :  { %v312_v50 = vrot.slane %v306_v49, 4 }
 0x26f   :  { %v280_v51 = vpop.permute.xlu1 %279 }
 0x270   :  { %v282_v52 = vmul.f32 %v1853_v33, %v280_v51  ;;  %313 = vrot.lane.b32.xlu1 %v312_v50, %s2001_s2 }
 0x272   :  { %308 = vrot.lane.b32.xlu0 %v282_v52, %s2002_s10 }
 0x2e2   :  { %v314_v53 = vpop.permute.xlu1 %313 }
 0x2e4   :  { %v309_v54 = vpop.permute.xlu0 %308 }
 0x2e5   :  { %v317_v55 = vsel %vm316_vm1, %v309_v54, %v314_v53 }
 0x2e6   :  { %1552 = vmatmul.mubr.msk.f32.vlgmr.msra.gmra.mrb[8].mxu0 %vm62_vm0, %v317_v55 }
 0x2e7   :  { %1723 = vmatpush1.bf16.msra.mxu0 %v2082_v13  ;;  %672 = vmatprep.mubr.f32.mxu0 %v2000_v7 }
 0x2e8   :  { %1725 = vmatprep.subr.bf16.mxu0 %v2104_v22 }
 0x2eb   :  { %1727 = vmatpush1.bf16.msra.mxu0 %v2115_v26 }
 0x2ec   :  { %1729 = vmatprep.subr.bf16.mxu0 %v2136_v35 }
 0x2ef   :  { %1731 = vmatpush1.bf16.msra.mxu0 %v2148_v39 }
 0x2f0   :  { %1733 = vmatprep.subr.bf16.mxu0 %v2160_v44 }
 0x2f3   :  { %1735 = vmatpush1.bf16.msra.mxu0 %v2169_v48 }
 0x2f4   :  { %1753 = vmatprep.subr.bf16.mxu0 %v2071_v9 }
 0x3b9   :  { %v387_v56 = vpop.f32.mrb[8].mxu0 }
 0x3ba   :  { %v393_v57 = vrot.slane %v387_v56, 4  ;;  %v389_v58 = vpop.f32.mrb[9].mxu0 }
 0x3bb   :  { %v396_v59 = vadd.f32 %v389_v58, %v2230_v17 }
 0x3bc   :  { %v395_v60 = vadd.f32 %v393_v57, %v2228_v16 }
 0x3bd   :  { %1858 = vtanh.f32 %v396_v59  ;;  %v1554_v0 = vmul.f32 -1.442695, %v396_v59 }
 0x3be   :  { %1860 = vtanh.f32 %v395_v60  ;;  %v1553_v1 = vmul.f32 -1.442695, %v395_v60 }
 0x3bf   :  { %1862 = vpow2.f32 %v1554_v0 }
 0x3c0   :  { %1864 = vpow2.f32 %v1553_v1 }
 0x3c7   :  { %v1859_v61 = vpop.eup %1858 }
 0x3c8   :  { %v1861_v63 = vpop.eup %1860  ;;  %436 = vrot.lane.b32.xlu0 %v1859_v61, %s2001_s2 }
 0x3c9   :  { %409 = vrot.lane.b32.xlu1 %v1861_v63, %s2001_s2  ;;  %v1863_v3 = vpop.eup %1862 }
 0x3ca   :  { %v1865_v5 = vpop.eup %1864  ;;  %v427_v8 = vadd.f32 1.0, %v1863_v3 }
 0x3cb   :  { %v400_v11 = vadd.f32 1.0, %v1865_v5 }
 0x3cc   :  { %1866 = vrcp.f32 %v427_v8 }
 0x3cd   :  { %1868 = vrcp.f32 %v400_v11 }
 0x3d6   :  { %v1867_v12 = vpop.eup %1866 }
 0x3d7   :  { %v1869_v16 = vpop.eup %1868  ;;  %v434_v23 = vmul.f32 %v1867_v12, %v432_v20 }
 0x3d8   :  { %v407_v25 = vmul.f32 %v1869_v16, %v405_v21 }
 0x43a   :  { %v437_v15 = vpop.permute.xlu0 %436 }
 0x43b   :  { %v439_v17 = vmul.f32 %v1867_v12, %v437_v15  ;;  %v410_v18 = vpop.permute.xlu1 %409 }
 0x43c   :  { %v412_v19 = vmul.f32 %v1869_v16, %v410_v18 }
 0x43d   :  { %441 = vrot.lane.b32.xlu0 %v439_v17, %s2002_s10 }
 0x43e   :  { %414 = vrot.lane.b32.xlu1 %v412_v19, %s2002_s10 }
 0x4af   :  { %v442_v24 = vpop.permute.xlu0 %441 }
 0x4b0   :  { %v2263_v27 = vadd.f32 %v442_v24, %v434_v23  ;;  %v415_v28 = vpop.permute.xlu1 %414 }
 0x4b1   :  { %v417_v29 = vadd.f32 %v415_v28, %v407_v25 }
 0x4b2   :  { %1870 = vtanh.f32 %v2263_v27  ;;  %v576_v5 = vrot.slane %v2263_v27, 4 }
 0x4b3   :  { %1872 = vtanh.f32 %v417_v29  ;;  %v549_v1 = vrot.slane %v417_v29, 4 }
 0x4bc   :  { %v1871_v30 = vpop.eup %1870 }
 0x4bd   :  { %v1873_v31 = vpop.eup %1872  ;;  %447 = vrot.lane.b32.xlu0 %v1871_v30, %s2001_s2 }
 0x4be   :  { %420 = vrot.lane.b32.xlu1 %v1873_v31, %s2001_s2 }
 0x52f   :  { %v448_v32 = vpop.permute.xlu0 %447 }
 0x530   :  { %v450_v33 = vmul.f32 %v1867_v12, %v448_v32  ;;  %v421_v34 = vpop.permute.xlu1 %420 }
 0x531   :  { %v423_v36 = vmul.f32 %v1869_v16, %v421_v34 }
 0x532   :  { %v456_v37 = vrot.slane %v450_v33, 4 }
 0x533   :  { %452 = vrot.lane.b32.xlu0 %v423_v36, %s2002_s10 }
 0x534   :  { %457 = vrot.lane.b32.xlu1 %v456_v37, %s2001_s2 }
 0x5a5   :  { %v453_v38 = vpop.permute.xlu0 %452 }
 0x5a6   :  { %v458_v40 = vpop.permute.xlu1 %457 }
 0x5a7   :  { %v460_v41 = vsel %vm316_vm1, %v453_v38, %v458_v40 }
 0x5a8   :  { %v462_v42 = vrot.slane %v460_v41, 4 }
 0x5aa   :  { %1555 = vmatmul.mubr.msk.f32.vlgmr.msra.gmra.mrb[2].mxu1 %vm62_vm0, %v462_v42 }
 0x5ab   :  { %1739 = vmatpush1.bf16.msra.mxu1 %v2082_v13  ;;  %816 = vmatprep.mubr.f32.mxu1 %v2000_v7 }
 0x5ac   :  { %1741 = vmatprep.subr.bf16.mxu1 %v2104_v22 }
 0x5af   :  { %1743 = vmatpush1.bf16.msra.mxu1 %v2115_v26 }
 0x5b0   :  { %1745 = vmatprep.subr.bf16.mxu1 %v2136_v35 }
 0x5b3   :  { %1747 = vmatpush1.bf16.msra.mxu1 %v2148_v39 }
 0x5b4   :  { %1749 = vmatprep.subr.bf16.mxu1 %v2160_v44 }
 0x5b7   :  { %1751 = vmatpush1.bf16.msra.mxu1 %v2169_v48 }
 0x5b8   :  { %1769 = vmatprep.subr.bf16.mxu1 %v2071_v9 }
 0x67d   :  { %v531_v43 = vpop.f32.mrb[2].mxu1 }
 0x67e   :  { %v536_v45 = vadd.f32 %v531_v43, %v2218_v2  ;;  %v533_v46 = vpop.f32.mrb[3].mxu1 }
 0x67f   :  { %v538_v47 = vrot.slane %v533_v46, 4 }
 0x680   :  { %1874 = vtanh.f32 %v536_v45  ;;  %v1556_v52 = vmul.f32 -1.442695, %v536_v45 }
 0x681   :  { %v540_v49 = vadd.f32 %v538_v47, %v2224_v10 }
 0x683   :  { %1876 = vtanh.f32 %v540_v49  ;;  %v1557_v53 = vmul.f32 -1.442695, %v540_v49 }
 0x684   :  { %1878 = vpow2.f32 %v1556_v52 }
 0x685   :  { %1880 = vpow2.f32 %v1557_v53 }
 0x68a   :  { %v1875_v50 = vpop.eup %1874 }
 0x68b   :  { %553 = vrot.lane.b32.xlu1 %v1875_v50, %s2001_s2 }
 0x68d   :  { %v1877_v51 = vpop.eup %1876 }
 0x68e   :  { %580 = vrot.lane.b32.xlu0 %v1877_v51, %s2001_s2  ;;  %v1879_v54 = vpop.eup %1878 }
 0x68f   :  { %v1881_v55 = vpop.eup %1880  ;;  %v544_v56 = vadd.f32 1.0, %v1879_v54 }
 0x690   :  { %v571_v57 = vadd.f32 1.0, %v1881_v55 }
 0x691   :  { %1882 = vrcp.f32 %v544_v56 }
 0x692   :  { %1884 = vrcp.f32 %v571_v57 }
 0x69b   :  { %v1883_v58 = vpop.eup %1882 }
 0x69c   :  { %v1885_v61 = vpop.eup %1884  ;;  %v551_v3 = vmul.f32 %v1883_v58, %v549_v1 }
 0x69d   :  { %v578_v12 = vmul.f32 %v1885_v61, %v576_v5 }
 0x6fd   :  { %v554_v59 = vpop.permute.xlu1 %553 }
 0x6fe   :  { %v556_v60 = vmul.f32 %v1883_v58, %v554_v59 }
 0x700   :  { %558 = vrot.lane.b32.xlu1 %v556_v60, %s2002_s10  ;;  %v581_v63 = vpop.permute.xlu0 %580 }
 0x701   :  { %v583_v0 = vmul.f32 %v1885_v61, %v581_v63 }
 0x703   :  { %585 = vrot.lane.b32.xlu0 %v583_v0, %s2002_s10 }
 0x772   :  { %v559_v8 = vpop.permute.xlu1 %558 }
 0x773   :  { %v2288_v11 = vadd.f32 %v559_v8, %v551_v3 }
 0x775   :  { %1886 = vtanh.f32 %v2288_v11  ;;  %v586_v15 = vpop.permute.xlu0 %585  ;;  %v692_v50 = vrot.slane %v2288_v11, 4 }
 0x776   :  { %v588_v16 = vadd.f32 %v586_v15, %v578_v12 }
 0x778   :  { %1888 = vtanh.f32 %v588_v16  ;;  %v719_v49 = vrot.slane %v588_v16, 4 }
 0x77f   :  { %v1887_v17 = vpop.eup %1886 }
 0x780   :  { %564 = vrot.lane.b32.xlu1 %v1887_v17, %s2001_s2 }
 0x782   :  { %v1889_v18 = vpop.eup %1888 }
 0x783   :  { %591 = vrot.lane.b32.xlu0 %v1889_v18, %s2001_s2 }
 0x7f2   :  { %v565_v19 = vpop.permute.xlu1 %564 }
 0x7f3   :  { %v567_v20 = vmul.f32 %v1883_v58, %v565_v19 }
 0x7f5   :  { %596 = vrot.lane.b32.xlu0 %v567_v20, %s2002_s10  ;;  %v592_v21 = vpop.permute.xlu0 %591 }
 0x7f6   :  { %v594_v23 = vmul.f32 %v1885_v61, %v592_v21 }
 0x7f8   :  { %v600_v24 = vrot.slane %v594_v23, 4 }
 0x7fa   :  { %601 = vrot.lane.b32.xlu1 %v600_v24, %s2001_s2 }
 0x867   :  { %v597_v25 = vpop.permute.xlu0 %596 }
 0x86c   :  { %v602_v27 = vpop.permute.xlu1 %601 }
 0x86d   :  { %v604_v28 = vsel %vm316_vm1, %v597_v25, %v602_v27 }
 0x86e   :  { %1558 = vmatmul.mubr.msk.f32.vlgmr.msra.gmra.mrb[10].mxu0 %vm62_vm0, %v604_v28 }
 0x86f   :  { %1755 = vmatpush1.bf16.msra.mxu0 %v2082_v13  ;;  %959 = vmatprep.mubr.f32.mxu0 %v2000_v7 }
 0x870   :  { %1757 = vmatprep.subr.bf16.mxu0 %v2104_v22 }
 0x873   :  { %1759 = vmatpush1.bf16.msra.mxu0 %v2115_v26 }
 0x874   :  { %1761 = vmatprep.subr.bf16.mxu0 %v2136_v35 }
 0x877   :  { %1763 = vmatpush1.bf16.msra.mxu0 %v2148_v39 }
 0x878   :  { %1765 = vmatprep.subr.bf16.mxu0 %v2160_v44 }
 0x87b   :  { %1767 = vmatpush1.bf16.msra.mxu0 %v2169_v48 }
 0x87c   :  { %1785 = vmatprep.subr.bf16.mxu0 %v2071_v9 }
 0x941   :  { %v674_v29 = vpop.f32.mrb[10].mxu0 }
 0x942   :  { %v680_v30 = vrot.slane %v674_v29, 4  ;;  %v676_v31 = vpop.f32.mrb[11].mxu0 }
 0x943   :  { %v683_v32 = vadd.f32 %v676_v31, %v2224_v10 }
 0x944   :  { %v682_v33 = vadd.f32 %v680_v30, %v2218_v2 }
 0x945   :  { %1890 = vtanh.f32 %v683_v32  ;;  %v1560_v37 = vmul.f32 -1.442695, %v683_v32 }
 0x946   :  { %1892 = vtanh.f32 %v682_v33  ;;  %v1559_v38 = vmul.f32 -1.442695, %v682_v33 }
 0x947   :  { %1894 = vpow2.f32 %v1560_v37 }
 0x948   :  { %1896 = vpow2.f32 %v1559_v38 }
 0x94f   :  { %v1891_v34 = vpop.eup %1890 }
 0x950   :  { %v1893_v36 = vpop.eup %1892  ;;  %723 = vrot.lane.b32.xlu0 %v1891_v34, %s2001_s2 }
 0x951   :  { %696 = vrot.lane.b32.xlu1 %v1893_v36, %s2001_s2  ;;  %v1895_v9 = vpop.eup %1894 }
 0x952   :  { %v1897_v40 = vpop.eup %1896  ;;  %v714_v41 = vadd.f32 1.0, %v1895_v9 }
 0x953   :  { %v687_v42 = vadd.f32 1.0, %v1897_v40 }
 0x954   :  { %1898 = vrcp.f32 %v714_v41 }
 0x955   :  { %1900 = vrcp.f32 %v687_v42 }
 0x95e   :  { %v1899_v10 = vpop.eup %1898 }
 0x95f   :  { %v1901_v43 = vpop.eup %1900  ;;  %v721_v51 = vmul.f32 %v1899_v10, %v719_v49 }
 0x960   :  { %v694_v53 = vmul.f32 %v1901_v43, %v692_v50 }
 0x9c2   :  { %v724_v2 = vpop.permute.xlu0 %723 }
 0x9c3   :  { %v726_v45 = vmul.f32 %v1899_v10, %v724_v2  ;;  %v697_v46 = vpop.permute.xlu1 %696 }
 0x9c4   :  { %v699_v47 = vmul.f32 %v1901_v43, %v697_v46 }
 0x9c5   :  { %728 = vrot.lane.b32.xlu0 %v726_v45, %s2002_s10 }
 0x9c6   :  { %701 = vrot.lane.b32.xlu1 %v699_v47, %s2002_s10 }
 0xa37   :  { %v729_v52 = vpop.permute.xlu0 %728 }
 0xa38   :  { %v2313_v54 = vadd.f32 %v729_v52, %v721_v51  ;;  %v702_v55 = vpop.permute.xlu1 %701 }
 0xa39   :  { %v704_v56 = vadd.f32 %v702_v55, %v694_v53 }
 0xa3a   :  { %1902 = vtanh.f32 %v2313_v54  ;;  %v863_v37 = vrot.slane %v2313_v54, 4 }
 0xa3b   :  { %1904 = vtanh.f32 %v704_v56  ;;  %v836_v34 = vrot.slane %v704_v56, 4 }
 0xa44   :  { %v1903_v57 = vpop.eup %1902 }
 0xa45   :  { %v1905_v58 = vpop.eup %1904  ;;  %734 = vrot.lane.b32.xlu0 %v1903_v57, %s2001_s2 }
 0xa46   :  { %707 = vrot.lane.b32.xlu1 %v1905_v58, %s2001_s2 }
 0xab7   :  { %v735_v59 = vpop.permute.xlu0 %734 }
 0xab8   :  { %v737_v60 = vmul.f32 %v1899_v10, %v735_v59  ;;  %v708_v61 = vpop.permute.xlu1 %707 }
 0xab9   :  { %v710_v63 = vmul.f32 %v1901_v43, %v708_v61 }
 0xaba   :  { %v743_v0 = vrot.slane %v737_v60, 4 }
 0xabb   :  { %739 = vrot.lane.b32.xlu0 %v710_v63, %s2002_s10 }
 0xabc   :  { %744 = vrot.lane.b32.xlu1 %v743_v0, %s2001_s2 }
 0xb2d   :  { %v740_v1 = vpop.permute.xlu0 %739 }
 0xb2e   :  { %v745_v3 = vpop.permute.xlu1 %744 }
 0xb2f   :  { %v747_v5 = vsel %vm316_vm1, %v740_v1, %v745_v3 }
 0xb30   :  { %v749_v8 = vrot.slane %v747_v5, 4 }
 0xb32   :  { %1561 = vmatmul.mubr.msk.f32.vlgmr.msra.gmra.mrb[4].mxu1 %vm62_vm0, %v749_v8 }
 0xb33   :  { %1771 = vmatpush1.bf16.msra.mxu1 %v2082_v13  ;;  %1103 = vmatprep.mubr.f32.mxu1 %v2000_v7 }
 0xb34   :  { %1773 = vmatprep.subr.bf16.mxu1 %v2104_v22 }
 0xb37   :  { %1775 = vmatpush1.bf16.msra.mxu1 %v2115_v26 }
 0xb38   :  { %1777 = vmatprep.subr.bf16.mxu1 %v2136_v35 }
 0xb3b   :  { %1779 = vmatpush1.bf16.msra.mxu1 %v2148_v39 }
 0xb3c   :  { %1781 = vmatprep.subr.bf16.mxu1 %v2160_v44 }
 0xb3f   :  { %1783 = vmatpush1.bf16.msra.mxu1 %v2169_v48 }
 0xc05   :  { %v818_v11 = vpop.f32.mrb[4].mxu1 }
 0xc06   :  { %v823_v12 = vadd.f32 %v818_v11, %v2222_v6  ;;  %v820_v15 = vpop.f32.mrb[5].mxu1 }
 0xc07   :  { %v825_v16 = vrot.slane %v820_v15, 4 }
 0xc08   :  { %1906 = vtanh.f32 %v823_v12  ;;  %v1562_v20 = vmul.f32 -1.442695, %v823_v12 }
 0xc09   :  { %v827_v17 = vadd.f32 %v825_v16, %v2220_v4 }
 0xc0b   :  { %1908 = vtanh.f32 %v827_v17  ;;  %v1563_v21 = vmul.f32 -1.442695, %v827_v17 }
 0xc0c   :  { %1910 = vpow2.f32 %v1562_v20 }
 0xc0d   :  { %1912 = vpow2.f32 %v1563_v21 }
 0xc12   :  { %v1907_v18 = vpop.eup %1906 }
 0xc13   :  { %840 = vrot.lane.b32.xlu1 %v1907_v18, %s2001_s2 }
 0xc15   :  { %v1909_v19 = vpop.eup %1908 }
 0xc16   :  { %867 = vrot.lane.b32.xlu0 %v1909_v19, %s2001_s2  ;;  %v1911_v23 = vpop.eup %1910 }
 0xc17   :  { %v1913_v24 = vpop.eup %1912  ;;  %v831_v25 = vadd.f32 1.0, %v1911_v23 }
 0xc18   :  { %v858_v27 = vadd.f32 1.0, %v1913_v24 }
 0xc19   :  { %1914 = vrcp.f32 %v831_v25 }
 0xc1a   :  { %1916 = vrcp.f32 %v858_v27 }
 0xc23   :  { %v1915_v28 = vpop.eup %1914 }
 0xc24   :  { %v1917_v31 = vpop.eup %1916  ;;  %v838_v36 = vmul.f32 %v1915_v28, %v836_v34 }
 0xc25   :  { %v865_v40 = vmul.f32 %v1917_v31, %v863_v37 }
 0xc85   :  { %v841_v29 = vpop.permute.xlu1 %840 }
 0xc86   :  { %v843_v30 = vmul.f32 %v1915_v28, %v841_v29 }
 0xc88   :  { %845 = vrot.lane.b32.xlu1 %v843_v30, %s2002_s10  ;;  %v868_v32 = vpop.permute.xlu0 %867 }
 0xc89   :  { %v870_v33 = vmul.f32 %v1917_v31, %v868_v32 }
 0xc8b   :  { %872 = vrot.lane.b32.xlu0 %v870_v33, %s2002_s10 }
 0xcfa   :  { %v846_v38 = vpop.permute.xlu1 %845 }
 0xcfb   :  { %v2337_v9 = vadd.f32 %v846_v38, %v838_v36 }
 0xcfd   :  { %1918 = vtanh.f32 %v2337_v9  ;;  %v873_v41 = vpop.permute.xlu0 %872  ;;  %v979_v1 = vrot.slane %v2337_v9, 4 }
 0xcfe   :  { %v875_v42 = vadd.f32 %v873_v41, %v865_v40 }
 0xd00   :  { %1920 = vtanh.f32 %v875_v42  ;;  %v1006_v0 = vrot.slane %v875_v42, 4 }
 0xd07   :  { %v1919_v10 = vpop.eup %1918 }
 0xd08   :  { %851 = vrot.lane.b32.xlu1 %v1919_v10, %s2001_s2 }
 0xd0a   :  { %v1921_v2 = vpop.eup %1920 }
 0xd0b   :  { %878 = vrot.lane.b32.xlu0 %v1921_v2, %s2001_s2 }
 0xd7a   :  { %v852_v43 = vpop.permute.xlu1 %851 }
 0xd7b   :  { %v854_v45 = vmul.f32 %v1915_v28, %v852_v43 }
 0xd7d   :  { %883 = vrot.lane.b32.xlu0 %v854_v45, %s2002_s10  ;;  %v879_v46 = vpop.permute.xlu0 %878 }
 0xd7e   :  { %v881_v47 = vmul.f32 %v1917_v31, %v879_v46 }
 0xd80   :  { %v887_v49 = vrot.slane %v881_v47, 4 }
 0xd82   :  { %888 = vrot.lane.b32.xlu1 %v887_v49, %s2001_s2 }
 0xdef   :  { %v884_v50 = vpop.permute.xlu0 %883 }
 0xdf4   :  { %v889_v51 = vpop.permute.xlu1 %888 }
 0xdf5   :  { %v891_v52 = vsel %vm316_vm1, %v884_v50, %v889_v51 }
 0xdf6   :  { %1564 = vmatmul.mubr.msk.f32.vlgmr.msra.gmra.mrb[12].mxu0 %vm62_vm0, %v891_v52 }
 0xdf7   :  { %1787 = vmatpush1.bf16.msra.mxu0 %v2082_v13  ;;  %1246 = vmatprep.mubr.f32.mxu0 %v2000_v7 }
 0xdf8   :  { %1789 = vmatprep.subr.bf16.mxu0 %v2104_v22 }
 0xdfb   :  { %1791 = vmatpush1.bf16.msra.mxu0 %v2115_v26 }
 0xdfc   :  { %1793 = vmatprep.subr.bf16.mxu0 %v2136_v35 }
 0xdff   :  { %1795 = vmatpush1.bf16.msra.mxu0 %v2148_v39 }
 0xe00   :  { %1797 = vmatprep.subr.bf16.mxu0 %v2160_v44 }
 0xe03   :  { %1799 = vmatpush1.bf16.msra.mxu0 %v2169_v48 }
 0xec9   :  { %v961_v53 = vpop.f32.mrb[12].mxu0 }
 0xeca   :  { %v967_v54 = vrot.slane %v961_v53, 4  ;;  %v963_v55 = vpop.f32.mrb[13].mxu0 }
 0xecb   :  { %v970_v56 = vadd.f32 %v963_v55, %v2220_v4 }
 0xecc   :  { %v969_v13 = vadd.f32 %v967_v54, %v2222_v6 }
 0xecd   :  { %1922 = vtanh.f32 %v970_v56  ;;  %v1566_v26 = vmul.f32 -1.442695, %v970_v56 }
 0xece   :  { %1924 = vtanh.f32 %v969_v13  ;;  %v1565_v35 = vmul.f32 -1.442695, %v969_v13 }
 0xecf   :  { %1926 = vpow2.f32 %v1566_v26 }
 0xed0   :  { %1928 = vpow2.f32 %v1565_v35 }
 0xed7   :  { %v1923_v22 = vpop.eup %1922 }
 0xed8   :  { %v1925_v57 = vpop.eup %1924  ;;  %1010 = vrot.lane.b32.xlu0 %v1923_v22, %s2001_s2 }
 0xed9   :  { %983 = vrot.lane.b32.xlu1 %v1925_v57, %s2001_s2  ;;  %v1927_v39 = vpop.eup %1926 }
 0xeda   :  { %v1929_v44 = vpop.eup %1928  ;;  %v1001_v48 = vadd.f32 1.0, %v1927_v39 }
 0xedb   :  { %v974_v58 = vadd.f32 1.0, %v1929_v44 }
 0xedc   :  { %1930 = vrcp.f32 %v1001_v48 }
 0xedd   :  { %1932 = vrcp.f32 %v974_v58 }
 0xee6   :  { %v1931_v4 = vpop.eup %1930 }
 0xee7   :  { %v1933_v59 = vpop.eup %1932  ;;  %v1008_v3 = vmul.f32 %v1931_v4, %v1006_v0 }
 0xee8   :  { %v981_v8 = vmul.f32 %v1933_v59, %v979_v1 }
 0xf4a   :  { %v1011_v6 = vpop.permute.xlu0 %1010 }
 0xf4b   :  { %v1013_v60 = vmul.f32 %v1931_v4, %v1011_v6  ;;  %v984_v61 = vpop.permute.xlu1 %983 }
 0xf4c   :  { %v986_v63 = vmul.f32 %v1933_v59, %v984_v61 }
 0xf4d   :  { %1015 = vrot.lane.b32.xlu0 %v1013_v60, %s2002_s10 }
 0xf4e   :  { %988 = vrot.lane.b32.xlu1 %v986_v63, %s2002_s10 }
 0xfbf   :  { %v1016_v5 = vpop.permute.xlu0 %1015 }
 0xfc0   :  { %v1018_v11 = vadd.f32 %v1016_v5, %v1008_v3  ;;  %v989_v12 = vpop.permute.xlu1 %988 }
 0xfc1   :  { %v991_v15 = vadd.f32 %v989_v12, %v981_v8 }
 0xfc2   :  { %1934 = vtanh.f32 %v1018_v11  ;;  %v1150_v51 = vrot.slane %v1018_v11, 4 }
 0xfc3   :  { %1936 = vtanh.f32 %v991_v15  ;;  %v1123_v49 = vrot.slane %v991_v15, 4 }
 0xfcc   :  { %v1935_v16 = vpop.eup %1934 }
 0xfcd   :  { %v1937_v17 = vpop.eup %1936  ;;  %1021 = vrot.lane.b32.xlu0 %v1935_v16, %s2001_s2 }
 0xfce   :  { %994 = vrot.lane.b32.xlu1 %v1937_v17, %s2001_s2 }
0x103f   :  { %v1022_v18 = vpop.permute.xlu0 %1021 }
0x1040   :  { %v1024_v19 = vmul.f32 %v1931_v4, %v1022_v18  ;;  %v995_v20 = vpop.permute.xlu1 %994 }
0x1041   :  { %v997_v21 = vmul.f32 %v1933_v59, %v995_v20 }
0x1042   :  { %v1030_v23 = vrot.slane %v1024_v19, 4 }
0x1043   :  { %1026 = vrot.lane.b32.xlu0 %v997_v21, %s2002_s10 }
0x1044   :  { %1031 = vrot.lane.b32.xlu1 %v1030_v23, %s2001_s2 }
0x10b5   :  { %v1027_v24 = vpop.permute.xlu0 %1026 }
0x10b6   :  { %v1032_v25 = vpop.permute.xlu1 %1031 }
0x10b7   :  { %v1034_v27 = vsel %vm316_vm1, %v1027_v24, %v1032_v25 }
0x10b8   :  { %v1036_v28 = vrot.slane %v1034_v27, 4 }
0x10ba   :  { %1567 = vmatmul.mubr.msk.f32.vlgmr.msra.gmra.mrb[6].mxu1 %vm62_vm0, %v1036_v28 }
0x10bb   :  { %1634 = vmatprep.mubr.msk.f32.mxu1 %vm2004_vm2, %v2000_v7 }
0x118d   :  { %v1105_v29 = vpop.f32.mrb[6].mxu1 }
0x118e   :  { %v1110_v30 = vadd.f32 %v1105_v29, %v2226_v14  ;;  %v1107_v31 = vpop.f32.mrb[7].mxu1 }
0x118f   :  { %v1112_v32 = vrot.slane %v1107_v31, 4 }
0x1190   :  { %1938 = vtanh.f32 %v1110_v30  ;;  %v1568_v37 = vmul.f32 -1.442695, %v1110_v30 }
0x1191   :  { %v1114_v33 = vadd.f32 %v1112_v32, %v2216_v62  ;;  %v1335_v32 = vld [vmem:[%s2504_s4] sm:$0xff] }
0x1193   :  { %1940 = vtanh.f32 %v1114_v33  ;;  %v1569_v38 = vmul.f32 -1.442695, %v1114_v33  ;;  %v1336_v33 = vld [vmem:[%s2504_s4 + $0x8] sm:$0xff] }
0x1194   :  { %1942 = vpow2.f32 %v1568_v37  ;;  %v1801_v37 = vpack.c.bf16 %v1336_v33, %v1335_v32 }
0x1195   :  { %1944 = vpow2.f32 %v1569_v38  ;;  %v1338_v38 = vld [vmem:[%s2504_s4 + $0x18] sm:$0xff] }
0x119a   :  { %v1939_v34 = vpop.eup %1938 }
0x119b   :  { %1127 = vrot.lane.b32.xlu1 %v1939_v34, %s2001_s2  ;;  %v1337_v34 = vld [vmem:[%s2504_s4 + $0x10] sm:$0xff] }
0x119d   :  { %v1941_v36 = vpop.eup %1940 }
0x119e   :  { %1154 = vrot.lane.b32.xlu0 %v1941_v36, %s2001_s2  ;;  %v1943_v9 = vpop.eup %1942  ;;  %v2003_v36 = vmov 0.0|0.0  }
0x119f   :  { %v1945_v40 = vpop.eup %1944  ;;  %v1118_v41 = vadd.f32 1.0, %v1943_v9  ;;  %1800 = vmatprep.subr.bf16.mxu1 %v2003_v36  ;;  %1824 = vmatprep.subr.bf16.mxu0 %v2003_v36  ;;  %v1804_v9 = vpack.c.bf16 %v1338_v38, %v1337_v34 }
0x11a0   :  { %v1145_v42 = vadd.f32 1.0, %v1945_v40  ;;  %1802 = vmatpush3.bf16.msra.mxu1 %v1801_v37  ;;  %v1339_v40 = vld [vmem:[%s2504_s4 + $0x20] sm:$0xff] }
0x11a1   :  { %1946 = vrcp.f32 %v1118_v41  ;;  %1803 = vmatprep.subr.bf16.mxu1 %v2003_v36  ;;  %v1340_v41 = vld [vmem:[%s2504_s4 + $0x28] sm:$0xff] }
0x11a2   :  { %1948 = vrcp.f32 %v1145_v42 }
0x11a4   :  { %1805 = vmatpush3.bf16.msra.mxu1 %v1804_v9 }
0x11a5   :  { %1806 = vmatprep.subr.bf16.mxu1 %v2003_v36 }
0x11ab   :  { %v1947_v10 = vpop.eup %1946 }
0x11ac   :  { %v1949_v45 = vpop.eup %1948  ;;  %v1125_v50 = vmul.f32 %v1947_v10, %v1123_v49  ;;  %v1342_v49 = vld [vmem:[%s2504_s4 + $0x38] sm:$0xff] }
0x11ad   :  { %v1152_v54 = vmul.f32 %v1949_v45, %v1150_v51  ;;  %v1343_v51 = vld [vmem:[%s2504_s4 + $0x40] sm:$0xff] }
0x120d   :  { %v1128_v2 = vpop.permute.xlu1 %1127 }
0x120e   :  { %v1130_v43 = vmul.f32 %v1947_v10, %v1128_v2 }
0x1210   :  { %1132 = vrot.lane.b32.xlu1 %v1130_v43, %s2002_s10  ;;  %v1155_v46 = vpop.permute.xlu0 %1154 }
0x1211   :  { %v1157_v47 = vmul.f32 %v1949_v45, %v1155_v46 }
0x1213   :  { %1159 = vrot.lane.b32.xlu0 %v1157_v47, %s2002_s10  ;;  %v1341_v47 = vld [vmem:[%s2504_s4 + $0x30] sm:$0xff] }
0x1282   :  { %v1133_v52 = vpop.permute.xlu1 %1132 }
0x1283   :  { %v1135_v53 = vadd.f32 %v1133_v52, %v1125_v50  ;;  %v1810_v50 = vpack.c.bf16 %v1342_v49, %v1341_v47  ;;  %v1344_v52 = vld [vmem:[%s2504_s4 + $0x48] sm:$0xff] }
0x1285   :  { %1950 = vtanh.f32 %v1135_v53  ;;  %v1160_v55 = vpop.permute.xlu0 %1159  ;;  %v1266_v21 = vrot.slane %v1135_v53, 4  ;;  %v1813_v53 = vpack.c.bf16 %v1344_v52, %v1343_v51 }
0x1286   :  { %v1162_v56 = vadd.f32 %v1160_v55, %v1152_v54  ;;  %v1345_v54 = vld [vmem:[%s2504_s4 + $0x50] sm:$0xff]  ;;  %v1346_v55 = vld [vmem:[%s2504_s4 + $0x58] sm:$0xff] }
0x1288   :  { %1952 = vtanh.f32 %v1162_v56  ;;  %v1293_v20 = vrot.slane %v1162_v56, 4  ;;  %v1816_v56 = vpack.c.bf16 %v1346_v55, %v1345_v54 }
0x128f   :  { %v1951_v13 = vpop.eup %1950 }
0x1290   :  { %1138 = vrot.lane.b32.xlu1 %v1951_v13, %s2001_s2  ;;  %v1347_v13 = vld [vmem:[%s2504_s4 + $0x60] sm:$0xff] }
0x1292   :  { %v1953_v22 = vpop.eup %1952 }
0x1293   :  { %1165 = vrot.lane.b32.xlu0 %v1953_v22, %s2001_s2  ;;  %v1348_v22 = vld [vmem:[%s2504_s4 + $0x68] sm:$0xff] }
0x1302   :  { %v1139_v57 = vpop.permute.xlu1 %1138 }
0x1303   :  { %v1141_v26 = vmul.f32 %v1947_v10, %v1139_v57  ;;  %v1819_v57 = vpack.c.bf16 %v1348_v22, %v1347_v13 }
0x1305   :  { %1170 = vrot.lane.b32.xlu0 %v1141_v26, %s2002_s10  ;;  %v1166_v35 = vpop.permute.xlu0 %1165  ;;  %v1349_v26 = vld [vmem:[%s2504_s4 + $0x70] sm:$0xff] }
0x1306   :  { %v1168_v39 = vmul.f32 %v1949_v45, %v1166_v35  ;;  %v1807_v45 = vpack.c.bf16 %v1340_v41, %v1339_v40  ;;  %v1350_v35 = vld [vmem:[%s2504_s4 + $0x78] sm:$0xff] }
0x1308   :  { %v1174_v44 = vrot.slane %v1168_v39, 4  ;;  %1808 = vmatpush3.bf16.msra.mxu1 %v1807_v45  ;;  %v1822_v39 = vpack.c.bf16 %v1350_v35, %v1349_v26 }
0x1309   :  { %1809 = vmatprep.subr.bf16.mxu1 %v2003_v36 }
0x130a   :  { %1175 = vrot.lane.b32.xlu1 %v1174_v44, %s2001_s2  ;;  %v1429_v44 = vld [vmem:[%s2506_s6] sm:$0xff] }
0x130c   :  { %1811 = vmatpush3.bf16.msra.mxu1 %v1810_v50 }
0x130d   :  { %1812 = vmatprep.subr.bf16.mxu1 %v2003_v36 }
0x1310   :  { %1814 = vmatpush3.bf16.msra.mxu1 %v1813_v53 }
0x1311   :  { %1815 = vmatprep.subr.bf16.mxu1 %v2003_v36 }
0x1314   :  { %1817 = vmatpush3.bf16.msra.mxu1 %v1816_v56 }
0x1315   :  { %1818 = vmatprep.subr.bf16.mxu1 %v2003_v36 }
0x1318   :  { %1820 = vmatpush3.bf16.msra.mxu1 %v1819_v57 }
0x1319   :  { %1821 = vmatprep.subr.bf16.mxu1 %v2003_v36 }
0x131c   :  { %1823 = vmatpush3.bf16.msra.mxu1 %v1822_v39 }
0x1377   :  { %v1171_v48 = vpop.permute.xlu0 %1170 }
0x137c   :  { %v1176_v58 = vpop.permute.xlu1 %1175 }
0x137d   :  { %v1178_v4 = vsel %vm316_vm1, %v1171_v48, %v1176_v58  ;;  %v1430_v48 = vld [vmem:[%s2506_s6 + $0x8] sm:$0xff] }
0x137e   :  { %1570 = vmatmul.mubr.msk.f32.vlgmr.msra.gmra.mrb[14].mxu0 %vm62_vm0, %v1178_v4  ;;  %v1825_v58 = vpack.c.bf16 %v1430_v48, %v1429_v44 }
0x137f   :  { %1653 = vmatprep.mubr.msk.f32.mxu0 %vm2004_vm2, %v2000_v7 }
0x1380   :  { %1826 = vmatpush3.bf16.msra.mxu0 %v1825_v58 }
0x1381   :  { %1827 = vmatprep.subr.bf16.mxu0 %v2003_v36 }
0x1451   :  { %v1248_v6 = vpop.f32.mrb[14].mxu0 }
0x1452   :  { %v1254_v59 = vrot.slane %v1248_v6, 4  ;;  %v1250_v60 = vpop.f32.mrb[15].mxu0 }
0x1453   :  { %v1257_v61 = vadd.f32 %v1250_v60, %v2216_v62 }
0x1454   :  { %v1256_v63 = vadd.f32 %v1254_v59, %v2226_v14 }
0x1455   :  { %1954 = vtanh.f32 %v1257_v61  ;;  %v1572_v3 = vmul.f32 -1.442695, %v1257_v61 }
0x1456   :  { %1956 = vtanh.f32 %v1256_v63  ;;  %v1571_v5 = vmul.f32 -1.442695, %v1256_v63 }
0x1457   :  { %1958 = vpow2.f32 %v1572_v3  ;;  %v1431_v3 = vld [vmem:[%s2506_s6 + $0x10] sm:$0xff] }
0x1458   :  { %1960 = vpow2.f32 %v1571_v5  ;;  %v1432_v5 = vld [vmem:[%s2506_s6 + $0x18] sm:$0xff] }
0x145f   :  { %v1955_v0 = vpop.eup %1954 }
0x1460   :  { %v1957_v1 = vpop.eup %1956  ;;  %1297 = vrot.lane.b32.xlu0 %v1955_v0, %s2001_s2 }
0x1461   :  { %1270 = vrot.lane.b32.xlu1 %v1957_v1, %s2001_s2  ;;  %v1959_v8 = vpop.eup %1958 }
0x1462   :  { %v1961_v11 = vpop.eup %1960  ;;  %v1288_v12 = vadd.f32 1.0, %v1959_v8  ;;  %v1828_v8 = vpack.c.bf16 %v1432_v5, %v1431_v3 }
0x1463   :  { %v1261_v15 = vadd.f32 1.0, %v1961_v11  ;;  %v1433_v11 = vld [vmem:[%s2506_s6 + $0x20] sm:$0xff] }
0x1464   :  { %1962 = vrcp.f32 %v1288_v12  ;;  %v1434_v12 = vld [vmem:[%s2506_s6 + $0x28] sm:$0xff]  ;;  %1829 = vmatpush3.bf16.msra.mxu0 %v1828_v8 }
0x1465   :  { %1964 = vrcp.f32 %v1261_v15  ;;  %v1831_v15 = vpack.c.bf16 %v1434_v12, %v1433_v11  ;;  %1830 = vmatprep.subr.bf16.mxu0 %v2003_v36 }
0x1468   :  { %1832 = vmatpush3.bf16.msra.mxu0 %v1831_v15 }
0x1469   :  { %1833 = vmatprep.subr.bf16.mxu0 %v2003_v36 }
0x146e   :  { %v1963_v62 = vpop.eup %1962 }
0x146f   :  { %v1965_v16 = vpop.eup %1964  ;;  %v1295_v23 = vmul.f32 %v1963_v62, %v1293_v20 }
0x1470   :  { %v1268_v25 = vmul.f32 %v1965_v16, %v1266_v21 }
0x14d2   :  { %v1298_v14 = vpop.permute.xlu0 %1297 }
0x14d3   :  { %v1300_v17 = vmul.f32 %v1963_v62, %v1298_v14  ;;  %v1271_v18 = vpop.permute.xlu1 %1270  ;;  %v1436_v14 = vld [vmem:[%s2506_s6 + $0x38] sm:$0xff] }
0x14d4   :  { %v1273_v19 = vmul.f32 %v1965_v16, %v1271_v18 }
0x14d5   :  { %1302 = vrot.lane.b32.xlu0 %v1300_v17, %s2002_s10  ;;  %v1573_v17 = vld [vmem:[%s2505_s5] ss:$0 sm:$0xff]  ;;  %s2005_s5 = smov [#allocation2]  }
0x14d6   :  { %1275 = vrot.lane.b32.xlu1 %v1273_v19, %s2002_s10 }
0x1547   :  { %v1303_v24 = vpop.permute.xlu0 %1302 }
0x1548   :  { %v1305_v27 = vadd.f32 %v1303_v24, %v1295_v23  ;;  %v1276_v28 = vpop.permute.xlu1 %1275  ;;  %v1574_v23 = vld [vmem:[%s2507_s7] ss:$0 sm:$0xff] }
0x1549   :  { %v1278_v29 = vadd.f32 %v1276_v28, %v1268_v25 }
0x154a   :  { %1966 = vtanh.f32 %v1305_v27 }
0x154b   :  { %1968 = vtanh.f32 %v1278_v29 }
0x1554   :  { %v1967_v30 = vpop.eup %1966 }
0x1555   :  { %v1969_v31 = vpop.eup %1968  ;;  %1308 = vrot.lane.b32.xlu0 %v1967_v30, %s2001_s2 }
0x1556   :  { %1281 = vrot.lane.b32.xlu1 %v1969_v31, %s2001_s2 }
0x15c7   :  { %v1309_v42 = vpop.permute.xlu0 %1308 }
0x15c8   :  { %v1311_v10 = vmul.f32 %v1963_v62, %v1309_v42  ;;  %v1282_v2 = vpop.permute.xlu1 %1281  ;;  %v1435_v62 = vld [vmem:[%s2506_s6 + $0x30] sm:$0xff]  ;;  %s1538_s6 = sshll.u32 %s2005_s5, 4  ;;  %s1539_s6 = int_to_ptr.vmem [resolvable:$true] %s1538_s6 }
0x15c9   :  { %v1284_v43 = vmul.f32 %v1965_v16, %v1282_v2  ;;  %v1834_v16 = vpack.c.bf16 %v1436_v14, %v1435_v62  ;;  %s1976_s7 = scalar_lea.vmem %s1539_s6, 32  ;;  %p1981_p1 = scmp.lt.s32.totalorder %s1539_s6, %s1539_s6 }
0x15ca   :  { %v1317_v46 = vrot.slane %v1311_v10, 4  ;;  %p1977_p0 = scmp.ne.s32.totalorder %s1539_s6, %s1976_s7  ;;  %p1982_p2 = scmp.lt.s32.totalorder %s1976_s7, %s1976_s7 }
0x15cb   :  { %1313 = vrot.lane.b32.xlu0 %v1284_v43, %s2002_s10  ;;  %1835 = vmatpush3.bf16.msra.mxu0 %v1834_v16 }
0x15cc   :  { %1318 = vrot.lane.b32.xlu1 %v1317_v46, %s2001_s2  ;;  %p1983_p3 = por %p1982_p2, %p1981_p1 }
0x15ce   :  { %p1984_p4 = pnand %p1983_p3, %p1977_p0 }
0x163d   :  { %v1314_v4 = vpop.permute.xlu0 %1313 }
0x163e   :  { %v1319_v6 = vpop.permute.xlu1 %1318 }
0x163f   :  { %v1321_v59 = vsel %vm316_vm1, %v1314_v4, %v1319_v6 }
0x1640   :  { %v1323_v60 = vrot.slane %v1321_v59, 1 }
0x1642   :  { %1324 = vrot.lane.b32.xlu0 %v1323_v60, %s2001_s2 }
0x16b4   :  { %v1325_v7 = vpop.permute.xlu0 %1324 }
0x16b5   :  { %v1327_v61 = vsel %vm62_vm0, %v1321_v59, %v1325_v7 }
0x16b6   :  { %v1329_v63 = vrot.slane %v1327_v61, 4  ;;  %v1331_v0 = vrot.slane %v1327_v61, 5 }
0x16b8   :  { %v1334_v1 = vsel %vm1333_vm3, %v1329_v63, %v1331_v0 }
0x16b9   :  { %1635 = vmatmul.mubr.f32.vlgmr.msra.gmra.mrb[8].mxu1 %v1334_v1 }
0x178c   :  { %v1424_v18 = vpop.f32.mrb[8].mxu1 }
0x178d   :  { %v1425_v19 = vadd.f32 %v1573_v17, %v1424_v18  ;;  %v1636_v20 = vpop.f32.mrb[9].mxu1 }
0x178f   :  { %1970 = vtanh.f32 %v1425_v19 }
0x1799   :  { %v1971_v21 = vpop.eup %1970 }
0x179a   :  { %1654 = vmatmul.mubr.msk.f32.vlgmr.msra.gmra.mrb[16].mxu0 %vm62_vm0, %v1971_v21 }
0x186d   :  { %v1513_v24 = vpop.f32.mrb[16].mxu0 }
0x186e   :  { %v1514_v25 = vadd.f32 %v1574_v23, %v1513_v24  ;;  %v1655_v27 = vpop.f32.mrb[17].mxu0 }
0x1870   :  { %v1518_v28 = vsel %vm1517_vm4, %v1514_v25, -inf }
0x1871   :  { %1519 = vmax.xlane.f32.xlu1 %v1518_v28 }
0x18fe   :  { %v1520_v29 = vpop.xlane.xlu1 %1519 }
0x18ff   :  { %v1521_v30 = vsub.f32 %v1514_v25, %v1520_v29 }
0x1901   :  { %v1522_v31 = vmul.f32 1.442695, %v1521_v30 }
0x1903   :  { %1972 = vpow2.f32 %v1522_v31 }
0x190d   :  { %v1973_v32 = vpop.eup %1972 }
0x190e   :  { %v1524_v33 = vsel %vm1517_vm4, %v1973_v32, 0.0 }
0x190f   :  { %1525 = vadd.xlane.f32.xlu0 %v1524_v33 }
0x199c   :  { %v1526_v34 = vpop.xlane.xlu0 %1525 }
0x199d   :  { %1974 = vlog2.f32 %v1526_v34 }
0x19a7   :  { %v1975_v36 = vpop.eup %1974 }
0x19a8   :  { %v1528_v37 = vmul.f32 0.6931472, %v1975_v36 }
0x19aa   :  { %v1529_v38 = vadd.f32 %v1528_v37, %v1520_v29 }
0x19ac   :  { %v1530_v9 = vsub.f32 %v1514_v25, %v1529_v38 }
0x19ae   :  { %1531 = vst.msk [vmem:[#allocation2] sm:$0x3] %vm1517_vm4, %v1530_v9 }
0x19af   :  { %1987 = shalt.err (!%p1984_p4)
}
0x19b0   :  { %s1988_s13 = scalar_lea.hbm %s2508_s8, 32 }
0x19b1   :  { %p1989_p5 = scmp.ne.s32.totalorder %s2508_s8, %s1988_s13  ;;  %p1992_p6 = scmp.lt.u32.totalorder %s1988_s13, %s2508_s8 }
0x19b3   :  { %p1994_p7 = pnand %p1992_p6, %p1989_p5 }
0x19b5   :  { %1997 = shalt.err (!%p1994_p7)
}
0x19b6   :  { %1541 = dma.vmem_to_hbm [thread:$0]  %s1539_s6, 32, %s2508_s8, [#allocation3]  }
0x19b7   :  { %1998 = dma.done.wait [#allocation3], 32  }
0x19b8   :  { %1999 = vsyncadd [#allocation3], 4294967264 }
0x19b9   :  { %1545 = vsyncpa [#allocation3], 1 }

// kernel: bimpm_forward.3
= control target key start
LH: loop header
LB: loop body
LE: loop exit
PB: predicated region body
PF: predicated region fallthrough
CT: control target
= control target key end

     0   :  { %s2449_s15 = smov 0   ;;  %s2987_s0 = inlined_call_operand.vmem [shape: f32[2,16,32], index: 0, kind: input, shape index: {}]   ;;  %s2988_s1 = inlined_call_operand.vmem [shape: f32[32,256], index: 1, kind: input, shape index: {}]   ;;  %s2989_s2 = inlined_call_operand.vmem [shape: f32[1,256], index: 2, kind: input, shape index: {}]   ;;  %s2990_s3 = inlined_call_operand.vmem [shape: f32[64,256], index: 3, kind: input, shape index: {}]   ;;  %s2991_s4 = inlined_call_operand.vmem [shape: f32[2,2,8,64], index: 4, kind: output, shape index: {}]  }
   0x1 LB: > { %s2098_s16 = sadd.s32 4294967295, %s2418_s15   ;;  %p2102_p0 = scmp.ge.s32.totalorder %s2418_s15, 1  ;;  %s2418_s15 = sphi %s2449_s15, %s14_s15  }
   0x2   : > { %p162_p1 = scmp.lt.s32.totalorder %s2418_s15, 3 }
   0x4   : > { %p163_p2 = pnand %p2102_p0, %p162_p1 }
   0x5   : > { %v305_v0 = vld [vmem:[%s2990_s3 + $0x8] sm:$0xff] (!%p163_p2)  ;;  %v307_v1 = vld [vmem:[%s2990_s3 + $0x18] sm:$0xff] (!%p163_p2)  ;;  %v304_v2 = vld [vmem:[%s2990_s3] sm:$0xff] (!%p163_p2)  ;;  %p188_p3 = scmp.lt.s32.totalorder (!%p163_p2), %s2098_s16, 1  ;;  %v2420_v7 = vmov (!%p163_p2), 0.0   ;;  %vm220_vm0 = vcmask (!%p163_p2), 261120   ;;  %v210_v39 = vlaneseq (!%p163_p2) }
   0x6   : > { %166 = sbr.rel (%p163_p2) target bundleno = 5713 (0x1651), region = 36  ;;  %v2466_v3 = vpack.c.bf16 (!%p163_p2), %v307_v1, %v305_v0  ;;  %v306_v4 = vld [vmem:[%s2990_s3 + $0x10] sm:$0xff] (!%p163_p2)  ;;  %v201_v5 = vld [vmem:[%s2988_s1 + $0x8] sm:$0xff] (!%p163_p2)  ;;  %v203_v6 = vld [vmem:[%s2988_s1 + $0x18] sm:$0xff] (!%p163_p2)  ;;  %291 = vmatprep.mubr.f32.mxu0 (!%p163_p2), %v2420_v7  ;;  %388 = vmatprep.mubr.f32.mxu1 (!%p163_p2), %v2420_v7  ;;  %s2421_s24 = smov (!%p163_p2), 64   ;;  %vm320_vm1 = vcmask (!%p163_p2), 523264  }
   0x7   : > { %v2479_v8 = vpack.c.bf16 (!%p163_p2), %v306_v4, %v304_v2  ;;  %v2136_v9 = vpack.c.bf16 (!%p163_p2), %v203_v6, %v201_v5  ;;  %v200_v10 = vld [vmem:[%s2988_s1] sm:$0xff] (!%p163_p2)  ;;  %v202_v11 = vld [vmem:[%s2988_s1 + $0x10] sm:$0xff] (!%p163_p2)  ;;  %v309_v12 = vld [vmem:[%s2990_s3 + $0x28] sm:$0xff] (!%p163_p2)  ;;  %v2587_v40 = vshrl.u32 (!%p163_p2), %v210_v39, 7  ;;  %s2422_s25 = smov (!%p163_p2), 32   ;;  %vm1727_vm2 = vcmask (!%p163_p2), 1040384  }
   0x8   : > { %2145 = vmatprep.subr.bf16.mxu1 (!%p163_p2), %v2466_v3  ;;  %v2138_v13 = vpack.c.bf16 (!%p163_p2), %v202_v11, %v200_v10  ;;  %v311_v14 = vld [vmem:[%s2990_s3 + $0x38] sm:$0xff] (!%p163_p2)  ;;  %v308_v15 = vld [vmem:[%s2990_s3 + $0x20] sm:$0xff] (!%p163_p2)  ;;  %v310_v16 = vld [vmem:[%s2990_s3 + $0x30] sm:$0xff] (!%p163_p2)  ;;  %vm1730_vm3 = vcmask (!%p163_p2), 1041408   ;;  %vm1733_vm4 = vcmask (!%p163_p2), 1042432   ;;  %vm1736_vm5 = vcmask (!%p163_p2), 1043456  }
   0x9   : > { %2147 = vmatpush1.bf16.msra.mxu1 (!%p163_p2), %v2479_v8  ;;  %2137 = vmatprep.subr.bf16.mxu0 (!%p163_p2), %v2136_v9  ;;  %v2503_v17 = vpack.c.bf16 (!%p163_p2), %v311_v14, %v309_v12  ;;  %v2505_v18 = vpack.c.bf16 (!%p163_p2), %v310_v16, %v308_v15  ;;  %v205_v19 = vld [vmem:[%s2988_s1 + $0x28] sm:$0xff] (!%p163_p2)  ;;  %v207_v20 = vld [vmem:[%s2988_s1 + $0x38] sm:$0xff] (!%p163_p2)  ;;  %v204_v21 = vld [vmem:[%s2988_s1 + $0x20] sm:$0xff] (!%p163_p2)  ;;  %v216_v41 = vsub.s32 (!%p163_p2), 1, %v2587_v40  ;;  %v2594_v44 = vsub.s32 (!%p163_p2), 0, %v2587_v40 }
   0xa   : > { %2139 = vmatpush1.bf16.msra.mxu0 (!%p163_p2), %v2138_v13  ;;  %v2140_v22 = vpack.c.bf16 (!%p163_p2), %v207_v20, %v205_v19  ;;  %v206_v23 = vld [vmem:[%s2988_s1 + $0x30] sm:$0xff] (!%p163_p2)  ;;  %v313_v24 = vld [vmem:[%s2990_s3 + $0x48] sm:$0xff] (!%p163_p2)  ;;  %v315_v25 = vld [vmem:[%s2990_s3 + $0x58] sm:$0xff] (!%p163_p2)  ;;  %vm1739_vm6 = vcmask (!%p163_p2), 1044480   ;;  %vm1742_vm7 = vcmask (!%p163_p2), 1045504   ;;  %vm1745_vm8 = vcmask (!%p163_p2), 1046528  }
   0xb   : > { %2149 = vmatprep.subr.bf16.mxu1 (!%p163_p2), %v2503_v17  ;;  %v2142_v26 = vpack.c.bf16 (!%p163_p2), %v206_v23, %v204_v21  ;;  %v2527_v27 = vpack.c.bf16 (!%p163_p2), %v315_v25, %v313_v24  ;;  %v312_v28 = vld [vmem:[%s2990_s3 + $0x40] sm:$0xff] (!%p163_p2)  ;;  %v314_v29 = vld [vmem:[%s2990_s3 + $0x50] sm:$0xff] (!%p163_p2)  ;;  %v317_v30 = vld [vmem:[%s2990_s3 + $0x68] sm:$0xff] (!%p163_p2) }
   0xc   : > { %2141 = vmatprep.subr.bf16.mxu0 (!%p163_p2), %v2140_v22  ;;  %v319_v31 = vld [vmem:[%s2990_s3 + $0x78] sm:$0xff] (!%p163_p2)  ;;  %v2547_v32 = vpack.c.bf16 (!%p163_p2), %v314_v29, %v312_v28  ;;  %v316_v35 = vld [vmem:[%s2990_s3 + $0x60] sm:$0xff] (!%p163_p2)  ;;  %v318_v36 = vld [vmem:[%s2990_s3 + $0x70] sm:$0xff] (!%p163_p2) }
   0xd   : > { %s2993_s16 = smov (!%p188_p3, %s2098_s16), 1  ;;  %2151 = vmatpush1.bf16.msra.mxu1 %v2505_v18  ;;  %v2550_v34 = vpack.c.bf16 %v319_v31, %v317_v30  ;;  %v2561_v37 = vpack.c.bf16 %v318_v36, %v316_v35  ;;  %v208_v42 = vld [vmem:[%s2989_s2] sm:$0x3] }
   0xe   : > { %s2134_s23 = sshll.u32 %s2993_s16, 4  ;;  %2143 = vmatpush1.bf16.msra.mxu0 %v2142_v26  ;;  %2153 = vmatprep.subr.bf16.mxu1 %v2527_v27  ;;  %v217_v43 = vrot.slane %v208_v42, %v216_v41  ;;  %v213_v48 = vrot.slane %v208_v42, %v2594_v44 }
   0xf   : > { %s192_s10 = scalar_lea.vmem %s2987_s0, %s2134_s23  ;;  %2161 = vmatprep.subr.bf16.mxu0 %v2466_v3  ;;  %s197_s28 = scalar_lea.vmem %s2991_s4, %s2134_s23 }
  0x10   : > { %v198_v33 = vld [vmem:[%s192_s10] sm:$0xff]  ;;  %v199_v38 = vld [vmem:[%s192_s10 + $0x8] sm:$0xff] }
  0x11   : > { %2155 = vmatpush1.bf16.msra.mxu1 %v2547_v32  ;;  %2107 = vmatmul.mubr.msk.f32.vlgmr.msra.gmra.mrb[0].mxu0 %vm220_vm0, %v198_v33 }
  0x12   : > { %2157 = vmatprep.subr.bf16.mxu1 %v2550_v34  ;;  %297 = vmatprep.mubr.f32.mxu0 %v2420_v7 }
  0x13   : > { %2163 = vmatpush1.bf16.msra.mxu0 %v2479_v8 }
  0x14   : > { %2165 = vmatprep.subr.bf16.mxu0 %v2503_v17 }
  0x15   : > { %2159 = vmatpush1.bf16.msra.mxu1 %v2561_v37  ;;  %2108 = vmatmul.mubr.msk.f32.gmra.mrb[2].mxu0 %vm220_vm0, %v199_v38 }
  0x16   : > { %525 = vmatprep.mubr.f32.mxu0 %v2420_v7  ;;  %2177 = vmatprep.subr.bf16.mxu1 %v2466_v3 }
  0x17   : > { %2167 = vmatpush1.bf16.msra.mxu0 %v2505_v18 }
  0x18   : > { %389 = vmatmul.mubr.f32.vlgmr.msra.gmra.mrb[0].mxu1 %v2420_v7  ;;  %2169 = vmatprep.subr.bf16.mxu0 %v2527_v27 }
  0x19   : > { %2179 = vmatpush1.bf16.msra.mxu1 %v2479_v8  ;;  %672 = vmatprep.mubr.f32.mxu1 %v2420_v7 }
  0x1a   : > { %2181 = vmatprep.subr.bf16.mxu1 %v2503_v17 }
  0x1b   : > { %2171 = vmatpush1.bf16.msra.mxu0 %v2547_v32 }
  0x1c   : > { %2173 = vmatprep.subr.bf16.mxu0 %v2550_v34 }
  0x1d   : > { %2183 = vmatpush1.bf16.msra.mxu1 %v2505_v18 }
  0x1e   : > { %2185 = vmatprep.subr.bf16.mxu1 %v2527_v27 }
  0x1f   : > { %2175 = vmatpush1.bf16.msra.mxu0 %v2561_v37 }
  0x20   : > { %2193 = vmatprep.subr.bf16.mxu0 %v2466_v3 }
  0x21   : > { %2187 = vmatpush1.bf16.msra.mxu1 %v2547_v32 }
  0x22   : > { %2189 = vmatprep.subr.bf16.mxu1 %v2550_v34 }
  0x25   : > { %2191 = vmatpush1.bf16.msra.mxu1 %v2561_v37 }
  0x26   : > { %2209 = vmatprep.subr.bf16.mxu1 %v2466_v3 }
  0xe4   : > { %v293_v45 = vpop.f32.mrb[0].mxu0 }
  0xe5   : > { %v295_v46 = vpop.f32.mrb[1].mxu0  ;;  %v2603_v56 = vadd.f32 %v293_v45, %v213_v48 }
  0xe6   : > { %v2596_v47 = vadd.f32 %v295_v46, %v217_v43 }
  0xe8   : > { %v299_v49 = vpop.f32.mrb[2].mxu0 }
  0xe9   : > { %v2599_v50 = vadd.f32 %v299_v49, %v213_v48  ;;  %v301_v51 = vpop.f32.mrb[3].mxu0 }
  0xea   : > { %v2601_v52 = vadd.f32 %v301_v51, %v217_v43 }
  0xeb   : > { %v390_v53 = vpop.f32.mrb[0].mxu1 }
  0xec   : > { %v392_v54 = vpop.f32.mrb[1].mxu1  ;;  %v395_v58 = vadd.f32 %v390_v53, %v2603_v56 }
  0xed   : > { %v397_v55 = vrot.slane %v392_v54, 2 }
  0xee   : > { %v2109_v62 = vmul.f32 -1.442695, %v395_v58 }
  0xef   : > { %v399_v57 = vadd.f32 %v397_v55, %v2601_v52 }
  0xf1   : > { %2284 = vtanh.f32 %v399_v57  ;;  %v2110_v61 = vmul.f32 -1.442695, %v399_v57 }
  0xf2   : > { %2286 = vtanh.f32 %v395_v58 }
  0xf3   : > { %2288 = vpow2.f32 %v2110_v61 }
  0xf4   : > { %2290 = vpow2.f32 %v2109_v62 }
  0xfb   : > { %v2285_v59 = vpop.eup %2284 }
  0xfc   : > { %433 = vrot.lane.b32.xlu0 %v2285_v59, %s2421_s24  ;;  %v2287_v60 = vpop.eup %2286 }
  0xfd   : > { %v2289_v63 = vpop.eup %2288 }
  0xfe   : > { %v427_v0 = vadd.f32 1.0, %v2289_v63  ;;  %v2291_v1 = vpop.eup %2290 }
  0xff   : > { %v403_v2 = vadd.f32 1.0, %v2291_v1 }
 0x100   : > { %409 = vrot.lane.b32.xlu0 %v2287_v60, %s2421_s24  ;;  %2292 = vrcp.f32 %v427_v0 }
 0x101   : > { %2294 = vrcp.f32 %v403_v2 }
 0x10a   : > { %v2293_v4 = vpop.eup %2292 }
 0x10b   : > { %v2295_v9 = vpop.eup %2294  ;;  %v431_v12 = vmul.f32 0.0, %v2293_v4 }
 0x10c   : > { %v407_v15 = vmul.f32 0.0, %v2295_v9 }
 0x16e   : > { %v434_v5 = vpop.permute.xlu0 %433 }
 0x16f   : > { %v436_v6 = vmul.f32 %v2293_v4, %v434_v5 }
 0x171   : > { %438 = vrot.lane.b32.xlu1 %v436_v6, %s2422_s25 }
 0x172   : > { %v410_v10 = vpop.permute.xlu0 %409 }
 0x173   : > { %v412_v11 = vmul.f32 %v2295_v9, %v410_v10 }
 0x175   : > { %414 = vrot.lane.b32.xlu1 %v412_v11, %s2422_s25 }
 0x1e3   : > { %v439_v13 = vpop.permute.xlu1 %438 }
 0x1e4   : > { %v2611_v14 = vadd.f32 %v439_v13, %v431_v12 }
 0x1e6   : > { %2296 = vtanh.f32 %v2611_v14  ;;  %v575_v61 = vrot.slane %v2611_v14, 2 }
 0x1e7   : > { %v415_v16 = vpop.permute.xlu1 %414 }
 0x1e8   : > { %v417_v19 = vadd.f32 %v415_v16, %v407_v15 }
 0x1ea   : > { %2298 = vtanh.f32 %v417_v19  ;;  %v548_v60 = vrot.slane %v417_v19, 6 }
 0x1f0   : > { %v2297_v20 = vpop.eup %2296 }
 0x1f1   : > { %444 = vrot.lane.b32.xlu0 %v2297_v20, %s2421_s24 }
 0x1f4   : > { %v2299_v21 = vpop.eup %2298 }
 0x1f5   : > { %420 = vrot.lane.b32.xlu1 %v2299_v21, %s2421_s24 }
 0x263   : > { %v445_v22 = vpop.permute.xlu0 %444 }
 0x264   : > { %v2616_v23 = vmul.f32 %v2293_v4, %v445_v22 }
 0x266   : > { %v453_v24 = vrot.slane %v2616_v23, 6 }
 0x267   : > { %v421_v25 = vpop.permute.xlu1 %420 }
 0x268   : > { %v2619_v26 = vmul.f32 %v2295_v9, %v421_v25  ;;  %454 = vrot.lane.b32.xlu1 %v453_v24, %s2421_s24  ;;  %v2423_v9 = vmov 1966171168  }
 0x269   : > { %v1467_v10 = vunpack.c.l.s4 %v2423_v9 }
 0x26a   : > { %449 = vrot.lane.b32.xlu0 %v2619_v26, %s2422_s25 }
 0x26b   : > { %v1468_v11 = vunpack.c.0.s8 %v1467_v10 }
 0x26d   : > { %v2651_v13 = vsub.s32 %v1468_v11, %v2587_v40 }
 0x26f   : > { %v1472_v19 = vrot.slane %v2619_v26, %v2651_v13 }
 0x271   : > { %v1473_v40 = vcombine.high %v1472_v19, %v1472_v19 }
 0x2da   : > { %v455_v28 = vpop.permute.xlu1 %454 }
 0x2dc   : > { %v450_v29 = vpop.permute.xlu0 %449 }
 0x2dd   : > { %v457_v30 = vsel %vm220_vm0, %v450_v29, %v455_v28  ;;  %v1480_v29 = vrot.slane %v1472_v19, %v2651_v13 }
 0x2de   : > { %2111 = vmatmul.mubr.msk.f32.vlgmr.msra.gmra.mrb[4].mxu0 %vm320_vm1, %v457_v30 }
 0x2df   : > { %2195 = vmatpush1.bf16.msra.mxu0 %v2479_v8  ;;  %819 = vmatprep.mubr.f32.mxu0 %v2420_v7 }
 0x2e0   : > { %2197 = vmatprep.subr.bf16.mxu0 %v2503_v17 }
 0x2e3   : > { %2199 = vmatpush1.bf16.msra.mxu0 %v2505_v18 }
 0x2e4   : > { %2201 = vmatprep.subr.bf16.mxu0 %v2527_v27 }
 0x2e7   : > { %2203 = vmatpush1.bf16.msra.mxu0 %v2547_v32 }
 0x2e8   : > { %2205 = vmatprep.subr.bf16.mxu0 %v2550_v34 }
 0x2eb   : > { %2207 = vmatpush1.bf16.msra.mxu0 %v2561_v37 }
 0x2ec   : > { %2225 = vmatprep.subr.bf16.mxu0 %v2466_v3 }
 0x3b1   : > { %v527_v31 = vpop.f32.mrb[4].mxu0 }
 0x3b2   : > { %v533_v33 = vrot.slane %v527_v31, 6  ;;  %v529_v35 = vpop.f32.mrb[5].mxu0  ;;  %v1487_v31 = vrot.slane %v1473_v40, %v2651_v13 }
 0x3b3   : > { %v537_v36 = vrot.slane %v529_v35, 4 }
 0x3b4   : > { %v535_v38 = vadd.f32 %v533_v33, %v2603_v56 }
 0x3b5   : > { %v539_v39 = vadd.f32 %v537_v36, %v2601_v52 }
 0x3b6   : > { %2300 = vtanh.f32 %v535_v38  ;;  %v2112_v43 = vmul.f32 -1.442695, %v535_v38 }
 0x3b7   : > { %2302 = vtanh.f32 %v539_v39  ;;  %v2113_v45 = vmul.f32 -1.442695, %v539_v39 }
 0x3b8   : > { %2304 = vpow2.f32 %v2112_v43 }
 0x3b9   : > { %2306 = vpow2.f32 %v2113_v45 }
 0x3c0   : > { %v2301_v41 = vpop.eup %2300 }
 0x3c1   : > { %v2303_v42 = vpop.eup %2302  ;;  %552 = vrot.lane.b32.xlu1 %v2301_v41, %s2421_s24 }
 0x3c2   : > { %579 = vrot.lane.b32.xlu0 %v2303_v42, %s2421_s24  ;;  %v2305_v46 = vpop.eup %2304 }
 0x3c3   : > { %v2307_v48 = vpop.eup %2306  ;;  %v543_v49 = vadd.f32 1.0, %v2305_v46 }
 0x3c4   : > { %v570_v51 = vadd.f32 1.0, %v2307_v48 }
 0x3c5   : > { %2308 = vrcp.f32 %v543_v49 }
 0x3c6   : > { %2310 = vrcp.f32 %v570_v51 }
 0x3cf   : > { %v2309_v53 = vpop.eup %2308 }
 0x3d0   : > { %v2311_v55 = vpop.eup %2310  ;;  %v550_v62 = vmul.f32 %v2309_v53, %v548_v60 }
 0x3d1   : > { %v577_v0 = vmul.f32 %v2311_v55, %v575_v61 }
 0x433   : > { %v553_v54 = vpop.permute.xlu1 %552 }
 0x434   : > { %v555_v57 = vmul.f32 %v2309_v53, %v553_v54  ;;  %v580_v58 = vpop.permute.xlu0 %579 }
 0x435   : > { %v582_v59 = vmul.f32 %v2311_v55, %v580_v58 }
 0x436   : > { %557 = vrot.lane.b32.xlu1 %v555_v57, %s2422_s25 }
 0x437   : > { %584 = vrot.lane.b32.xlu0 %v582_v59, %s2422_s25 }
 0x4a8   : > { %v558_v63 = vpop.permute.xlu1 %557 }
 0x4a9   : > { %v2642_v1 = vadd.f32 %v558_v63, %v550_v62  ;;  %v585_v2 = vpop.permute.xlu0 %584 }
 0x4aa   : > { %v2644_v4 = vadd.f32 %v585_v2, %v577_v0 }
 0x4ab   : > { %2312 = vtanh.f32 %v2642_v1  ;;  %v695_v9 = vrot.slane %v2642_v1, 6 }
 0x4ac   : > { %2314 = vtanh.f32 %v2644_v4  ;;  %v722_v10 = vrot.slane %v2644_v4, 2 }
 0x4b5   : > { %v2313_v5 = vpop.eup %2312 }
 0x4b6   : > { %v2315_v6 = vpop.eup %2314  ;;  %563 = vrot.lane.b32.xlu1 %v2313_v5, %s2421_s24 }
 0x4b7   : > { %590 = vrot.lane.b32.xlu0 %v2315_v6, %s2421_s24 }
 0x528   : > { %v564_v12 = vpop.permute.xlu1 %563 }
 0x529   : > { %v566_v14 = vmul.f32 %v2309_v53, %v564_v12  ;;  %v591_v15 = vpop.permute.xlu0 %590 }
 0x52a   : > { %v2653_v16 = vmul.f32 %v2311_v55, %v591_v15 }
 0x52b   : > { %v1496_v20 = vrot.slane %v566_v14, %v2651_v13  ;;  %595 = vrot.lane.b32.xlu0 %v566_v14, %s2422_s25 }
 0x52c   : > { %v599_v21 = vrot.slane %v2653_v16, 2 }
 0x52d   : > { %v1497_v22 = vcombine.high %v1496_v20, %v1496_v20  ;;  %v1504_v24 = vrot.slane %v1496_v20, %v2651_v13 }
 0x52e   : > { %600 = vrot.lane.b32.xlu1 %v599_v21, %s2421_s24 }
 0x52f   : > { %v1511_v25 = vrot.slane %v1497_v22, %v2651_v13  ;;  %v1512_v28 = vcombine.high %v1504_v24, %v1504_v24 }
 0x531   : > { %v1513_v30 = vcombine.high %v1511_v25, %v1511_v25  ;;  %v1660_v26 = vrot.slane %v1512_v28, %v2594_v44 }
 0x533   : > { %v1664_v33 = vrot.slane %v1513_v30, %v2594_v44  ;;  %v2668_v35 = vsel %vm1727_vm2, %v1480_v29, %v1660_v26 }
 0x535   : > { %v2671_v36 = vsel %vm1727_vm2, %v1487_v31, %v1664_v33 }
 0x59d   : > { %v596_v38 = vpop.permute.xlu0 %595 }
 0x5a0   : > { %v601_v39 = vpop.permute.xlu1 %600 }
 0x5a1   : > { %v603_v41 = vsel %vm220_vm0, %v596_v38, %v601_v39 }
 0x5a2   : > { %v605_v42 = vrot.slane %v603_v41, 2 }
 0x5a4   : > { %2114 = vmatmul.mubr.msk.f32.vlgmr.msra.gmra.mrb[2].mxu1 %vm320_vm1, %v605_v42 }
 0x5a5   : > { %2211 = vmatpush1.bf16.msra.mxu1 %v2479_v8  ;;  %963 = vmatprep.mubr.f32.mxu1 %v2420_v7 }
 0x5a6   : > { %2213 = vmatprep.subr.bf16.mxu1 %v2503_v17 }
 0x5a9   : > { %2215 = vmatpush1.bf16.msra.mxu1 %v2505_v18 }
 0x5aa   : > { %2217 = vmatprep.subr.bf16.mxu1 %v2527_v27 }
 0x5ad   : > { %2219 = vmatpush1.bf16.msra.mxu1 %v2547_v32 }
 0x5ae   : > { %2221 = vmatprep.subr.bf16.mxu1 %v2550_v34 }
 0x5b1   : > { %2223 = vmatpush1.bf16.msra.mxu1 %v2561_v37 }
 0x5b2   : > { %2241 = vmatprep.subr.bf16.mxu1 %v2466_v3 }
 0x677   : > { %v674_v43 = vpop.f32.mrb[2].mxu1 }
 0x678   : > { %v680_v45 = vrot.slane %v674_v43, 4  ;;  %v676_v46 = vpop.f32.mrb[3].mxu1 }
 0x679   : > { %v684_v48 = vrot.slane %v676_v46, 6 }
 0x67a   : > { %v682_v49 = vadd.f32 %v680_v45, %v2603_v56 }
 0x67b   : > { %v686_v51 = vadd.f32 %v684_v48, %v2601_v52 }
 0x67c   : > { %2316 = vtanh.f32 %v682_v49  ;;  %v2115_v55 = vmul.f32 -1.442695, %v682_v49 }
 0x67d   : > { %2318 = vtanh.f32 %v686_v51  ;;  %v2116_v57 = vmul.f32 -1.442695, %v686_v51 }
 0x67e   : > { %2320 = vpow2.f32 %v2115_v55 }
 0x67f   : > { %2322 = vpow2.f32 %v2116_v57 }
 0x686   : > { %v2317_v53 = vpop.eup %2316 }
 0x687   : > { %v2319_v54 = vpop.eup %2318  ;;  %699 = vrot.lane.b32.xlu1 %v2317_v53, %s2421_s24 }
 0x688   : > { %726 = vrot.lane.b32.xlu0 %v2319_v54, %s2421_s24  ;;  %v2321_v58 = vpop.eup %2320 }
 0x689   : > { %v2323_v59 = vpop.eup %2322  ;;  %v690_v60 = vadd.f32 1.0, %v2321_v58 }
 0x68a   : > { %v717_v61 = vadd.f32 1.0, %v2323_v59 }
 0x68b   : > { %2324 = vrcp.f32 %v690_v60 }
 0x68c   : > { %2326 = vrcp.f32 %v717_v61 }
 0x695   : > { %v2325_v62 = vpop.eup %2324 }
 0x696   : > { %v2327_v0 = vpop.eup %2326  ;;  %v697_v11 = vmul.f32 %v2325_v62, %v695_v9 }
 0x697   : > { %v724_v14 = vmul.f32 %v2327_v0, %v722_v10 }
 0x6f9   : > { %v700_v63 = vpop.permute.xlu1 %699 }
 0x6fa   : > { %v702_v2 = vmul.f32 %v2325_v62, %v700_v63  ;;  %v727_v5 = vpop.permute.xlu0 %726 }
 0x6fb   : > { %v729_v6 = vmul.f32 %v2327_v0, %v727_v5 }
 0x6fc   : > { %704 = vrot.lane.b32.xlu1 %v702_v2, %s2422_s25 }
 0x6fd   : > { %731 = vrot.lane.b32.xlu0 %v729_v6, %s2422_s25 }
 0x76e   : > { %v705_v12 = vpop.permute.xlu1 %704 }
 0x76f   : > { %v2692_v15 = vadd.f32 %v705_v12, %v697_v11  ;;  %v732_v19 = vpop.permute.xlu0 %731 }
 0x770   : > { %v2694_v20 = vadd.f32 %v732_v19, %v724_v14 }
 0x771   : > { %2328 = vtanh.f32 %v2692_v15  ;;  %v839_v5 = vrot.slane %v2692_v15, 6 }
 0x772   : > { %2330 = vtanh.f32 %v2694_v20  ;;  %v866_v2 = vrot.slane %v2694_v20, 2 }
 0x77b   : > { %v2329_v21 = vpop.eup %2328 }
 0x77c   : > { %v2331_v22 = vpop.eup %2330  ;;  %710 = vrot.lane.b32.xlu1 %v2329_v21, %s2421_s24 }
 0x77d   : > { %737 = vrot.lane.b32.xlu0 %v2331_v22, %s2421_s24 }
 0x7ee   : > { %v711_v1 = vpop.permute.xlu1 %710 }
 0x7ef   : > { %v713_v4 = vmul.f32 %v2325_v62, %v711_v1  ;;  %v738_v24 = vpop.permute.xlu0 %737 }
 0x7f0   : > { %v2700_v40 = vmul.f32 %v2327_v0, %v738_v24 }
 0x7f1   : > { %v1514_v25 = vcombine.high %v713_v4, %v713_v4  ;;  %742 = vrot.lane.b32.xlu0 %v713_v4, %s2422_s25 }
 0x7f2   : > { %v746_v28 = vrot.slane %v2700_v40, 6 }
 0x7f3   : > { %v1521_v29 = vrot.slane %v1514_v25, %v2651_v13 }
 0x7f4   : > { %747 = vrot.lane.b32.xlu1 %v746_v28, %s2421_s24 }
 0x7f5   : > { %v1522_v30 = vcombine.high %v1521_v29, %v1521_v29  ;;  %v1529_v26 = vrot.slane %v1521_v29, %v2651_v13 }
 0x7f7   : > { %v1536_v31 = vrot.slane %v1522_v30, %v2651_v13  ;;  %v1670_v33 = vrot.slane %v1529_v26, %v2594_v44 }
 0x7f9   : > { %v1674_v38 = vrot.slane %v1536_v31, %v2594_v44  ;;  %v2712_v39 = vsel %vm1730_vm3, %v2668_v35, %v1670_v33 }
 0x7fb   : > { %v2716_v41 = vsel %vm1730_vm3, %v2671_v36, %v1674_v38 }
 0x863   : > { %v743_v42 = vpop.permute.xlu0 %742 }
 0x866   : > { %v748_v43 = vpop.permute.xlu1 %747 }
 0x867   : > { %v750_v45 = vsel %vm220_vm0, %v743_v42, %v748_v43 }
 0x868   : > { %v752_v46 = vrot.slane %v750_v45, 4 }
 0x86a   : > { %2117 = vmatmul.mubr.msk.f32.vlgmr.msra.gmra.mrb[6].mxu0 %vm320_vm1, %v752_v46 }
 0x86b   : > { %2227 = vmatpush1.bf16.msra.mxu0 %v2479_v8  ;;  %1106 = vmatprep.mubr.f32.mxu0 %v2420_v7 }
 0x86c   : > { %2229 = vmatprep.subr.bf16.mxu0 %v2503_v17 }
 0x86f   : > { %2231 = vmatpush1.bf16.msra.mxu0 %v2505_v18 }
 0x870   : > { %2233 = vmatprep.subr.bf16.mxu0 %v2527_v27 }
 0x873   : > { %2235 = vmatpush1.bf16.msra.mxu0 %v2547_v32 }
 0x874   : > { %2237 = vmatprep.subr.bf16.mxu0 %v2550_v34 }
 0x877   : > { %2239 = vmatpush1.bf16.msra.mxu0 %v2561_v37 }
 0x878   : > { %2257 = vmatprep.subr.bf16.mxu0 %v2466_v3 }
 0x93d   : > { %v821_v35 = vpop.f32.mrb[6].mxu0 }
 0x93e   : > { %v827_v36 = vrot.slane %v821_v35, 2  ;;  %v823_v48 = vpop.f32.mrb[7].mxu0 }
 0x93f   : > { %v830_v49 = vadd.f32 %v823_v48, %v2601_v52 }
 0x940   : > { %v829_v51 = vadd.f32 %v827_v36, %v2603_v56 }
 0x941   : > { %2332 = vtanh.f32 %v830_v49  ;;  %v2119_v55 = vmul.f32 -1.442695, %v830_v49 }
 0x942   : > { %2334 = vtanh.f32 %v829_v51  ;;  %v2118_v57 = vmul.f32 -1.442695, %v829_v51 }
 0x943   : > { %2336 = vpow2.f32 %v2119_v55 }
 0x944   : > { %2338 = vpow2.f32 %v2118_v57 }
 0x94b   : > { %v2333_v53 = vpop.eup %2332 }
 0x94c   : > { %v2335_v54 = vpop.eup %2334  ;;  %870 = vrot.lane.b32.xlu0 %v2333_v53, %s2421_s24 }
 0x94d   : > { %843 = vrot.lane.b32.xlu1 %v2335_v54, %s2421_s24  ;;  %v2337_v3 = vpop.eup %2336 }
 0x94e   : > { %v2339_v58 = vpop.eup %2338  ;;  %v861_v59 = vadd.f32 1.0, %v2337_v3 }
 0x94f   : > { %v834_v60 = vadd.f32 1.0, %v2339_v58 }
 0x950   : > { %2340 = vrcp.f32 %v861_v59 }
 0x951   : > { %2342 = vrcp.f32 %v834_v60 }
 0x95a   : > { %v2341_v52 = vpop.eup %2340 }
 0x95b   : > { %v2343_v61 = vpop.eup %2342  ;;  %v868_v6 = vmul.f32 %v2341_v52, %v866_v2 }
 0x95c   : > { %v841_v10 = vmul.f32 %v2343_v61, %v839_v5 }
 0x9be   : > { %v871_v56 = vpop.permute.xlu0 %870 }
 0x9bf   : > { %v873_v62 = vmul.f32 %v2341_v52, %v871_v56  ;;  %v844_v63 = vpop.permute.xlu1 %843 }
 0x9c0   : > { %v846_v0 = vmul.f32 %v2343_v61, %v844_v63 }
 0x9c1   : > { %875 = vrot.lane.b32.xlu0 %v873_v62, %s2422_s25 }
 0x9c2   : > { %848 = vrot.lane.b32.xlu1 %v846_v0, %s2422_s25 }
 0xa33   : > { %v876_v9 = vpop.permute.xlu0 %875 }
 0xa34   : > { %v2737_v11 = vadd.f32 %v876_v9, %v868_v6  ;;  %v849_v12 = vpop.permute.xlu1 %848 }
 0xa35   : > { %v2739_v14 = vadd.f32 %v849_v12, %v841_v10 }
 0xa36   : > { %2344 = vtanh.f32 %v2737_v11  ;;  %v1010_v6 = vrot.slane %v2737_v11, 2 }
 0xa37   : > { %2346 = vtanh.f32 %v2739_v14  ;;  %v983_v2 = vrot.slane %v2739_v14, 6 }
 0xa40   : > { %v2345_v19 = vpop.eup %2344 }
 0xa41   : > { %v2347_v21 = vpop.eup %2346  ;;  %881 = vrot.lane.b32.xlu0 %v2345_v19, %s2421_s24 }
 0xa42   : > { %854 = vrot.lane.b32.xlu1 %v2347_v21, %s2421_s24 }
 0xab3   : > { %v882_v20 = vpop.permute.xlu0 %881 }
 0xab4   : > { %v2745_v15 = vmul.f32 %v2341_v52, %v882_v20  ;;  %v855_v22 = vpop.permute.xlu1 %854 }
 0xab5   : > { %v857_v1 = vmul.f32 %v2343_v61, %v855_v22 }
 0xab6   : > { %v890_v4 = vrot.slane %v2745_v15, 2 }
 0xab7   : > { %v1537_v24 = vcombine.high %v857_v1, %v857_v1  ;;  %886 = vrot.lane.b32.xlu0 %v857_v1, %s2422_s25 }
 0xab8   : > { %891 = vrot.lane.b32.xlu1 %v890_v4, %s2421_s24 }
 0xab9   : > { %v1544_v25 = vrot.slane %v1537_v24, %v2651_v13 }
 0xabb   : > { %v1545_v28 = vcombine.high %v1544_v25, %v1544_v25  ;;  %v1552_v29 = vrot.slane %v1544_v25, %v2651_v13 }
 0xabd   : > { %v1559_v30 = vrot.slane %v1545_v28, %v2651_v13  ;;  %v1560_v26 = vcombine.high %v1552_v29, %v1552_v29 }
 0xabf   : > { %v1561_v31 = vcombine.high %v1559_v30, %v1559_v30  ;;  %v1680_v33 = vrot.slane %v1560_v26, %v2594_v44 }
 0xac1   : > { %v1684_v38 = vrot.slane %v1561_v31, %v2594_v44  ;;  %v2757_v42 = vsel %vm1733_vm4, %v2712_v39, %v1680_v33 }
 0xac3   : > { %v2761_v43 = vsel %vm1733_vm4, %v2716_v41, %v1684_v38 }
 0xb29   : > { %v887_v45 = vpop.permute.xlu0 %886 }
 0xb2a   : > { %v892_v46 = vpop.permute.xlu1 %891 }
 0xb2b   : > { %v894_v35 = vsel %vm220_vm0, %v887_v45, %v892_v46 }
 0xb2c   : > { %v896_v36 = vrot.slane %v894_v35, 6 }
 0xb2e   : > { %2120 = vmatmul.mubr.msk.f32.vlgmr.msra.gmra.mrb[4].mxu1 %vm320_vm1, %v896_v36 }
 0xb2f   : > { %2243 = vmatpush1.bf16.msra.mxu1 %v2479_v8  ;;  %1253 = vmatprep.mubr.f32.mxu1 %v2420_v7 }
 0xb30   : > { %2245 = vmatprep.subr.bf16.mxu1 %v2503_v17 }
 0xb33   : > { %2247 = vmatpush1.bf16.msra.mxu1 %v2505_v18 }
 0xb34   : > { %2249 = vmatprep.subr.bf16.mxu1 %v2527_v27 }
 0xb37   : > { %2251 = vmatpush1.bf16.msra.mxu1 %v2547_v32 }
 0xb38   : > { %2253 = vmatprep.subr.bf16.mxu1 %v2550_v34 }
 0xb3b   : > { %2255 = vmatpush1.bf16.msra.mxu1 %v2561_v37 }
 0xc01   : > { %v965_v39 = vpop.f32.mrb[4].mxu1 }
 0xc02   : > { %v970_v41 = vadd.f32 %v965_v39, %v2599_v50  ;;  %v967_v48 = vpop.f32.mrb[5].mxu1 }
 0xc03   : > { %v972_v49 = vrot.slane %v967_v48, 2 }
 0xc04   : > { %2348 = vtanh.f32 %v970_v41  ;;  %v2121_v55 = vmul.f32 -1.442695, %v970_v41 }
 0xc05   : > { %v974_v51 = vadd.f32 %v972_v49, %v2596_v47 }
 0xc07   : > { %2350 = vtanh.f32 %v974_v51  ;;  %v2122_v57 = vmul.f32 -1.442695, %v974_v51 }
 0xc08   : > { %2352 = vpow2.f32 %v2121_v55 }
 0xc09   : > { %2354 = vpow2.f32 %v2122_v57 }
 0xc0e   : > { %v2349_v53 = vpop.eup %2348 }
 0xc0f   : > { %987 = vrot.lane.b32.xlu1 %v2349_v53, %s2421_s24 }
 0xc11   : > { %v2351_v54 = vpop.eup %2350 }
 0xc12   : > { %1014 = vrot.lane.b32.xlu0 %v2351_v54, %s2421_s24  ;;  %v2353_v3 = vpop.eup %2352 }
 0xc13   : > { %v2355_v58 = vpop.eup %2354  ;;  %v978_v59 = vadd.f32 1.0, %v2353_v3 }
 0xc14   : > { %v1005_v60 = vadd.f32 1.0, %v2355_v58 }
 0xc15   : > { %2356 = vrcp.f32 %v978_v59 }
 0xc16   : > { %2358 = vrcp.f32 %v1005_v60 }
 0xc1f   : > { %v2357_v52 = vpop.eup %2356 }
 0xc20   : > { %v2359_v62 = vpop.eup %2358  ;;  %v985_v5 = vmul.f32 %v2357_v52, %v983_v2 }
 0xc21   : > { %v1012_v12 = vmul.f32 %v2359_v62, %v1010_v6 }
 0xc81   : > { %v988_v56 = vpop.permute.xlu1 %987 }
 0xc82   : > { %v990_v61 = vmul.f32 %v2357_v52, %v988_v56 }
 0xc84   : > { %992 = vrot.lane.b32.xlu1 %v990_v61, %s2422_s25  ;;  %v1015_v63 = vpop.permute.xlu0 %1014 }
 0xc85   : > { %v1017_v0 = vmul.f32 %v2359_v62, %v1015_v63 }
 0xc87   : > { %1019 = vrot.lane.b32.xlu0 %v1017_v0, %s2422_s25 }
 0xcf6   : > { %v993_v9 = vpop.permute.xlu1 %992 }
 0xcf7   : > { %v2781_v10 = vadd.f32 %v993_v9, %v985_v5 }
 0xcf9   : > { %2360 = vtanh.f32 %v2781_v10  ;;  %v1020_v19 = vpop.permute.xlu0 %1019  ;;  %v1129_v3 = vrot.slane %v2781_v10, 6 }
 0xcfa   : > { %v2784_v21 = vadd.f32 %v1020_v19, %v1012_v12 }
 0xcfc   : > { %2362 = vtanh.f32 %v2784_v21  ;;  %v1156_v58 = vrot.slane %v2784_v21, 2 }
 0xd03   : > { %v2361_v20 = vpop.eup %2360 }
 0xd04   : > { %998 = vrot.lane.b32.xlu1 %v2361_v20, %s2421_s24 }
 0xd06   : > { %v2363_v22 = vpop.eup %2362 }
 0xd07   : > { %1025 = vrot.lane.b32.xlu0 %v2363_v22, %s2421_s24 }
 0xd76   : > { %v999_v14 = vpop.permute.xlu1 %998 }
 0xd77   : > { %v1001_v1 = vmul.f32 %v2357_v52, %v999_v14 }
 0xd79   : > { %v1568_v11 = vrot.slane %v1001_v1, %v2651_v13  ;;  %1030 = vrot.lane.b32.xlu0 %v1001_v1, %s2422_s25  ;;  %v1026_v4 = vpop.permute.xlu0 %1025 }
 0xd7a   : > { %v2791_v24 = vmul.f32 %v2359_v62, %v1026_v4 }
 0xd7b   : > { %v1569_v25 = vcombine.high %v1568_v11, %v1568_v11  ;;  %v1576_v28 = vrot.slane %v1568_v11, %v2651_v13 }
 0xd7c   : > { %v1034_v29 = vrot.slane %v2791_v24, 6 }
 0xd7d   : > { %v1583_v30 = vrot.slane %v1569_v25, %v2651_v13  ;;  %v1690_v26 = vrot.slane %v1576_v28, %v2594_v44 }
 0xd7e   : > { %1035 = vrot.lane.b32.xlu1 %v1034_v29, %s2421_s24 }
 0xd7f   : > { %v1694_v31 = vrot.slane %v1583_v30, %v2594_v44  ;;  %v2801_v33 = vsel %vm1736_vm5, %v2757_v42, %v1690_v26 }
 0xd81   : > { %v2805_v38 = vsel %vm1736_vm5, %v2761_v43, %v1694_v31 }
 0xdeb   : > { %v1031_v45 = vpop.permute.xlu0 %1030 }
 0xdf0   : > { %v1036_v46 = vpop.permute.xlu1 %1035 }
 0xdf1   : > { %v1038_v35 = vsel %vm220_vm0, %v1031_v45, %v1036_v46 }
 0xdf2   : > { %2123 = vmatmul.mubr.msk.f32.vlgmr.msra.gmra.mrb[8].mxu0 %vm320_vm1, %v1038_v35 }
 0xdf3   : > { %2259 = vmatpush1.bf16.msra.mxu0 %v2479_v8  ;;  %1400 = vmatprep.mubr.f32.mxu0 %v2420_v7 }
 0xdf4   : > { %2261 = vmatprep.subr.bf16.mxu0 %v2503_v17 }
 0xdf7   : > { %2263 = vmatpush1.bf16.msra.mxu0 %v2505_v18 }
 0xdf8   : > { %2265 = vmatprep.subr.bf16.mxu0 %v2527_v27 }
 0xdfb   : > { %2267 = vmatpush1.bf16.msra.mxu0 %v2547_v32 }
 0xdfc   : > { %2269 = vmatprep.subr.bf16.mxu0 %v2550_v34 }
 0xdff   : > { %2271 = vmatpush1.bf16.msra.mxu0 %v2561_v37 }
 0xec5   : > { %v1108_v42 = vpop.f32.mrb[8].mxu0 }
 0xec6   : > { %v1114_v43 = vrot.slane %v1108_v42, 6  ;;  %v1110_v36 = vpop.f32.mrb[9].mxu0 }
 0xec7   : > { %v1118_v39 = vrot.slane %v1110_v36, 4 }
 0xec8   : > { %v1116_v8 = vadd.f32 %v1114_v43, %v2599_v50 }
 0xec9   : > { %v1120_v7 = vadd.f32 %v1118_v39, %v2596_v47 }
 0xeca   : > { %2364 = vtanh.f32 %v1116_v8  ;;  %v2124_v27 = vmul.f32 -1.442695, %v1116_v8 }
 0xecb   : > { %2366 = vtanh.f32 %v1120_v7  ;;  %v2125_v32 = vmul.f32 -1.442695, %v1120_v7 }
 0xecc   : > { %2368 = vpow2.f32 %v2124_v27 }
 0xecd   : > { %2370 = vpow2.f32 %v2125_v32 }
 0xed4   : > { %v2365_v17 = vpop.eup %2364 }
 0xed5   : > { %v2367_v18 = vpop.eup %2366  ;;  %1133 = vrot.lane.b32.xlu1 %v2365_v17, %s2421_s24 }
 0xed6   : > { %1160 = vrot.lane.b32.xlu0 %v2367_v18, %s2421_s24  ;;  %v2369_v34 = vpop.eup %2368 }
 0xed7   : > { %v2371_v37 = vpop.eup %2370  ;;  %v1124_v41 = vadd.f32 1.0, %v2369_v34 }
 0xed8   : > { %v1151_v48 = vadd.f32 1.0, %v2371_v37 }
 0xed9   : > { %2372 = vrcp.f32 %v1124_v41 }
 0xeda   : > { %2374 = vrcp.f32 %v1151_v48 }
 0xee3   : > { %v2373_v49 = vpop.eup %2372 }
 0xee4   : > { %v2375_v53 = vpop.eup %2374  ;;  %v1131_v59 = vmul.f32 %v2373_v49, %v1129_v3 }
 0xee5   : > { %v1158_v52 = vmul.f32 %v2375_v53, %v1156_v58 }
 0xf47   : > { %v1134_v51 = vpop.permute.xlu1 %1133 }
 0xf48   : > { %v1136_v54 = vmul.f32 %v2373_v49, %v1134_v51  ;;  %v1161_v55 = vpop.permute.xlu0 %1160 }
 0xf49   : > { %v1163_v57 = vmul.f32 %v2375_v53, %v1161_v55 }
 0xf4a   : > { %1138 = vrot.lane.b32.xlu1 %v1136_v54, %s2422_s25 }
 0xf4b   : > { %1165 = vrot.lane.b32.xlu0 %v1163_v57, %s2422_s25 }
 0xfbc   : > { %v1139_v60 = vpop.permute.xlu1 %1138 }
 0xfbd   : > { %v2825_v56 = vadd.f32 %v1139_v60, %v1131_v59  ;;  %v1166_v61 = vpop.permute.xlu0 %1165 }
 0xfbe   : > { %v2827_v62 = vadd.f32 %v1166_v61, %v1158_v52 }
 0xfbf   : > { %2376 = vtanh.f32 %v2825_v56 }
 0xfc0   : > { %2378 = vtanh.f32 %v2827_v62  ;;  %v1303_v51 = vrot.slane %v2827_v62, 2 }
 0xfc9   : > { %v2377_v63 = vpop.eup %2376 }
 0xfca   : > { %v2379_v0 = vpop.eup %2378  ;;  %1144 = vrot.lane.b32.xlu1 %v2377_v63, %s2421_s24 }
 0xfcb   : > { %1171 = vrot.lane.b32.xlu0 %v2379_v0, %s2421_s24 }
0x103c   : > { %v1145_v2 = vpop.permute.xlu1 %1144 }
0x103d   : > { %v1147_v5 = vmul.f32 %v2373_v49, %v1145_v2  ;;  %v1172_v6 = vpop.permute.xlu0 %1171  ;;  %v1276_v49 = vrot.slane %v2825_v56, 6 }
0x103e   : > { %v2833_v9 = vmul.f32 %v2375_v53, %v1172_v6 }
0x103f   : > { %v1590_v10 = vrot.slane %v1147_v5, %v2651_v13  ;;  %1176 = vrot.lane.b32.xlu0 %v1147_v5, %s2422_s25 }
0x1040   : > { %v1180_v12 = vrot.slane %v2833_v9, 2 }
0x1041   : > { %v1591_v19 = vcombine.high %v1590_v10, %v1590_v10  ;;  %v1598_v21 = vrot.slane %v1590_v10, %v2651_v13 }
0x1042   : > { %1181 = vrot.lane.b32.xlu1 %v1180_v12, %s2421_s24 }
0x1043   : > { %v1605_v20 = vrot.slane %v1591_v19, %v2651_v13  ;;  %v1606_v22 = vcombine.high %v1598_v21, %v1598_v21 }
0x1045   : > { %v1607_v14 = vcombine.high %v1605_v20, %v1605_v20  ;;  %v1700_v1 = vrot.slane %v1606_v22, %v2594_v44 }
0x1047   : > { %v1704_v11 = vrot.slane %v1607_v14, %v2594_v44  ;;  %v2845_v4 = vsel %vm1739_vm6, %v2801_v33, %v1700_v1 }
0x1049   : > { %v2849_v25 = vsel %vm1739_vm6, %v2805_v38, %v1704_v11 }
0x10b1   : > { %v1177_v28 = vpop.permute.xlu0 %1176 }
0x10b4   : > { %v1182_v29 = vpop.permute.xlu1 %1181 }
0x10b5   : > { %v1184_v30 = vsel %vm220_vm0, %v1177_v28, %v1182_v29 }
0x10b6   : > { %v1186_v26 = vrot.slane %v1184_v30, 2 }
0x10b8   : > { %2126 = vmatmul.mubr.msk.f32.vlgmr.msra.gmra.mrb[6].mxu1 %vm320_vm1, %v1186_v26 }
0x118b   : > { %v1255_v31 = vpop.f32.mrb[6].mxu1 }
0x118c   : > { %v1261_v45 = vrot.slane %v1255_v31, 4  ;;  %v1257_v46 = vpop.f32.mrb[7].mxu1 }
0x118d   : > { %v1265_v35 = vrot.slane %v1257_v46, 6 }
0x118e   : > { %v1263_v42 = vadd.f32 %v1261_v45, %v2599_v50 }
0x118f   : > { %v1267_v33 = vadd.f32 %v1265_v35, %v2596_v47 }
0x1190   : > { %2380 = vtanh.f32 %v1263_v42  ;;  %v2127_v36 = vmul.f32 -1.442695, %v1263_v42 }
0x1191   : > { %2382 = vtanh.f32 %v1267_v33  ;;  %v2128_v39 = vmul.f32 -1.442695, %v1267_v33 }
0x1192   : > { %2384 = vpow2.f32 %v2127_v36 }
0x1193   : > { %2386 = vpow2.f32 %v2128_v39 }
0x119a   : > { %v2381_v43 = vpop.eup %2380 }
0x119b   : > { %v2383_v38 = vpop.eup %2382  ;;  %1280 = vrot.lane.b32.xlu1 %v2381_v43, %s2421_s24 }
0x119c   : > { %1307 = vrot.lane.b32.xlu0 %v2383_v38, %s2421_s24  ;;  %v2385_v8 = vpop.eup %2384 }
0x119d   : > { %v2387_v7 = vpop.eup %2386  ;;  %v1271_v17 = vadd.f32 1.0, %v2385_v8 }
0x119e   : > { %v1298_v18 = vadd.f32 1.0, %v2387_v7 }
0x119f   : > { %2388 = vrcp.f32 %v1271_v17 }
0x11a0   : > { %2390 = vrcp.f32 %v1298_v18 }
0x11a9   : > { %v2389_v27 = vpop.eup %2388 }
0x11aa   : > { %v2391_v34 = vpop.eup %2390  ;;  %v1278_v53 = vmul.f32 %v2389_v27, %v1276_v49 }
0x11ab   : > { %v1305_v55 = vmul.f32 %v2391_v34, %v1303_v51  ;;  %v1914_v51 = vcombine.high %v2616_v23, %v2616_v23  ;;  %v1797_v23 = vcombine.high %v2833_v9, %v2833_v9 }
0x120d   : > { %v1281_v32 = vpop.permute.xlu1 %1280 }
0x120e   : > { %v1283_v37 = vmul.f32 %v2389_v27, %v1281_v32  ;;  %v1308_v41 = vpop.permute.xlu0 %1307 }
0x120f   : > { %v1310_v48 = vmul.f32 %v2391_v34, %v1308_v41 }
0x1210   : > { %1285 = vrot.lane.b32.xlu1 %v1283_v37, %s2422_s25 }
0x1211   : > { %1312 = vrot.lane.b32.xlu0 %v1310_v48, %s2422_s25 }
0x1282   : > { %v1286_v54 = vpop.permute.xlu1 %1285 }
0x1283   : > { %v2861_v57 = vadd.f32 %v1286_v54, %v1278_v53  ;;  %v1313_v3 = vpop.permute.xlu0 %1312  ;;  %v1921_v53 = vrot.slane %v1914_v51, %v2651_v13  ;;  %v1891_v54 = vcombine.high %v2653_v16, %v2653_v16  ;;  %v1851_v16 = vrot.slane %v2745_v15, %v2651_v13 }
0x1284   : > { %v1315_v58 = vadd.f32 %v1313_v3, %v1305_v55  ;;  %v1820_v55 = vcombine.high %v2791_v24, %v2791_v24 }
0x1285   : > { %2392 = vtanh.f32 %v2861_v57  ;;  %v1420_v17 = vrot.slane %v2861_v57, 6  ;;  %v1929_v57 = vrot.slane %v1921_v53, %v2651_v13 }
0x1286   : > { %2394 = vtanh.f32 %v1315_v58  ;;  %v1447_v7 = vrot.slane %v1315_v58, 2  ;;  %v1922_v58 = vcombine.high %v1921_v53, %v1921_v53 }
0x1287   : > { %v1937_v24 = vcombine.high %v1929_v57, %v1929_v57 }
0x128f   : > { %v2393_v59 = vpop.eup %2392 }
0x1290   : > { %v2395_v60 = vpop.eup %2394  ;;  %1291 = vrot.lane.b32.xlu1 %v2393_v59, %s2421_s24  ;;  %v1873_v59 = vrot.slane %v2700_v40, %v2651_v13  ;;  %v1804_v40 = vrot.slane %v1797_v23, %v2651_v13 }
0x1291   : > { %1318 = vrot.lane.b32.xlu0 %v2395_v60, %s2421_s24  ;;  %v1898_v60 = vrot.slane %v1891_v54, %v2651_v13 }
0x1302   : > { %v1292_v52 = vpop.permute.xlu1 %1291 }
0x1303   : > { %v1294_v56 = vmul.f32 %v2389_v27, %v1292_v52  ;;  %v1319_v61 = vpop.permute.xlu0 %1318  ;;  %v1827_v52 = vrot.slane %v1820_v55, %v2651_v13 }
0x1304   : > { %v2866_v62 = vmul.f32 %v2391_v34, %v1319_v61  ;;  %v2914_v61 = vrot.slane %v1922_v58, %v2651_v13 }
0x1305   : > { %v1608_v63 = vcombine.high %v1294_v56, %v1294_v56  ;;  %1323 = vrot.lane.b32.xlu0 %v1294_v56, %s2422_s25 }
0x1306   : > { %v1327_v0 = vrot.slane %v2866_v62, 6  ;;  %v1779_v3 = vrot.slane %v2866_v62, %v2651_v13  ;;  %v1874_v62 = vcombine.high %v1873_v59, %v1873_v59 }
0x1307   : > { %v1615_v2 = vrot.slane %v1608_v63, %v2651_v13  ;;  %v1881_v63 = vrot.slane %v1873_v59, %v2651_v13 }
0x1308   : > { %1328 = vrot.lane.b32.xlu1 %v1327_v0, %s2421_s24  ;;  %v1780_v56 = vcombine.high %v1779_v3, %v1779_v3  ;;  %v1899_v0 = vcombine.high %v1898_v60, %v1898_v60  ;;  %v1787_v9 = vrot.slane %v1779_v3, %v2651_v13 }
0x1309   : > { %v1616_v5 = vcombine.high %v1615_v2, %v1615_v2  ;;  %v1623_v6 = vrot.slane %v1615_v2, %v2651_v13  ;;  %v1828_v2 = vcombine.high %v1827_v52, %v1827_v52 }
0x130a   : > { %v1794_v15 = vrot.slane %v1780_v56, %v2651_v13 }
0x130b   : > { %v1630_v10 = vrot.slane %v1616_v5, %v2651_v13  ;;  %v1710_v12 = vrot.slane %v1623_v6, %v2594_v44  ;;  %v1852_v5 = vcombine.high %v1851_v16, %v1851_v16  ;;  %v1906_v6 = vrot.slane %v1898_v60, %v2651_v13 }
0x130d   : > { %v2877_v19 = vsel %vm1742_vm7, %v2845_v4, %v1710_v12  ;;  %v1714_v21 = vrot.slane %v1630_v10, %v2594_v44  ;;  %v1835_v10 = vrot.slane %v1827_v52, %v2651_v13  ;;  %v2002_v12 = vrot.slane %v1937_v24, %v2594_v44 }
0x130f   : > { %v2882_v20 = vsel %vm1742_vm7, %v2849_v25, %v1714_v21  ;;  %v1888_v21 = vrot.slane %v1874_v62, %v2651_v13 }
0x1377   : > { %v1324_v22 = vpop.permute.xlu0 %1323 }
0x137a   : > { %v1329_v14 = vpop.permute.xlu1 %1328 }
0x137b   : > { %v1331_v1 = vsel %vm220_vm0, %v1324_v22, %v1329_v14  ;;  %v1889_v22 = vcombine.high %v1881_v63, %v1881_v63  ;;  %v1805_v14 = vcombine.high %v1804_v40, %v1804_v40 }
0x137c   : > { %v1333_v11 = vrot.slane %v1331_v1, 4 }
0x137e   : > { %2129 = vmatmul.mubr.msk.f32.vlgmr.msra.gmra.mrb[10].mxu0 %vm320_vm1, %v1333_v11  ;;  %v1938_v11 = vcombine.high %v2914_v61, %v2914_v61 }
0x1451   : > { %v1402_v28 = vpop.f32.mrb[10].mxu0 }
0x1452   : > { %v1408_v29 = vrot.slane %v1402_v28, 2  ;;  %v1404_v30 = vpop.f32.mrb[11].mxu0  ;;  %v1913_v28 = vrot.slane %v1899_v0, %v2651_v13 }
0x1453   : > { %v1411_v26 = vadd.f32 %v1404_v30, %v2596_v47  ;;  %v1795_v30 = vcombine.high %v1787_v9, %v1787_v9 }
0x1454   : > { %v1410_v4 = vadd.f32 %v1408_v29, %v2599_v50  ;;  %v1842_v29 = vrot.slane %v1828_v2, %v2651_v13  ;;  %v1996_v56 = vrot.slane %v1913_v28, %v2594_v44  ;;  %v2006_v2 = vrot.slane %v1938_v11, %v2594_v44 }
0x1455   : > { %2396 = vtanh.f32 %v1411_v26  ;;  %v2131_v25 = vmul.f32 -1.442695, %v1411_v26 }
0x1456   : > { %2398 = vtanh.f32 %v1410_v4  ;;  %v2130_v46 = vmul.f32 -1.442695, %v1410_v4 }
0x1457   : > { %2400 = vpow2.f32 %v2131_v25  ;;  %v1812_v25 = vrot.slane %v1804_v40, %v2651_v13 }
0x1458   : > { %2402 = vpow2.f32 %v2130_v46 }
0x145f   : > { %v2397_v31 = vpop.eup %2396 }
0x1460   : > { %v2399_v45 = vpop.eup %2398  ;;  %1451 = vrot.lane.b32.xlu1 %v2397_v31, %s2421_s24  ;;  %v1859_v31 = vrot.slane %v1851_v16, %v2651_v13 }
0x1461   : > { %1424 = vrot.lane.b32.xlu0 %v2399_v45, %s2421_s24  ;;  %v2401_v35 = vpop.eup %2400  ;;  %v1866_v45 = vrot.slane %v1852_v5, %v2651_v13 }
0x1462   : > { %v2403_v42 = vpop.eup %2402  ;;  %v1442_v33 = vadd.f32 1.0, %v2401_v35  ;;  %v1843_v35 = vcombine.high %v1835_v10, %v1835_v10 }
0x1463   : > { %v1415_v43 = vadd.f32 1.0, %v2403_v42  ;;  %v1796_v42 = vcombine.high %v1794_v15, %v1794_v15 }
0x1464   : > { %2404 = vrcp.f32 %v1442_v33 }
0x1465   : > { %2406 = vrcp.f32 %v1415_v43  ;;  %v1992_v43 = vrot.slane %v1906_v6, %v2594_v44 }
0x146e   : > { %v2405_v47 = vpop.eup %2404 }
0x146f   : > { %v2407_v38 = vpop.eup %2406  ;;  %v1449_v18 = vmul.f32 %v2405_v47, %v1447_v7  ;;  %v1942_v7 = vrot.slane %v1795_v30, %v2594_v44 }
0x1470   : > { %v1422_v32 = vmul.f32 %v2407_v38, %v1420_v17 }
0x14d2   : > { %v1452_v50 = vpop.permute.xlu1 %1451 }
0x14d3   : > { %v1454_v36 = vmul.f32 %v2405_v47, %v1452_v50  ;;  %v1425_v39 = vpop.permute.xlu0 %1424  ;;  %v1890_v50 = vcombine.high %v1888_v21, %v1888_v21 }
0x14d4   : > { %v1427_v8 = vmul.f32 %v2407_v38, %v1425_v39  ;;  %v1819_v39 = vrot.slane %v1805_v14, %v2651_v13 }
0x14d5   : > { %1456 = vrot.lane.b32.xlu1 %v1454_v36, %s2422_s25  ;;  %v1982_v36 = vrot.slane %v1889_v22, %v2594_v44  ;;  %v1986_v16 = vrot.slane %v1890_v50, %v2594_v44 }
0x14d6   : > { %1429 = vrot.lane.b32.xlu0 %v1427_v8, %s2422_s25  ;;  %v1844_v8 = vcombine.high %v1842_v29, %v1842_v29  ;;  %v1956_v51 = vrot.slane %v1819_v39, %v2594_v44 }
0x14d8   : > { %v1966_v57 = vrot.slane %v1844_v8, %v2594_v44 }
0x1547   : > { %v1457_v27 = vpop.permute.xlu1 %1456 }
0x1548   : > { %v1459_v34 = vadd.f32 %v1457_v27, %v1449_v18  ;;  %v1430_v37 = vpop.permute.xlu0 %1429  ;;  %v1976_v27 = vrot.slane %v1866_v45, %v2594_v44 }
0x1549   : > { %v1432_v41 = vadd.f32 %v1430_v37, %v1422_v32  ;;  %v1952_v32 = vrot.slane %v1812_v25, %v2594_v44  ;;  %v1962_v37 = vrot.slane %v1843_v35, %v2594_v44 }
0x154a   : > { %2408 = vtanh.f32 %v1459_v34 }
0x154b   : > { %2410 = vtanh.f32 %v1432_v41  ;;  %v1946_v41 = vrot.slane %v1796_v42, %v2594_v44 }
0x1554   : > { %v2409_v48 = vpop.eup %2408 }
0x1555   : > { %v2411_v49 = vpop.eup %2410  ;;  %1462 = vrot.lane.b32.xlu1 %v2409_v48, %s2421_s24 }
0x1556   : > { %1435 = vrot.lane.b32.xlu0 %v2411_v49, %s2421_s24 }
0x15c7   : > { %v1463_v1 = vpop.permute.xlu1 %1462 }
0x15c8   : > { %v1465_v26 = vmul.f32 %v2405_v47, %v1463_v1  ;;  %v1436_v4 = vpop.permute.xlu0 %1435 }
0x15c9   : > { %v1438_v46 = vmul.f32 %v2407_v38, %v1436_v4  ;;  %v1972_v38 = vrot.slane %v1859_v31, %v2594_v44 }
0x15ca   : > { %v1755_v33 = vrot.slane %v1465_v26, %v2651_v13 }
0x15cb   : > { %v1632_v47 = vcombine.high %v1438_v46, %v1438_v46 }
0x15cc   : > { %v1756_v17 = vcombine.high %v1755_v33, %v1755_v33  ;;  %v1763_v18 = vrot.slane %v1755_v33, %v2651_v13 }
0x15cd   : > { %v1639_v34 = vrot.slane %v1632_v47, %v2651_v13 }
0x15ce   : > { %v1770_v48 = vrot.slane %v1756_v17, %v2651_v13  ;;  %v2009_v49 = vsel %vm1727_vm2, %v1763_v18, %v1942_v7 }
0x15cf   : > { %v2011_v53 = vsel %vm1730_vm3, %v2009_v49, %v1952_v32  ;;  %v1640_v54 = vcombine.high %v1639_v34, %v1639_v34  ;;  %v1647_v55 = vrot.slane %v1639_v34, %v2651_v13 }
0x15d0   : > { %v2010_v3 = vsel %vm1727_vm2, %v1770_v48, %v1946_v41  ;;  %v2013_v58 = vsel %vm1733_vm4, %v2011_v53, %v1962_v37 }
0x15d1   : > { %v1654_v59 = vrot.slane %v1640_v54, %v2651_v13  ;;  %v1655_v23 = vcombine.high %v1647_v55, %v1647_v55  ;;  %v2015_v60 = vsel %vm1736_vm5, %v2013_v58, %v1972_v38  ;;  %v2012_v52 = vsel %vm1730_vm3, %v2010_v3, %v1956_v51 }
0x15d2   : > { %v2017_v24 = vsel %vm1739_vm6, %v2015_v60, %v1982_v36  ;;  %v2014_v61 = vsel %vm1733_vm4, %v2012_v52, %v1966_v57 }
0x15d3   : > { %v1656_v62 = vcombine.high %v1654_v59, %v1654_v59  ;;  %v1720_v63 = vrot.slane %v1655_v23, %v2594_v44  ;;  %v2019_v40 = vsel %vm1742_vm7, %v2017_v24, %v1992_v43  ;;  %v2016_v13 = vsel %vm1736_vm5, %v2014_v61, %v1976_v27 }
0x15d4   : > { %v2021_v0 = vsel %vm1745_vm8, %v2019_v40, %v2002_v12  ;;  %v2018_v9 = vsel %vm1739_vm6, %v2016_v13, %v1986_v16 }
0x15d5   : > { %v1746_v5 = vsel %vm1745_vm8, %v2877_v19, %v1720_v63  ;;  %v1724_v6 = vrot.slane %v1656_v62, %v2594_v44  ;;  %v2020_v10 = vsel %vm1742_vm7, %v2018_v9, %v1996_v56 }
0x15d6   : > { %2025 = vrot.lane.b32.xlu0 %v1746_v5, %s2422_s25  ;;  %v2022_v15 = vsel %vm1745_vm8, %v2020_v10, %v2006_v2 }
0x15d7   : > { %v1747_v21 = vsel %vm1745_vm8, %v2882_v20, %v1724_v6 }
0x15d8   : > { %2027 = vrot.lane.b32.xlu1 %v1747_v21, %s2422_s25 }
0x15da   : > { %2033 = vrot.lane.b32.xlu0 %v2021_v0, %s2421_s24 }
0x15dc   : > { %2035 = vrot.lane.b32.xlu1 %v2022_v15, %s2421_s24 }
0x1648   : > { %v2026_v12 = vpop.permute.xlu0 %2025 }
0x164a   : > { %v2028_v22 = vpop.permute.xlu1 %2027 }
0x164c   : > { %v2034_v44 = vpop.permute.xlu0 %2033 }
0x164d   : > { %v2039_v19 = vsel %vm220_vm0, %v2026_v12, %v2034_v44 }
0x164e   : > { %2041 = vst.msk [vmem:[%s197_s28] sm:$0xff] %vm320_vm1, %v2039_v19  ;;  %v2036_v14 = vpop.permute.xlu1 %2035 }
0x164f   : > { %v2040_v20 = vsel %vm220_vm0, %v2028_v22, %v2036_v14 }
0x1650   : > { %2042 = vst.msk [vmem:[%s197_s28 + $0x8] sm:$0xff] %vm320_vm1, %v2040_v20 }
0x1651 PF: > { %s14_s15 = sadd.s32 1, %s2418_s15  }
0x1652   : > { %p11_p4 = scmp.ge.s32.totalorder %s14_s15, 4  }
0x1654   :  { %13 = sbr.rel (!%p11_p4) target bundleno = 1 (0x1), region = 66 }

// kernel: bimpm_forward.4
= control target key start
LH: loop header
LB: loop body
LE: loop exit
PB: predicated region body
PF: predicated region fallthrough
CT: control target
= control target key end

     0   :  { %s3358_s18 = smov 0   ;;  %s3360_s19 = smov 0   ;;  %s4212_s0 = inlined_call_operand.vmem [shape: f32[2,2,8,64], index: 0, kind: input, shape index: {}, may-alias: {0,1}]   ;;  %s4213_s1 = inlined_call_operand.vmem [shape: f32[2,2,8,64], index: 1, kind: input, shape index: {}, may-alias: {0,1}]   ;;  %s4214_s2 = inlined_call_operand.vmem [shape: f32[32,24], index: 2, kind: input, shape index: {}]   ;;  %s4215_s3 = inlined_call_operand.vmem [shape: f32[32,24], index: 3, kind: input, shape index: {}]   ;;  %s4216_s4 = inlined_call_operand.vmem [shape: f32[16,32], index: 4, kind: input, shape index: {}]   ;;  %s4217_s5 = inlined_call_operand.vmem [shape: f32[8,2,2,64], index: 5, kind: output, shape index: {}]  }
   0x1   :  { %s3362_s20 = smov 0  }
   0x2 LB: > { %s3371_s21 = sadd.s32 4294967295, %s3316_s20   ;;  %s3373_s22 = sadd.s32 1, %s3316_s20   ;;  %s3316_s20 = sphi %s3362_s20, %s4233_s20   ;;  %s3312_s19 = sphi %s3360_s19, %s4232_s19   ;;  %s3308_s18 = sphi %s3358_s18, %s4231_s18  }
   0x3   : > { %s134_s23 = ssub.s32 %s3316_s20, %s3373_s22  ;;  %s137_s24 = sadd.s32 1, %s3312_s19 }
   0x4   : > { %p135_p0 = scmp.eq.s32.totalorder %s134_s23, 0  ;;  %p147_p1 = scmp.ne.s32.totalorder %s3312_s19, %s3308_s18 }
   0x5   : > { %p148_p2 = scmp.eq.s32.totalorder %s3371_s21, 1  ;;  %p2891_p3 = scmp.ge.s32.totalorder %s3316_s20, 1 }
   0x6   : > { %s3381_s25 = scalar_select %p135_p0, %s3312_s19, %s137_s24  }
   0x7   : > { %p3383_p4 = por %p148_p2, %p147_p1  ;;  %p196_p5 = scmp.lt.s32.totalorder %s3316_s20, 3 }
   0x9   : > { %p197_p6 = pnand %p2891_p3, %p196_p5 }
   0xb   : > { %200 = sbr.rel (%p197_p6) target bundleno = 1733 (0x6c5), region = 40 }
  0x12   : > { %p227_p7 = scmp.lt.s32.totalorder %s3371_s21, 1  ;;  %vm249_vm0 = vcmask 261120   ;;  %s3318_s10 = smov 96   ;;  %v4218_v19 = vlaneseq  ;;  %v3321_v34 = vmov 1966171168   ;;  %vm516_vm2 = vcmask 64512  }
  0x13   : > { %vm3184_vm1 = vmpackc.low %vm249_vm0, %vm249_vm0  ;;  %s3319_s11 = smov 8   ;;  %s3320_s12 = smov 120   ;;  %v802_v35 = vunpack.c.l.s4 %v3321_v34  ;;  %v3493_v51 = vld [vmem:[%s4216_s4] sm:$0xff]  ;;  %vm722_vm3 = vcmask 130112   ;;  %vm1730_vm4 = vcmask 1041409   ;;  %vm1732_vm5 = vcmask 1042434  }
  0x14   : > { %s228_s27 = scalar_select %p227_p7, %s3371_s21, 1  ;;  %v3449_v20 = vshrl.u32 %v4218_v19, 7  ;;  %vm1734_vm6 = vcmask 1043459   ;;  %vm1736_vm7 = vcmask 1044484   ;;  %vm1738_vm8 = vcmask 1045509  }
  0x15   : > { %v803_v36 = vunpack.c.0.s8 %v802_v35  ;;  %s3322_s17 = smov 32   ;;  %vm1740_vm9 = vcmask 1046534   ;;  %vm1742_vm10 = vcmask 1047559   ;;  %vm3325_vm13 = vmmov 0  }
  0x16   : > { %s2893_s28 = sshll.u32 %s228_s27, 3  ;;  %4225 = vst [vmem:[#allocation3_spill] sm:$0xff] %v3449_v20  ;;  %v3452_v21 = vsub.s32 0, %v3449_v20  ;;  %v3559_v34 = vsub.s32 5, %v3449_v20 }
  0x17   : > { %s3392_s6 = scalar_lea.vmem %s4213_s1, %s2893_s28  ;;  %s3397_s9 = scalar_lea.vmem %s4212_s0, %s2893_s28  ;;  %v3469_v37 = vsub.s32 %v803_v36, %v3449_v20  ;;  %v3564_v36 = vsub.s32 6, %v3449_v20 }
  0x18   : > { %v3400_v0 = vld [vmem:[%s3392_s6 + $0x10] sm:$0xff]  ;;  %v3403_v1 = vld [vmem:[%s3397_s9] sm:$0xff] }
  0x19   : > { %v3407_v2 = vmul.f32 %v3400_v0, %v3400_v0  ;;  %283 = vrot.lane.b32.xlu0 %v3400_v0, %s3318_s10  ;;  %3028 = vmatprep.mubr.msk.f32.mxu0 %vm249_vm0, %v3403_v1  ;;  %v3418_v3 = vmul.f32 %v3403_v1, %v3403_v1  ;;  %4226 = vst [vmem:[#allocation4_spill] sm:$0xff] %v3469_v37 }
  0x1a   : > { %3036 = vmatprep.subr.mxu1 %v3403_v1  ;;  %v807_v40 = vrot.slane %v3403_v1, %v3469_v37  ;;  %v800_v45 = vcombine.high %v3403_v1, %v3403_v1 }
  0x1b   : > { %271 = vrot.lane.b32.xlu1 %v3407_v2, %s3318_s10  ;;  %3037 = vmatpush3.msra.mxu1 %v3403_v1  ;;  %v265_v11 = vsel %vm249_vm0, %v3407_v2, 0.0  ;;  %v250_v26 = vsel %vm249_vm0, %v3418_v3, 0.0 }
  0x1c   : > { %v815_v44 = vcombine.high %v807_v40, %v807_v40  ;;  %v823_v46 = vrot.slane %v807_v40, %v3469_v37  ;;  %v814_v48 = vrot.slane %v800_v45, %v3469_v37 }
  0x1d   : > { %280 = vrot.lane.b32.xlu0 %v3403_v1, %s3318_s10 }
  0x1e   : > { %v837_v47 = vrot.slane %v815_v44, %v3469_v37  ;;  %v3488_v49 = vrot.slane %v823_v46, %v3452_v21  ;;  %v845_v50 = vcombine.high %v823_v46, %v823_v46  ;;  %v816_v54 = vcombine.high %v814_v48, %v814_v48 }
  0x1f   : > { %256 = vrot.lane.b32.xlu1 %v3418_v3, %s3318_s10  ;;  %v830_v57 = vrot.slane %v814_v48, %v3469_v37 }
  0x20   : > { %v3496_v52 = vrot.slane %v837_v47, %v3452_v21  ;;  %v847_v53 = vcombine.high %v837_v47, %v837_v47  ;;  %v1183_v55 = vmul.f32 %v3488_v49, %v3493_v51  ;;  %v3501_v56 = vrot.slane %v845_v50, %v3452_v21 }
  0x21   : > { %v844_v61 = vrot.slane %v816_v54, %v3469_v37  ;;  %v3517_v63 = vrot.slane %v830_v57, %v3452_v21  ;;  %v846_v45 = vcombine.high %v830_v57, %v830_v57 }
  0x22   : > { %v1184_v59 = vmul.f32 %v3496_v52, %v3493_v51  ;;  %v3508_v60 = vrot.slane %v847_v53, %v3452_v21  ;;  %v1185_v62 = vmul.f32 %v3501_v56, %v3493_v51 }
  0x23   : > { %v848_v46 = vcombine.high %v844_v61, %v844_v61  ;;  %v3579_v47 = vrot.slane %v846_v45, %v3452_v21 }
  0x25   : > { %v3582_v48 = vrot.slane %v848_v46, %v3452_v21 }
  0x27   : > { %v1190_v53 = vmul.f32 %v3582_v48, %v3493_v51 }
  0x8b   : > { %v3425_v4 = vpop.permute.xlu0 %283 }
  0x8c   : > { %v3183_v5 = vpack.c.bf16 %v3425_v4, %v3400_v0  ;;  %3213 = vmatprep.subr.msk.mxu1 %vm249_vm0, %v3425_v4 }
  0x8d   : > { %v3433_v6 = vpop.permute.xlu1 %271 }
  0x8e   : > { %v274_v7 = vsel %vm249_vm0, %v3433_v6, 0.0  ;;  %3185 = vmatprep.subr.msk.bf16.mxu0 %vm3184_vm1, %v3183_v5 }
  0x8f   : > { %275 = vadd.xlane.f32.xlu0 %v274_v7  ;;  %3188 = vmatpush3.bf16.xpose.msk.msra.mxu0 %vm3184_vm1, %v3183_v5  ;;  %v281_v10 = vpop.permute.xlu0 %280  ;;  %v1186_v5 = vmul.f32 %v3508_v60, %v3493_v51  ;;  %v3523_v7 = vrot.slane %v844_v61, %v3452_v21  ;;  %vm2534_vm1 = vcmask 130048  }
  0x90   : > { %3031 = vmatprep.subr.mxu0 %v3400_v0 }
  0x91   : > { %v3438_v8 = vpop.permute.xlu1 %256 }
  0x92   : > { %v259_v9 = vsel %vm249_vm0, %v3438_v8, 0.0 }
  0x93   : > { %260 = vadd.xlane.f32.xlu1 %v259_v9  ;;  %v1187_v9 = vmul.f32 %v3517_v63, %v3493_v51 }
  0x96   : > { %3029 = vmatmul.mubr.msk.f32.vlgmr.msra.gmra.mrb[0].mxu0 %vm249_vm0, %v281_v10 }
  0x97   : > { %3032 = vmatpush3.msra.mxu0 %v3400_v0  ;;  %266 = vadd.xlane.f32.xlu1 %v265_v11  ;;  %v1188_v11 = vmul.f32 %v3523_v7, %v3493_v51 }
  0x98   : > { %3041 = vmatprep.subr.msk.mxu0 %vm249_vm0, %v3425_v4 }
 0x11c   : > { %v276_v12 = vpop.xlane.xlu0 %275 }
 0x11d   : > { %v277_v13 = vmax.f32 %v276_v12, 1e-16 }
 0x11f   : > { %3252 = vrsqrt.f32 %v277_v13 }
 0x120   : > { %v261_v17 = vpop.xlane.xlu1 %260 }
 0x121   : > { %v262_v18 = vmax.f32 %v261_v17, 1e-16 }
 0x123   : > { %3254 = vrsqrt.f32 %v262_v18 }
 0x124   : > { %v267_v27 = vpop.xlane.xlu1 %266 }
 0x125   : > { %v268_v28 = vmax.f32 %v267_v27, 1e-16  ;;  %v3544_v27 = vsub.s32 2, %v3449_v20 }
 0x127   : > { %3256 = vrsqrt.f32 %v268_v28 }
 0x129   : > { %v3253_v14 = vpop.eup %3252 }
 0x12a   : > { %406 = vxpose.xlu0.b32.start.end [1/1] (short) (narrow) %v3253_v14, 8 }
 0x12d   : > { %v3458_v24 = vpop.eup %3254 }
 0x131   : > { %v3257_v29 = vpop.eup %3256 }
 0x169   : > { %v3030_v15 = vpop.f32.mrb[0].mxu0 }
 0x16a   : > { %v359_v16 = vpop.f32.mrb[1].mxu0 }
 0x1aa   : > { %v3454_v22 = vpop.trf.xlu0 }
 0x1ab   : > { %v441_v23 = vrot.slane %v3454_v22, %v3452_v21 }
 0x1ad   : > { %v442_v25 = vmul.f32 %v3458_v24, %v441_v23  ;;  %v3538_v23 = vsub.s32 1, %v3449_v20 }
 0x1af   : > { %444 = vrot.lane.b32.xlu1 %v442_v25, %s3319_s11 }
 0x1d3   : > { %251 = vadd.xlane.f32.xlu1 %v250_v26 }
 0x206   : > { %368 = vxpose.xlu1.b32.start.end [1/1] (short) (narrow) %v3257_v29, 8  ;;  %v3549_v29 = vsub.s32 3, %v3449_v20 }
 0x221   : > { %v445_v30 = vpop.permute.xlu1 %444 }
 0x222   : > { %v3464_v31 = vmul.f32 %v3030_v15, %v445_v30 }
 0x224   : > { %449 = vrot.lane.b32.xlu0 %v3464_v31, %s3320_s12  ;;  %v723_v10 = vsel %vm722_vm3, %v3464_v31, 0.0  ;;  %v971_v18 = vrot.slane %v3464_v31, %v3452_v21  ;;  %v979_v25 = vrot.slane %v3464_v31, %v3538_v23  ;;  %v987_v28 = vrot.slane %v3464_v31, %v3544_v27 }
 0x225   : > { %v724_v12 = vrot.slane %v723_v10, 4  ;;  %v995_v30 = vrot.slane %v3464_v31, %v3549_v29  ;;  %v1011_v35 = vrot.slane %v3464_v31, %v3559_v34  ;;  %vm2536_vm3 = vcmask 195584  }
 0x227   : > { %v725_v13 = vadd.f32 %v724_v12, %v723_v10 }
 0x229   : > { %v726_v14 = vrot.slane %v725_v13, 2 }
 0x22b   : > { %v727_v15 = vadd.f32 %v726_v14, %v725_v13 }
 0x260   : > { %v252_v32 = vpop.xlane.xlu1 %251 }
 0x261   : > { %v253_v33 = vmax.f32 %v252_v32, 1e-16  ;;  %v3554_v32 = vsub.s32 4, %v3449_v20 }
 0x263   : > { %3258 = vrsqrt.f32 %v253_v33  ;;  %v1003_v33 = vrot.slane %v3464_v31, %v3554_v32 }
 0x26d   : > { %v3474_v41 = vpop.eup %3258 }
 0x286   : > { %v384_v38 = vpop.trf.xlu1 }
 0x287   : > { %v403_v39 = vrot.slane %v384_v38, %v3452_v21  ;;  %v1019_v38 = vrot.slane %v3464_v31, %v3564_v36 }
 0x289   : > { %v404_v42 = vmul.f32 %v3474_v41, %v403_v39  ;;  %v3569_v39 = vsub.s32 7, %v3449_v20 }
 0x28b   : > { %v3477_v43 = vmul.f32 %v404_v42, %v359_v16  ;;  %v728_v16 = vrot.slane %v727_v15, 1  ;;  %v1027_v40 = vrot.slane %v3464_v31, %v3569_v39  ;;  %v247_v42 = vld [vmem:[%s4216_s4 + $0x8] sm:$0xff]  ;;  %v1189_v31 = vmul.f32 %v3579_v47, %v3493_v51 }
 0x28d   : > { %451 = vxpose.xlu0.b32.start.end [1/1] (short) (narrow) %v3477_v43, 8  ;;  %3033 = vmatprep.mubr.msk.f32.mxu0 %vm516_vm2, %v3477_v43  ;;  %v729_v17 = vadd.f32 %v728_v16, %v727_v15 }
 0x296   : > { %v450_v58 = vpop.permute.xlu0 %449 }
 0x297   : > { %484 = vxpose.xlu1.b32.start.end [1/1] (short) (narrow) %v450_v58, 8  ;;  %3034 = vmatmul.mubr.msk.f32.vlgmr.msra.gmra.mrb[2].mxu0 %vm516_vm2, %v450_v58  ;;  %v681_v26 = vsel %vm516_vm2, %v450_v58, 0.0 }
 0x298   : > { %3042 = vmatpush3.xpose.msk.msra.mxu0 %vm249_vm0, %v3425_v4  ;;  %3043 = vmatprep.mubr.msk.f32.mxu0 %vm249_vm0, %v1183_v55  ;;  %v4219_v55 = vmov 0  }
 0x29b   : > { %3044 = vmatmul.mubr.msk.f32.vlgmr.msra.gmra.mrb[4].mxu0 %vm249_vm0, %v1184_v59 }
 0x29c   : > { %3046 = vmatprep.mubr.msk.f32.mxu0 %vm249_vm0, %v1185_v62 }
 0x29f   : > { %3047 = vmatmul.mubr.msk.f32.gmra.mrb[6].mxu0 %vm249_vm0, %v1186_v5 }
 0x2a0   : > { %3049 = vmatprep.mubr.msk.f32.mxu0 %vm249_vm0, %v1187_v9 }
 0x2a3   : > { %3050 = vmatmul.mubr.msk.f32.gmra.mrb[8].mxu0 %vm249_vm0, %v1188_v11 }
 0x2b6   : > { %731 = vrot.lane.b32.xlu0 %v729_v17, %s3320_s12 }
 0x2b7   : > { %3249 = vset.pattern.permute.xlu0 %v4219_v55 }
 0x2ba   : > { %974 = vbcast.lane.b32.xlu0 %v971_v18, 264 }
 0x2be   : > { %682 = vadd.xlane.f32.xlu1 %v681_v26  ;;  %982 = vbcast.lane.b32.xlu0 %v979_v25, 264 }
 0x2c2   : > { %990 = vbcast.lane.b32.xlu0 %v987_v28, 264 }
 0x2c6   : > { %998 = vbcast.lane.b32.xlu0 %v995_v30, 264 }
 0x2ca   : > { %1006 = vbcast.lane.b32.xlu0 %v1003_v33, 264 }
 0x2ce   : > { %1014 = vbcast.lane.b32.xlu0 %v1011_v35, 264 }
 0x2d2   : > { %1022 = vbcast.lane.b32.xlu0 %v1019_v38, 264 }
 0x2d6   : > { %1030 = vbcast.lane.b32.xlu0 %v1027_v40, 264 }
 0x2da   : > { %1192 = vrot.lane.b32.xlu0 %v247_v42, %s3322_s17 }
 0x30d   : > { %v467_v44 = vpop.trf.xlu0 }
 0x30e   : > { %3038 = vmatprep.mubr.msk.f32.mxu1 %vm516_vm2, %v467_v44 }
 0x317   : > { %v500_v50 = vpop.trf.xlu1 }
 0x318   : > { %3039 = vmatmul.mubr.msk.f32.vlgmr.msra.gmra.mrb[0].mxu1 %vm516_vm2, %v500_v50 }
 0x319   : > { %3214 = vmatpush3.xpose.msk.msra.mxu1 %vm249_vm0, %v3425_v4  ;;  %3052 = vmatprep.mubr.msk.f32.mxu1 %vm249_vm0, %v1189_v31 }
 0x31c   : > { %3053 = vmatmul.mubr.msk.f32.vlgmr.msra.gmra.mrb[2].mxu1 %vm249_vm0, %v1190_v53 }
 0x328   : > { %v732_v54 = vpop.permute.xlu0 %731 }
 0x329   : > { %734 = vxpose.xlu1.b32.start.end [1/1] (short) (narrow) %v732_v54, 8 }
 0x32c   : > { %v975_v57 = vpop.permute.xlu0 %974 }
 0x32d   : > { %v1119_v58 = vmul.f32 %v3400_v0, %v975_v57  ;;  %v1032_v40 = vmul.f32 %v975_v57, %v3488_v49 }
 0x32f   : > { %v1127_v51 = vsel %vm249_vm0, %v1119_v58, -inf }
 0x330   : > { %v983_v59 = vpop.permute.xlu0 %982  ;;  %v1128_v9 = vrot.slane %v1127_v51, 4 }
 0x331   : > { %v1120_v61 = vmul.f32 %v3400_v0, %v983_v59  ;;  %v1033_v42 = vmul.f32 %v983_v59, %v3496_v52 }
 0x332   : > { %v1129_v14 = vmax.f32 %v1127_v51, %v1128_v9 }
 0x333   : > { %v1134_v62 = vsel %vm249_vm0, %v1120_v61, -inf  ;;  %v1041_v57 = vsel %vm249_vm0, %v1033_v42, -inf }
 0x334   : > { %v991_v4 = vpop.permute.xlu0 %990  ;;  %v1135_v10 = vrot.slane %v1134_v62, 4  ;;  %v1130_v28 = vrot.slane %v1129_v14, 2 }
 0x335   : > { %v1121_v5 = vmul.f32 %v3400_v0, %v991_v4  ;;  %v1034_v53 = vmul.f32 %v991_v4, %v3501_v56 }
 0x336   : > { %v1136_v16 = vmax.f32 %v1134_v62, %v1135_v10  ;;  %v1131_v50 = vmax.f32 %v1129_v14, %v1130_v28 }
 0x337   : > { %v1141_v11 = vsel %vm249_vm0, %v1121_v5, -inf  ;;  %v1040_v5 = vsel %vm249_vm0, %v1032_v40, -inf }
 0x338   : > { %v999_v12 = vpop.permute.xlu0 %998  ;;  %v1142_v15 = vrot.slane %v1141_v11, 4  ;;  %v1137_v33 = vrot.slane %v1136_v16, 2 }
 0x339   : > { %v1122_v13 = vmul.f32 %v3400_v0, %v999_v12 }
 0x33a   : > { %v1143_v30 = vmax.f32 %v1141_v11, %v1142_v15  ;;  %v1138_v58 = vmax.f32 %v1136_v16, %v1137_v33  ;;  %v1042_v15 = vsel %vm249_vm0, %v1034_v53, -inf }
 0x33b   : > { %v1148_v17 = vsel %vm249_vm0, %v1122_v13, -inf }
 0x33c   : > { %v1149_v18 = vrot.slane %v1148_v17, 4  ;;  %v1007_v25 = vpop.permute.xlu0 %1006  ;;  %v1144_v54 = vrot.slane %v1143_v30, 2  ;;  %v1139_v28 = vrot.slane %v1138_v58, 1 }
 0x33d   : > { %v1123_v26 = vmul.f32 %v3400_v0, %v1007_v25  ;;  %v1036_v59 = vmul.f32 %v1007_v25, %v3517_v63 }
 0x33e   : > { %v1150_v35 = vmax.f32 %v1148_v17, %v1149_v18  ;;  %v1145_v16 = vmax.f32 %v1143_v30, %v1144_v54  ;;  %v1035_v17 = vmul.f32 %v999_v12, %v3508_v60 }
 0x33f   : > { %v1155_v38 = vsel %vm249_vm0, %v1123_v26, -inf  ;;  %v1132_v26 = vrot.slane %v1131_v50, 1 }
 0x340   : > { %v1015_v44 = vpop.permute.xlu0 %1014  ;;  %v1156_v45 = vrot.slane %v1155_v38, 4  ;;  %v1151_v61 = vrot.slane %v1150_v35, 2  ;;  %v1146_v12 = vrot.slane %v1145_v16, 1  ;;  %v1043_v54 = vsel %vm249_vm0, %v1035_v17, -inf }
 0x341   : > { %v1037_v46 = vmul.f32 %v1015_v44, %v3523_v7  ;;  %v1124_v31 = vmul.f32 %v3400_v0, %v1015_v44  ;;  %v1133_v17 = vmax.f32 %v1131_v50, %v1132_v26 }
 0x342   : > { %v1157_v51 = vmax.f32 %v1155_v38, %v1156_v45  ;;  %v1152_v33 = vmax.f32 %v1150_v35, %v1151_v61  ;;  %v1044_v38 = vsel %vm249_vm0, %v1036_v59, -inf }
 0x343   : > { %v1162_v62 = vsel %vm249_vm0, %v1124_v31, -inf  ;;  %v1046_v13 = vsel %vm249_vm0, %v1037_v46, -inf }
 0x344   : > { %v1163_v9 = vrot.slane %v1162_v62, 4  ;;  %v1023_v10 = vpop.permute.xlu0 %1022  ;;  %v1158_v11 = vrot.slane %v1157_v51, 2  ;;  %v1047_v40 = vmax.f32 %v1041_v57, %v1046_v13  ;;  %v1153_v61 = vrot.slane %v1152_v33, 1 }
 0x345   : > { %v1038_v14 = vmul.f32 %v1023_v10, %v3579_v47  ;;  %v1125_v4 = vmul.f32 %v3400_v0, %v1023_v10 }
 0x346   : > { %v1164_v18 = vmax.f32 %v1162_v62, %v1163_v9  ;;  %v1159_v46 = vmax.f32 %v1157_v51, %v1158_v11  ;;  %v1045_v9 = vmax.f32 %v1040_v5, %v1044_v38  ;;  %v1154_v5 = vmax.f32 %v1152_v33, %v1153_v61 }
 0x347   : > { %v1169_v25 = vsel %vm249_vm0, %v1125_v4, -inf  ;;  %v1048_v31 = vsel %vm249_vm0, %v1038_v14, -inf  ;;  %v1140_v14 = vmax.f32 %v1138_v58, %v1139_v28  ;;  %v1935_v33 = vmul.f32 %v1133_v17, %v1133_v17 }
 0x348   : > { %v1165_v42 = vrot.slane %v1164_v18, 2  ;;  %v1170_v44 = vrot.slane %v1169_v25, 4  ;;  %v1031_v45 = vpop.permute.xlu0 %1030  ;;  %v1049_v10 = vmax.f32 %v1042_v15, %v1048_v31  ;;  %v1160_v4 = vrot.slane %v1159_v46, 1 }
 0x349   : > { %v1039_v53 = vmul.f32 %v1031_v45, %v3582_v48  ;;  %v1126_v30 = vmul.f32 %v3400_v0, %v1031_v45  ;;  %v1052_v19 = vmax.f32 %v1045_v9, %v1047_v40  ;;  %v1923_v58 = vsel %vm1730_vm4, %v1140_v14, %v1133_v17 }
 0x34a   : > { %v1166_v62 = vmax.f32 %v1164_v18, %v1165_v42  ;;  %v1171_v35 = vmax.f32 %v1169_v25, %v1170_v44  ;;  %v1147_v18 = vmax.f32 %v1145_v16, %v1146_v12  ;;  %v1161_v15 = vmax.f32 %v1159_v46, %v1160_v4 }
 0x34b   : > { %v1050_v59 = vsel %vm249_vm0, %v1039_v53, -inf  ;;  %v1176_v57 = vsel %vm249_vm0, %v1126_v30, -inf  ;;  %v1936_v28 = vmul.f32 %v1140_v14, %v1140_v14  ;;  %v683_v30 = vpop.xlane.xlu1 %682  ;;  %v1420_v17 = vrot.slane %v3474_v41, %v3538_v23 }
 0x34c   : > { %v1172_v13 = vrot.slane %v1171_v35, 2  ;;  %v1051_v51 = vmax.f32 %v1043_v54, %v1050_v59  ;;  %v1177_v11 = vrot.slane %v1176_v57, 4  ;;  %v1167_v55 = vrot.slane %v1166_v62, 1 }
 0x34d   : > { %v1937_v50 = vmul.f32 %v1147_v18, %v1147_v18  ;;  %v1924_v26 = vsel %vm1732_vm5, %v1147_v18, %v1923_v58  ;;  %v1939_v31 = vmul.f32 %v1161_v15, %v1161_v15  ;;  %v1954_v54 = vsel %vm1730_vm4, %v1936_v28, %v1935_v33 }
 0x34e   : > { %v1173_v45 = vmax.f32 %v1171_v35, %v1172_v13  ;;  %v1178_v37 = vmax.f32 %v1176_v57, %v1177_v11  ;;  %v1053_v20 = vmax.f32 %v1049_v10, %v1051_v51  ;;  %v1168_v40 = vmax.f32 %v1166_v62, %v1167_v55 }
 0x34f   : > { %v1925_v46 = vsel %vm1734_vm6, %v1154_v5, %v1924_v26  ;;  %v1955_v61 = vsel %vm1732_vm5, %v1937_v50, %v1954_v54  ;;  %v773_v10 = vmax.f32 %v683_v30, 1e-08  ;;  %v774_v13 = vmin.f32 %v683_v30, -1e-08 }
 0x350   : > { %v1174_v25 = vrot.slane %v1173_v45, 1  ;;  %v1179_v38 = vrot.slane %v1178_v37, 2  ;;  %v3626_v42 = vmax.f32 %v1052_v19, %v1053_v20  ;;  %v1938_v19 = vmul.f32 %v1154_v5, %v1154_v5 }
 0x351   : > { %v1926_v53 = vsel %vm1736_vm7, %v1161_v15, %v1925_v46  ;;  %v1940_v12 = vmul.f32 %v1168_v40, %v1168_v40  ;;  %vm772_vm11 = vcmp.ge.f32.partialorder %v683_v30, 0.0  ;;  %v1416_v18 = vrot.slane %v3474_v41, %v3452_v21 }
 0x352   : > { %v1180_v44 = vmax.f32 %v1178_v37, %v1179_v38  ;;  %2262 = vrot.lane.b32.xlu0 %v3626_v42, %s3322_s17  ;;  %v1175_v16 = vmax.f32 %v1173_v45, %v1174_v25  ;;  %v1927_v37 = vsel %vm1738_vm8, %v1168_v40, %v1926_v53  ;;  %v1956_v57 = vsel %vm1734_vm6, %v1938_v19, %v1955_v61 }
 0x353   : > { %v1957_v51 = vsel %vm1736_vm7, %v1939_v31, %v1956_v57  ;;  %v775_v45 = vsel %vm772_vm11, %v773_v10, %v774_v13  ;;  %v1454_v5 = vmul.f32 %v1420_v17, %v3454_v22  ;;  %v1428_v25 = vrot.slane %v3474_v41, %v3549_v29 }
 0x354   : > { %v1181_v20 = vrot.slane %v1180_v44, 1  ;;  %v1928_v62 = vsel %vm1740_vm9, %v1175_v16, %v1927_v37  ;;  %v1941_v35 = vmul.f32 %v1175_v16, %v1175_v16  ;;  %v1958_v11 = vsel %vm1738_vm8, %v1940_v12, %v1957_v51 }
 0x355   : > { %3260 = vrcp.f32 %v775_v45  ;;  %v1453_v58 = vmul.f32 %v1416_v18, %v3454_v22  ;;  %v1424_v28 = vrot.slane %v3474_v41, %v3544_v27  ;;  %v1468_v16 = vrot.slane %v1454_v5, %v3452_v21 }
 0x356   : > { %v1182_v55 = vmax.f32 %v1180_v44, %v1181_v20  ;;  %v1959_v14 = vsel %vm1740_vm9, %v1941_v35, %v1958_v11  ;;  %v1456_v26 = vmul.f32 %v1428_v25, %v3454_v22  ;;  %v1436_v33 = vrot.slane %v3474_v41, %v3559_v34 }
 0x357   : > { %v1464_v20 = vrot.slane %v1453_v58, %v3452_v21  ;;  %v1455_v46 = vmul.f32 %v1424_v28, %v3454_v22  ;;  %v1432_v31 = vrot.slane %v3474_v41, %v3554_v32  ;;  %v678_v18 = vsel %vm516_vm2, %v3477_v43, 0.0 }
 0x358   : > { %v1929_v9 = vsel %vm1742_vm10, %v1182_v55, %v1928_v62  ;;  %v1942_v59 = vmul.f32 %v1182_v55, %v1182_v55  ;;  %v1476_v37 = vrot.slane %v1456_v26, %v3452_v21  ;;  %v1458_v12 = vmul.f32 %v1436_v33, %v3454_v22 }
 0x359   : > { %1930 = vrot.lane.b32.xlu0 %v1929_v9, %s3322_s17  ;;  %v1472_v62 = vrot.slane %v1455_v46, %v3452_v21  ;;  %v1457_v35 = vmul.f32 %v1432_v31, %v3454_v22  ;;  %v684_v5 = vrot.slane %v678_v18, 4  ;;  %v4227_v46 = vmov 0  }
 0x35a   : > { %v1960_v4 = vsel %vm1742_vm10, %v1942_v59, %v1959_v14  ;;  %v1484_v57 = vrot.slane %v1458_v12, %v3452_v21  ;;  %v880_v31 = vrot.slane %v3477_v43, %v3554_v32  ;;  %v3324_v12 = vmov 0.0|0.0  }
 0x35b   : > { %v1480_v13 = vrot.slane %v1457_v35, %v3452_v21  ;;  %v685_v25 = vadd.f32 %v684_v5, %v678_v18  ;;  %3189 = vmatprep.subr.bf16.mxu0 %v3324_v12  ;;  %3195 = vmatprep.subr.bf16.mxu1 %v3324_v12  ;;  %v3326_v5 = vmov 0.0  }
 0x35c   : > { %3075 = vmatprep.mubr.msk.f32.mxu0 %vm3325_vm13, %v3326_v5 }
 0x35d   : > { %1961 = vrot.lane.b32.xlu0 %v1960_v4, %s3322_s17 }
 0x35f   : > { %v3261_v38 = vpop.eup %3260 }
 0x36a   : > { %v3035_v15 = vpop.f32.mrb[2].mxu0 }
 0x36b   : > { %v3656_v40 = vmul.f32 %v3261_v38, %v3035_v15  ;;  %v3658_v44 = vpop.f32.mrb[3].mxu0  ;;  %v686_v38 = vrot.slane %v685_v25, 2 }
 0x36d   : > { %v1934_v50 = vmul.f32 %v3656_v40, %v3656_v40  ;;  %v687_v15 = vadd.f32 %v686_v38, %v685_v25 }
 0x36e   : > { %v3045_v19 = vpop.f32.mrb[4].mxu0 }
 0x36f   : > { %v1494_v53 = vmul.f32 %v3045_v19, %v1468_v16  ;;  %v1333_v30 = vpop.f32.mrb[5].mxu0  ;;  %1944 = vrot.lane.b32.xlu1 %v1934_v50, %s3322_s17  ;;  %v688_v58 = vrot.slane %v687_v15, 1  ;;  %v3695_v19 = vpop.permute.xlu0 %1192 }
 0x370   : > { %v3671_v55 = vmul.f32 %v1464_v20, %v1333_v30  ;;  %v1197_v20 = vmul.f32 %v3695_v19, %v3501_v56  ;;  %v901_v30 = vrot.slane %v3477_v43, %v3569_v39  ;;  %v1198_v38 = vmul.f32 %v3695_v19, %v3508_v60 }
 0x371   : > { %v3686_v4 = vsel %vm516_vm2, %v1494_v53, -inf  ;;  %v689_v28 = vadd.f32 %v688_v58, %v687_v15  ;;  %v887_v53 = vrot.slane %v3477_v43, %v3559_v34 }
 0x372   : > { %v3048_v54 = vpop.f32.mrb[6].mxu0 }
 0x373   : > { %v3677_v61 = vmul.f32 %v3048_v54, %v1476_v37  ;;  %v1343_v9 = vpop.f32.mrb[7].mxu0  ;;  %v1202_v37 = vmul.f32 %v3695_v19, %v3582_v48  ;;  %v238_v54 = vld [vmem:[%s4214_s2] sm:$0xff] }
 0x374   : > { %v3679_v59 = vmul.f32 %v1472_v62, %v1343_v9  ;;  %v239_v62 = vld [vmem:[%s4214_s2 + $0x8] sm:$0xff]  ;;  %v1195_v9 = vmul.f32 %v3695_v19, %v3488_v49 }
 0x375   : > { %v3190_v35 = vpack.c.bf16 %v239_v62, %v238_v54 }
 0x376   : > { %v3051_v10 = vpop.f32.mrb[8].mxu0  ;;  %v3777_v62 = vsel %vm516_vm2, %v3679_v59, -inf  ;;  %v866_v59 = vrot.slane %v3477_v43, %v3544_v27 }
 0x377   : > { %v1498_v51 = vmul.f32 %v3051_v10, %v1484_v57  ;;  %v1353_v11 = vpop.f32.mrb[9].mxu0  ;;  %3191 = vmatpush3.bf16.msra.mxu0 %v3190_v35  ;;  %v240_v57 = vld [vmem:[%s4214_s2 + $0x10] sm:$0xff]  ;;  %v241_v10 = vld [vmem:[%s4214_s2 + $0x18] sm:$0xff] }
 0x378   : > { %v3683_v14 = vmul.f32 %v1480_v13, %v1353_v11  ;;  %3192 = vmatprep.subr.bf16.mxu0 %v3324_v12  ;;  %v1444_v13 = vrot.slane %v3474_v41, %v3569_v39  ;;  %v1719_v11 = vrot.slane %v3400_v0, %v3569_v39 }
 0x379   : > { %v3689_v45 = vsel %vm516_vm2, %v1498_v51, -inf  ;;  %v3193_v51 = vpack.c.bf16 %v241_v10, %v240_v57 }
 0x37a   : > { %v1639_v17 = vmax.f32 %v3686_v4, %v3689_v45  ;;  %v1720_v25 = vmul.f32 %v1719_v11, %v3403_v1  ;;  %v1460_v15 = vmul.f32 %v1444_v13, %v3454_v22 }
 0x37b   : > { %3194 = vmatpush3.bf16.msra.mxu0 %v3193_v51 }
 0x37c   : > { %3201 = vmatprep.subr.bf16.mxu0 %v3324_v12 }
 0x37e   : > { %3076 = vmatmul.mubr.msk.f32.vlgmr.msra.gmra.mrb[10].mxu0 %vm249_vm0, %v1720_v25 }
 0x37f   : > { %3078 = vmatprep.mubr.msk.f32.mxu0 %vm3325_vm13, %v3326_v5  ;;  %3203 = vmatpush3.bf16.msra.mxu0 %v3190_v35 }
 0x380   : > { %3204 = vmatprep.subr.bf16.mxu0 %v3324_v12 }
 0x383   : > { %3206 = vmatpush3.bf16.msra.mxu0 %v3193_v51  ;;  %v2267_v51 = vmul.f32 %v3626_v42, %v3626_v42 }
 0x398   : > { %690 = vxpose.xlu1.b32.start.end [1/1] (short) (narrow) %v689_v28, 8 }
 0x3a9   : > { %v750_v50 = vpop.trf.xlu1 }
 0x3aa   : > { %vm789_vm12 = vcmp.ge.f32.partialorder %v750_v50, 0.0  ;;  %v790_v16 = vmax.f32 %v750_v50, 1e-08  ;;  %v791_v26 = vmin.f32 %v750_v50, -1e-08  ;;  %v1492_v50 = vrot.slane %v1460_v15, %v3452_v21 }
 0x3ab   : > { %v873_v15 = vrot.slane %v3477_v43, %v3549_v29 }
 0x3ac   : > { %v792_v33 = vsel %vm789_vm12, %v790_v16, %v791_v26  ;;  %v3757_v16 = vsel %vm516_vm2, %v3683_v14, -inf }
 0x3ad   : > { %795 = vperm.xlu0 %3249, %v792_v33  }
 0x3b6   : > { %1215 = vrot.lane.b32.xlu1 %v1197_v20, %s3318_s10 }
 0x3b7   : > { %3250 = vset.pattern.permute.xlu1 %v4227_v46 }
 0x3ba   : > { %882 = vbcast.lane.b32.xlu1 %v880_v31, 256  ;;  %v852_v31 = vrot.slane %v3477_v43, %v3452_v21 }
 0x3be   : > { %889 = vbcast.lane.b32.xlu1 %v887_v53, 256  ;;  %v3764_v53 = vsel %vm516_vm2, %v3671_v55, -inf }
 0x3bf   : > { %v1638_v14 = vmax.f32 %v3764_v53, %v3757_v16 }
 0x3c1   : > { %v3791_v57 = vmax.f32 %v1638_v14, %v1639_v17  ;;  %v1908_v14 = vrot.slane %v3400_v0, %v3452_v21 }
 0x3c2   : > { %903 = vbcast.lane.b32.xlu1 %v901_v30, 256 }
 0x3c6   : > { %1225 = vrot.lane.b32.xlu1 %v1202_v37, %s3318_s10  ;;  %v3768_v37 = vsel %vm516_vm2, %v3677_v61, -inf }
 0x3cc   : > { %679 = vadd.xlane.f32.xlu0 %v678_v18  ;;  %v1440_v18 = vrot.slane %v3474_v41, %v3564_v36 }
 0x3ce   : > { %v1459_v58 = vmul.f32 %v1440_v18, %v3454_v22 }
 0x3d0   : > { %v1488_v33 = vrot.slane %v1459_v58, %v3452_v21  ;;  %v1199_v58 = vmul.f32 %v3695_v19, %v3517_v63 }
 0x3e2   : > { %1911 = vrot.lane.b32.xlu0 %v3656_v40, %s3322_s17  ;;  %v1196_v40 = vmul.f32 %v3695_v19, %v3496_v52 }
 0x3e6   : > { %1211 = vrot.lane.b32.xlu0 %v1195_v9, %s3318_s10  ;;  %v859_v9 = vrot.slane %v3477_v43, %v3538_v23 }
 0x3ea   : > { %1213 = vrot.lane.b32.xlu0 %v1196_v40, %s3318_s10  ;;  %v2263_v40 = vpop.permute.xlu0 %2262 }
 0x3eb   : > { %v3040_v41 = vpop.f32.mrb[0].mxu1 }
 0x3ec   : > { %v3750_v28 = vpop.f32.mrb[1].mxu1 }
 0x3ee   : > { %1217 = vrot.lane.b32.xlu0 %v1198_v38, %s3318_s10  ;;  %v1931_v11 = vpop.permute.xlu0 %1930 }
 0x3ef   : > { %v3054_v26 = vpop.f32.mrb[2].mxu1 }
 0x3f0   : > { %v1500_v20 = vmul.f32 %v3054_v26, %v1492_v50  ;;  %v1363_v46 = vpop.f32.mrb[3].mxu1  ;;  %v1200_v50 = vmul.f32 %v3695_v19, %v3523_v7  ;;  %v243_v26 = vld [vmem:[%s4215_s3 + $0x8] sm:$0xff] }
 0x3f1   : > { %v1499_v30 = vmul.f32 %v1488_v33, %v1363_v46  ;;  %v244_v46 = vld [vmem:[%s4215_s3 + $0x10] sm:$0xff] }
 0x3f2   : > { %v3773_v54 = vsel %vm516_vm2, %v1500_v20, -inf  ;;  %854 = vbcast.lane.b32.xlu0 %v852_v31, 256  ;;  %v3802_v18 = vpop.permute.xlu0 %1961  ;;  %v894_v20 = vrot.slane %v3477_v43, %v3564_v36  ;;  %v245_v31 = vld [vmem:[%s4215_s3 + $0x18] sm:$0xff]  ;;  %v1201_v43 = vmul.f32 %v3695_v19, %v3579_v47  ;;  %v2254_v19 = vrot.slane %v3403_v1, %v3452_v21 }
 0x3f3   : > { %v1641_v55 = vmax.f32 %v3768_v37, %v3773_v54  ;;  %v3782_v35 = vsel %vm516_vm2, %v1499_v30, -inf  ;;  %v3832_v30 = vpack.c.bf16 %v245_v31, %v244_v46  ;;  %v2265_v46 = vmul.f32 %v3400_v0, %v2263_v40 }
 0x3f4   : > { %v1640_v61 = vmax.f32 %v3777_v62, %v3782_v35 }
 0x3f6   : > { %v3793_v10 = vmax.f32 %v1640_v61, %v1641_v55  ;;  %861 = vbcast.lane.b32.xlu0 %v859_v9, 256  ;;  %v1909_v55 = vmul.f32 %v1908_v14, %v3403_v1  ;;  %v1945_v61 = vpop.permute.xlu1 %1944  ;;  %v1933_v9 = vmul.f32 %v1931_v11, %v3403_v1  ;;  %v2255_v11 = vmul.f32 %v3400_v0, %v2254_v19 }
 0x3f8   : > { %v1644_v13 = vmax.f32 %v3791_v57, %v3793_v10 }
 0x3fa   : > { %868 = vbcast.lane.b32.xlu0 %v866_v59, 256 }
 0x3fe   : > { %2272 = vrot.lane.b32.xlu0 %v2267_v51, %s3322_s17 }
 0x42c   : > { %v796_v17 = vpop.permute.xlu0 %795 }
 0x42d   : > { %3262 = vrcp.f32 %v796_v17 }
 0x437   : > { %v3263_v25 = vpop.eup %3262 }
 0x438   : > { %v799_v38 = vmul.f32 %v3263_v25, %v3040_v41  ;;  %v242_v41 = vld [vmem:[%s4215_s3] sm:$0xff]  ;;  %v706_v25 = vpop.trf.xlu1 }
 0x439   : > { %v3819_v33 = vpack.c.bf16 %v243_v26, %v242_v41  ;;  %vm778_vm15 = vcmp.ge.f32.partialorder %v706_v25, 0.0 }
 0x43a   : > { %2257 = vrot.lane.b32.xlu0 %v799_v38, %s3322_s17  ;;  %v2266_v42 = vmul.f32 %v799_v38, %v799_v38 }
 0x43b   : > { %3197 = vmatpush3.bf16.msra.mxu1 %v3819_v33 }
 0x43c   : > { %3198 = vmatprep.subr.bf16.mxu1 %v3324_v12  ;;  %v1216_v41 = vpop.permute.xlu1 %1215 }
 0x43e   : > { %875 = vbcast.lane.b32.xlu0 %v873_v15, 256  ;;  %v779_v15 = vmax.f32 %v706_v25, 1e-08 }
 0x43f   : > { %3200 = vmatpush3.bf16.msra.mxu1 %v3832_v30 }
 0x440   : > { %3207 = vmatprep.subr.bf16.mxu1 %v3324_v12 }
 0x442   : > { %1219 = vrot.lane.b32.xlu0 %v1199_v58, %s3318_s10  ;;  %v780_v58 = vmin.f32 %v706_v25, -1e-08 }
 0x446   : > { %2269 = vrot.lane.b32.xlu0 %v2266_v42, %s3322_s17 }
 0x44a   : > { %1221 = vrot.lane.b32.xlu0 %v1200_v50, %s3318_s10 }
 0x44e   : > { %896 = vbcast.lane.b32.xlu0 %v894_v20, 256  ;;  %v781_v20 = vsel %vm778_vm15, %v779_v15, %v780_v58 }
 0x452   : > { %1223 = vrot.lane.b32.xlu0 %v1201_v43, %s3318_s10  ;;  %v883_v43 = vpop.permute.xlu1 %882 }
 0x456   : > { %1966 = vrot.lane.b32.xlu0 %v1909_v55, %s3318_s10 }
 0x459   : > { %v680_v59 = vpop.xlane.xlu0 %679 }
 0x45a   : > { %vm766_vm14 = vcmp.ge.f32.partialorder %v680_v59, 0.0  ;;  %v767_v51 = vmax.f32 %v680_v59, 1e-08  ;;  %v768_v17 = vmin.f32 %v680_v59, -1e-08  ;;  %1970 = vrot.lane.b32.xlu0 %v1933_v9, %s3318_s10  ;;  %v890_v9 = vpop.permute.xlu1 %889 }
 0x45c   : > { %v769_v38 = vsel %vm766_vm14, %v767_v51, %v768_v17  ;;  %v950_v17 = vmul.f32 %v3523_v7, %v890_v9 }
 0x45d   : > { %3264 = vrcp.f32 %v769_v38  ;;  %v1912_v42 = vpop.permute.xlu0 %1911 }
 0x45e   : > { %v1914_v50 = vmul.f32 %v1912_v42, %v3403_v1  ;;  %1972 = vrot.lane.b32.xlu0 %v1945_v61, %s3318_s10 }
 0x460   : > { %1968 = vrot.lane.b32.xlu1 %v1914_v50, %s3318_s10  ;;  %v959_v50 = vsel %vm249_vm0, %v950_v17, -inf }
 0x461   : > { %v1212_v26 = vpop.permute.xlu0 %1211 }
 0x462   : > { %2277 = vrot.lane.b32.xlu0 %v2255_v11, %s3318_s10  ;;  %3055 = vmatprep.mubr.msk.f32.mxu1 %vm249_vm0, %v1212_v26 }
 0x464   : > { %784 = vperm.xlu1 %3250, %v781_v20  }
 0x465   : > { %v1214_v31 = vpop.permute.xlu0 %1213 }
 0x466   : > { %3056 = vmatmul.mubr.msk.f32.gmra.mrb[4].mxu1 %vm249_vm0, %v1214_v31  ;;  %2281 = vrot.lane.b32.xlu0 %v2265_v46, %s3318_s10  ;;  %v3881_v31 = vld [vmem:[%s3392_s6 + $0x10] sm:$0xff]  ;;  %s3327_s6 = smov 40  }
 0x467   : > { %v3265_v14 = vpop.eup %3264  ;;  %3058 = vmatprep.mubr.msk.f32.mxu1 %vm249_vm0, %v1216_v41 }
 0x468   : > { %1974 = vrot.lane.b32.xlu1 %v3802_v18, %s3318_s10  ;;  %v3860_v55 = vmul.f32 %v3265_v14, %v3658_v44  ;;  %v949_v44 = vmul.f32 %v3517_v63, %v883_v43 }
 0x469   : > { %v1218_v61 = vpop.permute.xlu0 %1217 }
 0x46a   : > { %3059 = vmatmul.mubr.msk.f32.gmra.mrb[6].mxu1 %vm249_vm0, %v1218_v61  ;;  %v1721_v40 = vmul.f32 %v3860_v55, %v3403_v1 }
 0x46c   : > { %3079 = vmatmul.mubr.msk.f32.gmra.mrb[12].mxu0 %vm249_vm0, %v1721_v40 }
 0x46d   : > { %v855_v59 = vpop.permute.xlu0 %854  ;;  %3081 = vmatprep.mubr.msk.f32.mxu0 %vm3325_vm13, %v3326_v5 }
 0x46e   : > { %v945_v51 = vmul.f32 %v3488_v49, %v855_v59  ;;  %v1055_v18 = vmul.f32 %v3400_v0, %v855_v59  ;;  %v957_v49 = vsel %vm249_vm0, %v949_v44, -inf }
 0x470   : > { %v1063_v19 = vsel %vm249_vm0, %v1055_v18, -inf  ;;  %v953_v38 = vsel %vm249_vm0, %v945_v51, -inf }
 0x471   : > { %v1064_v25 = vrot.slane %v1063_v19, 4  ;;  %v862_v1 = vpop.permute.xlu0 %861  ;;  %v958_v11 = vmax.f32 %v953_v38, %v957_v49 }
 0x472   : > { %v946_v15 = vmul.f32 %v3496_v52, %v862_v1  ;;  %v1056_v58 = vmul.f32 %v3400_v0, %v862_v1 }
 0x473   : > { %v1065_v42 = vmax.f32 %v1063_v19, %v1064_v25 }
 0x474   : > { %v954_v63 = vsel %vm249_vm0, %v946_v15, -inf  ;;  %v1070_v7 = vsel %vm249_vm0, %v1056_v58, -inf }
 0x475   : > { %v1066_v41 = vrot.slane %v1065_v42, 2  ;;  %v960_v26 = vmax.f32 %v954_v63, %v959_v50  ;;  %v1071_v20 = vrot.slane %v1070_v7, 4  ;;  %v869_v46 = vpop.permute.xlu0 %868 }
 0x476   : > { %v1057_v52 = vmul.f32 %v3881_v31, %v869_v46 }
 0x477   : > { %v1067_v14 = vmax.f32 %v1065_v42, %v1066_v41  ;;  %v3884_v0 = vmax.f32 %v958_v11, %v960_v26  ;;  %v1072_v61 = vmax.f32 %v1070_v7, %v1071_v20 }
 0x478   : > { %v1077_v40 = vsel %vm249_vm0, %v1057_v52, -inf }
 0x479   : > { %v1068_v59 = vrot.slane %v1067_v14, 1  ;;  %v1073_v51 = vrot.slane %v1072_v61, 2  ;;  %v1078_v18 = vrot.slane %v1077_v40, 4  ;;  %v2273_v44 = vpop.permute.xlu0 %2272 }
 0x47a   : > { %2285 = vrot.lane.b32.xlu0 %v2273_v44, %s3318_s10 }
 0x47b   : > { %v1074_v17 = vmax.f32 %v1072_v61, %v1073_v51  ;;  %v1079_v19 = vmax.f32 %v1077_v40, %v1078_v18  ;;  %v1069_v25 = vmax.f32 %v1067_v14, %v1068_v59  ;;  %v1059_v61 = vmul.f32 %v3881_v31, %v883_v43  ;;  %v904_v51 = vpop.permute.xlu1 %903 }
 0x47c   : > { %v1060_v59 = vmul.f32 %v3881_v31, %v890_v9 }
 0x47d   : > { %v1075_v1 = vrot.slane %v1074_v17, 1  ;;  %v1080_v38 = vrot.slane %v1079_v19, 2  ;;  %v1747_v49 = vmul.f32 %v1069_v25, %v1069_v25  ;;  %v1091_v44 = vsel %vm249_vm0, %v1059_v61, -inf }
 0x47e   : > { %v1092_v43 = vrot.slane %v1091_v44, 4 }
 0x47f   : > { %v1076_v15 = vmax.f32 %v1074_v17, %v1075_v1  ;;  %v1081_v58 = vmax.f32 %v1079_v19, %v1080_v38  ;;  %v1062_v19 = vmul.f32 %v3881_v31, %v904_v51  ;;  %v1098_v38 = vsel %vm249_vm0, %v1060_v59, -inf }
 0x480   : > { %v952_v59 = vmul.f32 %v3582_v48, %v904_v51 }
 0x481   : > { %v1731_v42 = vsel %vm1730_vm4, %v1076_v15, %v1069_v25  ;;  %v1748_v50 = vmul.f32 %v1076_v15, %v1076_v15  ;;  %v1082_v63 = vrot.slane %v1081_v58, 1  ;;  %v1112_v9 = vsel %vm249_vm0, %v1062_v19, -inf }
 0x482   : > { %v947_v19 = vmul.f32 %v3501_v56, %v869_v46 }
 0x483   : > { %v1763_v7 = vsel %vm1730_vm4, %v1748_v50, %v1747_v49  ;;  %v1083_v11 = vmax.f32 %v1081_v58, %v1082_v63  ;;  %v1099_v58 = vrot.slane %v1098_v38, 4  ;;  %v1093_v50 = vmax.f32 %v1091_v44, %v1092_v43 }
 0x484   : > { %v1113_v63 = vrot.slane %v1112_v9, 4 }
 0x485   : > { %v3891_v41 = vsel %vm1732_vm5, %v1083_v11, %v1731_v42  ;;  %v1749_v26 = vmul.f32 %v1083_v11, %v1083_v11  ;;  %v1094_v61 = vrot.slane %v1093_v50, 2 }
 0x487   : > { %v3894_v20 = vsel %vm1732_vm5, %v1749_v26, %v1763_v7  ;;  %v1100_v7 = vmax.f32 %v1098_v38, %v1099_v58 }
 0x4ac   : > { %v2258_v52 = vpop.permute.xlu0 %2257 }
 0x4ad   : > { %v2260_v14 = vmul.f32 %v3881_v31, %v2258_v52 }
 0x4af   : > { %2279 = vrot.lane.b32.xlu1 %v2260_v14, %s3318_s10  ;;  %v3910_v14 = vpop.f32.mrb[10].mxu0 }
 0x4b0   : > { %v876_v40 = vpop.permute.xlu0 %875 }
 0x4b1   : > { %v1058_v18 = vmul.f32 %v3881_v31, %v876_v40  ;;  %v948_v26 = vmul.f32 %v3508_v60, %v876_v40  ;;  %v1095_v40 = vmax.f32 %v1093_v50, %v1094_v61 }
 0x4b3   : > { %v1084_v17 = vsel %vm249_vm0, %v1058_v18, -inf  ;;  %v3077_v18 = vpop.f32.mrb[11].mxu0  ;;  %v956_v44 = vsel %vm249_vm0, %v948_v26, -inf }
 0x4b4   : > { %v1085_v25 = vrot.slane %v1084_v17, 4  ;;  %v1220_v1 = vpop.permute.xlu0 %1219 }
 0x4b5   : > { %3061 = vmatprep.mubr.msk.f32.mxu1 %vm249_vm0, %v1220_v1 }
 0x4b6   : > { %v1086_v15 = vmax.f32 %v1084_v17, %v1085_v25  ;;  %v1114_v17 = vmax.f32 %v1112_v9, %v1113_v63  ;;  %v1101_v25 = vrot.slane %v1100_v7, 2 }
 0x4b8   : > { %v2270_v49 = vpop.permute.xlu0 %2269  ;;  %v1087_v42 = vrot.slane %v1086_v15, 2  ;;  %v1115_v58 = vrot.slane %v1114_v17, 2  ;;  %v1102_v63 = vmax.f32 %v1100_v7, %v1101_v25 }
 0x4b9   : > { %2283 = vrot.lane.b32.xlu1 %v2270_v49, %s3318_s10  ;;  %v955_v49 = vsel %vm249_vm0, %v947_v19, -inf }
 0x4ba   : > { %v1088_v52 = vmax.f32 %v1086_v15, %v1087_v42  ;;  %v963_v15 = vsel %vm249_vm0, %v952_v59, -inf  ;;  %v1116_v59 = vmax.f32 %v1114_v17, %v1115_v58 }
 0x4bb   : > { %v964_v56 = vmax.f32 %v956_v44, %v963_v15 }
 0x4bc   : > { %v1222_v11 = vpop.permute.xlu0 %1221  ;;  %v1089_v38 = vrot.slane %v1088_v52, 1 }
 0x4bd   : > { %3062 = vmatmul.mubr.msk.f32.gmra.mrb[8].mxu1 %vm249_vm0, %v1222_v11  ;;  %v1226_v11 = vpop.permute.xlu1 %1225 }
 0x4be   : > { %v1090_v26 = vmax.f32 %v1088_v52, %v1089_v38  ;;  %v1117_v38 = vrot.slane %v1116_v59, 1 }
 0x4c0   : > { %v897_v1 = vpop.permute.xlu0 %896  ;;  %v1735_v7 = vsel %vm1734_vm6, %v1090_v26, %v3891_v41  ;;  %v1118_v41 = vmax.f32 %v1116_v59, %v1117_v38  ;;  %v1750_v58 = vmul.f32 %v1090_v26, %v1090_v26 }
 0x4c1   : > { %v951_v43 = vmul.f32 %v3579_v47, %v897_v1  ;;  %v1061_v60 = vmul.f32 %v3881_v31, %v897_v1  ;;  %v1096_v47 = vrot.slane %v1095_v40, 1  ;;  %v1103_v1 = vrot.slane %v1102_v63, 1 }
 0x4c2   : > { %v1754_v26 = vmul.f32 %v1118_v41, %v1118_v41 }
 0x4c3   : > { %v961_v48 = vsel %vm249_vm0, %v951_v43, -inf  ;;  %v1105_v51 = vsel %vm249_vm0, %v1061_v60, -inf  ;;  %v1097_v25 = vmax.f32 %v1095_v40, %v1096_v47  ;;  %v1104_v43 = vmax.f32 %v1102_v63, %v1103_v1 }
 0x4c4   : > { %v962_v46 = vmax.f32 %v955_v49, %v961_v48  ;;  %v1106_v9 = vrot.slane %v1105_v51, 4  ;;  %v1224_v42 = vpop.permute.xlu0 %1223 }
 0x4c5   : > { %3064 = vmatprep.mubr.msk.f32.mxu1 %vm249_vm0, %v1224_v42  ;;  %v1752_v42 = vmul.f32 %v1104_v43, %v1104_v43 }
 0x4c6   : > { %v966_v50 = vmax.f32 %v962_v46, %v964_v56  ;;  %v1107_v61 = vmax.f32 %v1105_v51, %v1106_v9  ;;  %3065 = vmatmul.mubr.msk.f32.gmra.mrb[10].mxu1 %vm249_vm0, %v1226_v11  ;;  %v3293_v51 = vld [vmem:[%s3397_s9] sm:$0xff]  ;;  %s224_s9 = sand.u32 1, %s3308_s18  }
 0x4c7   : > { %3104 = vmatprep.mubr.msk.f32.mxu1 %vm3325_vm13, %v3326_v5  ;;  %s2892_s10 = sshll.u32 %s224_s9, 4 }
 0x4c8   : > { %v3926_v18 = vmax.f32 %v3884_v0, %v966_v50  ;;  %v1108_v19 = vrot.slane %v1107_v61, 2  ;;  %v1967_v52 = vpop.permute.xlu0 %1966  ;;  %v1737_v0 = vsel %vm1736_vm7, %v1097_v25, %v1735_v7  ;;  %v1770_v50 = vrot.slane %v3407_v2, 7  ;;  %s226_s18 = scalar_lea.vmem [#allocation2], %s2892_s10 }
 0x4c9   : > { %v1739_v40 = vsel %vm1738_vm8, %v1104_v43, %v1737_v0 }
 0x4ca   : > { %v1109_v44 = vmax.f32 %v1107_v61, %v1108_v19  ;;  %3105 = vmatmul.mubr.msk.f32.vlgmr.msra.gmra.mrb[12].mxu1 %vm249_vm0, %v1967_v52  ;;  %v2109_v61 = vrot.slane %v3293_v51, %v3569_v39  ;;  %v2112_v52 = vmul.f32 %v3881_v31, %v3926_v18 }
 0x4cb   : > { %3107 = vmatprep.mubr.msk.f32.mxu1 %vm3325_vm13, %v3326_v5  ;;  %3209 = vmatpush3.bf16.msra.mxu1 %v3819_v33 }
 0x4cc   : > { %v1110_v17 = vrot.slane %v1109_v44, 1  ;;  %3210 = vmatprep.subr.bf16.mxu1 %v3324_v12  ;;  %v1765_v12 = vsel %vm1734_vm6, %v1750_v58, %v3894_v20  ;;  %v1971_v56 = vpop.permute.xlu0 %1970  ;;  %v1746_v20 = vmul.f32 %v3860_v55, %v3860_v55  ;;  %v2110_v19 = vmul.f32 %v3881_v31, %v2109_v61 }
 0x4ce   : > { %v1111_v60 = vmax.f32 %v1109_v44, %v1110_v17  ;;  %v1517_v44 = vrot.slane %v3458_v24, %v3549_v29 }
 0x4cf   : > { %3212 = vmatpush3.bf16.msra.mxu1 %v3832_v30  ;;  %v1751_v30 = vmul.f32 %v1097_v25, %v1097_v25  ;;  %v2115_v25 = vrot.slane %v3418_v3, 7 }
 0x4d0   : > { %v1741_v15 = vsel %vm1740_vm9, %v1111_v60, %v1739_v40  ;;  %v1753_v46 = vmul.f32 %v1111_v60, %v1111_v60  ;;  %v1973_v47 = vpop.permute.xlu0 %1972 }
 0x4d1   : > { %v1743_v49 = vsel %vm1742_vm10, %v1118_v41, %v1741_v15  ;;  %v1766_v9 = vsel %vm1736_vm7, %v1751_v30, %v1765_v12  ;;  %v1525_v12 = vrot.slane %v3458_v24, %v3559_v34  ;;  %v1521_v30 = vrot.slane %v3458_v24, %v3554_v32 }
 0x4d2   : > { %v1969_v48 = vpop.permute.xlu1 %1968  ;;  %v1745_v33 = vmul.f32 %v3293_v51, %v1743_v49  ;;  %v1767_v63 = vsel %vm1738_vm8, %v1752_v42, %v1766_v9  ;;  %v1533_v34 = vrot.slane %v3458_v24, %v3569_v39  ;;  %v1529_v32 = vrot.slane %v3458_v24, %v3564_v36 }
 0x4d3   : > { %3108 = vmatmul.mubr.msk.f32.gmra.mrb[14].mxu1 %vm249_vm0, %v1969_v48  ;;  %v1768_v11 = vsel %vm1740_vm9, %v1753_v46, %v1767_v63  ;;  %v1547_v46 = vmul.f32 %v1525_v12, %v3454_v22  ;;  %v1546_v9 = vmul.f32 %v1521_v30, %v3454_v22 }
 0x4d4   : > { %3082 = vmatmul.mubr.msk.f32.gmra.mrb[14].mxu0 %vm249_vm0, %v1745_v33  ;;  %3110 = vmatprep.mubr.msk.f32.mxu1 %vm3325_vm13, %v3326_v5  ;;  %v1769_v55 = vsel %vm1742_vm10, %v1754_v26, %v1768_v11  ;;  %v2278_v10 = vpop.permute.xlu0 %2277  ;;  %v1505_v33 = vrot.slane %v3458_v24, %v3452_v21 }
 0x4d5   : > { %3084 = vmatprep.mubr.msk.f32.mxu0 %vm3325_vm13, %v3326_v5  ;;  %v1569_v26 = vrot.slane %v1546_v9, %v3452_v21 }
 0x4d7   : > { %3111 = vmatmul.mubr.msk.f32.gmra.mrb[16].mxu1 %vm249_vm0, %v1971_v56  ;;  %v1542_v56 = vmul.f32 %v1505_v33, %v3454_v22 }
 0x4d8   : > { %3085 = vmatmul.mubr.msk.f32.gmra.mrb[16].mxu0 %vm249_vm0, %v3418_v3  ;;  %3113 = vmatprep.mubr.msk.f32.mxu1 %vm3325_vm13, %v3326_v5 }
 0x4d9   : > { %3087 = vmatprep.mubr.msk.f32.mxu0 %vm3325_vm13, %v3326_v5  ;;  %v1553_v42 = vrot.slane %v1542_v56, %v3452_v21 }
 0x4db   : > { %3114 = vmatmul.mubr.msk.f32.gmra.mrb[18].mxu1 %vm249_vm0, %v3438_v8 }
 0x4dc   : > { %3088 = vmatmul.mubr.msk.f32.gmra.mrb[18].mxu0 %vm249_vm0, %v1746_v20  ;;  %3116 = vmatprep.mubr.msk.f32.mxu1 %vm3325_vm13, %v3326_v5  ;;  %v1573_v20 = vrot.slane %v1547_v46, %v3452_v21 }
 0x4dd   : > { %3090 = vmatprep.mubr.msk.f32.mxu0 %vm3325_vm13, %v3326_v5 }
 0x4df   : > { %3117 = vmatmul.mubr.msk.f32.gmra.mrb[20].mxu1 %vm249_vm0, %v1973_v47 }
 0x4e0   : > { %3091 = vmatmul.mubr.msk.f32.gmra.mrb[20].mxu0 %vm249_vm0, %v1769_v55  ;;  %3119 = vmatprep.mubr.msk.f32.mxu1 %vm3325_vm13, %v3326_v5 }
 0x4e1   : > { %3093 = vmatprep.mubr.msk.f32.mxu0 %vm3325_vm13, %v3326_v5 }
 0x4e2   : > { %1645 = vxpose.xlu1.b32.start.end [1/1] (short) (narrow) %v1644_v13, 8 }
 0x4e3   : > { %v785_v59 = vpop.permute.xlu1 %784 }
 0x4e4   : > { %3266 = vrcp.f32 %v785_v59  ;;  %3094 = vmatmul.mubr.msk.f32.gmra.mrb[22].mxu0 %vm249_vm0, %v1770_v50 }
 0x4e5   : > { %3133 = vmatprep.mubr.msk.f32.mxu0 %vm3325_vm13, %v3326_v5 }
 0x4e7   : > { %v1975_v1 = vpop.permute.xlu1 %1974 }
 0x4e8   : > { %3120 = vmatmul.mubr.msk.f32.gmra.mrb[22].mxu1 %vm249_vm0, %v1975_v1  ;;  %3134 = vmatmul.mubr.msk.f32.vlgmr.msra.gmra.mrb[24].mxu0 %vm249_vm0, %v2110_v19 }
 0x4e9   : > { %3122 = vmatprep.mubr.msk.f32.mxu1 %vm3325_vm13, %v3326_v5  ;;  %3136 = vmatprep.mubr.msk.f32.mxu0 %vm3325_vm13, %v3326_v5 }
 0x4ec   : > { %3123 = vmatmul.mubr.msk.f32.gmra.mrb[24].mxu1 %vm249_vm0, %v3433_v6 }
 0x4ed   : > { %3162 = vmatprep.mubr.msk.f32.mxu1 %vm3325_vm13, %v3326_v5 }
 0x4ee   : > { %v3267_v57 = vpop.eup %3266 }
 0x4ef   : > { %v788_v13 = vmul.f32 %v3267_v57, %v3750_v28  ;;  %v1549_v57 = vmul.f32 %v1533_v34, %v3454_v22 }
 0x4f0   : > { %3163 = vmatmul.mubr.msk.f32.vlgmr.msra.gmra.mrb[26].mxu1 %vm249_vm0, %v2278_v10  ;;  %v1548_v10 = vmul.f32 %v1529_v32, %v3454_v22 }
 0x4f1   : > { %v2111_v7 = vmul.f32 %v3881_v31, %v788_v13  ;;  %3165 = vmatprep.mubr.msk.f32.mxu1 %vm3325_vm13, %v3326_v5  ;;  %v2113_v28 = vmul.f32 %v788_v13, %v788_v13  ;;  %v2114_v31 = vmul.f32 %v3926_v18, %v3926_v18  ;;  %v2282_v18 = vpop.permute.xlu0 %2281 }
 0x4f3   : > { %3137 = vmatmul.mubr.msk.f32.gmra.mrb[26].mxu0 %vm249_vm0, %v2111_v7  ;;  %v1577_v7 = vrot.slane %v1548_v10, %v3452_v21 }
 0x4f4   : > { %3139 = vmatprep.mubr.msk.f32.mxu0 %vm3325_vm13, %v3326_v5 }
 0x4f7   : > { %3140 = vmatmul.mubr.msk.f32.gmra.mrb[28].mxu0 %vm249_vm0, %v2112_v52 }
 0x4f8   : > { %3142 = vmatprep.mubr.msk.f32.mxu0 %vm3325_vm13, %v3326_v5 }
 0x4fb   : > { %3143 = vmatmul.mubr.msk.f32.gmra.mrb[30].mxu0 %vm249_vm0, %v3407_v2 }
 0x4fc   : > { %3145 = vmatprep.mubr.msk.f32.mxu0 %vm3325_vm13, %v3326_v5 }
 0x4ff   : > { %3146 = vmatmul.mubr.msk.f32.gmra.mrb[32].mxu0 %vm249_vm0, %v2113_v28 }
 0x500   : > { %3148 = vmatprep.mubr.msk.f32.mxu0 %vm3325_vm13, %v3326_v5 }
 0x503   : > { %3149 = vmatmul.mubr.msk.f32.gmra.mrb[34].mxu0 %vm249_vm0, %v2114_v31 }
 0x504   : > { %3151 = vmatprep.mubr.msk.f32.mxu0 %vm3325_vm13, %v3326_v5 }
 0x507   : > { %3152 = vmatmul.mubr.msk.f32.gmra.mrb[36].mxu0 %vm249_vm0, %v2115_v25 }
 0x509   : > { %1594 = vmax.xlane.f32.xlu1 %v3686_v4  ;;  %v1509_v4 = vrot.slane %v3458_v24, %v3538_v23 }
 0x50d   : > { %1600 = vmax.xlane.f32.xlu1 %v3768_v37  ;;  %v1513_v37 = vrot.slane %v3458_v24, %v3544_v27  ;;  %v1581_v24 = vrot.slane %v1549_v57, %v3452_v21 }
 0x50f   : > { %v1544_v17 = vmul.f32 %v1513_v37, %v3454_v22 }
 0x511   : > { %1606 = vmax.xlane.f32.xlu1 %v3689_v45  ;;  %v2286_v45 = vpop.permute.xlu0 %2285  ;;  %v1561_v27 = vrot.slane %v1544_v17, %v3452_v21 }
 0x521   : > { %v2280_v2 = vpop.permute.xlu1 %2279 }
 0x522   : > { %3166 = vmatmul.mubr.msk.f32.gmra.mrb[28].mxu1 %vm249_vm0, %v2280_v2 }
 0x523   : > { %3168 = vmatprep.mubr.msk.f32.mxu1 %vm3325_vm13, %v3326_v5 }
 0x526   : > { %3169 = vmatmul.mubr.msk.f32.gmra.mrb[30].mxu1 %vm249_vm0, %v2282_v18 }
 0x527   : > { %3171 = vmatprep.mubr.msk.f32.mxu1 %vm3325_vm13, %v3326_v5 }
 0x52a   : > { %3172 = vmatmul.mubr.msk.f32.gmra.mrb[32].mxu1 %vm249_vm0, %v3433_v6  ;;  %v1543_v6 = vmul.f32 %v1509_v4, %v3454_v22 }
 0x52b   : > { %3174 = vmatprep.mubr.msk.f32.mxu1 %vm3325_vm13, %v3326_v5  ;;  %v2284_v3 = vpop.permute.xlu1 %2283 }
 0x52c   : > { %v1557_v38 = vrot.slane %v1543_v6, %v3452_v21 }
 0x52e   : > { %3175 = vmatmul.mubr.msk.f32.gmra.mrb[34].mxu1 %vm249_vm0, %v2284_v3 }
 0x52f   : > { %3177 = vmatprep.mubr.msk.f32.mxu1 %vm3325_vm13, %v3326_v5 }
 0x532   : > { %3178 = vmatmul.mubr.msk.f32.gmra.mrb[36].mxu1 %vm249_vm0, %v2286_v45 }
 0x533   : > { %3180 = vmatprep.mubr.msk.f32.mxu1 %vm3325_vm13, %v3326_v5  ;;  %v1545_v5 = vmul.f32 %v1517_v44, %v3454_v22 }
 0x536   : > { %3181 = vmatmul.mubr.msk.f32.gmra.mrb[38].mxu1 %vm249_vm0, %v3438_v8  ;;  %v1565_v8 = vrot.slane %v1545_v5, %v3452_v21 }
 0x539   : > { %v3057_v23 = vpop.f32.mrb[4].mxu1 }
 0x53a   : > { %v1583_v0 = vmul.f32 %v3057_v23, %v1557_v38  ;;  %v1373_v43 = vpop.f32.mrb[5].mxu1 }
 0x53b   : > { %v1582_v63 = vmul.f32 %v1553_v42, %v1373_v43 }
 0x53c   : > { %v1617_v60 = vsel %vm516_vm2, %v1583_v0, -inf }
 0x53d   : > { %1618 = vmax.xlane.f32.xlu1 %v1617_v60  ;;  %v3060_v41 = vpop.f32.mrb[6].mxu1  ;;  %v4077_v59 = vsel %vm516_vm2, %v1582_v63, -inf }
 0x53e   : > { %v1383_v40 = vpop.f32.mrb[7].mxu1  ;;  %v1585_v49 = vmul.f32 %v3060_v41, %v1565_v8 }
 0x53f   : > { %v1584_v15 = vmul.f32 %v1561_v27, %v1383_v40  ;;  %v4055_v29 = vpop.f32.mrb[12].mxu0 }
 0x540   : > { %v3080_v58 = vpop.f32.mrb[13].mxu0  ;;  %v1623_v51 = vsel %vm516_vm2, %v1585_v49, -inf }
 0x541   : > { %v1620_v48 = vsel %vm516_vm2, %v1584_v15, -inf }
 0x542   : > { %1621 = vmax.xlane.f32.xlu1 %v1620_v48 }
 0x546   : > { %1624 = vmax.xlane.f32.xlu1 %v1623_v51 }
 0x590   : > { %v3063_v11 = vpop.f32.mrb[8].mxu1 }
 0x591   : > { %v1587_v47 = vmul.f32 %v3063_v11, %v1573_v20  ;;  %v1393_v55 = vpop.f32.mrb[9].mxu1 }
 0x592   : > { %v1586_v50 = vmul.f32 %v1569_v26, %v1393_v55 }
 0x593   : > { %v1629_v61 = vsel %vm516_vm2, %v1587_v47, -inf }
 0x594   : > { %v4080_v19 = vsel %vm516_vm2, %v1586_v50, -inf  ;;  %1630 = vmax.xlane.f32.xlu1 %v1629_v61  ;;  %v1678_v1 = vmax.f32 %v1617_v60, %v1629_v61 }
 0x595   : > { %v1677_v39 = vmax.f32 %v4077_v59, %v4080_v19 }
 0x597   : > { %v1681_v13 = vmax.f32 %v1677_v39, %v1678_v1 }
 0x599   : > { %v3066_v36 = vpop.f32.mrb[10].mxu1 }
 0x59a   : > { %v1589_v52 = vmul.f32 %v3066_v36, %v1581_v24  ;;  %v1403_v28 = vpop.f32.mrb[11].mxu1 }
 0x59b   : > { %v1588_v31 = vmul.f32 %v1577_v7, %v1403_v28 }
 0x59c   : > { %v1635_v25 = vsel %vm516_vm2, %v1589_v52, -inf }
 0x59d   : > { %v4090_v2 = vsel %vm516_vm2, %v1588_v31, -inf  ;;  %1636 = vmax.xlane.f32.xlu1 %v1635_v25  ;;  %v1680_v18 = vmax.f32 %v1623_v51, %v1635_v25  ;;  %v4092_v3 = vpop.f32.mrb[12].mxu1 }
 0x59e   : > { %v1679_v22 = vmax.f32 %v1620_v48, %v4090_v2  ;;  %v3106_v4 = vpop.f32.mrb[13].mxu1 }
 0x5a0   : > { %v1682_v45 = vmax.f32 %v1679_v22, %v1680_v18 }
 0x5a2   : > { %v1683_v6 = vmax.f32 %v1681_v13, %v1682_v45 }
 0x5a4   : > { %1684 = vxpose.xlu0.b32.start.end [1/1] (short) (narrow) %v1683_v6, 8 }
 0x5a6   : > { %v2061_v37 = vpop.f32.mrb[14].mxu1 }
 0x5a7   : > { %v1865_v44 = vpop.f32.mrb[14].mxu0  ;;  %v3109_v38 = vpop.f32.mrb[15].mxu1 }
 0x5a8   : > { %v3083_v23 = vpop.f32.mrb[15].mxu0 }
 0x5aa   : > { %v2066_v17 = vpop.f32.mrb[16].mxu1 }
 0x5ab   : > { %v3112_v0 = vpop.f32.mrb[17].mxu1  ;;  %v1870_v43 = vpop.f32.mrb[16].mxu0 }
 0x5ac   : > { %v3086_v5 = vpop.f32.mrb[17].mxu0 }
 0x5ae   : > { %v2071_v60 = vpop.f32.mrb[18].mxu1 }
 0x5af   : > { %v1875_v41 = vpop.f32.mrb[18].mxu0  ;;  %v3115_v27 = vpop.f32.mrb[19].mxu1 }
 0x5b0   : > { %v1897_v40 = vmul.f32 %v1875_v41, %v1870_v43  ;;  %v3089_v8 = vpop.f32.mrb[19].mxu0 }
 0x5b2   : > { %v1898_v15 = vmax.f32 %v1897_v40, 1e-16  ;;  %v2076_v58 = vpop.f32.mrb[20].mxu1 }
 0x5b3   : > { %v2098_v49 = vmul.f32 %v2076_v58, %v2071_v60  ;;  %v1880_v48 = vpop.f32.mrb[20].mxu0  ;;  %v3118_v51 = vpop.f32.mrb[21].mxu1 }
 0x5b4   : > { %3268 = vrsqrt.f32 %v1898_v15  ;;  %v1901_v33 = vmul.f32 %v1880_v48, %v1870_v43  ;;  %v3092_v12 = vpop.f32.mrb[21].mxu0 }
 0x5b5   : > { %v2099_v30 = vmax.f32 %v2098_v49, 1e-16 }
 0x5b6   : > { %v1902_v56 = vmax.f32 %v1901_v33, 1e-16 }
 0x5b7   : > { %3270 = vrsqrt.f32 %v2099_v30  ;;  %v1885_v46 = vpop.f32.mrb[22].mxu0 }
 0x5b8   : > { %3272 = vrsqrt.f32 %v1902_v56  ;;  %v1892_v9 = vrot.slane %v1885_v46, %v3452_v21  ;;  %v3095_v42 = vpop.f32.mrb[23].mxu0 }
 0x5b9   : > { %v1661_v42 = vpop.trf.xlu1 }
 0x5ba   : > { %v1893_v20 = vmul.f32 %v1892_v9, %v1870_v43 }
 0x5bb   : > { %v2081_v63 = vpop.f32.mrb[22].mxu1  ;;  %v2201_v11 = vpop.f32.mrb[24].mxu0 }
 0x5bc   : > { %v2102_v26 = vmul.f32 %v2081_v63, %v2071_v60  ;;  %v3121_v34 = vpop.f32.mrb[23].mxu1  ;;  %v1894_v47 = vmax.f32 %v1893_v20, 1e-16  ;;  %v3135_v55 = vpop.f32.mrb[25].mxu0 }
 0x5be   : > { %v3269_v32 = vpop.eup %3268  ;;  %v2103_v50 = vmax.f32 %v2102_v26, 1e-16  ;;  %3274 = vrsqrt.f32 %v1894_v47 }
 0x5bf   : > { %v2086_v61 = vpop.f32.mrb[24].mxu1  ;;  %v4097_v1 = vmul.f32 %v3269_v32, %v4055_v29 }
 0x5c0   : > { %3276 = vrsqrt.f32 %v2103_v50  ;;  %v2093_v57 = vrot.slane %v2086_v61, %v3452_v21  ;;  %v3124_v39 = vpop.f32.mrb[25].mxu1 }
 0x5c1   : > { %v3271_v10 = vpop.eup %3270 }
 0x5c2   : > { %v3273_v13 = vpop.eup %3272  ;;  %v2094_v24 = vmul.f32 %v2093_v57, %v2071_v60  ;;  %v4100_v36 = vmul.f32 %v3271_v10, %v2061_v37 }
 0x5c3   : > { %v4102_v7 = vpop.f32.mrb[26].mxu1  ;;  %v4104_v52 = vmul.f32 %v3273_v13, %v1865_v44 }
 0x5c4   : > { %v2095_v28 = vmax.f32 %v2094_v24, 1e-16  ;;  %v3164_v31 = vpop.f32.mrb[27].mxu1 }
 0x5c6   : > { %3278 = vrsqrt.f32 %v2095_v28  ;;  %v2206_v25 = vpop.f32.mrb[26].mxu0 }
 0x5c7   : > { %v3138_v18 = vpop.f32.mrb[27].mxu0 }
 0x5c8   : > { %v3275_v29 = vpop.eup %3274 }
 0x5c9   : > { %v4107_v22 = vmul.f32 %v3275_v29, %v3910_v14 }
 0x5ca   : > { %v3277_v4 = vpop.eup %3276  ;;  %v2211_v45 = vpop.f32.mrb[28].mxu0 }
 0x5cb   : > { %v3141_v6 = vpop.f32.mrb[29].mxu0  ;;  %v4109_v38 = vmul.f32 %v3277_v4, %v2066_v17 }
 0x5ce   : > { %v2216_v37 = vpop.f32.mrb[30].mxu0 }
 0x5cf   : > { %v3144_v23 = vpop.f32.mrb[31].mxu0 }
 0x5d0   : > { %v3279_v0 = vpop.eup %3278 }
 0x5d1   : > { %1591 = vmax.xlane.f32.xlu0 %v3764_v53  ;;  %v2097_v44 = vmul.f32 %v3279_v0, %v4092_v3  ;;  %v4228_v0 = vlaneseq }
 0x5d2   : > { %v2221_v43 = vpop.f32.mrb[32].mxu0 }
 0x5d3   : > { %v2243_v5 = vmul.f32 %v2221_v43, %v2216_v37  ;;  %v3147_v60 = vpop.f32.mrb[33].mxu0 }
 0x5d5   : > { %v2244_v41 = vmax.f32 %v2243_v5, 1e-16  ;;  %1597 = vmax.xlane.f32.xlu0 %v3777_v62 }
 0x5d6   : > { %v2226_v14 = vpop.f32.mrb[34].mxu0 }
 0x5d7   : > { %3280 = vrsqrt.f32 %v2244_v41  ;;  %v2247_v27 = vmul.f32 %v2226_v14, %v2216_v37  ;;  %v3150_v40 = vpop.f32.mrb[35].mxu0 }
 0x5d9   : > { %v2248_v8 = vmax.f32 %v2247_v27, 1e-16  ;;  %1603 = vmax.xlane.f32.xlu0 %v3757_v16 }
 0x5da   : > { %v2231_v17 = vpop.f32.mrb[36].mxu0 }
 0x5db   : > { %3282 = vrsqrt.f32 %v2248_v8  ;;  %v2238_v15 = vrot.slane %v2231_v17, %v3452_v21  ;;  %v3153_v53 = vpop.f32.mrb[37].mxu0 }
 0x5dd   : > { %1615 = vmax.xlane.f32.xlu0 %v4077_v59  ;;  %v2239_v3 = vmul.f32 %v2238_v15, %v2216_v37 }
 0x5df   : > { %v2240_v58 = vmax.f32 %v2239_v3, 1e-16 }
 0x5e1   : > { %v3281_v49 = vpop.eup %3280  ;;  %1609 = vmax.xlane.f32.xlu0 %v3782_v35  ;;  %3284 = vrsqrt.f32 %v2240_v58 }
 0x5e2   : > { %v2246_v62 = vmul.f32 %v3281_v49, %v2206_v25  ;;  %v1595_v25 = vpop.xlane.xlu1 %1594 }
 0x5e5   : > { %v3283_v48 = vpop.eup %3282  ;;  %1612 = vmax.xlane.f32.xlu0 %v3773_v54 }
 0x5e6   : > { %v2250_v51 = vmul.f32 %v3283_v48, %v2211_v45  ;;  %v1601_v29 = vpop.xlane.xlu1 %1600 }
 0x5e9   : > { %1627 = vmax.xlane.f32.xlu0 %v4080_v19 }
 0x5ea   : > { %v1607_v45 = vpop.xlane.xlu1 %1606 }
 0x5eb   : > { %v3285_v16 = vpop.eup %3284 }
 0x5ec   : > { %v4120_v33 = vmul.f32 %v3285_v16, %v2201_v11 }
 0x5ed   : > { %1633 = vmax.xlane.f32.xlu0 %v4090_v2 }
 0x5ee   : > { %v1619_v6 = vpop.xlane.xlu1 %1618 }
 0x5f2   : > { %v1622_v37 = vpop.xlane.xlu1 %1621 }
 0x5f5   : > { %v2368_v12 = vpop.f32.mrb[28].mxu1 }
 0x5f6   : > { %v3167_v59 = vpop.f32.mrb[29].mxu1  ;;  %v1625_v43 = vpop.xlane.xlu1 %1624 }
 0x5f9   : > { %v2373_v30 = vpop.f32.mrb[30].mxu1 }
 0x5fa   : > { %v3170_v56 = vpop.f32.mrb[31].mxu1 }
 0x5fd   : > { %v2378_v46 = vpop.f32.mrb[32].mxu1 }
 0x5fe   : > { %v3173_v9 = vpop.f32.mrb[33].mxu1 }
 0x601   : > { %v2383_v35 = vpop.f32.mrb[34].mxu1 }
 0x602   : > { %v2405_v20 = vmul.f32 %v2383_v35, %v2378_v46  ;;  %v3176_v63 = vpop.f32.mrb[35].mxu1 }
 0x603   : > { %2546 = vrot.lane.b32.xlu0 %v1661_v42, %s3319_s11 }
 0x604   : > { %v2406_v54 = vmax.f32 %v2405_v20, 1e-16 }
 0x605   : > { %v2388_v26 = vpop.f32.mrb[36].mxu1 }
 0x606   : > { %3286 = vrsqrt.f32 %v2406_v54  ;;  %v2409_v19 = vmul.f32 %v2388_v26, %v2378_v46  ;;  %v3179_v11 = vpop.f32.mrb[37].mxu1 }
 0x607   : > { %2465 = vrot.lane.b32.xlu0 %v4097_v1, %s3319_s11 }
 0x608   : > { %v2410_v2 = vmax.f32 %v2409_v19, 1e-16 }
 0x609   : > { %v2393_v34 = vpop.f32.mrb[38].mxu1 }
 0x60a   : > { %3288 = vrsqrt.f32 %v2410_v2  ;;  %v2400_v47 = vrot.slane %v2393_v34, %v3452_v21  ;;  %v3182_v55 = vpop.f32.mrb[39].mxu1 }
 0x60b   : > { %2469 = vrot.lane.b32.xlu0 %v4104_v52, %s3319_s11 }
 0x60c   : > { %v2401_v32 = vmul.f32 %v2400_v47, %v2378_v46 }
 0x60e   : > { %v2402_v50 = vmax.f32 %v2401_v32, 1e-16 }
 0x60f   : > { %2473 = vrot.lane.b32.xlu0 %v2097_v44, %s3322_s17  ;;  %v2422_v44 = vand.u32 127, %v4228_v0 }
 0x610   : > { %v3287_v61 = vpop.eup %3286  ;;  %3290 = vrsqrt.f32 %v2402_v50 }
 0x611   : > { %v2408_v57 = vmul.f32 %v3287_v61, %v2368_v12  ;;  %v2423_v5 = vadd.s32 4294967288, %v2422_v44  ;;  %v2484_v27 = vadd.s32 4294967256, %v2422_v44 }
 0x614   : > { %v3289_v39 = vpop.eup %3288 }
 0x615   : > { %v2412_v10 = vmul.f32 %v3289_v39, %v2373_v30 }
 0x617   : > { %2570 = vrot.lane.b32.xlu0 %v2412_v10, %s3327_s6 }
 0x61a   : > { %v3291_v1 = vpop.eup %3290 }
 0x61b   : > { %2530 = vrot.lane.b32.xlu0 %v4109_v38, %s3327_s6  ;;  %v2404_v13 = vmul.f32 %v3291_v1, %v4102_v7 }
 0x621   : > { %v1631_v41 = vpop.xlane.xlu1 %1630 }
 0x624   : > { %v1700_v24 = vpop.trf.xlu0 }
 0x625   : > { %2562 = vrot.lane.b32.xlu1 %v1700_v24, %s3327_s6 }
 0x629   : > { %2550 = vrot.lane.b32.xlu1 %v2246_v62, %s3319_s11 }
 0x62a   : > { %v1637_v40 = vpop.xlane.xlu1 %1636 }
 0x62d   : > { %2554 = vrot.lane.b32.xlu1 %v2250_v51, %s3319_s11  ;;  %s2950_s11 = sshll.u32 (%p3383_p4), %s3371_s21, 1 }
 0x62e   : > { %s2754_s27 = scalar_lea.vmem (%p3383_p4), %s4217_s5, %s2950_s11 }
 0x631   : > { %2566 = vrot.lane.b32.xlu1 %v2408_v57, %s3327_s6 }
 0x635   : > { %2558 = vrot.lane.b32.xlu1 %v2404_v13, %s3322_s17 }
 0x639   : > { %2526 = vrot.lane.b32.xlu1 %v4100_v36, %s3327_s6  ;;  %v4229_v36 = vld [vmem:[#allocation3_spill] sm:$0xff] }
 0x63a   : > { %v2426_v14 = vsub.s32 %v2423_v5, %v4229_v36  ;;  %v2487_v3 = vsub.s32 %v2484_v27, %v4229_v36 }
 0x63c   : > { %v2431_v53 = vrot.slane %v1595_v25, %v2426_v14  ;;  %v2439_v16 = vrot.slane %v1601_v29, %v2426_v14  ;;  %v2492_v12 = vrot.slane %v1619_v6, %v2487_v3  ;;  %v2496_v9 = vrot.slane %v1622_v37, %v2487_v3 }
 0x63d   : > { %v2447_v20 = vrot.slane %v1607_v45, %v2426_v14  ;;  %v2500_v11 = vrot.slane %v1625_v43, %v2487_v3  ;;  %v2508_v39 = vrot.slane %v1631_v41, %v2487_v3  ;;  %v4230_v43 = vld [vmem:[#allocation4_spill] sm:$0xff] }
 0x65e   : > { %v1592_v52 = vpop.xlane.xlu0 %1591 }
 0x65f   : > { %v2427_v8 = vrot.slane %v1592_v52, %v2426_v14 }
 0x661   : > { %v2456_v49 = vsel %vm1730_vm4, %v2431_v53, %v2427_v8 }
 0x662   : > { %v1598_v28 = vpop.xlane.xlu0 %1597 }
 0x663   : > { %v2435_v15 = vrot.slane %v1598_v28, %v2426_v14 }
 0x665   : > { %v2457_v48 = vsel %vm1732_vm5, %v2435_v15, %v2456_v49 }
 0x666   : > { %v1604_v31 = vpop.xlane.xlu0 %1603  ;;  %v2458_v56 = vsel %vm1734_vm6, %v2439_v16, %v2457_v48 }
 0x667   : > { %v2443_v51 = vrot.slane %v1604_v31, %v2426_v14 }
 0x669   : > { %v2459_v35 = vsel %vm1736_vm7, %v2443_v51, %v2458_v56 }
 0x66a   : > { %v1616_v18 = vpop.xlane.xlu0 %1615  ;;  %v2460_v2 = vsel %vm1738_vm8, %v2447_v20, %v2459_v35 }
 0x66b   : > { %v2488_v62 = vrot.slane %v1616_v18, %v2487_v3 }
 0x66d   : > { %v2517_v46 = vsel %vm1730_vm4, %v2492_v12, %v2488_v62  ;;  %vm2539_vm4 = vcmask 326656  }
 0x66e   : > { %v1610_v4 = vpop.xlane.xlu0 %1609  ;;  %v2518_v54 = vsel %vm1732_vm5, %v2496_v9, %v2517_v46  ;;  %vm2541_vm5 = vcmask 392192  }
 0x66f   : > { %v2451_v42 = vrot.slane %v1610_v4, %v2426_v14  ;;  %v2519_v32 = vsel %vm1734_vm6, %v2500_v11, %v2518_v54  ;;  %v2516_v4 = vrot.slane %v1637_v40, %v2487_v3  ;;  %vm2543_vm6 = vcmask 457728  }
 0x671   : > { %v2461_v47 = vsel %vm1740_vm9, %v2451_v42, %v2460_v2 }
 0x672   : > { %v1613_v7 = vpop.xlane.xlu0 %1612 }
 0x673   : > { %v2455_v63 = vrot.slane %v1613_v7, %v2426_v14 }
 0x675   : > { %v2462_v55 = vsel %vm1742_vm10, %v2455_v63, %v2461_v47 }
 0x676   : > { %v1628_v38 = vpop.xlane.xlu0 %1627  ;;  %v2533_v1 = vsel %vm516_vm2, %v4107_v22, %v2462_v55 }
 0x677   : > { %v2504_v26 = vrot.slane %v1628_v38, %v2487_v3 }
 0x679   : > { %v2520_v50 = vsel %vm1736_vm7, %v2504_v26, %v2519_v32 }
 0x67a   : > { %v1634_v23 = vpop.xlane.xlu0 %1633  ;;  %v2521_v13 = vsel %vm1738_vm8, %v2508_v39, %v2520_v50 }
 0x67b   : > { %v2512_v61 = vrot.slane %v1634_v23, %v2487_v3 }
 0x67d   : > { %v2522_v31 = vsel %vm1740_vm9, %v2512_v61, %v2521_v13 }
 0x67e   : > { %v2547_v60 = vpop.permute.xlu0 %2546  ;;  %v2523_v7 = vsel %vm1742_vm10, %v2516_v4, %v2522_v31 }
 0x67f   : > { %v2573_v10 = vsel %vm516_vm2, %v4120_v33, %v2547_v60  ;;  %vm2737_vm2 = vcmask 517120  }
 0x682   : > { %v2466_v17 = vpop.permute.xlu0 %2465 }
 0x683   : > { %v2535_v24 = vsel %vm2534_vm1, %v2533_v1, %v2466_v17 }
 0x686   : > { %v2470_v59 = vpop.permute.xlu0 %2469 }
 0x687   : > { %v2537_v25 = vsel %vm2536_vm3, %v2535_v24, %v2470_v59 }
 0x68a   : > { %v2474_v34 = vpop.permute.xlu0 %2473 }
 0x68b   : > { %v2538_v45 = vsel %vm249_vm0, %v2537_v25, %v2474_v34 }
 0x68c   : > { %v2540_v38 = vsel %vm2539_vm4, %v2538_v45, %v2523_v7 }
 0x68e   : > { %v2571_v52 = vpop.permute.xlu0 %2570 }
 0x692   : > { %v2531_v0 = vpop.permute.xlu0 %2530 }
 0x697   : > { %v2563_v58 = vpop.permute.xlu1 %2562 }
 0x69b   : > { %v2551_v30 = vpop.permute.xlu1 %2550 }
 0x69c   : > { %v2574_v28 = vsel %vm2534_vm1, %v2573_v10, %v2551_v30 }
 0x69f   : > { %v2555_v19 = vpop.permute.xlu1 %2554 }
 0x6a0   : > { %v2575_v18 = vsel %vm2536_vm3, %v2574_v28, %v2555_v19 }
 0x6a3   : > { %v2567_v57 = vpop.permute.xlu1 %2566 }
 0x6a7   : > { %v2559_v29 = vpop.permute.xlu1 %2558 }
 0x6a8   : > { %v2576_v33 = vsel %vm249_vm0, %v2575_v18, %v2559_v29  ;;  %vm2728_vm0 = vcmask 1040384  }
 0x6a9   : > { %v2577_v22 = vsel %vm2539_vm4, %v2576_v33, %v2563_v58 }
 0x6aa   : > { %v2578_v6 = vsel %vm2541_vm5, %v2577_v22, %v2567_v57 }
 0x6ab   : > { %v2579_v37 = vsel %vm2543_vm6, %v2578_v6, %v2571_v52  ;;  %v2527_v23 = vpop.permute.xlu1 %2526 }
 0x6ac   : > { %v2639_v44 = vcombine.high %v2579_v37, %v2579_v37  ;;  %v2646_v5 = vrot.slane %v2579_v37, %v4230_v43  ;;  %v2542_v60 = vsel %vm2541_vm5, %v2540_v38, %v2527_v23 }
 0x6ad   : > { %v2544_v41 = vsel %vm2543_vm6, %v2542_v60, %v2531_v0 }
 0x6ae   : > { %v2653_v36 = vrot.slane %v2639_v44, %v4230_v43  ;;  %v2654_v14 = vcombine.high %v2646_v5, %v2646_v5  ;;  %v2662_v27 = vrot.slane %v2646_v5, %v4230_v43  ;;  %v2581_v40 = vcombine.high %v2544_v41, %v2544_v41 }
 0x6af   : > { %v2588_v8 = vrot.slane %v2544_v41, %v4230_v43 }
 0x6b0   : > { %v2655_v17 = vcombine.high %v2653_v36, %v2653_v36  ;;  %v2669_v15 = vrot.slane %v2653_v36, %v4230_v43  ;;  %v2676_v53 = vrot.slane %v2654_v14, %v4230_v43  ;;  %v2684_v3 = vcombine.high %v2662_v27, %v2662_v27 }
 0x6b1   : > { %v2691_v58 = vrot.slane %v2662_v27, %v3452_v21  ;;  %v2595_v49 = vrot.slane %v2581_v40, %v4230_v43  ;;  %v2596_v62 = vcombine.high %v2588_v8, %v2588_v8  ;;  %v2604_v48 = vrot.slane %v2588_v8, %v4230_v43 }
 0x6b2   : > { %v2683_v51 = vrot.slane %v2655_v17, %v4230_v43  ;;  %v2685_v16 = vcombine.high %v2669_v15, %v2669_v15  ;;  %v2686_v12 = vcombine.high %v2676_v53, %v2676_v53  ;;  %v2695_v59 = vrot.slane %v2676_v53, %v3452_v21 }
 0x6b3   : > { %v2699_v30 = vrot.slane %v2684_v3, %v3452_v21  ;;  %v2707_v56 = vrot.slane %v2669_v15, %v3452_v21  ;;  %v2597_v46 = vcombine.high %v2595_v49, %v2595_v49  ;;  %v2611_v9 = vrot.slane %v2595_v49, %v4230_v43 }
 0x6b4   : > { %v2687_v35 = vcombine.high %v2683_v51, %v2683_v51  ;;  %v2703_v42 = vrot.slane %v2686_v12, %v3452_v21  ;;  %v2711_v20 = vrot.slane %v2683_v51, %v3452_v21  ;;  %v2715_v63 = vrot.slane %v2685_v16, %v3452_v21 }
 0x6b5   : > { %v2618_v54 = vrot.slane %v2596_v62, %v4230_v43  ;;  %v2625_v26 = vrot.slane %v2597_v46, %v4230_v43  ;;  %v2626_v19 = vcombine.high %v2604_v48, %v2604_v48  ;;  %v2627_v11 = vcombine.high %v2611_v9, %v2611_v9  ;;  %2752 = sbr.rel (!%p3383_p4) target bundleno = 1733 (0x6c5), region = 44 }
 0x6b6   : > { %v2719_v2 = vrot.slane %v2687_v35, %v3452_v21  ;;  %v2729_v34 = vsel %vm2728_vm0, %v2604_v48, %v2691_v58  ;;  %v2733_v47 = vsel %vm2728_vm0, %v2611_v9, %v2707_v56 }
 0x6b7   : > { %v2628_v55 = vcombine.high %v2618_v54, %v2618_v54  ;;  %v2629_v32 = vcombine.high %v2625_v26, %v2625_v26  ;;  %v2730_v50 = vsel %vm2728_vm0, %v2618_v54, %v2695_v59  ;;  %v2731_v61 = vsel %vm2728_vm0, %v2626_v19, %v2699_v30  ;;  %2738 = vst.msk [vmem:[%s226_s18] sm:$0x3] %vm2737_vm2, %v2729_v34 }
 0x6b8   : > { %2742 = vst.msk [vmem:[%s226_s18 + $0x8] sm:$0x3] %vm2737_vm2, %v2733_v47  ;;  %v2734_v57 = vsel %vm2728_vm0, %v2625_v26, %v2711_v20  ;;  %v2735_v39 = vsel %vm2728_vm0, %v2627_v11, %v2715_v63  ;;  %2739 = vst.msk [vmem:[%s226_s18 + $0x2] sm:$0x3] %vm2737_vm2, %v2730_v50 }
 0x6b9   : > { %2740 = vst.msk [vmem:[%s226_s18 + $0x4] sm:$0x3] %vm2737_vm2, %v2731_v61  ;;  %v2732_v21 = vsel %vm2728_vm0, %v2628_v55, %v2703_v42  ;;  %v2736_v10 = vsel %vm2728_vm0, %v2629_v32, %v2719_v2  ;;  %2743 = vst.msk [vmem:[%s226_s18 + $0xa] sm:$0x3] %vm2737_vm2, %v2734_v57 }
 0x6ba   : > { %2744 = vst.msk [vmem:[%s226_s18 + $0xc] sm:$0x3] %vm2737_vm2, %v2735_v39  ;;  %2741 = vst.msk [vmem:[%s226_s18 + $0x6] sm:$0x3] %vm2737_vm2, %v2732_v21 }
 0x6bb   : > { %2745 = vst.msk [vmem:[%s226_s18 + $0xe] sm:$0x3] %vm2737_vm2, %v2736_v10 }
 0x6be   : > { %v2770_v1 = vld [vmem:[%s226_s18] sm:$0x3] }
 0x6bf   : > { %v2772_v13 = vld [vmem:[%s226_s18 + $0x2] sm:$0x3]  ;;  %v2778_v28 = vld [vmem:[%s226_s18 + $0x8] sm:$0x3]  ;;  %2771 = vst [vmem:[%s2754_s27] sm:$0x3] %v2770_v1 }
 0x6c0   : > { %v2774_v24 = vld [vmem:[%s226_s18 + $0x4] sm:$0x3]  ;;  %2773 = vst [vmem:[%s2754_s27 + $0x4] sm:$0x3] %v2772_v13  ;;  %2779 = vst [vmem:[%s2754_s27 + $0x10] sm:$0x3] %v2778_v28 }
 0x6c1   : > { %v2776_v52 = vld [vmem:[%s226_s18 + $0x6] sm:$0x3]  ;;  %2775 = vst [vmem:[%s2754_s27 + $0x8] sm:$0x3] %v2774_v24  ;;  %v2780_v31 = vld [vmem:[%s226_s18 + $0xa] sm:$0x3] }
 0x6c2   : > { %2777 = vst [vmem:[%s2754_s27 + $0xc] sm:$0x3] %v2776_v52  ;;  %v2782_v25 = vld [vmem:[%s226_s18 + $0xc] sm:$0x3]  ;;  %v2784_v18 = vld [vmem:[%s226_s18 + $0xe] sm:$0x3] }
 0x6c3   : > { %2781 = vst [vmem:[%s2754_s27 + $0x14] sm:$0x3] %v2780_v31  ;;  %2783 = vst [vmem:[%s2754_s27 + $0x18] sm:$0x3] %v2782_v25 }
 0x6c4   : > { %2785 = vst [vmem:[%s2754_s27 + $0x1c] sm:$0x3] %v2784_v18 }
 0x6c5 PF: > { %p12_p8 = scmp.ge.s32.totalorder %s3373_s22, 4   ;;  %s4231_s18 = smov %s3312_s19 }
 0x6c6   : > { %s4232_s19 = smov %s3381_s25  ;;  %s4233_s20 = smov %s3373_s22 }
 0x6c7   :  { %14 = sbr.rel (!%p12_p8) target bundleno = 2 (0x2), region = 114 }

</bundles_post_ra>
